<compile_context>
chip_gen: v5e
topology: v5e:2x2
jax: 0.10.0
libtpu: 0.0.40
codegen_flags: <defaults>
</compile_context>

<pallas_src>
import functools

import jax
import jax.numpy as jnp
from jax.experimental import pallas as pl
from jax.experimental.pallas import tpu as pltpu

LEAKY_SLOPE = 0.2   # assumed slope for ConvNormAct's 'leakyrelu'
KSIZE = 5
STRIDE = 2
PAD = 2
LANE = 128
ACC_VREG_BUDGET = 24 * 1024   # ~24 f32 vregs for the (M, Cout_pad) accumulator


def _round_up(x, m):
    return (x + m - 1) // m * m


def _pick_row_tile(ho, wo, cout_pad):
    """Largest divisor of Ho such that the (row_tile*Wo, Cout_pad) f32
    accumulator stays within ~24 vregs: bigger M -> better MXU occupancy and
    fewer grid steps, without forcing vreg spills."""
    max_m = max(wo, ACC_VREG_BUDGET // max(cout_pad, 1))
    best = 1
    for rt in range(1, ho + 1):
        if ho % rt == 0 and rt * wo <= max_m:
            best = rt
    return best


def _vmem_limit(*buffer_bytes):
    need = 2 * sum(buffer_bytes)          # double-buffered by the pipeline
    return int(min(128 << 20, max(need + (4 << 20), 16 << 20)))


def _make_tap_conv_kernel(row_tile, wo, cout_pad, ksize=KSIZE):
    """Fused conv(k=5,s=2,p=2) + bias + LeakyReLU for one (batch, row-tile) block.

    Refs (batch dim squeezed):
      p_ref: (4, Ho+2, Wo+2, Cin)     bf16 parity planes, full image (resident)
      w_ref: (25, Cin, Cout_pad)      bf16 weights, tap-major (resident)
      b_ref: (1, Cout_pad)            f32 bias
      o_ref: (row_tile, Wo, Cout_pad) bf16 output block
    """
    m = row_tile * wo

    def kernel(p_ref, w_ref, b_ref, o_ref):
        row0 = pl.multiple_of(pl.program_id(1) * row_tile, row_tile)
        acc = None
        # TODO(synk): on v6e/v7x, pair taps that share a parity plane and row
        # along K (K=2*Cin) to halve the MXU issue count.
        for kh in range(ksize):              # static, unrolled: 25 dots / step
            a, dh = kh % 2, kh // 2
            for kw in range(ksize):
                pb, dw = kw % 2, kw // 2
                slab = p_ref[2 * a + pb, pl.ds(row0 + dh, row_tile),
                             pl.ds(dw, wo), :]
                part = jnp.dot(slab.reshape(m, -1), w_ref[kh * ksize + kw],
                               preferred_element_type=jnp.float32)
                acc = part if acc is None else acc + part
        acc = acc + b_ref[...]                           # single f32 bias add
        acc = jnp.maximum(acc, LEAKY_SLOPE * acc)        # LeakyReLU
        o_ref[...] = acc.reshape(row_tile, wo, cout_pad).astype(o_ref.dtype)

    return kernel


def _make_im2col_kernel(row_tile, wo, cout_pad):
    """Layer-1 kernel: one (M, Kpad) x (Kpad, Cout_pad) matmul + bias + LeakyReLU."""
    m = row_tile * wo

    def kernel(x_ref, w_ref, b_ref, o_ref):
        acc = jnp.dot(x_ref[...].reshape(m, -1), w_ref[...],
                      preferred_element_type=jnp.float32)
        acc = acc + b_ref[...]
        acc = jnp.maximum(acc, LEAKY_SLOPE * acc)
        o_ref[...] = acc.reshape(row_tile, wo, cout_pad).astype(o_ref.dtype)

    return kernel


def conv_first_layer(x_nhwc, w_flat, b_prep):
    """Layer 1 (Cin=3): XLA-side im2col (K=75 padded to 128) + fused matmul kernel."""
    N, H, W, Cin = x_nhwc.shape
    Ho = (H + 2 * PAD - KSIZE) // STRIDE + 1
    Wo = (W + 2 * PAD - KSIZE) // STRIDE + 1
    k_pad, cout_pad = w_flat.shape

    # im2col: lhs[n, ho, wo, (kh*5+kw)*Cin + c] = x_padded[n, 2*ho+kh, 2*wo+kw, c]
    xp = jnp.pad(x_nhwc, ((0, 0), (PAD, PAD), (PAD, PAD), (0, 0)))
    cols = []
    for kh in range(KSIZE):
        for kw in range(KSIZE):
            cols.append(xp[:, kh:kh + 2 * Ho - 1:2, kw:kw + 2 * Wo - 1:2, :])
    lhs = jnp.concatenate(cols, axis=-1)                       # (N, Ho, Wo, 75)
    lhs = jnp.pad(lhs, ((0, 0), (0, 0), (0, 0),
                        (0, k_pad - KSIZE * KSIZE * Cin)))

    row_tile = _pick_row_tile(Ho, Wo, cout_pad)
    kernel = _make_im2col_kernel(row_tile, Wo, cout_pad)
    vmem = _vmem_limit(row_tile * Wo * k_pad * 2,        # lhs block (bf16)
                       k_pad * cout_pad * 2,             # weights (bf16)
                       cout_pad * 4,                     # bias (f32)
                       row_tile * Wo * cout_pad * 2)     # out block (bf16)

    return pl.pallas_call(
        kernel,
        out_shape=jax.ShapeDtypeStruct((N, Ho, Wo, cout_pad), jnp.bfloat16),
        grid=(N, Ho // row_tile),
        in_specs=[
            pl.BlockSpec((None, row_tile, Wo, k_pad), lambda n, t: (n, t, 0, 0)),
            pl.BlockSpec((k_pad, cout_pad), lambda n, t: (0, 0)),
            pl.BlockSpec((1, cout_pad), lambda n, t: (0, 0)),
        ],
        out_specs=pl.BlockSpec((None, row_tile, Wo, cout_pad),
                               lambda n, t: (n, t, 0, 0)),
        compiler_params=pltpu.CompilerParams(
            dimension_semantics=("parallel", "parallel"),
            vmem_limit_bytes=vmem),
    )(lhs, w_flat, b_prep)


def conv_norm_act(x_nhwc, w_prep, b_prep):
    """Spectral-norm conv (k=5, s=2, p=2) + LeakyReLU; Cin already lane-padded.

    x_nhwc: (N, H, W, Cin) bf16;  w_prep: (25, Cin, Cout_pad) bf16;
    b_prep: (1, Cout_pad) f32.  Returns (N, Ho, Wo, Cout_pad) bf16.
    """
    N, H, W, Cin = x_nhwc.shape
    Ho = (H + 2 * PAD - KSIZE) // STRIDE + 1
    Wo = (W + 2 * PAD - KSIZE) // STRIDE + 1
    cout_pad = w_prep.shape[-1]

    # Parity-plane restructuring (XLA side, ~1x input traffic):
    # planes[n, 2*a+b, i, j, c] = x_padded[n, 2*i+a, 2*j+b, c], so every stride-2
    # conv tap is a contiguous unit-stride window inside one plane.
    # TODO(synk): emit this layout directly from the previous layer's store to
    # remove one activation read+write per layer (matters most on v5e).
    Hp = 2 * (Ho + 2)
    Wp = 2 * (Wo + 2)
    xp = jnp.pad(x_nhwc,
                 ((0, 0), (PAD, Hp - H - PAD), (PAD, Wp - W - PAD), (0, 0)))
    planes = jnp.transpose(
        xp.reshape(N, Ho + 2, 2, Wo + 2, 2, Cin), (0, 2, 4, 1, 3, 5)
    ).reshape(N, 4, Ho + 2, Wo + 2, Cin)

    row_tile = _pick_row_tile(Ho, Wo, cout_pad)
    kernel = _make_tap_conv_kernel(row_tile, Wo, cout_pad)
    vmem = _vmem_limit(4 * (Ho + 2) * (Wo + 2) * Cin * 2,    # planes (bf16)
                       KSIZE * KSIZE * Cin * cout_pad * 2,   # weights (bf16)
                       cout_pad * 4,                         # bias (f32)
                       row_tile * Wo * cout_pad * 2)         # out block (bf16)

    # TODO(synk): for very large images (esp. v7x's 64 MiB VMEM), halo-tile the
    # planes over output rows (manual make_async_copy with a 2-row halo) instead
    # of keeping the whole image block resident per batch element.
    return pl.pallas_call(
        kernel,
        out_shape=jax.ShapeDtypeStruct((N, Ho, Wo, cout_pad), jnp.bfloat16),
        grid=(N, Ho // row_tile),
        in_specs=[
            pl.BlockSpec((None, 4, Ho + 2, Wo + 2, Cin),
                         lambda n, t: (n, 0, 0, 0, 0)),
            pl.BlockSpec(w_prep.shape, lambda n, t: (0, 0, 0)),
            pl.BlockSpec(b_prep.shape, lambda n, t: (0, 0)),
        ],
        out_specs=pl.BlockSpec((None, row_tile, Wo, cout_pad),
                               lambda n, t: (n, t, 0, 0)),
        compiler_params=pltpu.CompilerParams(
            dimension_semantics=("parallel", "parallel"),
            vmem_limit_bytes=vmem),
    )(planes, w_prep, b_prep)


def spectral_normalize(weight):
    # TODO(synk): PyTorch spectral_norm uses one power-iteration step per
    # forward with persistent u/v; here we use the exact (converged) sigma.
    cout = weight.shape[0]
    sigma = jnp.linalg.norm(weight.reshape(cout, -1), ord=2)
    return weight / sigma


def init_params(key, base_n_channels=8):
    chans = [3, base_n_channels, 2 * base_n_channels, 2 * base_n_channels,
             4 * base_n_channels, 8 * base_n_channels]
    params = []
    for i in range(5):
        cin, cout = chans[i], chans[i + 1]
        key, kw, kb = jax.random.split(key, 3)
        fan_in = cin * KSIZE * KSIZE
        w = jax.random.normal(kw, (cout, cin, KSIZE, KSIZE), jnp.float32)
        w = w * (2.0 / fan_in) ** 0.5
        b = jax.random.normal(kb, (cout,), jnp.float32) * 0.01
        params.append((w, b))
    return params


def prepare_params(params, in_channels=3):
    """One-time weight prep (hoisted out of the forward path): spectral norm,
    tap-major layout, zero-pad channels to lane width, cast to bf16.
    Layer 0 gets the im2col layout (K*K*Cin padded to 128, Cout_pad)."""
    prepared = []
    cin_pad = in_channels   # network input is not channel-padded
    cout = in_channels
    for i, (w, b) in enumerate(params):
        cout, cin, k, _ = w.shape
        w = spectral_normalize(w)
        cout_pad = _round_up(cout, LANE)
        bf = jnp.pad(b, (0, cout_pad - cout)).reshape(1, cout_pad)
        if i == 0:
            kdim = k * k * cin
            wf = jnp.transpose(w, (2, 3, 1, 0)).reshape(kdim, cout)
            wf = jnp.pad(wf, ((0, _round_up(kdim, LANE) - kdim),
                              (0, cout_pad - cout)))
        else:
            wf = jnp.transpose(w, (2, 3, 1, 0)).reshape(k * k, cin, cout)
            wf = jnp.pad(wf, ((0, 0), (0, cin_pad - cin), (0, cout_pad - cout)))
        prepared.append((wf.astype(jnp.bfloat16), bf.astype(jnp.float32)))
        cin_pad = cout_pad   # padded activation channels feed the next layer
    return tuple(prepared), cout


@functools.partial(jax.jit, static_argnums=2)
def patch_discriminator(x_nchw, prepared, final_channels):
    x = jnp.transpose(x_nchw, (0, 2, 3, 1)).astype(jnp.bfloat16)  # NCHW -> NHWC
    # TODO(synk): fuse the spatially tiny tail layers (Ho*Wo <= 64) into a
    # single pallas_call with VMEM-resident intermediates to remove per-call
    # launch and HBM round-trip overhead.
    for i, (w_prep, b_prep) in enumerate(prepared):
        if i == 0:
            x = conv_first_layer(x, w_prep, b_prep)
        else:
            x = conv_norm_act(x, w_prep, b_prep)
    x = x[..., :final_channels].astype(jnp.float32)   # drop lane padding
    return jnp.transpose(x, (0, 3, 1, 2))             # back to NCHW


if __name__ == "__main__":
    key = jax.random.PRNGKey(0)
    kx, kp = jax.random.split(key)
    x = jax.random.normal(kx, (2, 3, 16, 16), jnp.float32)   # NCHW input
    params = init_params(kp, base_n_channels=8)              # small demo size
    prepared, final_channels = prepare_params(params)
    out = patch_discriminator(x, prepared, final_channels)
    jax.block_until_ready(out)
    # 16 -> 8 -> 4 -> 2 -> 1 -> 1 spatially; final channels = 8 * base = 64
    assert out.shape == (2, 64, 1, 1), out.shape
    print("KERNEL_OK")
</pallas_src>

<mosaic_0001>
module attributes {stable_mosaic.version = 11 : i64} {
  func.func @kernel(%arg0: i32, %arg1: i32, %arg2: memref<1x8x8x128xbf16, #tpu.memory_space<vmem>>, %arg3: memref<128x128xbf16, #tpu.memory_space<vmem>>, %arg4: memref<1x128xf32, #tpu.memory_space<vmem>>, %arg5: memref<1x8x8x128xbf16, #tpu.memory_space<vmem>>) attributes {dimension_semantics = [#tpu.dimension_semantics<parallel>, #tpu.dimension_semantics<parallel>], iteration_bounds = array<i64: 2, 1>, scalar_prefetch = 0 : i64, scratch_operands = 0 : i64, tpu.core_type = #tpu.core_type<tc>, window_params = [{transform_indices = @transform_0, window_bounds = array<i64: 1, 8, 8, 128>}, {pipeline_mode = #tpu.pipeline_mode<synchronous>, transform_indices = @transform_1, window_bounds = array<i64: 128, 128>}, {pipeline_mode = #tpu.pipeline_mode<synchronous>, transform_indices = @transform_2, window_bounds = array<i64: 1, 128>}, {transform_indices = @transform_3, window_bounds = array<i64: 1, 8, 8, 128>}]} {
    %c0 = arith.constant 0 : index
    %c0_0 = arith.constant 0 : index
    %c0_1 = arith.constant 0 : index
    %c0_2 = arith.constant 0 : index
    %0 = vector.load %arg2[%c0, %c0_0, %c0_1, %c0_2] : memref<1x8x8x128xbf16, #tpu.memory_space<vmem>>, vector<1x8x8x128xbf16>
    %1 = vector.shape_cast %0 : vector<1x8x8x128xbf16> to vector<8x8x128xbf16>
    %2 = vector.shape_cast %1 : vector<8x8x128xbf16> to vector<64x128xbf16>
    %c0_3 = arith.constant 0 : index
    %c0_4 = arith.constant 0 : index
    %3 = vector.load %arg3[%c0_3, %c0_4] : memref<128x128xbf16, #tpu.memory_space<vmem>>, vector<128x128xbf16>
    %cst = arith.constant dense<0.000000e+00> : vector<64x128xf32>
    %4 = tpu.matmul %2, %3, %cst {dimension_numbers = #tpu.dot_dimension_numbers<[1], [0], [0], [1], [0, 0, 1, 1], [], []>} : vector<64x128xbf16>, vector<128x128xbf16>, vector<64x128xf32> -> vector<64x128xf32>
    %c0_5 = arith.constant 0 : index
    %c0_6 = arith.constant 0 : index
    %5 = vector.load %arg4[%c0_5, %c0_6] : memref<1x128xf32, #tpu.memory_space<vmem>>, vector<1x128xf32>
    %6 = vector.broadcast %5 : vector<1x128xf32> to vector<64x128xf32>
    %7 = arith.addf %4, %6 : vector<64x128xf32>
    %cst_7 = arith.constant 2.000000e-01 : f32
    %8 = vector.broadcast %cst_7 : f32 to vector<64x128xf32>
    %9 = arith.mulf %8, %7 : vector<64x128xf32>
    %10 = arith.maximumf %7, %9 : vector<64x128xf32>
    %11 = vector.shape_cast %10 : vector<64x128xf32> to vector<8x8x128xf32>
    %12 = arith.truncf %11 : vector<8x8x128xf32> to vector<8x8x128xbf16>
    %c0_8 = arith.constant 0 : index
    %c0_9 = arith.constant 0 : index
    %c0_10 = arith.constant 0 : index
    %c0_11 = arith.constant 0 : index
    %13 = vector.load %arg5[%c0_8, %c0_9, %c0_10, %c0_11] : memref<1x8x8x128xbf16, #tpu.memory_space<vmem>>, vector<1x8x8x128xbf16>
    %14 = vector.shape_cast %13 : vector<1x8x8x128xbf16> to vector<8x8x128xbf16>
    %15 = vector.shape_cast %12 : vector<8x8x128xbf16> to vector<1x8x8x128xbf16>
    tpu.vector_store %arg5[%c0_8, %c0_9, %c0_10, %c0_11], %15 {strides = array<i32>} : memref<1x8x8x128xbf16, #tpu.memory_space<vmem>>, vector<1x8x8x128xbf16>,
    return
  }
  func.func @transform_0(%arg0: i32, %arg1: i32) -> (i32, i32, i32, i32) {
    %c0_i32 = arith.constant 0 : i32
    %c0_i32_0 = arith.constant 0 : i32
    %c0_i32_1 = arith.constant 0 : i32
    return %arg0, %arg1, %c0_i32, %c0_i32_0 : i32, i32, i32, i32
  }
  func.func @transform_1(%arg0: i32, %arg1: i32) -> (i32, i32) {
    %c0_i32 = arith.constant 0 : i32
    %c0_i32_0 = arith.constant 0 : i32
    %c0_i32_1 = arith.constant 0 : i32
    return %c0_i32, %c0_i32_0 : i32, i32
  }
  func.func @transform_2(%arg0: i32, %arg1: i32) -> (i32, i32) {
    %c0_i32 = arith.constant 0 : i32
    %c0_i32_0 = arith.constant 0 : i32
    %c0_i32_1 = arith.constant 0 : i32
    return %c0_i32, %c0_i32_0 : i32, i32
  }
  func.func @transform_3(%arg0: i32, %arg1: i32) -> (i32, i32, i32, i32) {
    %c0_i32 = arith.constant 0 : i32
    %c0_i32_0 = arith.constant 0 : i32
    %c0_i32_1 = arith.constant 0 : i32
    return %arg0, %arg1, %c0_i32, %c0_i32_0 : i32, i32, i32, i32
  }
}

module attributes {stable_mosaic.version = 11 : i64} {
  func.func @kernel(%arg0: i32, %arg1: i32, %arg2: memref<1x4x6x6x128xbf16, #tpu.memory_space<vmem>>, %arg3: memref<25x128x128xbf16, #tpu.memory_space<vmem>>, %arg4: memref<1x128xf32, #tpu.memory_space<vmem>>, %arg5: memref<1x4x4x128xbf16, #tpu.memory_space<vmem>>) attributes {dimension_semantics = [#tpu.dimension_semantics<parallel>, #tpu.dimension_semantics<parallel>], iteration_bounds = array<i64: 2, 1>, scalar_prefetch = 0 : i64, scratch_operands = 0 : i64, tpu.core_type = #tpu.core_type<tc>, window_params = [{transform_indices = @transform_0, window_bounds = array<i64: 1, 4, 6, 6, 128>}, {pipeline_mode = #tpu.pipeline_mode<synchronous>, transform_indices = @transform_1, window_bounds = array<i64: 25, 128, 128>}, {pipeline_mode = #tpu.pipeline_mode<synchronous>, transform_indices = @transform_2, window_bounds = array<i64: 1, 128>}, {transform_indices = @transform_3, window_bounds = array<i64: 1, 4, 4, 128>}]} {
    %c4_i32 = arith.constant 4 : i32
    %0 = arith.muli %arg1, %c4_i32 : i32
    %1 = tpu.assume_multiple %0, 4 : i32
    %c0_i32 = arith.constant 0 : i32
    %2 = arith.addi %1, %c0_i32 : i32
    %c0 = arith.constant 0 : index
    %c0_0 = arith.constant 0 : index
    %3 = arith.index_cast %2 : i32 to index
    %c0_1 = arith.constant 0 : index
    %c0_2 = arith.constant 0 : index
    %4 = vector.load %arg2[%c0, %c0_0, %3, %c0_1, %c0_2] : memref<1x4x6x6x128xbf16, #tpu.memory_space<vmem>>, vector<1x1x4x4x128xbf16>
    %5 = vector.shape_cast %4 : vector<1x1x4x4x128xbf16> to vector<4x4x128xbf16>
    %6 = vector.shape_cast %5 : vector<4x4x128xbf16> to vector<16x128xbf16>
    %c0_3 = arith.constant 0 : index
    %c0_4 = arith.constant 0 : index
    %c0_5 = arith.constant 0 : index
    %7 = vector.load %arg3[%c0_3, %c0_4, %c0_5] : memref<25x128x128xbf16, #tpu.memory_space<vmem>>, vector<1x128x128xbf16>
    %8 = vector.shape_cast %7 : vector<1x128x128xbf16> to vector<128x128xbf16>
    %cst = arith.constant dense<0.000000e+00> : vector<16x128xf32>
    %9 = tpu.matmul %6, %8, %cst {dimension_numbers = #tpu.dot_dimension_numbers<[1], [0], [0], [1], [0, 0, 1, 1], [], []>} : vector<16x128xbf16>, vector<128x128xbf16>, vector<16x128xf32> -> vector<16x128xf32>
    %c0_i32_6 = arith.constant 0 : i32
    %10 = arith.addi %1, %c0_i32_6 : i32
    %c0_7 = arith.constant 0 : index
    %c1 = arith.constant 1 : index
    %11 = arith.index_cast %10 : i32 to index
    %c0_8 = arith.constant 0 : index
    %c0_9 = arith.constant 0 : index
    %12 = vector.load %arg2[%c0_7, %c1, %11, %c0_8, %c0_9] : memref<1x4x6x6x128xbf16, #tpu.memory_space<vmem>>, vector<1x1x4x4x128xbf16>
    %13 = vector.shape_cast %12 : vector<1x1x4x4x128xbf16> to vector<4x4x128xbf16>
    %14 = vector.shape_cast %13 : vector<4x4x128xbf16> to vector<16x128xbf16>
    %c1_10 = arith.constant 1 : index
    %c0_11 = arith.constant 0 : index
    %c0_12 = arith.constant 0 : index
    %15 = vector.load %arg3[%c1_10, %c0_11, %c0_12] : memref<25x128x128xbf16, #tpu.memory_space<vmem>>, vector<1x128x128xbf16>
    %16 = vector.shape_cast %15 : vector<1x128x128xbf16> to vector<128x128xbf16>
    %cst_13 = arith.constant dense<0.000000e+00> : vector<16x128xf32>
    %17 = tpu.matmul %14, %16, %cst_13 {dimension_numbers = #tpu.dot_dimension_numbers<[1], [0], [0], [1], [0, 0, 1, 1], [], []>} : vector<16x128xbf16>, vector<128x128xbf16>, vector<16x128xf32> -> vector<16x128xf32>
    %18 = arith.addf %9, %17 : vector<16x128xf32>
    %c0_i32_14 = arith.constant 0 : i32
    %19 = arith.addi %1, %c0_i32_14 : i32
    %c0_15 = arith.constant 0 : index
    %c0_16 = arith.constant 0 : index
    %20 = arith.index_cast %19 : i32 to index
    %c1_17 = arith.constant 1 : index
    %c0_18 = arith.constant 0 : index
    %21 = vector.load %arg2[%c0_15, %c0_16, %20, %c1_17, %c0_18] : memref<1x4x6x6x128xbf16, #tpu.memory_space<vmem>>, vector<1x1x4x4x128xbf16>
    %22 = vector.shape_cast %21 : vector<1x1x4x4x128xbf16> to vector<4x4x128xbf16>
    %23 = vector.shape_cast %22 : vector<4x4x128xbf16> to vector<16x128xbf16>
    %c2 = arith.constant 2 : index
    %c0_19 = arith.constant 0 : index
    %c0_20 = arith.constant 0 : index
    %24 = vector.load %arg3[%c2, %c0_19, %c0_20] : memref<25x128x128xbf16, #tpu.memory_space<vmem>>, vector<1x128x128xbf16>
    %25 = vector.shape_cast %24 : vector<1x128x128xbf16> to vector<128x128xbf16>
    %cst_21 = arith.constant dense<0.000000e+00> : vector<16x128xf32>
    %26 = tpu.matmul %23, %25, %cst_21 {dimension_numbers = #tpu.dot_dimension_numbers<[1], [0], [0], [1], [0, 0, 1, 1], [], []>} : vector<16x128xbf16>, vector<128x128xbf16>, vector<16x128xf32> -> vector<16x128xf32>
    %27 = arith.addf %18, %26 : vector<16x128xf32>
    %c0_i32_22 = arith.constant 0 : i32
    %28 = arith.addi %1, %c0_i32_22 : i32
    %c0_23 = arith.constant 0 : index
    %c1_24 = arith.constant 1 : index
    %29 = arith.index_cast %28 : i32 to index
    %c1_25 = arith.constant 1 : index
    %c0_26 = arith.constant 0 : index
    %30 = vector.load %arg2[%c0_23, %c1_24, %29, %c1_25, %c0_26] : memref<1x4x6x6x128xbf16, #tpu.memory_space<vmem>>, vector<1x1x4x4x128xbf16>
    %31 = vector.shape_cast %30 : vector<1x1x4x4x128xbf16> to vector<4x4x128xbf16>
    %32 = vector.shape_cast %31 : vector<4x4x128xbf16> to vector<16x128xbf16>
    %c3 = arith.constant 3 : index
    %c0_27 = arith.constant 0 : index
    %c0_28 = arith.constant 0 : index
    %33 = vector.load %arg3[%c3, %c0_27, %c0_28] : memref<25x128x128xbf16, #tpu.memory_space<vmem>>, vector<1x128x128xbf16>
    %34 = vector.shape_cast %33 : vector<1x128x128xbf16> to vector<128x128xbf16>
    %cst_29 = arith.constant dense<0.000000e+00> : vector<16x128xf32>
    %35 = tpu.matmul %32, %34, %cst_29 {dimension_numbers = #tpu.dot_dimension_numbers<[1], [0], [0], [1], [0, 0, 1, 1], [], []>} : vector<16x128xbf16>, vector<128x128xbf16>, vector<16x128xf32> -> vector<16x128xf32>
    %36 = arith.addf %27, %35 : vector<16x128xf32>
    %c0_i32_30 = arith.constant 0 : i32
    %37 = arith.addi %1, %c0_i32_30 : i32
    %c0_31 = arith.constant 0 : index
    %c0_32 = arith.constant 0 : index
    %38 = arith.index_cast %37 : i32 to index
    %c2_33 = arith.constant 2 : index
    %c0_34 = arith.constant 0 : index
    %39 = vector.load %arg2[%c0_31, %c0_32, %38, %c2_33, %c0_34] : memref<1x4x6x6x128xbf16, #tpu.memory_space<vmem>>, vector<1x1x4x4x128xbf16>
    %40 = vector.shape_cast %39 : vector<1x1x4x4x128xbf16> to vector<4x4x128xbf16>
    %41 = vector.shape_cast %40 : vector<4x4x128xbf16> to vector<16x128xbf16>
    %c4 = arith.constant 4 : index
    %c0_35 = arith.constant 0 : index
    %c0_36 = arith.constant 0 : index
    %42 = vector.load %arg3[%c4, %c0_35, %c0_36] : memref<25x128x128xbf16, #tpu.memory_space<vmem>>, vector<1x128x128xbf16>
    %43 = vector.shape_cast %42 : vector<1x128x128xbf16> to vector<128x128xbf16>
    %cst_37 = arith.constant dense<0.000000e+00> : vector<16x128xf32>
    %44 = tpu.matmul %41, %43, %cst_37 {dimension_numbers = #tpu.dot_dimension_numbers<[1], [0], [0], [1], [0, 0, 1, 1], [], []>} : vector<16x128xbf16>, vector<128x128xbf16>, vector<16x128xf32> -> vector<16x128xf32>
    %45 = arith.addf %36, %44 : vector<16x128xf32>
    %c0_i32_38 = arith.constant 0 : i32
    %46 = arith.addi %1, %c0_i32_38 : i32
    %c0_39 = arith.constant 0 : index
    %c2_40 = arith.constant 2 : index
    %47 = arith.index_cast %46 : i32 to index
    %c0_41 = arith.constant 0 : index
    %c0_42 = arith.constant 0 : index
    %48 = vector.load %arg2[%c0_39, %c2_40, %47, %c0_41, %c0_42] : memref<1x4x6x6x128xbf16, #tpu.memory_space<vmem>>, vector<1x1x4x4x128xbf16>
    %49 = vector.shape_cast %48 : vector<1x1x4x4x128xbf16> to vector<4x4x128xbf16>
    %50 = vector.shape_cast %49 : vector<4x4x128xbf16> to vector<16x128xbf16>
    %c5 = arith.constant 5 : index
    %c0_43 = arith.constant 0 : index
    %c0_44 = arith.constant 0 : index
    %51 = vector.load %arg3[%c5, %c0_43, %c0_44] : memref<25x128x128xbf16, #tpu.memory_space<vmem>>, vector<1x128x128xbf16>
    %52 = vector.shape_cast %51 : vector<1x128x128xbf16> to vector<128x128xbf16>
    %cst_45 = arith.constant dense<0.000000e+00> : vector<16x128xf32>
    %53 = tpu.matmul %50, %52, %cst_45 {dimension_numbers = #tpu.dot_dimension_numbers<[1], [0], [0], [1], [0, 0, 1, 1], [], []>} : vector<16x128xbf16>, vector<128x128xbf16>, vector<16x128xf32> -> vector<16x128xf32>
    %54 = arith.addf %45, %53 : vector<16x128xf32>
    %c0_i32_46 = arith.constant 0 : i32
    %55 = arith.addi %1, %c0_i32_46 : i32
    %c0_47 = arith.constant 0 : index
    %c3_48 = arith.constant 3 : index
    %56 = arith.index_cast %55 : i32 to index
    %c0_49 = arith.constant 0 : index
    %c0_50 = arith.constant 0 : index
    %57 = vector.load %arg2[%c0_47, %c3_48, %56, %c0_49, %c0_50] : memref<1x4x6x6x128xbf16, #tpu.memory_space<vmem>>, vector<1x1x4x4x128xbf16>
    %58 = vector.shape_cast %57 : vector<1x1x4x4x128xbf16> to vector<4x4x128xbf16>
    %59 = vector.shape_cast %58 : vector<4x4x128xbf16> to vector<16x128xbf16>
    %c6 = arith.constant 6 : index
    %c0_51 = arith.constant 0 : index
    %c0_52 = arith.constant 0 : index
    %60 = vector.load %arg3[%c6, %c0_51, %c0_52] : memref<25x128x128xbf16, #tpu.memory_space<vmem>>, vector<1x128x128xbf16>
    %61 = vector.shape_cast %60 : vector<1x128x128xbf16> to vector<128x128xbf16>
    %cst_53 = arith.constant dense<0.000000e+00> : vector<16x128xf32>
    %62 = tpu.matmul %59, %61, %cst_53 {dimension_numbers = #tpu.dot_dimension_numbers<[1], [0], [0], [1], [0, 0, 1, 1], [], []>} : vector<16x128xbf16>, vector<128x128xbf16>, vector<16x128xf32> -> vector<16x128xf32>
    %63 = arith.addf %54, %62 : vector<16x128xf32>
    %c0_i32_54 = arith.constant 0 : i32
    %64 = arith.addi %1, %c0_i32_54 : i32
    %c0_55 = arith.constant 0 : index
    %c2_56 = arith.constant 2 : index
    %65 = arith.index_cast %64 : i32 to index
    %c1_57 = arith.constant 1 : index
    %c0_58 = arith.constant 0 : index
    %66 = vector.load %arg2[%c0_55, %c2_56, %65, %c1_57, %c0_58] : memref<1x4x6x6x128xbf16, #tpu.memory_space<vmem>>, vector<1x1x4x4x128xbf16>
    %67 = vector.shape_cast %66 : vector<1x1x4x4x128xbf16> to vector<4x4x128xbf16>
    %68 = vector.shape_cast %67 : vector<4x4x128xbf16> to vector<16x128xbf16>
    %c7 = arith.constant 7 : index
    %c0_59 = arith.constant 0 : index
    %c0_60 = arith.constant 0 : index
    %69 = vector.load %arg3[%c7, %c0_59, %c0_60] : memref<25x128x128xbf16, #tpu.memory_space<vmem>>, vector<1x128x128xbf16>
    %70 = vector.shape_cast %69 : vector<1x128x128xbf16> to vector<128x128xbf16>
    %cst_61 = arith.constant dense<0.000000e+00> : vector<16x128xf32>
    %71 = tpu.matmul %68, %70, %cst_61 {dimension_numbers = #tpu.dot_dimension_numbers<[1], [0], [0], [1], [0, 0, 1, 1], [], []>} : vector<16x128xbf16>, vector<128x128xbf16>, vector<16x128xf32> -> vector<16x128xf32>
    %72 = arith.addf %63, %71 : vector<16x128xf32>
    %c0_i32_62 = arith.constant 0 : i32
    %73 = arith.addi %1, %c0_i32_62 : i32
    %c0_63 = arith.constant 0 : index
    %c3_64 = arith.constant 3 : index
    %74 = arith.index_cast %73 : i32 to index
    %c1_65 = arith.constant 1 : index
    %c0_66 = arith.constant 0 : index
    %75 = vector.load %arg2[%c0_63, %c3_64, %74, %c1_65, %c0_66] : memref<1x4x6x6x128xbf16, #tpu.memory_space<vmem>>, vector<1x1x4x4x128xbf16>
    %76 = vector.shape_cast %75 : vector<1x1x4x4x128xbf16> to vector<4x4x128xbf16>
    %77 = vector.shape_cast %76 : vector<4x4x128xbf16> to vector<16x128xbf16>
    %c8 = arith.constant 8 : index
    %c0_67 = arith.constant 0 : index
    %c0_68 = arith.constant 0 : index
    %78 = vector.load %arg3[%c8, %c0_67, %c0_68] : memref<25x128x128xbf16, #tpu.memory_space<vmem>>, vector<1x128x128xbf16>
    %79 = vector.shape_cast %78 : vector<1x128x128xbf16> to vector<128x128xbf16>
    %cst_69 = arith.constant dense<0.000000e+00> : vector<16x128xf32>
    %80 = tpu.matmul %77, %79, %cst_69 {dimension_numbers = #tpu.dot_dimension_numbers<[1], [0], [0], [1], [0, 0, 1, 1], [], []>} : vector<16x128xbf16>, vector<128x128xbf16>, vector<16x128xf32> -> vector<16x128xf32>
    %81 = arith.addf %72, %80 : vector<16x128xf32>
    %c0_i32_70 = arith.constant 0 : i32
    %82 = arith.addi %1, %c0_i32_70 : i32
    %c0_71 = arith.constant 0 : index
    %c2_72 = arith.constant 2 : index
    %83 = arith.index_cast %82 : i32 to index
    %c2_73 = arith.constant 2 : index
    %c0_74 = arith.constant 0 : index
    %84 = vector.load %arg2[%c0_71, %c2_72, %83, %c2_73, %c0_74] : memref<1x4x6x6x128xbf16, #tpu.memory_space<vmem>>, vector<1x1x4x4x128xbf16>
    %85 = vector.shape_cast %84 : vector<1x1x4x4x128xbf16> to vector<4x4x128xbf16>
    %86 = vector.shape_cast %85 : vector<4x4x128xbf16> to vector<16x128xbf16>
    %c9 = arith.constant 9 : index
    %c0_75 = arith.constant 0 : index
    %c0_76 = arith.constant 0 : index
    %87 = vector.load %arg3[%c9, %c0_75, %c0_76] : memref<25x128x128xbf16, #tpu.memory_space<vmem>>, vector<1x128x128xbf16>
    %88 = vector.shape_cast %87 : vector<1x128x128xbf16> to vector<128x128xbf16>
    %cst_77 = arith.constant dense<0.000000e+00> : vector<16x128xf32>
    %89 = tpu.matmul %86, %88, %cst_77 {dimension_numbers = #tpu.dot_dimension_numbers<[1], [0], [0], [1], [0, 0, 1, 1], [], []>} : vector<16x128xbf16>, vector<128x128xbf16>, vector<16x128xf32> -> vector<16x128xf32>
    %90 = arith.addf %81, %89 : vector<16x128xf32>
    %c1_i32 = arith.constant 1 : i32
    %91 = arith.addi %1, %c1_i32 : i32
    %c0_78 = arith.constant 0 : index
    %c0_79 = arith.constant 0 : index
    %92 = arith.index_cast %91 : i32 to index
    %c0_80 = arith.constant 0 : index
    %c0_81 = arith.constant 0 : index
    %93 = vector.load %arg2[%c0_78, %c0_79, %92, %c0_80, %c0_81] : memref<1x4x6x6x128xbf16, #tpu.memory_space<vmem>>, vector<1x1x4x4x128xbf16>
    %94 = vector.shape_cast %93 : vector<1x1x4x4x128xbf16> to vector<4x4x128xbf16>
    %95 = vector.shape_cast %94 : vector<4x4x128xbf16> to vector<16x128xbf16>
    %c10 = arith.constant 10 : index
    %c0_82 = arith.constant 0 : index
    %c0_83 = arith.constant 0 : index
    %96 = vector.load %arg3[%c10, %c0_82, %c0_83] : memref<25x128x128xbf16, #tpu.memory_space<vmem>>, vector<1x128x128xbf16>
    %97 = vector.shape_cast %96 : vector<1x128x128xbf16> to vector<128x128xbf16>
    %cst_84 = arith.constant dense<0.000000e+00> : vector<16x128xf32>
    %98 = tpu.matmul %95, %97, %cst_84 {dimension_numbers = #tpu.dot_dimension_numbers<[1], [0], [0], [1], [0, 0, 1, 1], [], []>} : vector<16x128xbf16>, vector<128x128xbf16>, vector<16x128xf32> -> vector<16x128xf32>
    %99 = arith.addf %90, %98 : vector<16x128xf32>
    %c1_i32_85 = arith.constant 1 : i32
    %100 = arith.addi %1, %c1_i32_85 : i32
    %c0_86 = arith.constant 0 : index
    %c1_87 = arith.constant 1 : index
    %101 = arith.index_cast %100 : i32 to index
    %c0_88 = arith.constant 0 : index
    %c0_89 = arith.constant 0 : index
    %102 = vector.load %arg2[%c0_86, %c1_87, %101, %c0_88, %c0_89] : memref<1x4x6x6x128xbf16, #tpu.memory_space<vmem>>, vector<1x1x4x4x128xbf16>
    %103 = vector.shape_cast %102 : vector<1x1x4x4x128xbf16> to vector<4x4x128xbf16>
    %104 = vector.shape_cast %103 : vector<4x4x128xbf16> to vector<16x128xbf16>
    %c11 = arith.constant 11 : index
    %c0_90 = arith.constant 0 : index
    %c0_91 = arith.constant 0 : index
    %105 = vector.load %arg3[%c11, %c0_90, %c0_91] : memref<25x128x128xbf16, #tpu.memory_space<vmem>>, vector<1x128x128xbf16>
    %106 = vector.shape_cast %105 : vector<1x128x128xbf16> to vector<128x128xbf16>
    %cst_92 = arith.constant dense<0.000000e+00> : vector<16x128xf32>
    %107 = tpu.matmul %104, %106, %cst_92 {dimension_numbers = #tpu.dot_dimension_numbers<[1], [0], [0], [1], [0, 0, 1, 1], [], []>} : vector<16x128xbf16>, vector<128x128xbf16>, vector<16x128xf32> -> vector<16x128xf32>
    %108 = arith.addf %99, %107 : vector<16x128xf32>
    %c1_i32_93 = arith.constant 1 : i32
    %109 = arith.addi %1, %c1_i32_93 : i32
    %c0_94 = arith.constant 0 : index
    %c0_95 = arith.constant 0 : index
    %110 = arith.index_cast %109 : i32 to index
    %c1_96 = arith.constant 1 : index
    %c0_97 = arith.constant 0 : index
    %111 = vector.load %arg2[%c0_94, %c0_95, %110, %c1_96, %c0_97] : memref<1x4x6x6x128xbf16, #tpu.memory_space<vmem>>, vector<1x1x4x4x128xbf16>
    %112 = vector.shape_cast %111 : vector<1x1x4x4x128xbf16> to vector<4x4x128xbf16>
    %113 = vector.shape_cast %112 : vector<4x4x128xbf16> to vector<16x128xbf16>
    %c12 = arith.constant 12 : index
    %c0_98 = arith.constant 0 : index
    %c0_99 = arith.constant 0 : index
    %114 = vector.load %arg3[%c12, %c0_98, %c0_99] : memref<25x128x128xbf16, #tpu.memory_space<vmem>>, vector<1x128x128xbf16>
    %115 = vector.shape_cast %114 : vector<1x128x128xbf16> to vector<128x128xbf16>
    %cst_100 = arith.constant dense<0.000000e+00> : vector<16x128xf32>
    %116 = tpu.matmul %113, %115, %cst_100 {dimension_numbers = #tpu.dot_dimension_numbers<[1], [0], [0], [1], [0, 0, 1, 1], [], []>} : vector<16x128xbf16>, vector<128x128xbf16>, vector<16x128xf32> -> vector<16x128xf32>
    %117 = arith.addf %108, %116 : vector<16x128xf32>
    %c1_i32_101 = arith.constant 1 : i32
    %118 = arith.addi %1, %c1_i32_101 : i32
    %c0_102 = arith.constant 0 : index
    %c1_103 = arith.constant 1 : index
    %119 = arith.index_cast %118 : i32 to index
    %c1_104 = arith.constant 1 : index
    %c0_105 = arith.constant 0 : index
    %120 = vector.load %arg2[%c0_102, %c1_103, %119, %c1_104, %c0_105] : memref<1x4x6x6x128xbf16, #tpu.memory_space<vmem>>, vector<1x1x4x4x128xbf16>
    %121 = vector.shape_cast %120 : vector<1x1x4x4x128xbf16> to vector<4x4x128xbf16>
    %122 = vector.shape_cast %121 : vector<4x4x128xbf16> to vector<16x128xbf16>
    %c13 = arith.constant 13 : index
    %c0_106 = arith.constant 0 : index
    %c0_107 = arith.constant 0 : index
    %123 = vector.load %arg3[%c13, %c0_106, %c0_107] : memref<25x128x128xbf16, #tpu.memory_space<vmem>>, vector<1x128x128xbf16>
    %124 = vector.shape_cast %123 : vector<1x128x128xbf16> to vector<128x128xbf16>
    %cst_108 = arith.constant dense<0.000000e+00> : vector<16x128xf32>
    %125 = tpu.matmul %122, %124, %cst_108 {dimension_numbers = #tpu.dot_dimension_numbers<[1], [0], [0], [1], [0, 0, 1, 1], [], []>} : vector<16x128xbf16>, vector<128x128xbf16>, vector<16x128xf32> -> vector<16x128xf32>
    %126 = arith.addf %117, %125 : vector<16x128xf32>
    %c1_i32_109 = arith.constant 1 : i32
    %127 = arith.addi %1, %c1_i32_109 : i32
    %c0_110 = arith.constant 0 : index
    %c0_111 = arith.constant 0 : index
    %128 = arith.index_cast %127 : i32 to index
    %c2_112 = arith.constant 2 : index
    %c0_113 = arith.constant 0 : index
    %129 = vector.load %arg2[%c0_110, %c0_111, %128, %c2_112, %c0_113] : memref<1x4x6x6x128xbf16, #tpu.memory_space<vmem>>, vector<1x1x4x4x128xbf16>
    %130 = vector.shape_cast %129 : vector<1x1x4x4x128xbf16> to vector<4x4x128xbf16>
    %131 = vector.shape_cast %130 : vector<4x4x128xbf16> to vector<16x128xbf16>
    %c14 = arith.constant 14 : index
    %c0_114 = arith.constant 0 : index
    %c0_115 = arith.constant 0 : index
    %132 = vector.load %arg3[%c14, %c0_114, %c0_115] : memref<25x128x128xbf16, #tpu.memory_space<vmem>>, vector<1x128x128xbf16>
    %133 = vector.shape_cast %132 : vector<1x128x128xbf16> to vector<128x128xbf16>
    %cst_116 = arith.constant dense<0.000000e+00> : vector<16x128xf32>
    %134 = tpu.matmul %131, %133, %cst_116 {dimension_numbers = #tpu.dot_dimension_numbers<[1], [0], [0], [1], [0, 0, 1, 1], [], []>} : vector<16x128xbf16>, vector<128x128xbf16>, vector<16x128xf32> -> vector<16x128xf32>
    %135 = arith.addf %126, %134 : vector<16x128xf32>
    %c1_i32_117 = arith.constant 1 : i32
    %136 = arith.addi %1, %c1_i32_117 : i32
    %c0_118 = arith.constant 0 : index
    %c2_119 = arith.constant 2 : index
    %137 = arith.index_cast %136 : i32 to index
    %c0_120 = arith.constant 0 : index
    %c0_121 = arith.constant 0 : index
    %138 = vector.load %arg2[%c0_118, %c2_119, %137, %c0_120, %c0_121] : memref<1x4x6x6x128xbf16, #tpu.memory_space<vmem>>, vector<1x1x4x4x128xbf16>
    %139 = vector.shape_cast %138 : vector<1x1x4x4x128xbf16> to vector<4x4x128xbf16>
    %140 = vector.shape_cast %139 : vector<4x4x128xbf16> to vector<16x128xbf16>
    %c15 = arith.constant 15 : index
    %c0_122 = arith.constant 0 : index
    %c0_123 = arith.constant 0 : index
    %141 = vector.load %arg3[%c15, %c0_122, %c0_123] : memref<25x128x128xbf16, #tpu.memory_space<vmem>>, vector<1x128x128xbf16>
    %142 = vector.shape_cast %141 : vector<1x128x128xbf16> to vector<128x128xbf16>
    %cst_124 = arith.constant dense<0.000000e+00> : vector<16x128xf32>
    %143 = tpu.matmul %140, %142, %cst_124 {dimension_numbers = #tpu.dot_dimension_numbers<[1], [0], [0], [1], [0, 0, 1, 1], [], []>} : vector<16x128xbf16>, vector<128x128xbf16>, vector<16x128xf32> -> vector<16x128xf32>
    %144 = arith.addf %135, %143 : vector<16x128xf32>
    %c1_i32_125 = arith.constant 1 : i32
    %145 = arith.addi %1, %c1_i32_125 : i32
    %c0_126 = arith.constant 0 : index
    %c3_127 = arith.constant 3 : index
    %146 = arith.index_cast %145 : i32 to index
    %c0_128 = arith.constant 0 : index
    %c0_129 = arith.constant 0 : index
    %147 = vector.load %arg2[%c0_126, %c3_127, %146, %c0_128, %c0_129] : memref<1x4x6x6x128xbf16, #tpu.memory_space<vmem>>, vector<1x1x4x4x128xbf16>
    %148 = vector.shape_cast %147 : vector<1x1x4x4x128xbf16> to vector<4x4x128xbf16>
    %149 = vector.shape_cast %148 : vector<4x4x128xbf16> to vector<16x128xbf16>
    %c16 = arith.constant 16 : index
    %c0_130 = arith.constant 0 : index
    %c0_131 = arith.constant 0 : index
    %150 = vector.load %arg3[%c16, %c0_130, %c0_131] : memref<25x128x128xbf16, #tpu.memory_space<vmem>>, vector<1x128x128xbf16>
    %151 = vector.shape_cast %150 : vector<1x128x128xbf16> to vector<128x128xbf16>
    %cst_132 = arith.constant dense<0.000000e+00> : vector<16x128xf32>
    %152 = tpu.matmul %149, %151, %cst_132 {dimension_numbers = #tpu.dot_dimension_numbers<[1], [0], [0], [1], [0, 0, 1, 1], [], []>} : vector<16x128xbf16>, vector<128x128xbf16>, vector<16x128xf32> -> vector<16x128xf32>
    %153 = arith.addf %144, %152 : vector<16x128xf32>
    %c1_i32_133 = arith.constant 1 : i32
    %154 = arith.addi %1, %c1_i32_133 : i32
    %c0_134 = arith.constant 0 : index
    %c2_135 = arith.constant 2 : index
    %155 = arith.index_cast %154 : i32 to index
    %c1_136 = arith.constant 1 : index
    %c0_137 = arith.constant 0 : index
    %156 = vector.load %arg2[%c0_134, %c2_135, %155, %c1_136, %c0_137] : memref<1x4x6x6x128xbf16, #tpu.memory_space<vmem>>, vector<1x1x4x4x128xbf16>
    %157 = vector.shape_cast %156 : vector<1x1x4x4x128xbf16> to vector<4x4x128xbf16>
    %158 = vector.shape_cast %157 : vector<4x4x128xbf16> to vector<16x128xbf16>
    %c17 = arith.constant 17 : index
    %c0_138 = arith.constant 0 : index
    %c0_139 = arith.constant 0 : index
    %159 = vector.load %arg3[%c17, %c0_138, %c0_139] : memref<25x128x128xbf16, #tpu.memory_space<vmem>>, vector<1x128x128xbf16>
    %160 = vector.shape_cast %159 : vector<1x128x128xbf16> to vector<128x128xbf16>
    %cst_140 = arith.constant dense<0.000000e+00> : vector<16x128xf32>
    %161 = tpu.matmul %158, %160, %cst_140 {dimension_numbers = #tpu.dot_dimension_numbers<[1], [0], [0], [1], [0, 0, 1, 1], [], []>} : vector<16x128xbf16>, vector<128x128xbf16>, vector<16x128xf32> -> vector<16x128xf32>
    %162 = arith.addf %153, %161 : vector<16x128xf32>
    %c1_i32_141 = arith.constant 1 : i32
    %163 = arith.addi %1, %c1_i32_141 : i32
    %c0_142 = arith.constant 0 : index
    %c3_143 = arith.constant 3 : index
    %164 = arith.index_cast %163 : i32 to index
    %c1_144 = arith.constant 1 : index
    %c0_145 = arith.constant 0 : index
    %165 = vector.load %arg2[%c0_142, %c3_143, %164, %c1_144, %c0_145] : memref<1x4x6x6x128xbf16, #tpu.memory_space<vmem>>, vector<1x1x4x4x128xbf16>
    %166 = vector.shape_cast %165 : vector<1x1x4x4x128xbf16> to vector<4x4x128xbf16>
    %167 = vector.shape_cast %166 : vector<4x4x128xbf16> to vector<16x128xbf16>
    %c18 = arith.constant 18 : index
    %c0_146 = arith.constant 0 : index
    %c0_147 = arith.constant 0 : index
    %168 = vector.load %arg3[%c18, %c0_146, %c0_147] : memref<25x128x128xbf16, #tpu.memory_space<vmem>>, vector<1x128x128xbf16>
    %169 = vector.shape_cast %168 : vector<1x128x128xbf16> to vector<128x128xbf16>
    %cst_148 = arith.constant dense<0.000000e+00> : vector<16x128xf32>
    %170 = tpu.matmul %167, %169, %cst_148 {dimension_numbers = #tpu.dot_dimension_numbers<[1], [0], [0], [1], [0, 0, 1, 1], [], []>} : vector<16x128xbf16>, vector<128x128xbf16>, vector<16x128xf32> -> vector<16x128xf32>
    %171 = arith.addf %162, %170 : vector<16x128xf32>
    %c1_i32_149 = arith.constant 1 : i32
    %172 = arith.addi %1, %c1_i32_149 : i32
    %c0_150 = arith.constant 0 : index
    %c2_151 = arith.constant 2 : index
    %173 = arith.index_cast %172 : i32 to index
    %c2_152 = arith.constant 2 : index
    %c0_153 = arith.constant 0 : index
    %174 = vector.load %arg2[%c0_150, %c2_151, %173, %c2_152, %c0_153] : memref<1x4x6x6x128xbf16, #tpu.memory_space<vmem>>, vector<1x1x4x4x128xbf16>
    %175 = vector.shape_cast %174 : vector<1x1x4x4x128xbf16> to vector<4x4x128xbf16>
    %176 = vector.shape_cast %175 : vector<4x4x128xbf16> to vector<16x128xbf16>
    %c19 = arith.constant 19 : index
    %c0_154 = arith.constant 0 : index
    %c0_155 = arith.constant 0 : index
    %177 = vector.load %arg3[%c19, %c0_154, %c0_155] : memref<25x128x128xbf16, #tpu.memory_space<vmem>>, vector<1x128x128xbf16>
    %178 = vector.shape_cast %177 : vector<1x128x128xbf16> to vector<128x128xbf16>
    %cst_156 = arith.constant dense<0.000000e+00> : vector<16x128xf32>
    %179 = tpu.matmul %176, %178, %cst_156 {dimension_numbers = #tpu.dot_dimension_numbers<[1], [0], [0], [1], [0, 0, 1, 1], [], []>} : vector<16x128xbf16>, vector<128x128xbf16>, vector<16x128xf32> -> vector<16x128xf32>
    %180 = arith.addf %171, %179 : vector<16x128xf32>
    %c2_i32 = arith.constant 2 : i32
    %181 = arith.addi %1, %c2_i32 : i32
    %c0_157 = arith.constant 0 : index
    %c0_158 = arith.constant 0 : index
    %182 = arith.index_cast %181 : i32 to index
    %c0_159 = arith.constant 0 : index
    %c0_160 = arith.constant 0 : index
    %183 = vector.load %arg2[%c0_157, %c0_158, %182, %c0_159, %c0_160] : memref<1x4x6x6x128xbf16, #tpu.memory_space<vmem>>, vector<1x1x4x4x128xbf16>
    %184 = vector.shape_cast %183 : vector<1x1x4x4x128xbf16> to vector<4x4x128xbf16>
    %185 = vector.shape_cast %184 : vector<4x4x128xbf16> to vector<16x128xbf16>
    %c20 = arith.constant 20 : index
    %c0_161 = arith.constant 0 : index
    %c0_162 = arith.constant 0 : index
    %186 = vector.load %arg3[%c20, %c0_161, %c0_162] : memref<25x128x128xbf16, #tpu.memory_space<vmem>>, vector<1x128x128xbf16>
    %187 = vector.shape_cast %186 : vector<1x128x128xbf16> to vector<128x128xbf16>
    %cst_163 = arith.constant dense<0.000000e+00> : vector<16x128xf32>
    %188 = tpu.matmul %185, %187, %cst_163 {dimension_numbers = #tpu.dot_dimension_numbers<[1], [0], [0], [1], [0, 0, 1, 1], [], []>} : vector<16x128xbf16>, vector<128x128xbf16>, vector<16x128xf32> -> vector<16x128xf32>
    %189 = arith.addf %180, %188 : vector<16x128xf32>
    %c2_i32_164 = arith.constant 2 : i32
    %190 = arith.addi %1, %c2_i32_164 : i32
    %c0_165 = arith.constant 0 : index
    %c1_166 = arith.constant 1 : index
    %191 = arith.index_cast %190 : i32 to index
    %c0_167 = arith.constant 0 : index
    %c0_168 = arith.constant 0 : index
    %192 = vector.load %arg2[%c0_165, %c1_166, %191, %c0_167, %c0_168] : memref<1x4x6x6x128xbf16, #tpu.memory_space<vmem>>, vector<1x1x4x4x128xbf16>
    %193 = vector.shape_cast %192 : vector<1x1x4x4x128xbf16> to vector<4x4x128xbf16>
    %194 = vector.shape_cast %193 : vector<4x4x128xbf16> to vector<16x128xbf16>
    %c21 = arith.constant 21 : index
    %c0_169 = arith.constant 0 : index
    %c0_170 = arith.constant 0 : index
    %195 = vector.load %arg3[%c21, %c0_169, %c0_170] : memref<25x128x128xbf16, #tpu.memory_space<vmem>>, vector<1x128x128xbf16>
    %196 = vector.shape_cast %195 : vector<1x128x128xbf16> to vector<128x128xbf16>
    %cst_171 = arith.constant dense<0.000000e+00> : vector<16x128xf32>
    %197 = tpu.matmul %194, %196, %cst_171 {dimension_numbers = #tpu.dot_dimension_numbers<[1], [0], [0], [1], [0, 0, 1, 1], [], []>} : vector<16x128xbf16>, vector<128x128xbf16>, vector<16x128xf32> -> vector<16x128xf32>
    %198 = arith.addf %189, %197 : vector<16x128xf32>
    %c2_i32_172 = arith.constant 2 : i32
    %199 = arith.addi %1, %c2_i32_172 : i32
    %c0_173 = arith.constant 0 : index
    %c0_174 = arith.constant 0 : index
    %200 = arith.index_cast %199 : i32 to index
    %c1_175 = arith.constant 1 : index
    %c0_176 = arith.constant 0 : index
    %201 = vector.load %arg2[%c0_173, %c0_174, %200, %c1_175, %c0_176] : memref<1x4x6x6x128xbf16, #tpu.memory_space<vmem>>, vector<1x1x4x4x128xbf16>
    %202 = vector.shape_cast %201 : vector<1x1x4x4x128xbf16> to vector<4x4x128xbf16>
    %203 = vector.shape_cast %202 : vector<4x4x128xbf16> to vector<16x128xbf16>
    %c22 = arith.constant 22 : index
    %c0_177 = arith.constant 0 : index
    %c0_178 = arith.constant 0 : index
    %204 = vector.load %arg3[%c22, %c0_177, %c0_178] : memref<25x128x128xbf16, #tpu.memory_space<vmem>>, vector<1x128x128xbf16>
    %205 = vector.shape_cast %204 : vector<1x128x128xbf16> to vector<128x128xbf16>
    %cst_179 = arith.constant dense<0.000000e+00> : vector<16x128xf32>
    %206 = tpu.matmul %203, %205, %cst_179 {dimension_numbers = #tpu.dot_dimension_numbers<[1], [0], [0], [1], [0, 0, 1, 1], [], []>} : vector<16x128xbf16>, vector<128x128xbf16>, vector<16x128xf32> -> vector<16x128xf32>
    %207 = arith.addf %198, %206 : vector<16x128xf32>
    %c2_i32_180 = arith.constant 2 : i32
    %208 = arith.addi %1, %c2_i32_180 : i32
    %c0_181 = arith.constant 0 : index
    %c1_182 = arith.constant 1 : index
    %209 = arith.index_cast %208 : i32 to index
    %c1_183 = arith.constant 1 : index
    %c0_184 = arith.constant 0 : index
    %210 = vector.load %arg2[%c0_181, %c1_182, %209, %c1_183, %c0_184] : memref<1x4x6x6x128xbf16, #tpu.memory_space<vmem>>, vector<1x1x4x4x128xbf16>
    %211 = vector.shape_cast %210 : vector<1x1x4x4x128xbf16> to vector<4x4x128xbf16>
    %212 = vector.shape_cast %211 : vector<4x4x128xbf16> to vector<16x128xbf16>
    %c23 = arith.constant 23 : index
    %c0_185 = arith.constant 0 : index
    %c0_186 = arith.constant 0 : index
    %213 = vector.load %arg3[%c23, %c0_185, %c0_186] : memref<25x128x128xbf16, #tpu.memory_space<vmem>>, vector<1x128x128xbf16>
    %214 = vector.shape_cast %213 : vector<1x128x128xbf16> to vector<128x128xbf16>
    %cst_187 = arith.constant dense<0.000000e+00> : vector<16x128xf32>
    %215 = tpu.matmul %212, %214, %cst_187 {dimension_numbers = #tpu.dot_dimension_numbers<[1], [0], [0], [1], [0, 0, 1, 1], [], []>} : vector<16x128xbf16>, vector<128x128xbf16>, vector<16x128xf32> -> vector<16x128xf32>
    %216 = arith.addf %207, %215 : vector<16x128xf32>
    %c2_i32_188 = arith.constant 2 : i32
    %217 = arith.addi %1, %c2_i32_188 : i32
    %c0_189 = arith.constant 0 : index
    %c0_190 = arith.constant 0 : index
    %218 = arith.index_cast %217 : i32 to index
    %c2_191 = arith.constant 2 : index
    %c0_192 = arith.constant 0 : index
    %219 = vector.load %arg2[%c0_189, %c0_190, %218, %c2_191, %c0_192] : memref<1x4x6x6x128xbf16, #tpu.memory_space<vmem>>, vector<1x1x4x4x128xbf16>
    %220 = vector.shape_cast %219 : vector<1x1x4x4x128xbf16> to vector<4x4x128xbf16>
    %221 = vector.shape_cast %220 : vector<4x4x128xbf16> to vector<16x128xbf16>
    %c24 = arith.constant 24 : index
    %c0_193 = arith.constant 0 : index
    %c0_194 = arith.constant 0 : index
    %222 = vector.load %arg3[%c24, %c0_193, %c0_194] : memref<25x128x128xbf16, #tpu.memory_space<vmem>>, vector<1x128x128xbf16>
    %223 = vector.shape_cast %222 : vector<1x128x128xbf16> to vector<128x128xbf16>
    %cst_195 = arith.constant dense<0.000000e+00> : vector<16x128xf32>
    %224 = tpu.matmul %221, %223, %cst_195 {dimension_numbers = #tpu.dot_dimension_numbers<[1], [0], [0], [1], [0, 0, 1, 1], [], []>} : vector<16x128xbf16>, vector<128x128xbf16>, vector<16x128xf32> -> vector<16x128xf32>
    %225 = arith.addf %216, %224 : vector<16x128xf32>
    %c0_196 = arith.constant 0 : index
    %c0_197 = arith.constant 0 : index
    %226 = vector.load %arg4[%c0_196, %c0_197] : memref<1x128xf32, #tpu.memory_space<vmem>>, vector<1x128xf32>
    %227 = vector.broadcast %226 : vector<1x128xf32> to vector<16x128xf32>
    %228 = arith.addf %225, %227 : vector<16x128xf32>
    %cst_198 = arith.constant 2.000000e-01 : f32
    %229 = vector.broadcast %cst_198 : f32 to vector<16x128xf32>
    %230 = arith.mulf %229, %228 : vector<16x128xf32>
    %231 = arith.maximumf %228, %230 : vector<16x128xf32>
    %232 = vector.shape_cast %231 : vector<16x128xf32> to vector<4x4x128xf32>
    %233 = arith.truncf %232 : vector<4x4x128xf32> to vector<4x4x128xbf16>
    %c0_199 = arith.constant 0 : index
    %c0_200 = arith.constant 0 : index
    %c0_201 = arith.constant 0 : index
    %c0_202 = arith.constant 0 : index
    %234 = vector.load %arg5[%c0_199, %c0_200, %c0_201, %c0_202] : memref<1x4x4x128xbf16, #tpu.memory_space<vmem>>, vector<1x4x4x128xbf16>
    %235 = vector.shape_cast %234 : vector<1x4x4x128xbf16> to vector<4x4x128xbf16>
    %236 = vector.shape_cast %233 : vector<4x4x128xbf16> to vector<1x4x4x128xbf16>
    tpu.vector_store %arg5[%c0_199, %c0_200, %c0_201, %c0_202], %236 {strides = array<i32>} : memref<1x4x4x128xbf16, #tpu.memory_space<vmem>>, vector<1x4x4x128xbf16>,
    return
  }
  func.func @transform_0(%arg0: i32, %arg1: i32) -> (i32, i32, i32, i32, i32) {
    %c0_i32 = arith.constant 0 : i32
    %c0_i32_0 = arith.constant 0 : i32
    %c0_i32_1 = arith.constant 0 : i32
    %c0_i32_2 = arith.constant 0 : i32
    %c0_i32_3 = arith.constant 0 : i32
    return %arg0, %c0_i32, %c0_i32_0, %c0_i32_1, %c0_i32_2 : i32, i32, i32, i32, i32
  }
  func.func @transform_1(%arg0: i32, %arg1: i32) -> (i32, i32, i32) {
    %c0_i32 = arith.constant 0 : i32
    %c0_i32_0 = arith.constant 0 : i32
    %c0_i32_1 = arith.constant 0 : i32
    %c0_i32_2 = arith.constant 0 : i32
    return %c0_i32, %c0_i32_0, %c0_i32_1 : i32, i32, i32
  }
  func.func @transform_2(%arg0: i32, %arg1: i32) -> (i32, i32) {
    %c0_i32 = arith.constant 0 : i32
    %c0_i32_0 = arith.constant 0 : i32
    %c0_i32_1 = arith.constant 0 : i32
    return %c0_i32, %c0_i32_0 : i32, i32
  }
  func.func @transform_3(%arg0: i32, %arg1: i32) -> (i32, i32, i32, i32) {
    %c0_i32 = arith.constant 0 : i32
    %c0_i32_0 = arith.constant 0 : i32
    %c0_i32_1 = arith.constant 0 : i32
    return %arg0, %arg1, %c0_i32, %c0_i32_0 : i32, i32, i32, i32
  }
}

module attributes {stable_mosaic.version = 11 : i64} {
  func.func @kernel(%arg0: i32, %arg1: i32, %arg2: memref<1x4x4x4x128xbf16, #tpu.memory_space<vmem>>, %arg3: memref<25x128x128xbf16, #tpu.memory_space<vmem>>, %arg4: memref<1x128xf32, #tpu.memory_space<vmem>>, %arg5: memref<1x2x2x128xbf16, #tpu.memory_space<vmem>>) attributes {dimension_semantics = [#tpu.dimension_semantics<parallel>, #tpu.dimension_semantics<parallel>], iteration_bounds = array<i64: 2, 1>, scalar_prefetch = 0 : i64, scratch_operands = 0 : i64, tpu.core_type = #tpu.core_type<tc>, window_params = [{transform_indices = @transform_0, window_bounds = array<i64: 1, 4, 4, 4, 128>}, {pipeline_mode = #tpu.pipeline_mode<synchronous>, transform_indices = @transform_1, window_bounds = array<i64: 25, 128, 128>}, {pipeline_mode = #tpu.pipeline_mode<synchronous>, transform_indices = @transform_2, window_bounds = array<i64: 1, 128>}, {transform_indices = @transform_3, window_bounds = array<i64: 1, 2, 2, 128>}]} {
    %c2_i32 = arith.constant 2 : i32
    %0 = arith.muli %arg1, %c2_i32 : i32
    %1 = tpu.assume_multiple %0, 2 : i32
    %c0_i32 = arith.constant 0 : i32
    %2 = arith.addi %1, %c0_i32 : i32
    %c0 = arith.constant 0 : index
    %c0_0 = arith.constant 0 : index
    %3 = arith.index_cast %2 : i32 to index
    %c0_1 = arith.constant 0 : index
    %c0_2 = arith.constant 0 : index
    %4 = vector.load %arg2[%c0, %c0_0, %3, %c0_1, %c0_2] : memref<1x4x4x4x128xbf16, #tpu.memory_space<vmem>>, vector<1x1x2x2x128xbf16>
    %5 = vector.shape_cast %4 : vector<1x1x2x2x128xbf16> to vector<2x2x128xbf16>
    %6 = vector.shape_cast %5 : vector<2x2x128xbf16> to vector<4x128xbf16>
    %c0_3 = arith.constant 0 : index
    %c0_4 = arith.constant 0 : index
    %c0_5 = arith.constant 0 : index
    %7 = vector.load %arg3[%c0_3, %c0_4, %c0_5] : memref<25x128x128xbf16, #tpu.memory_space<vmem>>, vector<1x128x128xbf16>
    %8 = vector.shape_cast %7 : vector<1x128x128xbf16> to vector<128x128xbf16>
    %cst = arith.constant dense<0.000000e+00> : vector<4x128xf32>
    %9 = tpu.matmul %6, %8, %cst {dimension_numbers = #tpu.dot_dimension_numbers<[1], [0], [0], [1], [0, 0, 1, 1], [], []>} : vector<4x128xbf16>, vector<128x128xbf16>, vector<4x128xf32> -> vector<4x128xf32>
    %c0_i32_6 = arith.constant 0 : i32
    %10 = arith.addi %1, %c0_i32_6 : i32
    %c0_7 = arith.constant 0 : index
    %c1 = arith.constant 1 : index
    %11 = arith.index_cast %10 : i32 to index
    %c0_8 = arith.constant 0 : index
    %c0_9 = arith.constant 0 : index
    %12 = vector.load %arg2[%c0_7, %c1, %11, %c0_8, %c0_9] : memref<1x4x4x4x128xbf16, #tpu.memory_space<vmem>>, vector<1x1x2x2x128xbf16>
    %13 = vector.shape_cast %12 : vector<1x1x2x2x128xbf16> to vector<2x2x128xbf16>
    %14 = vector.shape_cast %13 : vector<2x2x128xbf16> to vector<4x128xbf16>
    %c1_10 = arith.constant 1 : index
    %c0_11 = arith.constant 0 : index
    %c0_12 = arith.constant 0 : index
    %15 = vector.load %arg3[%c1_10, %c0_11, %c0_12] : memref<25x128x128xbf16, #tpu.memory_space<vmem>>, vector<1x128x128xbf16>
    %16 = vector.shape_cast %15 : vector<1x128x128xbf16> to vector<128x128xbf16>
    %cst_13 = arith.constant dense<0.000000e+00> : vector<4x128xf32>
    %17 = tpu.matmul %14, %16, %cst_13 {dimension_numbers = #tpu.dot_dimension_numbers<[1], [0], [0], [1], [0, 0, 1, 1], [], []>} : vector<4x128xbf16>, vector<128x128xbf16>, vector<4x128xf32> -> vector<4x128xf32>
    %18 = arith.addf %9, %17 : vector<4x128xf32>
    %c0_i32_14 = arith.constant 0 : i32
    %19 = arith.addi %1, %c0_i32_14 : i32
    %c0_15 = arith.constant 0 : index
    %c0_16 = arith.constant 0 : index
    %20 = arith.index_cast %19 : i32 to index
    %c1_17 = arith.constant 1 : index
    %c0_18 = arith.constant 0 : index
    %21 = vector.load %arg2[%c0_15, %c0_16, %20, %c1_17, %c0_18] : memref<1x4x4x4x128xbf16, #tpu.memory_space<vmem>>, vector<1x1x2x2x128xbf16>
    %22 = vector.shape_cast %21 : vector<1x1x2x2x128xbf16> to vector<2x2x128xbf16>
    %23 = vector.shape_cast %22 : vector<2x2x128xbf16> to vector<4x128xbf16>
    %c2 = arith.constant 2 : index
    %c0_19 = arith.constant 0 : index
    %c0_20 = arith.constant 0 : index
    %24 = vector.load %arg3[%c2, %c0_19, %c0_20] : memref<25x128x128xbf16, #tpu.memory_space<vmem>>, vector<1x128x128xbf16>
    %25 = vector.shape_cast %24 : vector<1x128x128xbf16> to vector<128x128xbf16>
    %cst_21 = arith.constant dense<0.000000e+00> : vector<4x128xf32>
    %26 = tpu.matmul %23, %25, %cst_21 {dimension_numbers = #tpu.dot_dimension_numbers<[1], [0], [0], [1], [0, 0, 1, 1], [], []>} : vector<4x128xbf16>, vector<128x128xbf16>, vector<4x128xf32> -> vector<4x128xf32>
    %27 = arith.addf %18, %26 : vector<4x128xf32>
    %c0_i32_22 = arith.constant 0 : i32
    %28 = arith.addi %1, %c0_i32_22 : i32
    %c0_23 = arith.constant 0 : index
    %c1_24 = arith.constant 1 : index
    %29 = arith.index_cast %28 : i32 to index
    %c1_25 = arith.constant 1 : index
    %c0_26 = arith.constant 0 : index
    %30 = vector.load %arg2[%c0_23, %c1_24, %29, %c1_25, %c0_26] : memref<1x4x4x4x128xbf16, #tpu.memory_space<vmem>>, vector<1x1x2x2x128xbf16>
    %31 = vector.shape_cast %30 : vector<1x1x2x2x128xbf16> to vector<2x2x128xbf16>
    %32 = vector.shape_cast %31 : vector<2x2x128xbf16> to vector<4x128xbf16>
    %c3 = arith.constant 3 : index
    %c0_27 = arith.constant 0 : index
    %c0_28 = arith.constant 0 : index
    %33 = vector.load %arg3[%c3, %c0_27, %c0_28] : memref<25x128x128xbf16, #tpu.memory_space<vmem>>, vector<1x128x128xbf16>
    %34 = vector.shape_cast %33 : vector<1x128x128xbf16> to vector<128x128xbf16>
    %cst_29 = arith.constant dense<0.000000e+00> : vector<4x128xf32>
    %35 = tpu.matmul %32, %34, %cst_29 {dimension_numbers = #tpu.dot_dimension_numbers<[1], [0], [0], [1], [0, 0, 1, 1], [], []>} : vector<4x128xbf16>, vector<128x128xbf16>, vector<4x128xf32> -> vector<4x128xf32>
    %36 = arith.addf %27, %35 : vector<4x128xf32>
    %c0_i32_30 = arith.constant 0 : i32
    %37 = arith.addi %1, %c0_i32_30 : i32
    %c0_31 = arith.constant 0 : index
    %c0_32 = arith.constant 0 : index
    %38 = arith.index_cast %37 : i32 to index
    %c2_33 = arith.constant 2 : index
    %c0_34 = arith.constant 0 : index
    %39 = vector.load %arg2[%c0_31, %c0_32, %38, %c2_33, %c0_34] : memref<1x4x4x4x128xbf16, #tpu.memory_space<vmem>>, vector<1x1x2x2x128xbf16>
    %40 = vector.shape_cast %39 : vector<1x1x2x2x128xbf16> to vector<2x2x128xbf16>
    %41 = vector.shape_cast %40 : vector<2x2x128xbf16> to vector<4x128xbf16>
    %c4 = arith.constant 4 : index
    %c0_35 = arith.constant 0 : index
    %c0_36 = arith.constant 0 : index
    %42 = vector.load %arg3[%c4, %c0_35, %c0_36] : memref<25x128x128xbf16, #tpu.memory_space<vmem>>, vector<1x128x128xbf16>
    %43 = vector.shape_cast %42 : vector<1x128x128xbf16> to vector<128x128xbf16>
    %cst_37 = arith.constant dense<0.000000e+00> : vector<4x128xf32>
    %44 = tpu.matmul %41, %43, %cst_37 {dimension_numbers = #tpu.dot_dimension_numbers<[1], [0], [0], [1], [0, 0, 1, 1], [], []>} : vector<4x128xbf16>, vector<128x128xbf16>, vector<4x128xf32> -> vector<4x128xf32>
    %45 = arith.addf %36, %44 : vector<4x128xf32>
    %c0_i32_38 = arith.constant 0 : i32
    %46 = arith.addi %1, %c0_i32_38 : i32
    %c0_39 = arith.constant 0 : index
    %c2_40 = arith.constant 2 : index
    %47 = arith.index_cast %46 : i32 to index
    %c0_41 = arith.constant 0 : index
    %c0_42 = arith.constant 0 : index
    %48 = vector.load %arg2[%c0_39, %c2_40, %47, %c0_41, %c0_42] : memref<1x4x4x4x128xbf16, #tpu.memory_space<vmem>>, vector<1x1x2x2x128xbf16>
    %49 = vector.shape_cast %48 : vector<1x1x2x2x128xbf16> to vector<2x2x128xbf16>
    %50 = vector.shape_cast %49 : vector<2x2x128xbf16> to vector<4x128xbf16>
    %c5 = arith.constant 5 : index
    %c0_43 = arith.constant 0 : index
    %c0_44 = arith.constant 0 : index
    %51 = vector.load %arg3[%c5, %c0_43, %c0_44] : memref<25x128x128xbf16, #tpu.memory_space<vmem>>, vector<1x128x128xbf16>
    %52 = vector.shape_cast %51 : vector<1x128x128xbf16> to vector<128x128xbf16>
    %cst_45 = arith.constant dense<0.000000e+00> : vector<4x128xf32>
    %53 = tpu.matmul %50, %52, %cst_45 {dimension_numbers = #tpu.dot_dimension_numbers<[1], [0], [0], [1], [0, 0, 1, 1], [], []>} : vector<4x128xbf16>, vector<128x128xbf16>, vector<4x128xf32> -> vector<4x128xf32>
    %54 = arith.addf %45, %53 : vector<4x128xf32>
    %c0_i32_46 = arith.constant 0 : i32
    %55 = arith.addi %1, %c0_i32_46 : i32
    %c0_47 = arith.constant 0 : index
    %c3_48 = arith.constant 3 : index
    %56 = arith.index_cast %55 : i32 to index
    %c0_49 = arith.constant 0 : index
    %c0_50 = arith.constant 0 : index
    %57 = vector.load %arg2[%c0_47, %c3_48, %56, %c0_49, %c0_50] : memref<1x4x4x4x128xbf16, #tpu.memory_space<vmem>>, vector<1x1x2x2x128xbf16>
    %58 = vector.shape_cast %57 : vector<1x1x2x2x128xbf16> to vector<2x2x128xbf16>
    %59 = vector.shape_cast %58 : vector<2x2x128xbf16> to vector<4x128xbf16>
    %c6 = arith.constant 6 : index
    %c0_51 = arith.constant 0 : index
    %c0_52 = arith.constant 0 : index
    %60 = vector.load %arg3[%c6, %c0_51, %c0_52] : memref<25x128x128xbf16, #tpu.memory_space<vmem>>, vector<1x128x128xbf16>
    %61 = vector.shape_cast %60 : vector<1x128x128xbf16> to vector<128x128xbf16>
    %cst_53 = arith.constant dense<0.000000e+00> : vector<4x128xf32>
    %62 = tpu.matmul %59, %61, %cst_53 {dimension_numbers = #tpu.dot_dimension_numbers<[1], [0], [0], [1], [0, 0, 1, 1], [], []>} : vector<4x128xbf16>, vector<128x128xbf16>, vector<4x128xf32> -> vector<4x128xf32>
    %63 = arith.addf %54, %62 : vector<4x128xf32>
    %c0_i32_54 = arith.constant 0 : i32
    %64 = arith.addi %1, %c0_i32_54 : i32
    %c0_55 = arith.constant 0 : index
    %c2_56 = arith.constant 2 : index
    %65 = arith.index_cast %64 : i32 to index
    %c1_57 = arith.constant 1 : index
    %c0_58 = arith.constant 0 : index
    %66 = vector.load %arg2[%c0_55, %c2_56, %65, %c1_57, %c0_58] : memref<1x4x4x4x128xbf16, #tpu.memory_space<vmem>>, vector<1x1x2x2x128xbf16>
    %67 = vector.shape_cast %66 : vector<1x1x2x2x128xbf16> to vector<2x2x128xbf16>
    %68 = vector.shape_cast %67 : vector<2x2x128xbf16> to vector<4x128xbf16>
    %c7 = arith.constant 7 : index
    %c0_59 = arith.constant 0 : index
    %c0_60 = arith.constant 0 : index
    %69 = vector.load %arg3[%c7, %c0_59, %c0_60] : memref<25x128x128xbf16, #tpu.memory_space<vmem>>, vector<1x128x128xbf16>
    %70 = vector.shape_cast %69 : vector<1x128x128xbf16> to vector<128x128xbf16>
    %cst_61 = arith.constant dense<0.000000e+00> : vector<4x128xf32>
    %71 = tpu.matmul %68, %70, %cst_61 {dimension_numbers = #tpu.dot_dimension_numbers<[1], [0], [0], [1], [0, 0, 1, 1], [], []>} : vector<4x128xbf16>, vector<128x128xbf16>, vector<4x128xf32> -> vector<4x128xf32>
    %72 = arith.addf %63, %71 : vector<4x128xf32>
    %c0_i32_62 = arith.constant 0 : i32
    %73 = arith.addi %1, %c0_i32_62 : i32
    %c0_63 = arith.constant 0 : index
    %c3_64 = arith.constant 3 : index
    %74 = arith.index_cast %73 : i32 to index
    %c1_65 = arith.constant 1 : index
    %c0_66 = arith.constant 0 : index
    %75 = vector.load %arg2[%c0_63, %c3_64, %74, %c1_65, %c0_66] : memref<1x4x4x4x128xbf16, #tpu.memory_space<vmem>>, vector<1x1x2x2x128xbf16>
    %76 = vector.shape_cast %75 : vector<1x1x2x2x128xbf16> to vector<2x2x128xbf16>
    %77 = vector.shape_cast %76 : vector<2x2x128xbf16> to vector<4x128xbf16>
    %c8 = arith.constant 8 : index
    %c0_67 = arith.constant 0 : index
    %c0_68 = arith.constant 0 : index
    %78 = vector.load %arg3[%c8, %c0_67, %c0_68] : memref<25x128x128xbf16, #tpu.memory_space<vmem>>, vector<1x128x128xbf16>
    %79 = vector.shape_cast %78 : vector<1x128x128xbf16> to vector<128x128xbf16>
    %cst_69 = arith.constant dense<0.000000e+00> : vector<4x128xf32>
    %80 = tpu.matmul %77, %79, %cst_69 {dimension_numbers = #tpu.dot_dimension_numbers<[1], [0], [0], [1], [0, 0, 1, 1], [], []>} : vector<4x128xbf16>, vector<128x128xbf16>, vector<4x128xf32> -> vector<4x128xf32>
    %81 = arith.addf %72, %80 : vector<4x128xf32>
    %c0_i32_70 = arith.constant 0 : i32
    %82 = arith.addi %1, %c0_i32_70 : i32
    %c0_71 = arith.constant 0 : index
    %c2_72 = arith.constant 2 : index
    %83 = arith.index_cast %82 : i32 to index
    %c2_73 = arith.constant 2 : index
    %c0_74 = arith.constant 0 : index
    %84 = vector.load %arg2[%c0_71, %c2_72, %83, %c2_73, %c0_74] : memref<1x4x4x4x128xbf16, #tpu.memory_space<vmem>>, vector<1x1x2x2x128xbf16>
    %85 = vector.shape_cast %84 : vector<1x1x2x2x128xbf16> to vector<2x2x128xbf16>
    %86 = vector.shape_cast %85 : vector<2x2x128xbf16> to vector<4x128xbf16>
    %c9 = arith.constant 9 : index
    %c0_75 = arith.constant 0 : index
    %c0_76 = arith.constant 0 : index
    %87 = vector.load %arg3[%c9, %c0_75, %c0_76] : memref<25x128x128xbf16, #tpu.memory_space<vmem>>, vector<1x128x128xbf16>
    %88 = vector.shape_cast %87 : vector<1x128x128xbf16> to vector<128x128xbf16>
    %cst_77 = arith.constant dense<0.000000e+00> : vector<4x128xf32>
    %89 = tpu.matmul %86, %88, %cst_77 {dimension_numbers = #tpu.dot_dimension_numbers<[1], [0], [0], [1], [0, 0, 1, 1], [], []>} : vector<4x128xbf16>, vector<128x128xbf16>, vector<4x128xf32> -> vector<4x128xf32>
    %90 = arith.addf %81, %89 : vector<4x128xf32>
    %c1_i32 = arith.constant 1 : i32
    %91 = arith.addi %1, %c1_i32 : i32
    %c0_78 = arith.constant 0 : index
    %c0_79 = arith.constant 0 : index
    %92 = arith.index_cast %91 : i32 to index
    %c0_80 = arith.constant 0 : index
    %c0_81 = arith.constant 0 : index
    %93 = vector.load %arg2[%c0_78, %c0_79, %92, %c0_80, %c0_81] : memref<1x4x4x4x128xbf16, #tpu.memory_space<vmem>>, vector<1x1x2x2x128xbf16>
    %94 = vector.shape_cast %93 : vector<1x1x2x2x128xbf16> to vector<2x2x128xbf16>
    %95 = vector.shape_cast %94 : vector<2x2x128xbf16> to vector<4x128xbf16>
    %c10 = arith.constant 10 : index
    %c0_82 = arith.constant 0 : index
    %c0_83 = arith.constant 0 : index
    %96 = vector.load %arg3[%c10, %c0_82, %c0_83] : memref<25x128x128xbf16, #tpu.memory_space<vmem>>, vector<1x128x128xbf16>
    %97 = vector.shape_cast %96 : vector<1x128x128xbf16> to vector<128x128xbf16>
    %cst_84 = arith.constant dense<0.000000e+00> : vector<4x128xf32>
    %98 = tpu.matmul %95, %97, %cst_84 {dimension_numbers = #tpu.dot_dimension_numbers<[1], [0], [0], [1], [0, 0, 1, 1], [], []>} : vector<4x128xbf16>, vector<128x128xbf16>, vector<4x128xf32> -> vector<4x128xf32>
    %99 = arith.addf %90, %98 : vector<4x128xf32>
    %c1_i32_85 = arith.constant 1 : i32
    %100 = arith.addi %1, %c1_i32_85 : i32
    %c0_86 = arith.constant 0 : index
    %c1_87 = arith.constant 1 : index
    %101 = arith.index_cast %100 : i32 to index
    %c0_88 = arith.constant 0 : index
    %c0_89 = arith.constant 0 : index
    %102 = vector.load %arg2[%c0_86, %c1_87, %101, %c0_88, %c0_89] : memref<1x4x4x4x128xbf16, #tpu.memory_space<vmem>>, vector<1x1x2x2x128xbf16>
    %103 = vector.shape_cast %102 : vector<1x1x2x2x128xbf16> to vector<2x2x128xbf16>
    %104 = vector.shape_cast %103 : vector<2x2x128xbf16> to vector<4x128xbf16>
    %c11 = arith.constant 11 : index
    %c0_90 = arith.constant 0 : index
    %c0_91 = arith.constant 0 : index
    %105 = vector.load %arg3[%c11, %c0_90, %c0_91] : memref<25x128x128xbf16, #tpu.memory_space<vmem>>, vector<1x128x128xbf16>
    %106 = vector.shape_cast %105 : vector<1x128x128xbf16> to vector<128x128xbf16>
    %cst_92 = arith.constant dense<0.000000e+00> : vector<4x128xf32>
    %107 = tpu.matmul %104, %106, %cst_92 {dimension_numbers = #tpu.dot_dimension_numbers<[1], [0], [0], [1], [0, 0, 1, 1], [], []>} : vector<4x128xbf16>, vector<128x128xbf16>, vector<4x128xf32> -> vector<4x128xf32>
    %108 = arith.addf %99, %107 : vector<4x128xf32>
    %c1_i32_93 = arith.constant 1 : i32
    %109 = arith.addi %1, %c1_i32_93 : i32
    %c0_94 = arith.constant 0 : index
    %c0_95 = arith.constant 0 : index
    %110 = arith.index_cast %109 : i32 to index
    %c1_96 = arith.constant 1 : index
    %c0_97 = arith.constant 0 : index
    %111 = vector.load %arg2[%c0_94, %c0_95, %110, %c1_96, %c0_97] : memref<1x4x4x4x128xbf16, #tpu.memory_space<vmem>>, vector<1x1x2x2x128xbf16>
    %112 = vector.shape_cast %111 : vector<1x1x2x2x128xbf16> to vector<2x2x128xbf16>
    %113 = vector.shape_cast %112 : vector<2x2x128xbf16> to vector<4x128xbf16>
    %c12 = arith.constant 12 : index
    %c0_98 = arith.constant 0 : index
    %c0_99 = arith.constant 0 : index
    %114 = vector.load %arg3[%c12, %c0_98, %c0_99] : memref<25x128x128xbf16, #tpu.memory_space<vmem>>, vector<1x128x128xbf16>
    %115 = vector.shape_cast %114 : vector<1x128x128xbf16> to vector<128x128xbf16>
    %cst_100 = arith.constant dense<0.000000e+00> : vector<4x128xf32>
    %116 = tpu.matmul %113, %115, %cst_100 {dimension_numbers = #tpu.dot_dimension_numbers<[1], [0], [0], [1], [0, 0, 1, 1], [], []>} : vector<4x128xbf16>, vector<128x128xbf16>, vector<4x128xf32> -> vector<4x128xf32>
    %117 = arith.addf %108, %116 : vector<4x128xf32>
    %c1_i32_101 = arith.constant 1 : i32
    %118 = arith.addi %1, %c1_i32_101 : i32
    %c0_102 = arith.constant 0 : index
    %c1_103 = arith.constant 1 : index
    %119 = arith.index_cast %118 : i32 to index
    %c1_104 = arith.constant 1 : index
    %c0_105 = arith.constant 0 : index
    %120 = vector.load %arg2[%c0_102, %c1_103, %119, %c1_104, %c0_105] : memref<1x4x4x4x128xbf16, #tpu.memory_space<vmem>>, vector<1x1x2x2x128xbf16>
    %121 = vector.shape_cast %120 : vector<1x1x2x2x128xbf16> to vector<2x2x128xbf16>
    %122 = vector.shape_cast %121 : vector<2x2x128xbf16> to vector<4x128xbf16>
    %c13 = arith.constant 13 : index
    %c0_106 = arith.constant 0 : index
    %c0_107 = arith.constant 0 : index
    %123 = vector.load %arg3[%c13, %c0_106, %c0_107] : memref<25x128x128xbf16, #tpu.memory_space<vmem>>, vector<1x128x128xbf16>
    %124 = vector.shape_cast %123 : vector<1x128x128xbf16> to vector<128x128xbf16>
    %cst_108 = arith.constant dense<0.000000e+00> : vector<4x128xf32>
    %125 = tpu.matmul %122, %124, %cst_108 {dimension_numbers = #tpu.dot_dimension_numbers<[1], [0], [0], [1], [0, 0, 1, 1], [], []>} : vector<4x128xbf16>, vector<128x128xbf16>, vector<4x128xf32> -> vector<4x128xf32>
    %126 = arith.addf %117, %125 : vector<4x128xf32>
    %c1_i32_109 = arith.constant 1 : i32
    %127 = arith.addi %1, %c1_i32_109 : i32
    %c0_110 = arith.constant 0 : index
    %c0_111 = arith.constant 0 : index
    %128 = arith.index_cast %127 : i32 to index
    %c2_112 = arith.constant 2 : index
    %c0_113 = arith.constant 0 : index
    %129 = vector.load %arg2[%c0_110, %c0_111, %128, %c2_112, %c0_113] : memref<1x4x4x4x128xbf16, #tpu.memory_space<vmem>>, vector<1x1x2x2x128xbf16>
    %130 = vector.shape_cast %129 : vector<1x1x2x2x128xbf16> to vector<2x2x128xbf16>
    %131 = vector.shape_cast %130 : vector<2x2x128xbf16> to vector<4x128xbf16>
    %c14 = arith.constant 14 : index
    %c0_114 = arith.constant 0 : index
    %c0_115 = arith.constant 0 : index
    %132 = vector.load %arg3[%c14, %c0_114, %c0_115] : memref<25x128x128xbf16, #tpu.memory_space<vmem>>, vector<1x128x128xbf16>
    %133 = vector.shape_cast %132 : vector<1x128x128xbf16> to vector<128x128xbf16>
    %cst_116 = arith.constant dense<0.000000e+00> : vector<4x128xf32>
    %134 = tpu.matmul %131, %133, %cst_116 {dimension_numbers = #tpu.dot_dimension_numbers<[1], [0], [0], [1], [0, 0, 1, 1], [], []>} : vector<4x128xbf16>, vector<128x128xbf16>, vector<4x128xf32> -> vector<4x128xf32>
    %135 = arith.addf %126, %134 : vector<4x128xf32>
    %c1_i32_117 = arith.constant 1 : i32
    %136 = arith.addi %1, %c1_i32_117 : i32
    %c0_118 = arith.constant 0 : index
    %c2_119 = arith.constant 2 : index
    %137 = arith.index_cast %136 : i32 to index
    %c0_120 = arith.constant 0 : index
    %c0_121 = arith.constant 0 : index
    %138 = vector.load %arg2[%c0_118, %c2_119, %137, %c0_120, %c0_121] : memref<1x4x4x4x128xbf16, #tpu.memory_space<vmem>>, vector<1x1x2x2x128xbf16>
    %139 = vector.shape_cast %138 : vector<1x1x2x2x128xbf16> to vector<2x2x128xbf16>
    %140 = vector.shape_cast %139 : vector<2x2x128xbf16> to vector<4x128xbf16>
    %c15 = arith.constant 15 : index
    %c0_122 = arith.constant 0 : index
    %c0_123 = arith.constant 0 : index
    %141 = vector.load %arg3[%c15, %c0_122, %c0_123] : memref<25x128x128xbf16, #tpu.memory_space<vmem>>, vector<1x128x128xbf16>
    %142 = vector.shape_cast %141 : vector<1x128x128xbf16> to vector<128x128xbf16>
    %cst_124 = arith.constant dense<0.000000e+00> : vector<4x128xf32>
    %143 = tpu.matmul %140, %142, %cst_124 {dimension_numbers = #tpu.dot_dimension_numbers<[1], [0], [0], [1], [0, 0, 1, 1], [], []>} : vector<4x128xbf16>, vector<128x128xbf16>, vector<4x128xf32> -> vector<4x128xf32>
    %144 = arith.addf %135, %143 : vector<4x128xf32>
    %c1_i32_125 = arith.constant 1 : i32
    %145 = arith.addi %1, %c1_i32_125 : i32
    %c0_126 = arith.constant 0 : index
    %c3_127 = arith.constant 3 : index
    %146 = arith.index_cast %145 : i32 to index
    %c0_128 = arith.constant 0 : index
    %c0_129 = arith.constant 0 : index
    %147 = vector.load %arg2[%c0_126, %c3_127, %146, %c0_128, %c0_129] : memref<1x4x4x4x128xbf16, #tpu.memory_space<vmem>>, vector<1x1x2x2x128xbf16>
    %148 = vector.shape_cast %147 : vector<1x1x2x2x128xbf16> to vector<2x2x128xbf16>
    %149 = vector.shape_cast %148 : vector<2x2x128xbf16> to vector<4x128xbf16>
    %c16 = arith.constant 16 : index
    %c0_130 = arith.constant 0 : index
    %c0_131 = arith.constant 0 : index
    %150 = vector.load %arg3[%c16, %c0_130, %c0_131] : memref<25x128x128xbf16, #tpu.memory_space<vmem>>, vector<1x128x128xbf16>
    %151 = vector.shape_cast %150 : vector<1x128x128xbf16> to vector<128x128xbf16>
    %cst_132 = arith.constant dense<0.000000e+00> : vector<4x128xf32>
    %152 = tpu.matmul %149, %151, %cst_132 {dimension_numbers = #tpu.dot_dimension_numbers<[1], [0], [0], [1], [0, 0, 1, 1], [], []>} : vector<4x128xbf16>, vector<128x128xbf16>, vector<4x128xf32> -> vector<4x128xf32>
    %153 = arith.addf %144, %152 : vector<4x128xf32>
    %c1_i32_133 = arith.constant 1 : i32
    %154 = arith.addi %1, %c1_i32_133 : i32
    %c0_134 = arith.constant 0 : index
    %c2_135 = arith.constant 2 : index
    %155 = arith.index_cast %154 : i32 to index
    %c1_136 = arith.constant 1 : index
    %c0_137 = arith.constant 0 : index
    %156 = vector.load %arg2[%c0_134, %c2_135, %155, %c1_136, %c0_137] : memref<1x4x4x4x128xbf16, #tpu.memory_space<vmem>>, vector<1x1x2x2x128xbf16>
    %157 = vector.shape_cast %156 : vector<1x1x2x2x128xbf16> to vector<2x2x128xbf16>
    %158 = vector.shape_cast %157 : vector<2x2x128xbf16> to vector<4x128xbf16>
    %c17 = arith.constant 17 : index
    %c0_138 = arith.constant 0 : index
    %c0_139 = arith.constant 0 : index
    %159 = vector.load %arg3[%c17, %c0_138, %c0_139] : memref<25x128x128xbf16, #tpu.memory_space<vmem>>, vector<1x128x128xbf16>
    %160 = vector.shape_cast %159 : vector<1x128x128xbf16> to vector<128x128xbf16>
    %cst_140 = arith.constant dense<0.000000e+00> : vector<4x128xf32>
    %161 = tpu.matmul %158, %160, %cst_140 {dimension_numbers = #tpu.dot_dimension_numbers<[1], [0], [0], [1], [0, 0, 1, 1], [], []>} : vector<4x128xbf16>, vector<128x128xbf16>, vector<4x128xf32> -> vector<4x128xf32>
    %162 = arith.addf %153, %161 : vector<4x128xf32>
    %c1_i32_141 = arith.constant 1 : i32
    %163 = arith.addi %1, %c1_i32_141 : i32
    %c0_142 = arith.constant 0 : index
    %c3_143 = arith.constant 3 : index
    %164 = arith.index_cast %163 : i32 to index
    %c1_144 = arith.constant 1 : index
    %c0_145 = arith.constant 0 : index
    %165 = vector.load %arg2[%c0_142, %c3_143, %164, %c1_144, %c0_145] : memref<1x4x4x4x128xbf16, #tpu.memory_space<vmem>>, vector<1x1x2x2x128xbf16>
    %166 = vector.shape_cast %165 : vector<1x1x2x2x128xbf16> to vector<2x2x128xbf16>
    %167 = vector.shape_cast %166 : vector<2x2x128xbf16> to vector<4x128xbf16>
    %c18 = arith.constant 18 : index
    %c0_146 = arith.constant 0 : index
    %c0_147 = arith.constant 0 : index
    %168 = vector.load %arg3[%c18, %c0_146, %c0_147] : memref<25x128x128xbf16, #tpu.memory_space<vmem>>, vector<1x128x128xbf16>
    %169 = vector.shape_cast %168 : vector<1x128x128xbf16> to vector<128x128xbf16>
    %cst_148 = arith.constant dense<0.000000e+00> : vector<4x128xf32>
    %170 = tpu.matmul %167, %169, %cst_148 {dimension_numbers = #tpu.dot_dimension_numbers<[1], [0], [0], [1], [0, 0, 1, 1], [], []>} : vector<4x128xbf16>, vector<128x128xbf16>, vector<4x128xf32> -> vector<4x128xf32>
    %171 = arith.addf %162, %170 : vector<4x128xf32>
    %c1_i32_149 = arith.constant 1 : i32
    %172 = arith.addi %1, %c1_i32_149 : i32
    %c0_150 = arith.constant 0 : index
    %c2_151 = arith.constant 2 : index
    %173 = arith.index_cast %172 : i32 to index
    %c2_152 = arith.constant 2 : index
    %c0_153 = arith.constant 0 : index
    %174 = vector.load %arg2[%c0_150, %c2_151, %173, %c2_152, %c0_153] : memref<1x4x4x4x128xbf16, #tpu.memory_space<vmem>>, vector<1x1x2x2x128xbf16>
    %175 = vector.shape_cast %174 : vector<1x1x2x2x128xbf16> to vector<2x2x128xbf16>
    %176 = vector.shape_cast %175 : vector<2x2x128xbf16> to vector<4x128xbf16>
    %c19 = arith.constant 19 : index
    %c0_154 = arith.constant 0 : index
    %c0_155 = arith.constant 0 : index
    %177 = vector.load %arg3[%c19, %c0_154, %c0_155] : memref<25x128x128xbf16, #tpu.memory_space<vmem>>, vector<1x128x128xbf16>
    %178 = vector.shape_cast %177 : vector<1x128x128xbf16> to vector<128x128xbf16>
    %cst_156 = arith.constant dense<0.000000e+00> : vector<4x128xf32>
    %179 = tpu.matmul %176, %178, %cst_156 {dimension_numbers = #tpu.dot_dimension_numbers<[1], [0], [0], [1], [0, 0, 1, 1], [], []>} : vector<4x128xbf16>, vector<128x128xbf16>, vector<4x128xf32> -> vector<4x128xf32>
    %180 = arith.addf %171, %179 : vector<4x128xf32>
    %c2_i32_157 = arith.constant 2 : i32
    %181 = arith.addi %1, %c2_i32_157 : i32
    %c0_158 = arith.constant 0 : index
    %c0_159 = arith.constant 0 : index
    %182 = arith.index_cast %181 : i32 to index
    %c0_160 = arith.constant 0 : index
    %c0_161 = arith.constant 0 : index
    %183 = vector.load %arg2[%c0_158, %c0_159, %182, %c0_160, %c0_161] : memref<1x4x4x4x128xbf16, #tpu.memory_space<vmem>>, vector<1x1x2x2x128xbf16>
    %184 = vector.shape_cast %183 : vector<1x1x2x2x128xbf16> to vector<2x2x128xbf16>
    %185 = vector.shape_cast %184 : vector<2x2x128xbf16> to vector<4x128xbf16>
    %c20 = arith.constant 20 : index
    %c0_162 = arith.constant 0 : index
    %c0_163 = arith.constant 0 : index
    %186 = vector.load %arg3[%c20, %c0_162, %c0_163] : memref<25x128x128xbf16, #tpu.memory_space<vmem>>, vector<1x128x128xbf16>
    %187 = vector.shape_cast %186 : vector<1x128x128xbf16> to vector<128x128xbf16>
    %cst_164 = arith.constant dense<0.000000e+00> : vector<4x128xf32>
    %188 = tpu.matmul %185, %187, %cst_164 {dimension_numbers = #tpu.dot_dimension_numbers<[1], [0], [0], [1], [0, 0, 1, 1], [], []>} : vector<4x128xbf16>, vector<128x128xbf16>, vector<4x128xf32> -> vector<4x128xf32>
    %189 = arith.addf %180, %188 : vector<4x128xf32>
    %c2_i32_165 = arith.constant 2 : i32
    %190 = arith.addi %1, %c2_i32_165 : i32
    %c0_166 = arith.constant 0 : index
    %c1_167 = arith.constant 1 : index
    %191 = arith.index_cast %190 : i32 to index
    %c0_168 = arith.constant 0 : index
    %c0_169 = arith.constant 0 : index
    %192 = vector.load %arg2[%c0_166, %c1_167, %191, %c0_168, %c0_169] : memref<1x4x4x4x128xbf16, #tpu.memory_space<vmem>>, vector<1x1x2x2x128xbf16>
    %193 = vector.shape_cast %192 : vector<1x1x2x2x128xbf16> to vector<2x2x128xbf16>
    %194 = vector.shape_cast %193 : vector<2x2x128xbf16> to vector<4x128xbf16>
    %c21 = arith.constant 21 : index
    %c0_170 = arith.constant 0 : index
    %c0_171 = arith.constant 0 : index
    %195 = vector.load %arg3[%c21, %c0_170, %c0_171] : memref<25x128x128xbf16, #tpu.memory_space<vmem>>, vector<1x128x128xbf16>
    %196 = vector.shape_cast %195 : vector<1x128x128xbf16> to vector<128x128xbf16>
    %cst_172 = arith.constant dense<0.000000e+00> : vector<4x128xf32>
    %197 = tpu.matmul %194, %196, %cst_172 {dimension_numbers = #tpu.dot_dimension_numbers<[1], [0], [0], [1], [0, 0, 1, 1], [], []>} : vector<4x128xbf16>, vector<128x128xbf16>, vector<4x128xf32> -> vector<4x128xf32>
    %198 = arith.addf %189, %197 : vector<4x128xf32>
    %c2_i32_173 = arith.constant 2 : i32
    %199 = arith.addi %1, %c2_i32_173 : i32
    %c0_174 = arith.constant 0 : index
    %c0_175 = arith.constant 0 : index
    %200 = arith.index_cast %199 : i32 to index
    %c1_176 = arith.constant 1 : index
    %c0_177 = arith.constant 0 : index
    %201 = vector.load %arg2[%c0_174, %c0_175, %200, %c1_176, %c0_177] : memref<1x4x4x4x128xbf16, #tpu.memory_space<vmem>>, vector<1x1x2x2x128xbf16>
    %202 = vector.shape_cast %201 : vector<1x1x2x2x128xbf16> to vector<2x2x128xbf16>
    %203 = vector.shape_cast %202 : vector<2x2x128xbf16> to vector<4x128xbf16>
    %c22 = arith.constant 22 : index
    %c0_178 = arith.constant 0 : index
    %c0_179 = arith.constant 0 : index
    %204 = vector.load %arg3[%c22, %c0_178, %c0_179] : memref<25x128x128xbf16, #tpu.memory_space<vmem>>, vector<1x128x128xbf16>
    %205 = vector.shape_cast %204 : vector<1x128x128xbf16> to vector<128x128xbf16>
    %cst_180 = arith.constant dense<0.000000e+00> : vector<4x128xf32>
    %206 = tpu.matmul %203, %205, %cst_180 {dimension_numbers = #tpu.dot_dimension_numbers<[1], [0], [0], [1], [0, 0, 1, 1], [], []>} : vector<4x128xbf16>, vector<128x128xbf16>, vector<4x128xf32> -> vector<4x128xf32>
    %207 = arith.addf %198, %206 : vector<4x128xf32>
    %c2_i32_181 = arith.constant 2 : i32
    %208 = arith.addi %1, %c2_i32_181 : i32
    %c0_182 = arith.constant 0 : index
    %c1_183 = arith.constant 1 : index
    %209 = arith.index_cast %208 : i32 to index
    %c1_184 = arith.constant 1 : index
    %c0_185 = arith.constant 0 : index
    %210 = vector.load %arg2[%c0_182, %c1_183, %209, %c1_184, %c0_185] : memref<1x4x4x4x128xbf16, #tpu.memory_space<vmem>>, vector<1x1x2x2x128xbf16>
    %211 = vector.shape_cast %210 : vector<1x1x2x2x128xbf16> to vector<2x2x128xbf16>
    %212 = vector.shape_cast %211 : vector<2x2x128xbf16> to vector<4x128xbf16>
    %c23 = arith.constant 23 : index
    %c0_186 = arith.constant 0 : index
    %c0_187 = arith.constant 0 : index
    %213 = vector.load %arg3[%c23, %c0_186, %c0_187] : memref<25x128x128xbf16, #tpu.memory_space<vmem>>, vector<1x128x128xbf16>
    %214 = vector.shape_cast %213 : vector<1x128x128xbf16> to vector<128x128xbf16>
    %cst_188 = arith.constant dense<0.000000e+00> : vector<4x128xf32>
    %215 = tpu.matmul %212, %214, %cst_188 {dimension_numbers = #tpu.dot_dimension_numbers<[1], [0], [0], [1], [0, 0, 1, 1], [], []>} : vector<4x128xbf16>, vector<128x128xbf16>, vector<4x128xf32> -> vector<4x128xf32>
    %216 = arith.addf %207, %215 : vector<4x128xf32>
    %c2_i32_189 = arith.constant 2 : i32
    %217 = arith.addi %1, %c2_i32_189 : i32
    %c0_190 = arith.constant 0 : index
    %c0_191 = arith.constant 0 : index
    %218 = arith.index_cast %217 : i32 to index
    %c2_192 = arith.constant 2 : index
    %c0_193 = arith.constant 0 : index
    %219 = vector.load %arg2[%c0_190, %c0_191, %218, %c2_192, %c0_193] : memref<1x4x4x4x128xbf16, #tpu.memory_space<vmem>>, vector<1x1x2x2x128xbf16>
    %220 = vector.shape_cast %219 : vector<1x1x2x2x128xbf16> to vector<2x2x128xbf16>
    %221 = vector.shape_cast %220 : vector<2x2x128xbf16> to vector<4x128xbf16>
    %c24 = arith.constant 24 : index
    %c0_194 = arith.constant 0 : index
    %c0_195 = arith.constant 0 : index
    %222 = vector.load %arg3[%c24, %c0_194, %c0_195] : memref<25x128x128xbf16, #tpu.memory_space<vmem>>, vector<1x128x128xbf16>
    %223 = vector.shape_cast %222 : vector<1x128x128xbf16> to vector<128x128xbf16>
    %cst_196 = arith.constant dense<0.000000e+00> : vector<4x128xf32>
    %224 = tpu.matmul %221, %223, %cst_196 {dimension_numbers = #tpu.dot_dimension_numbers<[1], [0], [0], [1], [0, 0, 1, 1], [], []>} : vector<4x128xbf16>, vector<128x128xbf16>, vector<4x128xf32> -> vector<4x128xf32>
    %225 = arith.addf %216, %224 : vector<4x128xf32>
    %c0_197 = arith.constant 0 : index
    %c0_198 = arith.constant 0 : index
    %226 = vector.load %arg4[%c0_197, %c0_198] : memref<1x128xf32, #tpu.memory_space<vmem>>, vector<1x128xf32>
    %227 = vector.broadcast %226 : vector<1x128xf32> to vector<4x128xf32>
    %228 = arith.addf %225, %227 : vector<4x128xf32>
    %cst_199 = arith.constant 2.000000e-01 : f32
    %229 = vector.broadcast %cst_199 : f32 to vector<4x128xf32>
    %230 = arith.mulf %229, %228 : vector<4x128xf32>
    %231 = arith.maximumf %228, %230 : vector<4x128xf32>
    %232 = vector.shape_cast %231 : vector<4x128xf32> to vector<2x2x128xf32>
    %233 = arith.truncf %232 : vector<2x2x128xf32> to vector<2x2x128xbf16>
    %c0_200 = arith.constant 0 : index
    %c0_201 = arith.constant 0 : index
    %c0_202 = arith.constant 0 : index
    %c0_203 = arith.constant 0 : index
    %234 = vector.load %arg5[%c0_200, %c0_201, %c0_202, %c0_203] : memref<1x2x2x128xbf16, #tpu.memory_space<vmem>>, vector<1x2x2x128xbf16>
    %235 = vector.shape_cast %234 : vector<1x2x2x128xbf16> to vector<2x2x128xbf16>
    %236 = vector.shape_cast %233 : vector<2x2x128xbf16> to vector<1x2x2x128xbf16>
    tpu.vector_store %arg5[%c0_200, %c0_201, %c0_202, %c0_203], %236 {strides = array<i32>} : memref<1x2x2x128xbf16, #tpu.memory_space<vmem>>, vector<1x2x2x128xbf16>,
    return
  }
  func.func @transform_0(%arg0: i32, %arg1: i32) -> (i32, i32, i32, i32, i32) {
    %c0_i32 = arith.constant 0 : i32
    %c0_i32_0 = arith.constant 0 : i32
    %c0_i32_1 = arith.constant 0 : i32
    %c0_i32_2 = arith.constant 0 : i32
    %c0_i32_3 = arith.constant 0 : i32
    return %arg0, %c0_i32, %c0_i32_0, %c0_i32_1, %c0_i32_2 : i32, i32, i32, i32, i32
  }
  func.func @transform_1(%arg0: i32, %arg1: i32) -> (i32, i32, i32) {
    %c0_i32 = arith.constant 0 : i32
    %c0_i32_0 = arith.constant 0 : i32
    %c0_i32_1 = arith.constant 0 : i32
    %c0_i32_2 = arith.constant 0 : i32
    return %c0_i32, %c0_i32_0, %c0_i32_1 : i32, i32, i32
  }
  func.func @transform_2(%arg0: i32, %arg1: i32) -> (i32, i32) {
    %c0_i32 = arith.constant 0 : i32
    %c0_i32_0 = arith.constant 0 : i32
    %c0_i32_1 = arith.constant 0 : i32
    return %c0_i32, %c0_i32_0 : i32, i32
  }
  func.func @transform_3(%arg0: i32, %arg1: i32) -> (i32, i32, i32, i32) {
    %c0_i32 = arith.constant 0 : i32
    %c0_i32_0 = arith.constant 0 : i32
    %c0_i32_1 = arith.constant 0 : i32
    return %arg0, %arg1, %c0_i32, %c0_i32_0 : i32, i32, i32, i32
  }
}

module attributes {stable_mosaic.version = 11 : i64} {
  func.func @kernel(%arg0: i32, %arg1: i32, %arg2: memref<1x4x3x3x128xbf16, #tpu.memory_space<vmem>>, %arg3: memref<25x128x128xbf16, #tpu.memory_space<vmem>>, %arg4: memref<1x128xf32, #tpu.memory_space<vmem>>, %arg5: memref<1x1x1x128xbf16, #tpu.memory_space<vmem>>) attributes {dimension_semantics = [#tpu.dimension_semantics<parallel>, #tpu.dimension_semantics<parallel>], iteration_bounds = array<i64: 2, 1>, scalar_prefetch = 0 : i64, scratch_operands = 0 : i64, tpu.core_type = #tpu.core_type<tc>, window_params = [{transform_indices = @transform_0, window_bounds = array<i64: 1, 4, 3, 3, 128>}, {pipeline_mode = #tpu.pipeline_mode<synchronous>, transform_indices = @transform_1, window_bounds = array<i64: 25, 128, 128>}, {pipeline_mode = #tpu.pipeline_mode<synchronous>, transform_indices = @transform_2, window_bounds = array<i64: 1, 128>}, {transform_indices = @transform_3, window_bounds = array<i64: 1, 1, 1, 128>}]} {
    %c1_i32 = arith.constant 1 : i32
    %0 = arith.muli %arg1, %c1_i32 : i32
    %1 = tpu.assume_multiple %0, 1 : i32
    %c0_i32 = arith.constant 0 : i32
    %2 = arith.addi %1, %c0_i32 : i32
    %c0 = arith.constant 0 : index
    %c0_0 = arith.constant 0 : index
    %3 = arith.index_cast %2 : i32 to index
    %c0_1 = arith.constant 0 : index
    %c0_2 = arith.constant 0 : index
    %4 = vector.load %arg2[%c0, %c0_0, %3, %c0_1, %c0_2] : memref<1x4x3x3x128xbf16, #tpu.memory_space<vmem>>, vector<1x1x1x1x128xbf16>
    %5 = vector.shape_cast %4 : vector<1x1x1x1x128xbf16> to vector<1x1x128xbf16>
    %6 = vector.shape_cast %5 : vector<1x1x128xbf16> to vector<1x128xbf16>
    %c0_3 = arith.constant 0 : index
    %c0_4 = arith.constant 0 : index
    %c0_5 = arith.constant 0 : index
    %7 = vector.load %arg3[%c0_3, %c0_4, %c0_5] : memref<25x128x128xbf16, #tpu.memory_space<vmem>>, vector<1x128x128xbf16>
    %8 = vector.shape_cast %7 : vector<1x128x128xbf16> to vector<128x128xbf16>
    %cst = arith.constant dense<0.000000e+00> : vector<1x128xf32>
    %9 = tpu.matmul %6, %8, %cst {dimension_numbers = #tpu.dot_dimension_numbers<[1], [0], [0], [1], [0, 0, 1, 1], [], []>} : vector<1x128xbf16>, vector<128x128xbf16>, vector<1x128xf32> -> vector<1x128xf32>
    %c0_i32_6 = arith.constant 0 : i32
    %10 = arith.addi %1, %c0_i32_6 : i32
    %c0_7 = arith.constant 0 : index
    %c1 = arith.constant 1 : index
    %11 = arith.index_cast %10 : i32 to index
    %c0_8 = arith.constant 0 : index
    %c0_9 = arith.constant 0 : index
    %12 = vector.load %arg2[%c0_7, %c1, %11, %c0_8, %c0_9] : memref<1x4x3x3x128xbf16, #tpu.memory_space<vmem>>, vector<1x1x1x1x128xbf16>
    %13 = vector.shape_cast %12 : vector<1x1x1x1x128xbf16> to vector<1x1x128xbf16>
    %14 = vector.shape_cast %13 : vector<1x1x128xbf16> to vector<1x128xbf16>
    %c1_10 = arith.constant 1 : index
    %c0_11 = arith.constant 0 : index
    %c0_12 = arith.constant 0 : index
    %15 = vector.load %arg3[%c1_10, %c0_11, %c0_12] : memref<25x128x128xbf16, #tpu.memory_space<vmem>>, vector<1x128x128xbf16>
    %16 = vector.shape_cast %15 : vector<1x128x128xbf16> to vector<128x128xbf16>
    %cst_13 = arith.constant dense<0.000000e+00> : vector<1x128xf32>
    %17 = tpu.matmul %14, %16, %cst_13 {dimension_numbers = #tpu.dot_dimension_numbers<[1], [0], [0], [1], [0, 0, 1, 1], [], []>} : vector<1x128xbf16>, vector<128x128xbf16>, vector<1x128xf32> -> vector<1x128xf32>
    %18 = arith.addf %9, %17 : vector<1x128xf32>
    %c0_i32_14 = arith.constant 0 : i32
    %19 = arith.addi %1, %c0_i32_14 : i32
    %c0_15 = arith.constant 0 : index
    %c0_16 = arith.constant 0 : index
    %20 = arith.index_cast %19 : i32 to index
    %c1_17 = arith.constant 1 : index
    %c0_18 = arith.constant 0 : index
    %21 = vector.load %arg2[%c0_15, %c0_16, %20, %c1_17, %c0_18] : memref<1x4x3x3x128xbf16, #tpu.memory_space<vmem>>, vector<1x1x1x1x128xbf16>
    %22 = vector.shape_cast %21 : vector<1x1x1x1x128xbf16> to vector<1x1x128xbf16>
    %23 = vector.shape_cast %22 : vector<1x1x128xbf16> to vector<1x128xbf16>
    %c2 = arith.constant 2 : index
    %c0_19 = arith.constant 0 : index
    %c0_20 = arith.constant 0 : index
    %24 = vector.load %arg3[%c2, %c0_19, %c0_20] : memref<25x128x128xbf16, #tpu.memory_space<vmem>>, vector<1x128x128xbf16>
    %25 = vector.shape_cast %24 : vector<1x128x128xbf16> to vector<128x128xbf16>
    %cst_21 = arith.constant dense<0.000000e+00> : vector<1x128xf32>
    %26 = tpu.matmul %23, %25, %cst_21 {dimension_numbers = #tpu.dot_dimension_numbers<[1], [0], [0], [1], [0, 0, 1, 1], [], []>} : vector<1x128xbf16>, vector<128x128xbf16>, vector<1x128xf32> -> vector<1x128xf32>
    %27 = arith.addf %18, %26 : vector<1x128xf32>
    %c0_i32_22 = arith.constant 0 : i32
    %28 = arith.addi %1, %c0_i32_22 : i32
    %c0_23 = arith.constant 0 : index
    %c1_24 = arith.constant 1 : index
    %29 = arith.index_cast %28 : i32 to index
    %c1_25 = arith.constant 1 : index
    %c0_26 = arith.constant 0 : index
    %30 = vector.load %arg2[%c0_23, %c1_24, %29, %c1_25, %c0_26] : memref<1x4x3x3x128xbf16, #tpu.memory_space<vmem>>, vector<1x1x1x1x128xbf16>
    %31 = vector.shape_cast %30 : vector<1x1x1x1x128xbf16> to vector<1x1x128xbf16>
    %32 = vector.shape_cast %31 : vector<1x1x128xbf16> to vector<1x128xbf16>
    %c3 = arith.constant 3 : index
    %c0_27 = arith.constant 0 : index
    %c0_28 = arith.constant 0 : index
    %33 = vector.load %arg3[%c3, %c0_27, %c0_28] : memref<25x128x128xbf16, #tpu.memory_space<vmem>>, vector<1x128x128xbf16>
    %34 = vector.shape_cast %33 : vector<1x128x128xbf16> to vector<128x128xbf16>
    %cst_29 = arith.constant dense<0.000000e+00> : vector<1x128xf32>
    %35 = tpu.matmul %32, %34, %cst_29 {dimension_numbers = #tpu.dot_dimension_numbers<[1], [0], [0], [1], [0, 0, 1, 1], [], []>} : vector<1x128xbf16>, vector<128x128xbf16>, vector<1x128xf32> -> vector<1x128xf32>
    %36 = arith.addf %27, %35 : vector<1x128xf32>
    %c0_i32_30 = arith.constant 0 : i32
    %37 = arith.addi %1, %c0_i32_30 : i32
    %c0_31 = arith.constant 0 : index
    %c0_32 = arith.constant 0 : index
    %38 = arith.index_cast %37 : i32 to index
    %c2_33 = arith.constant 2 : index
    %c0_34 = arith.constant 0 : index
    %39 = vector.load %arg2[%c0_31, %c0_32, %38, %c2_33, %c0_34] : memref<1x4x3x3x128xbf16, #tpu.memory_space<vmem>>, vector<1x1x1x1x128xbf16>
    %40 = vector.shape_cast %39 : vector<1x1x1x1x128xbf16> to vector<1x1x128xbf16>
    %41 = vector.shape_cast %40 : vector<1x1x128xbf16> to vector<1x128xbf16>
    %c4 = arith.constant 4 : index
    %c0_35 = arith.constant 0 : index
    %c0_36 = arith.constant 0 : index
    %42 = vector.load %arg3[%c4, %c0_35, %c0_36] : memref<25x128x128xbf16, #tpu.memory_space<vmem>>, vector<1x128x128xbf16>
    %43 = vector.shape_cast %42 : vector<1x128x128xbf16> to vector<128x128xbf16>
    %cst_37 = arith.constant dense<0.000000e+00> : vector<1x128xf32>
    %44 = tpu.matmul %41, %43, %cst_37 {dimension_numbers = #tpu.dot_dimension_numbers<[1], [0], [0], [1], [0, 0, 1, 1], [], []>} : vector<1x128xbf16>, vector<128x128xbf16>, vector<1x128xf32> -> vector<1x128xf32>
    %45 = arith.addf %36, %44 : vector<1x128xf32>
    %c0_i32_38 = arith.constant 0 : i32
    %46 = arith.addi %1, %c0_i32_38 : i32
    %c0_39 = arith.constant 0 : index
    %c2_40 = arith.constant 2 : index
    %47 = arith.index_cast %46 : i32 to index
    %c0_41 = arith.constant 0 : index
    %c0_42 = arith.constant 0 : index
    %48 = vector.load %arg2[%c0_39, %c2_40, %47, %c0_41, %c0_42] : memref<1x4x3x3x128xbf16, #tpu.memory_space<vmem>>, vector<1x1x1x1x128xbf16>
    %49 = vector.shape_cast %48 : vector<1x1x1x1x128xbf16> to vector<1x1x128xbf16>
    %50 = vector.shape_cast %49 : vector<1x1x128xbf16> to vector<1x128xbf16>
    %c5 = arith.constant 5 : index
    %c0_43 = arith.constant 0 : index
    %c0_44 = arith.constant 0 : index
    %51 = vector.load %arg3[%c5, %c0_43, %c0_44] : memref<25x128x128xbf16, #tpu.memory_space<vmem>>, vector<1x128x128xbf16>
    %52 = vector.shape_cast %51 : vector<1x128x128xbf16> to vector<128x128xbf16>
    %cst_45 = arith.constant dense<0.000000e+00> : vector<1x128xf32>
    %53 = tpu.matmul %50, %52, %cst_45 {dimension_numbers = #tpu.dot_dimension_numbers<[1], [0], [0], [1], [0, 0, 1, 1], [], []>} : vector<1x128xbf16>, vector<128x128xbf16>, vector<1x128xf32> -> vector<1x128xf32>
    %54 = arith.addf %45, %53 : vector<1x128xf32>
    %c0_i32_46 = arith.constant 0 : i32
    %55 = arith.addi %1, %c0_i32_46 : i32
    %c0_47 = arith.constant 0 : index
    %c3_48 = arith.constant 3 : index
    %56 = arith.index_cast %55 : i32 to index
    %c0_49 = arith.constant 0 : index
    %c0_50 = arith.constant 0 : index
    %57 = vector.load %arg2[%c0_47, %c3_48, %56, %c0_49, %c0_50] : memref<1x4x3x3x128xbf16, #tpu.memory_space<vmem>>, vector<1x1x1x1x128xbf16>
    %58 = vector.shape_cast %57 : vector<1x1x1x1x128xbf16> to vector<1x1x128xbf16>
    %59 = vector.shape_cast %58 : vector<1x1x128xbf16> to vector<1x128xbf16>
    %c6 = arith.constant 6 : index
    %c0_51 = arith.constant 0 : index
    %c0_52 = arith.constant 0 : index
    %60 = vector.load %arg3[%c6, %c0_51, %c0_52] : memref<25x128x128xbf16, #tpu.memory_space<vmem>>, vector<1x128x128xbf16>
    %61 = vector.shape_cast %60 : vector<1x128x128xbf16> to vector<128x128xbf16>
    %cst_53 = arith.constant dense<0.000000e+00> : vector<1x128xf32>
    %62 = tpu.matmul %59, %61, %cst_53 {dimension_numbers = #tpu.dot_dimension_numbers<[1], [0], [0], [1], [0, 0, 1, 1], [], []>} : vector<1x128xbf16>, vector<128x128xbf16>, vector<1x128xf32> -> vector<1x128xf32>
    %63 = arith.addf %54, %62 : vector<1x128xf32>
    %c0_i32_54 = arith.constant 0 : i32
    %64 = arith.addi %1, %c0_i32_54 : i32
    %c0_55 = arith.constant 0 : index
    %c2_56 = arith.constant 2 : index
    %65 = arith.index_cast %64 : i32 to index
    %c1_57 = arith.constant 1 : index
    %c0_58 = arith.constant 0 : index
    %66 = vector.load %arg2[%c0_55, %c2_56, %65, %c1_57, %c0_58] : memref<1x4x3x3x128xbf16, #tpu.memory_space<vmem>>, vector<1x1x1x1x128xbf16>
    %67 = vector.shape_cast %66 : vector<1x1x1x1x128xbf16> to vector<1x1x128xbf16>
    %68 = vector.shape_cast %67 : vector<1x1x128xbf16> to vector<1x128xbf16>
    %c7 = arith.constant 7 : index
    %c0_59 = arith.constant 0 : index
    %c0_60 = arith.constant 0 : index
    %69 = vector.load %arg3[%c7, %c0_59, %c0_60] : memref<25x128x128xbf16, #tpu.memory_space<vmem>>, vector<1x128x128xbf16>
    %70 = vector.shape_cast %69 : vector<1x128x128xbf16> to vector<128x128xbf16>
    %cst_61 = arith.constant dense<0.000000e+00> : vector<1x128xf32>
    %71 = tpu.matmul %68, %70, %cst_61 {dimension_numbers = #tpu.dot_dimension_numbers<[1], [0], [0], [1], [0, 0, 1, 1], [], []>} : vector<1x128xbf16>, vector<128x128xbf16>, vector<1x128xf32> -> vector<1x128xf32>
    %72 = arith.addf %63, %71 : vector<1x128xf32>
    %c0_i32_62 = arith.constant 0 : i32
    %73 = arith.addi %1, %c0_i32_62 : i32
    %c0_63 = arith.constant 0 : index
    %c3_64 = arith.constant 3 : index
    %74 = arith.index_cast %73 : i32 to index
    %c1_65 = arith.constant 1 : index
    %c0_66 = arith.constant 0 : index
    %75 = vector.load %arg2[%c0_63, %c3_64, %74, %c1_65, %c0_66] : memref<1x4x3x3x128xbf16, #tpu.memory_space<vmem>>, vector<1x1x1x1x128xbf16>
    %76 = vector.shape_cast %75 : vector<1x1x1x1x128xbf16> to vector<1x1x128xbf16>
    %77 = vector.shape_cast %76 : vector<1x1x128xbf16> to vector<1x128xbf16>
    %c8 = arith.constant 8 : index
    %c0_67 = arith.constant 0 : index
    %c0_68 = arith.constant 0 : index
    %78 = vector.load %arg3[%c8, %c0_67, %c0_68] : memref<25x128x128xbf16, #tpu.memory_space<vmem>>, vector<1x128x128xbf16>
    %79 = vector.shape_cast %78 : vector<1x128x128xbf16> to vector<128x128xbf16>
    %cst_69 = arith.constant dense<0.000000e+00> : vector<1x128xf32>
    %80 = tpu.matmul %77, %79, %cst_69 {dimension_numbers = #tpu.dot_dimension_numbers<[1], [0], [0], [1], [0, 0, 1, 1], [], []>} : vector<1x128xbf16>, vector<128x128xbf16>, vector<1x128xf32> -> vector<1x128xf32>
    %81 = arith.addf %72, %80 : vector<1x128xf32>
    %c0_i32_70 = arith.constant 0 : i32
    %82 = arith.addi %1, %c0_i32_70 : i32
    %c0_71 = arith.constant 0 : index
    %c2_72 = arith.constant 2 : index
    %83 = arith.index_cast %82 : i32 to index
    %c2_73 = arith.constant 2 : index
    %c0_74 = arith.constant 0 : index
    %84 = vector.load %arg2[%c0_71, %c2_72, %83, %c2_73, %c0_74] : memref<1x4x3x3x128xbf16, #tpu.memory_space<vmem>>, vector<1x1x1x1x128xbf16>
    %85 = vector.shape_cast %84 : vector<1x1x1x1x128xbf16> to vector<1x1x128xbf16>
    %86 = vector.shape_cast %85 : vector<1x1x128xbf16> to vector<1x128xbf16>
    %c9 = arith.constant 9 : index
    %c0_75 = arith.constant 0 : index
    %c0_76 = arith.constant 0 : index
    %87 = vector.load %arg3[%c9, %c0_75, %c0_76] : memref<25x128x128xbf16, #tpu.memory_space<vmem>>, vector<1x128x128xbf16>
    %88 = vector.shape_cast %87 : vector<1x128x128xbf16> to vector<128x128xbf16>
    %cst_77 = arith.constant dense<0.000000e+00> : vector<1x128xf32>
    %89 = tpu.matmul %86, %88, %cst_77 {dimension_numbers = #tpu.dot_dimension_numbers<[1], [0], [0], [1], [0, 0, 1, 1], [], []>} : vector<1x128xbf16>, vector<128x128xbf16>, vector<1x128xf32> -> vector<1x128xf32>
    %90 = arith.addf %81, %89 : vector<1x128xf32>
    %c1_i32_78 = arith.constant 1 : i32
    %91 = arith.addi %1, %c1_i32_78 : i32
    %c0_79 = arith.constant 0 : index
    %c0_80 = arith.constant 0 : index
    %92 = arith.index_cast %91 : i32 to index
    %c0_81 = arith.constant 0 : index
    %c0_82 = arith.constant 0 : index
    %93 = vector.load %arg2[%c0_79, %c0_80, %92, %c0_81, %c0_82] : memref<1x4x3x3x128xbf16, #tpu.memory_space<vmem>>, vector<1x1x1x1x128xbf16>
    %94 = vector.shape_cast %93 : vector<1x1x1x1x128xbf16> to vector<1x1x128xbf16>
    %95 = vector.shape_cast %94 : vector<1x1x128xbf16> to vector<1x128xbf16>
    %c10 = arith.constant 10 : index
    %c0_83 = arith.constant 0 : index
    %c0_84 = arith.constant 0 : index
    %96 = vector.load %arg3[%c10, %c0_83, %c0_84] : memref<25x128x128xbf16, #tpu.memory_space<vmem>>, vector<1x128x128xbf16>
    %97 = vector.shape_cast %96 : vector<1x128x128xbf16> to vector<128x128xbf16>
    %cst_85 = arith.constant dense<0.000000e+00> : vector<1x128xf32>
    %98 = tpu.matmul %95, %97, %cst_85 {dimension_numbers = #tpu.dot_dimension_numbers<[1], [0], [0], [1], [0, 0, 1, 1], [], []>} : vector<1x128xbf16>, vector<128x128xbf16>, vector<1x128xf32> -> vector<1x128xf32>
    %99 = arith.addf %90, %98 : vector<1x128xf32>
    %c1_i32_86 = arith.constant 1 : i32
    %100 = arith.addi %1, %c1_i32_86 : i32
    %c0_87 = arith.constant 0 : index
    %c1_88 = arith.constant 1 : index
    %101 = arith.index_cast %100 : i32 to index
    %c0_89 = arith.constant 0 : index
    %c0_90 = arith.constant 0 : index
    %102 = vector.load %arg2[%c0_87, %c1_88, %101, %c0_89, %c0_90] : memref<1x4x3x3x128xbf16, #tpu.memory_space<vmem>>, vector<1x1x1x1x128xbf16>
    %103 = vector.shape_cast %102 : vector<1x1x1x1x128xbf16> to vector<1x1x128xbf16>
    %104 = vector.shape_cast %103 : vector<1x1x128xbf16> to vector<1x128xbf16>
    %c11 = arith.constant 11 : index
    %c0_91 = arith.constant 0 : index
    %c0_92 = arith.constant 0 : index
    %105 = vector.load %arg3[%c11, %c0_91, %c0_92] : memref<25x128x128xbf16, #tpu.memory_space<vmem>>, vector<1x128x128xbf16>
    %106 = vector.shape_cast %105 : vector<1x128x128xbf16> to vector<128x128xbf16>
    %cst_93 = arith.constant dense<0.000000e+00> : vector<1x128xf32>
    %107 = tpu.matmul %104, %106, %cst_93 {dimension_numbers = #tpu.dot_dimension_numbers<[1], [0], [0], [1], [0, 0, 1, 1], [], []>} : vector<1x128xbf16>, vector<128x128xbf16>, vector<1x128xf32> -> vector<1x128xf32>
    %108 = arith.addf %99, %107 : vector<1x128xf32>
    %c1_i32_94 = arith.constant 1 : i32
    %109 = arith.addi %1, %c1_i32_94 : i32
    %c0_95 = arith.constant 0 : index
    %c0_96 = arith.constant 0 : index
    %110 = arith.index_cast %109 : i32 to index
    %c1_97 = arith.constant 1 : index
    %c0_98 = arith.constant 0 : index
    %111 = vector.load %arg2[%c0_95, %c0_96, %110, %c1_97, %c0_98] : memref<1x4x3x3x128xbf16, #tpu.memory_space<vmem>>, vector<1x1x1x1x128xbf16>
    %112 = vector.shape_cast %111 : vector<1x1x1x1x128xbf16> to vector<1x1x128xbf16>
    %113 = vector.shape_cast %112 : vector<1x1x128xbf16> to vector<1x128xbf16>
    %c12 = arith.constant 12 : index
    %c0_99 = arith.constant 0 : index
    %c0_100 = arith.constant 0 : index
    %114 = vector.load %arg3[%c12, %c0_99, %c0_100] : memref<25x128x128xbf16, #tpu.memory_space<vmem>>, vector<1x128x128xbf16>
    %115 = vector.shape_cast %114 : vector<1x128x128xbf16> to vector<128x128xbf16>
    %cst_101 = arith.constant dense<0.000000e+00> : vector<1x128xf32>
    %116 = tpu.matmul %113, %115, %cst_101 {dimension_numbers = #tpu.dot_dimension_numbers<[1], [0], [0], [1], [0, 0, 1, 1], [], []>} : vector<1x128xbf16>, vector<128x128xbf16>, vector<1x128xf32> -> vector<1x128xf32>
    %117 = arith.addf %108, %116 : vector<1x128xf32>
    %c1_i32_102 = arith.constant 1 : i32
    %118 = arith.addi %1, %c1_i32_102 : i32
    %c0_103 = arith.constant 0 : index
    %c1_104 = arith.constant 1 : index
    %119 = arith.index_cast %118 : i32 to index
    %c1_105 = arith.constant 1 : index
    %c0_106 = arith.constant 0 : index
    %120 = vector.load %arg2[%c0_103, %c1_104, %119, %c1_105, %c0_106] : memref<1x4x3x3x128xbf16, #tpu.memory_space<vmem>>, vector<1x1x1x1x128xbf16>
    %121 = vector.shape_cast %120 : vector<1x1x1x1x128xbf16> to vector<1x1x128xbf16>
    %122 = vector.shape_cast %121 : vector<1x1x128xbf16> to vector<1x128xbf16>
    %c13 = arith.constant 13 : index
    %c0_107 = arith.constant 0 : index
    %c0_108 = arith.constant 0 : index
    %123 = vector.load %arg3[%c13, %c0_107, %c0_108] : memref<25x128x128xbf16, #tpu.memory_space<vmem>>, vector<1x128x128xbf16>
    %124 = vector.shape_cast %123 : vector<1x128x128xbf16> to vector<128x128xbf16>
    %cst_109 = arith.constant dense<0.000000e+00> : vector<1x128xf32>
    %125 = tpu.matmul %122, %124, %cst_109 {dimension_numbers = #tpu.dot_dimension_numbers<[1], [0], [0], [1], [0, 0, 1, 1], [], []>} : vector<1x128xbf16>, vector<128x128xbf16>, vector<1x128xf32> -> vector<1x128xf32>
    %126 = arith.addf %117, %125 : vector<1x128xf32>
    %c1_i32_110 = arith.constant 1 : i32
    %127 = arith.addi %1, %c1_i32_110 : i32
    %c0_111 = arith.constant 0 : index
    %c0_112 = arith.constant 0 : index
    %128 = arith.index_cast %127 : i32 to index
    %c2_113 = arith.constant 2 : index
    %c0_114 = arith.constant 0 : index
    %129 = vector.load %arg2[%c0_111, %c0_112, %128, %c2_113, %c0_114] : memref<1x4x3x3x128xbf16, #tpu.memory_space<vmem>>, vector<1x1x1x1x128xbf16>
    %130 = vector.shape_cast %129 : vector<1x1x1x1x128xbf16> to vector<1x1x128xbf16>
    %131 = vector.shape_cast %130 : vector<1x1x128xbf16> to vector<1x128xbf16>
    %c14 = arith.constant 14 : index
    %c0_115 = arith.constant 0 : index
    %c0_116 = arith.constant 0 : index
    %132 = vector.load %arg3[%c14, %c0_115, %c0_116] : memref<25x128x128xbf16, #tpu.memory_space<vmem>>, vector<1x128x128xbf16>
    %133 = vector.shape_cast %132 : vector<1x128x128xbf16> to vector<128x128xbf16>
    %cst_117 = arith.constant dense<0.000000e+00> : vector<1x128xf32>
    %134 = tpu.matmul %131, %133, %cst_117 {dimension_numbers = #tpu.dot_dimension_numbers<[1], [0], [0], [1], [0, 0, 1, 1], [], []>} : vector<1x128xbf16>, vector<128x128xbf16>, vector<1x128xf32> -> vector<1x128xf32>
    %135 = arith.addf %126, %134 : vector<1x128xf32>
    %c1_i32_118 = arith.constant 1 : i32
    %136 = arith.addi %1, %c1_i32_118 : i32
    %c0_119 = arith.constant 0 : index
    %c2_120 = arith.constant 2 : index
    %137 = arith.index_cast %136 : i32 to index
    %c0_121 = arith.constant 0 : index
    %c0_122 = arith.constant 0 : index
    %138 = vector.load %arg2[%c0_119, %c2_120, %137, %c0_121, %c0_122] : memref<1x4x3x3x128xbf16, #tpu.memory_space<vmem>>, vector<1x1x1x1x128xbf16>
    %139 = vector.shape_cast %138 : vector<1x1x1x1x128xbf16> to vector<1x1x128xbf16>
    %140 = vector.shape_cast %139 : vector<1x1x128xbf16> to vector<1x128xbf16>
    %c15 = arith.constant 15 : index
    %c0_123 = arith.constant 0 : index
    %c0_124 = arith.constant 0 : index
    %141 = vector.load %arg3[%c15, %c0_123, %c0_124] : memref<25x128x128xbf16, #tpu.memory_space<vmem>>, vector<1x128x128xbf16>
    %142 = vector.shape_cast %141 : vector<1x128x128xbf16> to vector<128x128xbf16>
    %cst_125 = arith.constant dense<0.000000e+00> : vector<1x128xf32>
    %143 = tpu.matmul %140, %142, %cst_125 {dimension_numbers = #tpu.dot_dimension_numbers<[1], [0], [0], [1], [0, 0, 1, 1], [], []>} : vector<1x128xbf16>, vector<128x128xbf16>, vector<1x128xf32> -> vector<1x128xf32>
    %144 = arith.addf %135, %143 : vector<1x128xf32>
    %c1_i32_126 = arith.constant 1 : i32
    %145 = arith.addi %1, %c1_i32_126 : i32
    %c0_127 = arith.constant 0 : index
    %c3_128 = arith.constant 3 : index
    %146 = arith.index_cast %145 : i32 to index
    %c0_129 = arith.constant 0 : index
    %c0_130 = arith.constant 0 : index
    %147 = vector.load %arg2[%c0_127, %c3_128, %146, %c0_129, %c0_130] : memref<1x4x3x3x128xbf16, #tpu.memory_space<vmem>>, vector<1x1x1x1x128xbf16>
    %148 = vector.shape_cast %147 : vector<1x1x1x1x128xbf16> to vector<1x1x128xbf16>
    %149 = vector.shape_cast %148 : vector<1x1x128xbf16> to vector<1x128xbf16>
    %c16 = arith.constant 16 : index
    %c0_131 = arith.constant 0 : index
    %c0_132 = arith.constant 0 : index
    %150 = vector.load %arg3[%c16, %c0_131, %c0_132] : memref<25x128x128xbf16, #tpu.memory_space<vmem>>, vector<1x128x128xbf16>
    %151 = vector.shape_cast %150 : vector<1x128x128xbf16> to vector<128x128xbf16>
    %cst_133 = arith.constant dense<0.000000e+00> : vector<1x128xf32>
    %152 = tpu.matmul %149, %151, %cst_133 {dimension_numbers = #tpu.dot_dimension_numbers<[1], [0], [0], [1], [0, 0, 1, 1], [], []>} : vector<1x128xbf16>, vector<128x128xbf16>, vector<1x128xf32> -> vector<1x128xf32>
    %153 = arith.addf %144, %152 : vector<1x128xf32>
    %c1_i32_134 = arith.constant 1 : i32
    %154 = arith.addi %1, %c1_i32_134 : i32
    %c0_135 = arith.constant 0 : index
    %c2_136 = arith.constant 2 : index
    %155 = arith.index_cast %154 : i32 to index
    %c1_137 = arith.constant 1 : index
    %c0_138 = arith.constant 0 : index
    %156 = vector.load %arg2[%c0_135, %c2_136, %155, %c1_137, %c0_138] : memref<1x4x3x3x128xbf16, #tpu.memory_space<vmem>>, vector<1x1x1x1x128xbf16>
    %157 = vector.shape_cast %156 : vector<1x1x1x1x128xbf16> to vector<1x1x128xbf16>
    %158 = vector.shape_cast %157 : vector<1x1x128xbf16> to vector<1x128xbf16>
    %c17 = arith.constant 17 : index
    %c0_139 = arith.constant 0 : index
    %c0_140 = arith.constant 0 : index
    %159 = vector.load %arg3[%c17, %c0_139, %c0_140] : memref<25x128x128xbf16, #tpu.memory_space<vmem>>, vector<1x128x128xbf16>
    %160 = vector.shape_cast %159 : vector<1x128x128xbf16> to vector<128x128xbf16>
    %cst_141 = arith.constant dense<0.000000e+00> : vector<1x128xf32>
    %161 = tpu.matmul %158, %160, %cst_141 {dimension_numbers = #tpu.dot_dimension_numbers<[1], [0], [0], [1], [0, 0, 1, 1], [], []>} : vector<1x128xbf16>, vector<128x128xbf16>, vector<1x128xf32> -> vector<1x128xf32>
    %162 = arith.addf %153, %161 : vector<1x128xf32>
    %c1_i32_142 = arith.constant 1 : i32
    %163 = arith.addi %1, %c1_i32_142 : i32
    %c0_143 = arith.constant 0 : index
    %c3_144 = arith.constant 3 : index
    %164 = arith.index_cast %163 : i32 to index
    %c1_145 = arith.constant 1 : index
    %c0_146 = arith.constant 0 : index
    %165 = vector.load %arg2[%c0_143, %c3_144, %164, %c1_145, %c0_146] : memref<1x4x3x3x128xbf16, #tpu.memory_space<vmem>>, vector<1x1x1x1x128xbf16>
    %166 = vector.shape_cast %165 : vector<1x1x1x1x128xbf16> to vector<1x1x128xbf16>
    %167 = vector.shape_cast %166 : vector<1x1x128xbf16> to vector<1x128xbf16>
    %c18 = arith.constant 18 : index
    %c0_147 = arith.constant 0 : index
    %c0_148 = arith.constant 0 : index
    %168 = vector.load %arg3[%c18, %c0_147, %c0_148] : memref<25x128x128xbf16, #tpu.memory_space<vmem>>, vector<1x128x128xbf16>
    %169 = vector.shape_cast %168 : vector<1x128x128xbf16> to vector<128x128xbf16>
    %cst_149 = arith.constant dense<0.000000e+00> : vector<1x128xf32>
    %170 = tpu.matmul %167, %169, %cst_149 {dimension_numbers = #tpu.dot_dimension_numbers<[1], [0], [0], [1], [0, 0, 1, 1], [], []>} : vector<1x128xbf16>, vector<128x128xbf16>, vector<1x128xf32> -> vector<1x128xf32>
    %171 = arith.addf %162, %170 : vector<1x128xf32>
    %c1_i32_150 = arith.constant 1 : i32
    %172 = arith.addi %1, %c1_i32_150 : i32
    %c0_151 = arith.constant 0 : index
    %c2_152 = arith.constant 2 : index
    %173 = arith.index_cast %172 : i32 to index
    %c2_153 = arith.constant 2 : index
    %c0_154 = arith.constant 0 : index
    %174 = vector.load %arg2[%c0_151, %c2_152, %173, %c2_153, %c0_154] : memref<1x4x3x3x128xbf16, #tpu.memory_space<vmem>>, vector<1x1x1x1x128xbf16>
    %175 = vector.shape_cast %174 : vector<1x1x1x1x128xbf16> to vector<1x1x128xbf16>
    %176 = vector.shape_cast %175 : vector<1x1x128xbf16> to vector<1x128xbf16>
    %c19 = arith.constant 19 : index
    %c0_155 = arith.constant 0 : index
    %c0_156 = arith.constant 0 : index
    %177 = vector.load %arg3[%c19, %c0_155, %c0_156] : memref<25x128x128xbf16, #tpu.memory_space<vmem>>, vector<1x128x128xbf16>
    %178 = vector.shape_cast %177 : vector<1x128x128xbf16> to vector<128x128xbf16>
    %cst_157 = arith.constant dense<0.000000e+00> : vector<1x128xf32>
    %179 = tpu.matmul %176, %178, %cst_157 {dimension_numbers = #tpu.dot_dimension_numbers<[1], [0], [0], [1], [0, 0, 1, 1], [], []>} : vector<1x128xbf16>, vector<128x128xbf16>, vector<1x128xf32> -> vector<1x128xf32>
    %180 = arith.addf %171, %179 : vector<1x128xf32>
    %c2_i32 = arith.constant 2 : i32
    %181 = arith.addi %1, %c2_i32 : i32
    %c0_158 = arith.constant 0 : index
    %c0_159 = arith.constant 0 : index
    %182 = arith.index_cast %181 : i32 to index
    %c0_160 = arith.constant 0 : index
    %c0_161 = arith.constant 0 : index
    %183 = vector.load %arg2[%c0_158, %c0_159, %182, %c0_160, %c0_161] : memref<1x4x3x3x128xbf16, #tpu.memory_space<vmem>>, vector<1x1x1x1x128xbf16>
    %184 = vector.shape_cast %183 : vector<1x1x1x1x128xbf16> to vector<1x1x128xbf16>
    %185 = vector.shape_cast %184 : vector<1x1x128xbf16> to vector<1x128xbf16>
    %c20 = arith.constant 20 : index
    %c0_162 = arith.constant 0 : index
    %c0_163 = arith.constant 0 : index
    %186 = vector.load %arg3[%c20, %c0_162, %c0_163] : memref<25x128x128xbf16, #tpu.memory_space<vmem>>, vector<1x128x128xbf16>
    %187 = vector.shape_cast %186 : vector<1x128x128xbf16> to vector<128x128xbf16>
    %cst_164 = arith.constant dense<0.000000e+00> : vector<1x128xf32>
    %188 = tpu.matmul %185, %187, %cst_164 {dimension_numbers = #tpu.dot_dimension_numbers<[1], [0], [0], [1], [0, 0, 1, 1], [], []>} : vector<1x128xbf16>, vector<128x128xbf16>, vector<1x128xf32> -> vector<1x128xf32>
    %189 = arith.addf %180, %188 : vector<1x128xf32>
    %c2_i32_165 = arith.constant 2 : i32
    %190 = arith.addi %1, %c2_i32_165 : i32
    %c0_166 = arith.constant 0 : index
    %c1_167 = arith.constant 1 : index
    %191 = arith.index_cast %190 : i32 to index
    %c0_168 = arith.constant 0 : index
    %c0_169 = arith.constant 0 : index
    %192 = vector.load %arg2[%c0_166, %c1_167, %191, %c0_168, %c0_169] : memref<1x4x3x3x128xbf16, #tpu.memory_space<vmem>>, vector<1x1x1x1x128xbf16>
    %193 = vector.shape_cast %192 : vector<1x1x1x1x128xbf16> to vector<1x1x128xbf16>
    %194 = vector.shape_cast %193 : vector<1x1x128xbf16> to vector<1x128xbf16>
    %c21 = arith.constant 21 : index
    %c0_170 = arith.constant 0 : index
    %c0_171 = arith.constant 0 : index
    %195 = vector.load %arg3[%c21, %c0_170, %c0_171] : memref<25x128x128xbf16, #tpu.memory_space<vmem>>, vector<1x128x128xbf16>
    %196 = vector.shape_cast %195 : vector<1x128x128xbf16> to vector<128x128xbf16>
    %cst_172 = arith.constant dense<0.000000e+00> : vector<1x128xf32>
    %197 = tpu.matmul %194, %196, %cst_172 {dimension_numbers = #tpu.dot_dimension_numbers<[1], [0], [0], [1], [0, 0, 1, 1], [], []>} : vector<1x128xbf16>, vector<128x128xbf16>, vector<1x128xf32> -> vector<1x128xf32>
    %198 = arith.addf %189, %197 : vector<1x128xf32>
    %c2_i32_173 = arith.constant 2 : i32
    %199 = arith.addi %1, %c2_i32_173 : i32
    %c0_174 = arith.constant 0 : index
    %c0_175 = arith.constant 0 : index
    %200 = arith.index_cast %199 : i32 to index
    %c1_176 = arith.constant 1 : index
    %c0_177 = arith.constant 0 : index
    %201 = vector.load %arg2[%c0_174, %c0_175, %200, %c1_176, %c0_177] : memref<1x4x3x3x128xbf16, #tpu.memory_space<vmem>>, vector<1x1x1x1x128xbf16>
    %202 = vector.shape_cast %201 : vector<1x1x1x1x128xbf16> to vector<1x1x128xbf16>
    %203 = vector.shape_cast %202 : vector<1x1x128xbf16> to vector<1x128xbf16>
    %c22 = arith.constant 22 : index
    %c0_178 = arith.constant 0 : index
    %c0_179 = arith.constant 0 : index
    %204 = vector.load %arg3[%c22, %c0_178, %c0_179] : memref<25x128x128xbf16, #tpu.memory_space<vmem>>, vector<1x128x128xbf16>
    %205 = vector.shape_cast %204 : vector<1x128x128xbf16> to vector<128x128xbf16>
    %cst_180 = arith.constant dense<0.000000e+00> : vector<1x128xf32>
    %206 = tpu.matmul %203, %205, %cst_180 {dimension_numbers = #tpu.dot_dimension_numbers<[1], [0], [0], [1], [0, 0, 1, 1], [], []>} : vector<1x128xbf16>, vector<128x128xbf16>, vector<1x128xf32> -> vector<1x128xf32>
    %207 = arith.addf %198, %206 : vector<1x128xf32>
    %c2_i32_181 = arith.constant 2 : i32
    %208 = arith.addi %1, %c2_i32_181 : i32
    %c0_182 = arith.constant 0 : index
    %c1_183 = arith.constant 1 : index
    %209 = arith.index_cast %208 : i32 to index
    %c1_184 = arith.constant 1 : index
    %c0_185 = arith.constant 0 : index
    %210 = vector.load %arg2[%c0_182, %c1_183, %209, %c1_184, %c0_185] : memref<1x4x3x3x128xbf16, #tpu.memory_space<vmem>>, vector<1x1x1x1x128xbf16>
    %211 = vector.shape_cast %210 : vector<1x1x1x1x128xbf16> to vector<1x1x128xbf16>
    %212 = vector.shape_cast %211 : vector<1x1x128xbf16> to vector<1x128xbf16>
    %c23 = arith.constant 23 : index
    %c0_186 = arith.constant 0 : index
    %c0_187 = arith.constant 0 : index
    %213 = vector.load %arg3[%c23, %c0_186, %c0_187] : memref<25x128x128xbf16, #tpu.memory_space<vmem>>, vector<1x128x128xbf16>
    %214 = vector.shape_cast %213 : vector<1x128x128xbf16> to vector<128x128xbf16>
    %cst_188 = arith.constant dense<0.000000e+00> : vector<1x128xf32>
    %215 = tpu.matmul %212, %214, %cst_188 {dimension_numbers = #tpu.dot_dimension_numbers<[1], [0], [0], [1], [0, 0, 1, 1], [], []>} : vector<1x128xbf16>, vector<128x128xbf16>, vector<1x128xf32> -> vector<1x128xf32>
    %216 = arith.addf %207, %215 : vector<1x128xf32>
    %c2_i32_189 = arith.constant 2 : i32
    %217 = arith.addi %1, %c2_i32_189 : i32
    %c0_190 = arith.constant 0 : index
    %c0_191 = arith.constant 0 : index
    %218 = arith.index_cast %217 : i32 to index
    %c2_192 = arith.constant 2 : index
    %c0_193 = arith.constant 0 : index
    %219 = vector.load %arg2[%c0_190, %c0_191, %218, %c2_192, %c0_193] : memref<1x4x3x3x128xbf16, #tpu.memory_space<vmem>>, vector<1x1x1x1x128xbf16>
    %220 = vector.shape_cast %219 : vector<1x1x1x1x128xbf16> to vector<1x1x128xbf16>
    %221 = vector.shape_cast %220 : vector<1x1x128xbf16> to vector<1x128xbf16>
    %c24 = arith.constant 24 : index
    %c0_194 = arith.constant 0 : index
    %c0_195 = arith.constant 0 : index
    %222 = vector.load %arg3[%c24, %c0_194, %c0_195] : memref<25x128x128xbf16, #tpu.memory_space<vmem>>, vector<1x128x128xbf16>
    %223 = vector.shape_cast %222 : vector<1x128x128xbf16> to vector<128x128xbf16>
    %cst_196 = arith.constant dense<0.000000e+00> : vector<1x128xf32>
    %224 = tpu.matmul %221, %223, %cst_196 {dimension_numbers = #tpu.dot_dimension_numbers<[1], [0], [0], [1], [0, 0, 1, 1], [], []>} : vector<1x128xbf16>, vector<128x128xbf16>, vector<1x128xf32> -> vector<1x128xf32>
    %225 = arith.addf %216, %224 : vector<1x128xf32>
    %c0_197 = arith.constant 0 : index
    %c0_198 = arith.constant 0 : index
    %226 = vector.load %arg4[%c0_197, %c0_198] : memref<1x128xf32, #tpu.memory_space<vmem>>, vector<1x128xf32>
    %227 = arith.addf %225, %226 : vector<1x128xf32>
    %cst_199 = arith.constant 2.000000e-01 : f32
    %228 = vector.broadcast %cst_199 : f32 to vector<1x128xf32>
    %229 = arith.mulf %228, %227 : vector<1x128xf32>
    %230 = arith.maximumf %227, %229 : vector<1x128xf32>
    %231 = vector.shape_cast %230 : vector<1x128xf32> to vector<1x1x128xf32>
    %232 = arith.truncf %231 : vector<1x1x128xf32> to vector<1x1x128xbf16>
    %c0_200 = arith.constant 0 : index
    %c0_201 = arith.constant 0 : index
    %c0_202 = arith.constant 0 : index
    %c0_203 = arith.constant 0 : index
    %233 = vector.load %arg5[%c0_200, %c0_201, %c0_202, %c0_203] : memref<1x1x1x128xbf16, #tpu.memory_space<vmem>>, vector<1x1x1x128xbf16>
    %234 = vector.shape_cast %233 : vector<1x1x1x128xbf16> to vector<1x1x128xbf16>
    %235 = vector.shape_cast %232 : vector<1x1x128xbf16> to vector<1x1x1x128xbf16>
    tpu.vector_store %arg5[%c0_200, %c0_201, %c0_202, %c0_203], %235 {strides = array<i32>} : memref<1x1x1x128xbf16, #tpu.memory_space<vmem>>, vector<1x1x1x128xbf16>,
    return
  }
  func.func @transform_0(%arg0: i32, %arg1: i32) -> (i32, i32, i32, i32, i32) {
    %c0_i32 = arith.constant 0 : i32
    %c0_i32_0 = arith.constant 0 : i32
    %c0_i32_1 = arith.constant 0 : i32
    %c0_i32_2 = arith.constant 0 : i32
    %c0_i32_3 = arith.constant 0 : i32
    return %arg0, %c0_i32, %c0_i32_0, %c0_i32_1, %c0_i32_2 : i32, i32, i32, i32, i32
  }
  func.func @transform_1(%arg0: i32, %arg1: i32) -> (i32, i32, i32) {
    %c0_i32 = arith.constant 0 : i32
    %c0_i32_0 = arith.constant 0 : i32
    %c0_i32_1 = arith.constant 0 : i32
    %c0_i32_2 = arith.constant 0 : i32
    return %c0_i32, %c0_i32_0, %c0_i32_1 : i32, i32, i32
  }
  func.func @transform_2(%arg0: i32, %arg1: i32) -> (i32, i32) {
    %c0_i32 = arith.constant 0 : i32
    %c0_i32_0 = arith.constant 0 : i32
    %c0_i32_1 = arith.constant 0 : i32
    return %c0_i32, %c0_i32_0 : i32, i32
  }
  func.func @transform_3(%arg0: i32, %arg1: i32) -> (i32, i32, i32, i32) {
    %c0_i32 = arith.constant 0 : i32
    %c0_i32_0 = arith.constant 0 : i32
    %c0_i32_1 = arith.constant 0 : i32
    return %arg0, %arg1, %c0_i32, %c0_i32_0 : i32, i32, i32, i32
  }
}

</mosaic_0001>

<bundles_post_ra>
// kernel: patch_discriminator.5
= control target key start
LH: loop header
LB: loop body
LE: loop exit
PB: predicated region body
PF: predicated region fallthrough
CT: control target
= control target key end

     0   :  { %s647_s12 = smov 0   ;;  %s649_s13 = smov 0   ;;  %s718_s0 = inlined_call_operand.vmem [shape: bf16[2,8,8,128], index: 0, kind: input, shape index: {}]   ;;  %s719_s1 = inlined_call_operand.vmem [shape: bf16[128,128], index: 1, kind: input, shape index: {}]   ;;  %s720_s2 = inlined_call_operand.vmem [shape: f32[1,128], index: 2, kind: input, shape index: {}]   ;;  %s721_s3 = inlined_call_operand.vmem [shape: bf16[2,8,8,128], index: 3, kind: output, shape index: {}]  }
   0x1   :  { %s651_s14 = smov 0  }
   0x2 LB: > { %s25_s15 = sadd.s32 1, %s621_s13  ;;  %p462_p0 = scmp.ge.s32.totalorder %s625_s14, 1  ;;  %s625_s14 = sphi %s651_s14, %s13_s14   ;;  %s621_s13 = sphi %s649_s13, %s723_s13   ;;  %s617_s12 = sphi %s647_s12, %s722_s12  }
   0x3   : > { %p27_p1 = scmp.ge.s32.totalorder %s25_s15, 2  ;;  %p158_p2 = scmp.lt.s32.totalorder %s625_s14, 3 }
   0x5   : > { %s725_s15 = smov (%p27_p1, %s25_s15), 0  ;;  %p159_p3 = pnand %p462_p0, %p158_p2 }
   0x6   : > { %p191_p4 = scmp.lt.s32.totalorder (!%p159_p3), %s617_s12, 1 }
   0x7   : > { %162 = sbr.rel (%p159_p3) target bundleno = 195 (0xc3), region = 32 }
   0xc   : > { %v530_v0 = vld [vmem:[%s719_s1 + $0x38] sm:$0xff]  ;;  %v529_v1 = vld [vmem:[%s719_s1 + $0x30] sm:$0xff]  ;;  %v528_v2 = vld [vmem:[%s719_s1 + $0x28] sm:$0xff]  ;;  %s727_s12 = smov (!%p191_p4, %s617_s12), 1 }
   0xd   : > { %310 = vmatpush.bf16.msra.mxu0 %v530_v0  ;;  %554 = vmatpush.bf16.msra.mxu1 %v530_v0  ;;  %v527_v3 = vld [vmem:[%s719_s1 + $0x20] sm:$0xff]  ;;  %v526_v4 = vld [vmem:[%s719_s1 + $0x18] sm:$0xff]  ;;  %v525_v5 = vld [vmem:[%s719_s1 + $0x10] sm:$0xff]  ;;  %s517_s30 = sshll.u32 %s727_s12, 5 }
   0xe   : > { %555 = vmatpush.bf16.msra.mxu2 %v530_v0  ;;  %556 = vmatpush.bf16.msra.mxu3 %v530_v0  ;;  %v524_v6 = vld [vmem:[%s719_s1 + $0x8] sm:$0xff]  ;;  %v523_v7 = vld [vmem:[%s719_s1] sm:$0xff]  ;;  %s198_s8 = scalar_lea.vmem %s718_s0, %s517_s30  ;;  %s208_s17 = scalar_lea.vmem %s721_s3, %s517_s30 }
   0xf   : > { %v519_v8 = vld [vmem:[%s198_s8] sm:$0xff]  ;;  %v520_v9 = vld [vmem:[%s198_s8 + $0x8] sm:$0xff]  ;;  %v521_v10 = vld [vmem:[%s198_s8 + $0x10] sm:$0xff] }
  0x10   : > { %v522_v11 = vld [vmem:[%s198_s8 + $0x18] sm:$0xff]  ;;  %v602_v14 = vld [vmem:[%s720_s2] ss:$0 sm:$0xff] }
  0x11   : > { %311 = vmatpush.bf16.msra.mxu0 %v529_v1  ;;  %557 = vmatpush.bf16.msra.mxu1 %v529_v1 }
  0x12   : > { %558 = vmatpush.bf16.msra.mxu2 %v529_v1  ;;  %559 = vmatpush.bf16.msra.mxu3 %v529_v1 }
  0x15   : > { %312 = vmatpush.bf16.msra.mxu0 %v528_v2  ;;  %560 = vmatpush.bf16.msra.mxu1 %v528_v2 }
  0x16   : > { %561 = vmatpush.bf16.msra.mxu2 %v528_v2  ;;  %562 = vmatpush.bf16.msra.mxu3 %v528_v2 }
  0x19   : > { %313 = vmatpush.bf16.msra.mxu0 %v527_v3  ;;  %563 = vmatpush.bf16.msra.mxu1 %v527_v3 }
  0x1a   : > { %564 = vmatpush.bf16.msra.mxu2 %v527_v3  ;;  %565 = vmatpush.bf16.msra.mxu3 %v527_v3 }
  0x1d   : > { %314 = vmatpush.bf16.msra.mxu0 %v526_v4  ;;  %566 = vmatpush.bf16.msra.mxu1 %v526_v4 }
  0x1e   : > { %567 = vmatpush.bf16.msra.mxu2 %v526_v4  ;;  %568 = vmatpush.bf16.msra.mxu3 %v526_v4 }
  0x21   : > { %315 = vmatpush.bf16.msra.mxu0 %v525_v5  ;;  %569 = vmatpush.bf16.msra.mxu1 %v525_v5 }
  0x22   : > { %570 = vmatpush.bf16.msra.mxu2 %v525_v5  ;;  %571 = vmatpush.bf16.msra.mxu3 %v525_v5 }
  0x25   : > { %316 = vmatpush.bf16.msra.mxu0 %v524_v6  ;;  %572 = vmatpush.bf16.msra.mxu1 %v524_v6 }
  0x26   : > { %573 = vmatpush.bf16.msra.mxu2 %v524_v6  ;;  %574 = vmatpush.bf16.msra.mxu3 %v524_v6 }
  0x29   : > { %317 = vmatpush.bf16.msra.mxu0 %v523_v7  ;;  %575 = vmatpush.bf16.msra.mxu1 %v523_v7 }
  0x2a   : > { %576 = vmatpush.bf16.msra.mxu2 %v523_v7  ;;  %577 = vmatpush.bf16.msra.mxu3 %v523_v7 }
  0x2c   : > { %318 = vmatmul.bf16.vlgmr.msra.gmra.mxu0 %v519_v8  ;;  %323 = vmatmul.bf16.vlgmr.msra.gmra.mxu1 %v520_v9 }
  0x2d   : > { %328 = vmatmul.bf16.vlgmr.msra.gmra.mxu2 %v521_v10  ;;  %333 = vmatmul.bf16.vlgmr.msra.gmra.mxu3 %v522_v11 }
  0xa9   : > { %v319_v12 = vpop.f32.mrf.mxu0  ;;  %v324_v13 = vpop.f32.mrf.mxu1 }
  0xaa   : > { %v320_v15 = vadd.f32 %v602_v14, %v319_v12  ;;  %v325_v16 = vadd.f32 %v602_v14, %v324_v13 }
  0xac   : > { %v339_v21 = vmul.f32 0.2, %v320_v15  ;;  %v341_v22 = vmul.f32 0.2, %v325_v16 }
  0xae   : > { %v347_v29 = vmax.f32 %v320_v15, %v339_v21  ;;  %v349_v30 = vmax.f32 %v325_v16, %v341_v22 }
  0xb0   : > { %v329_v17 = vpop.f32.mrf.mxu2  ;;  %v334_v18 = vpop.f32.mrf.mxu3 }
  0xb1   : > { %v321_v19 = vpop.f32.mrf.mxu0  ;;  %v326_v20 = vpop.f32.mrf.mxu1  ;;  %v330_v27 = vadd.f32 %v602_v14, %v329_v17  ;;  %v335_v28 = vadd.f32 %v602_v14, %v334_v18 }
  0xb2   : > { %v322_v23 = vadd.f32 %v602_v14, %v321_v19  ;;  %v327_v24 = vadd.f32 %v602_v14, %v326_v20 }
  0xb3   : > { %v343_v37 = vmul.f32 0.2, %v330_v27  ;;  %v345_v38 = vmul.f32 0.2, %v335_v28 }
  0xb4   : > { %v340_v25 = vmul.f32 0.2, %v322_v23  ;;  %v342_v26 = vmul.f32 0.2, %v327_v24 }
  0xb5   : > { %v351_v43 = vmax.f32 %v330_v27, %v343_v37  ;;  %v353_v44 = vmax.f32 %v335_v28, %v345_v38 }
  0xb6   : > { %v348_v31 = vmax.f32 %v322_v23, %v340_v25  ;;  %v350_v32 = vmax.f32 %v327_v24, %v342_v26 }
  0xb8   : > { %v534_v33 = vpack.c.bf16 %v348_v31, %v347_v29  ;;  %v539_v34 = vpack.c.bf16 %v350_v32, %v349_v30  ;;  %v331_v35 = vpop.f32.mrf.mxu2  ;;  %v336_v36 = vpop.f32.mrf.mxu3 }
  0xb9   : > { %v332_v39 = vadd.f32 %v602_v14, %v331_v35  ;;  %v337_v40 = vadd.f32 %v602_v14, %v336_v36 }
  0xba   : > { %535 = vst [vmem:[%s208_s17] sm:$0xff] %v534_v33  }
  0xbb   : > { %551 = vst [vmem:[%s208_s17 + $0x8] sm:$0xff] %v539_v34   ;;  %v344_v41 = vmul.f32 0.2, %v332_v39  ;;  %v346_v42 = vmul.f32 0.2, %v337_v40 }
  0xbd   : > { %v352_v45 = vmax.f32 %v332_v39, %v344_v41  ;;  %v354_v46 = vmax.f32 %v337_v40, %v346_v42 }
  0xbf   : > { %v544_v47 = vpack.c.bf16 %v352_v45, %v351_v43  ;;  %v549_v48 = vpack.c.bf16 %v354_v46, %v353_v44 }
  0xc1   : > { %552 = vst [vmem:[%s208_s17 + $0x10] sm:$0xff] %v544_v47  }
  0xc2   : > { %553 = vst [vmem:[%s208_s17 + $0x18] sm:$0xff] %v549_v48  }
  0xc3 PF: > { %s13_s14 = sadd.s32 1, %s625_s14   ;;  %s722_s12 = smov %s621_s13 }
  0xc4   : > { %p10_p5 = scmp.ge.s32.totalorder %s13_s14, 4   ;;  %s723_s13 = smov %s725_s15 }
  0xc6   :  { %12 = sbr.rel (!%p10_p5) target bundleno = 2 (0x2), region = 62 }

// kernel: patch_discriminator.7
= control target key start
LH: loop header
LB: loop body
LE: loop exit
PB: predicated region body
PF: predicated region fallthrough
CT: control target
= control target key end

     0   :  { %s4605_s12 = smov 0   ;;  %s4607_s13 = smov 0   ;;  %s5494_s0 = inlined_call_operand.vmem [shape: bf16[2,4,4,4,128], index: 0, kind: input, shape index: {}]   ;;  %s5495_s1 = inlined_call_operand.vmem [shape: bf16[25,128,128], index: 1, kind: input, shape index: {}]   ;;  %s5496_s2 = inlined_call_operand.vmem [shape: f32[1,128], index: 2, kind: input, shape index: {}]   ;;  %s5497_s3 = inlined_call_operand.vmem [shape: bf16[2,2,2,128], index: 3, kind: output, shape index: {}]  }
   0x1   :  { %s4609_s14 = smov 0  }
   0x2 LB: > { %s25_s15 = sadd.s32 1, %s4579_s13  ;;  %p3081_p0 = scmp.ge.s32.totalorder %s4583_s14, 1  ;;  %s4583_s14 = sphi %s4609_s14, %s13_s14   ;;  %s4579_s13 = sphi %s4607_s13, %s5505_s13   ;;  %s4575_s12 = sphi %s4605_s12, %s5504_s12  }
   0x3   : > { %p27_p1 = scmp.ge.s32.totalorder %s25_s15, 2  ;;  %p151_p2 = scmp.lt.s32.totalorder %s4583_s14, 3 }
   0x5   : > { %s5507_s15 = smov (%p27_p1, %s25_s15), 0  ;;  %p152_p3 = pnand %p3081_p0, %p151_p2 }
   0x6   : > { %p178_p4 = scmp.lt.s32.totalorder (!%p152_p3), %s4575_s12, 1 }
   0x7   : > { %155 = sbr.rel (%p152_p3) target bundleno = 422 (0x1a6), region = 32 }
   0xc   : > { %v4351_v0 = vld [vmem:[%s5495_s1 + $0x78] sm:$0xff]  ;;  %v4350_v2 = vld [vmem:[%s5495_s1 + $0x70] sm:$0xff]  ;;  %s5509_s12 = smov (!%p178_p4, %s4575_s12), 1  ;;  %v4349_v7 = vld [vmem:[%s5495_s1 + $0x68] sm:$0xff]  ;;  %vm381_vm0 = vcmask 1040384   ;;  %vm391_vm1 = vcmask 1041409  }
   0xd   : > { %v4343_v1 = vld [vmem:[%s5495_s1 + $0x38] sm:$0xff]  ;;  %290 = vmatpush.bf16.msra.mxu0 %v4351_v0  ;;  %v4342_v4 = vld [vmem:[%s5495_s1 + $0x30] sm:$0xff]  ;;  %v4341_v9 = vld [vmem:[%s5495_s1 + $0x28] sm:$0xff]  ;;  %s4335_s11 = sshll.u32 %s5509_s12, 5  ;;  %vm393_vm2 = vcmask 1043459   ;;  %vm395_vm3 = vcmask 1042433  }
   0xe   : > { %v4359_v3 = vld [vmem:[%s5495_s1 + $0xb8] sm:$0xff]  ;;  %358 = vmatpush.bf16.msra.mxu1 %v4343_v1  ;;  %v4358_v5 = vld [vmem:[%s5495_s1 + $0xb0] sm:$0xff]  ;;  %v4357_v10 = vld [vmem:[%s5495_s1 + $0xa8] sm:$0xff]  ;;  %s4671_s24 = scalar_lea.vmem %s5494_s0, %s4335_s11  ;;  %vm411_vm4 = vsmask.f32 256  ;;  %vm385_vm10 = vcmask 1042434  }
   0xf   : > { %514 = vmatpush.bf16.msra.mxu2 %v4359_v3  ;;  %v4367_v6 = vld [vmem:[%s5495_s1 + $0xf8] sm:$0xff]  ;;  %v4366_v8 = vld [vmem:[%s5495_s1 + $0xf0] sm:$0xff]  ;;  %v4348_v11 = vld [vmem:[%s5495_s1 + $0x60] sm:$0xff]  ;;  %vm412_vm5 = vsmask.f32 1284  ;;  %vm389_vm14 = vcmask 1041408  }
  0x10   : > { %650 = vmatpush.bf16.msra.mxu3 %v4367_v6  ;;  %v4365_v12 = vld [vmem:[%s5495_s1 + $0xe8] sm:$0xff]  ;;  %v4340_v13 = vld [vmem:[%s5495_s1 + $0x20] sm:$0xff]  ;;  %v4347_v14 = vld [vmem:[%s5495_s1 + $0x58] sm:$0xff]  ;;  %vm414_vm6 = vsmask.f32 2312  ;;  %s3084_s23 = sshll.u32 %s5509_s12, 1 }
  0x11   : > { %291 = vmatpush.bf16.msra.mxu0 %v4350_v2  ;;  %v4356_v15 = vld [vmem:[%s5495_s1 + $0xa0] sm:$0xff]  ;;  %v4339_v16 = vld [vmem:[%s5495_s1 + $0x18] sm:$0xff]  ;;  %vm416_vm7 = vsmask.f32 3340  ;;  %v3085_v18 = vld [vmem:[%s4671_s24 + $0x8] sm:$0x1]  ;;  %s190_s27 = scalar_lea.vmem %s5497_s3, %s3084_s23 }
  0x12   : > { %359 = vmatpush.bf16.msra.mxu1 %v4342_v4  ;;  %v4364_v17 = vld [vmem:[%s5495_s1 + $0xe0] sm:$0xff]  ;;  %v3086_v19 = vld [vmem:[%s4671_s24 + $0xa] sm:$0x1]  ;;  %v4355_v21 = vld [vmem:[%s5495_s1 + $0x98] sm:$0xff]  ;;  %236 = vst [vmem:[#allocation1] ss:$9 sm:$0xff] %v3085_v18 }
  0x13   : > { %515 = vmatpush.bf16.msra.mxu2 %v4358_v5  ;;  %v371_v20 = vld [vmem:[%s4671_s24] sm:$0x3]  ;;  %vm418_vm8 = vsmask.f32 4368  ;;  %239 = vst [vmem:[#allocation1 + $0x1] ss:$9 sm:$0xff] %v3086_v19  ;;  %vm413_vm9 = vmor %vm411_vm4, %vm412_vm5 }
  0x14   : > { %651 = vmatpush.bf16.msra.mxu3 %v4366_v8  ;;  %v375_v22 = vrot.slane %v371_v20, 1  ;;  %v372_v23 = vld [vmem:[%s4671_s24 + $0x2] sm:$0x3]  ;;  %v376_v24 = vrot.slane %v371_v20, 2  ;;  %v377_v25 = vrot.slane %v371_v20, 3  ;;  %vm415_vm11 = vmor %vm413_vm9, %vm414_vm6  ;;  %v4346_v30 = vld [vmem:[%s5495_s1 + $0x50] sm:$0xff] }
  0x15   : > { %292 = vmatpush.bf16.msra.mxu0 %v4349_v7  ;;  %v378_v26 = vrot.slane %v372_v23, 1  ;;  %v379_v27 = vrot.slane %v372_v23, 2  ;;  %v380_v28 = vrot.slane %v372_v23, 3  ;;  %v4696_v29 = vld [vmem:[%s4671_s24 + $0x8] sm:$0x3]  ;;  %v4363_v31 = vld [vmem:[%s5495_s1 + $0xd8] sm:$0xff]  ;;  %vm417_vm12 = vmor %vm415_vm11, %vm416_vm7 }
  0x16   : > { %360 = vmatpush.bf16.msra.mxu1 %v4341_v9  ;;  %v392_v32 = vsel %vm391_vm1, %v371_v20, %v375_v22  ;;  %v394_v33 = vsel %vm393_vm2, %v376_v24, %v377_v25  ;;  %vm420_vm13 = vsmask.f32 5396  ;;  %v4338_v34 = vld [vmem:[%s5495_s1 + $0x10] sm:$0xff]  ;;  %v384_v35 = vsel %vm381_vm0, %v371_v20, %v375_v22  ;;  %vm419_vm15 = vmor %vm417_vm12, %vm418_vm8  ;;  %v4714_v37 = vld [vmem:[%s4671_s24 + $0xa] sm:$0x3] }
  0x17   : > { %516 = vmatpush.bf16.msra.mxu2 %v4357_v10  ;;  %v396_v36 = vsel %vm395_vm3, %v392_v32, %v394_v33  ;;  %vm422_vm4 = vsmask.f32 6424  ;;  %v4345_v38 = vld [vmem:[%s5495_s1 + $0x48] sm:$0xff]  ;;  %v4354_v39 = vld [vmem:[%s5495_s1 + $0x90] sm:$0xff]  ;;  %v388_v40 = vsel %vm385_vm10, %v376_v24, %v377_v25  ;;  %v406_v41 = vsel %vm391_vm1, %v372_v23, %v378_v26  ;;  %v195_v44 = vld [vmem:[%s4671_s24] sm:$0x1] }
  0x18   : > { %652 = vmatpush.bf16.msra.mxu3 %v4365_v12  ;;  %v407_v42 = vsel %vm393_vm2, %v379_v27, %v380_v28  ;;  %v532_v43 = vrot.slane %v4696_v29, 1  ;;  %v401_v45 = vsel %vm381_vm0, %v372_v23, %v378_v26  ;;  %v404_v46 = vsel %vm385_vm10, %v379_v27, %v380_v28  ;;  %vm4731_vm5 = vmor %vm419_vm15, %vm420_vm13  ;;  %v4362_v50 = vld [vmem:[%s5495_s1 + $0xd0] sm:$0xff]  ;;  %v196_v51 = vld [vmem:[%s4671_s24 + $0x2] sm:$0x1] }
  0x19   : > { %293 = vmatpush.bf16.msra.mxu0 %v4348_v11  ;;  %v408_v47 = vsel %vm395_vm3, %v406_v41, %v407_v42  ;;  %v533_v49 = vrot.slane %v4696_v29, 2  ;;  %v398_v52 = vrot.slane %v396_v36, 1  ;;  %v534_v53 = vrot.slane %v4696_v29, 3  ;;  %v4337_v55 = vld [vmem:[%s5495_s1 + $0x8] sm:$0xff]  ;;  %vm4755_vm6 = vmor %vm4731_vm5, %vm422_vm4  ;;  %v4344_v2 = vld [vmem:[%s5495_s1 + $0x40] sm:$0xff] }
  0x1a   : > { %361 = vmatpush.bf16.msra.mxu1 %v4340_v13  ;;  %v535_v54 = vrot.slane %v4714_v37, 1  ;;  %v240_v56 = vld [vmem:[#allocation1] sm:$0xff]  ;;  %v390_v57 = vsel %vm389_vm14, %v384_v35, %v388_v40  ;;  %v410_v58 = vrot.slane %v408_v47, 1  ;;  %v536_v59 = vrot.slane %v4714_v37, 2  ;;  %v4353_v61 = vld [vmem:[%s5495_s1 + $0x88] sm:$0xff]  ;;  %v4375_v7 = vld [vmem:[%s5495_s1 + $0x138] sm:$0xff] }
  0x1b   : > { %517 = vmatpush.bf16.msra.mxu2 %v4356_v15  ;;  %v537_v60 = vrot.slane %v4714_v37, 3  ;;  %304 = vst [vmem:[#allocation1] ss:$9 sm:$0xff] %v195_v44  ;;  %v405_v62 = vsel %vm389_vm14, %v401_v45, %v404_v46  ;;  %vm424_vm7 = vsmask.f32 7452  ;;  %v545_v0 = vsel %vm391_vm1, %v4696_v29, %v532_v43  ;;  %v4361_v3 = vld [vmem:[%s5495_s1 + $0xc8] sm:$0xff] }
  0x1c   : > { %653 = vmatpush.bf16.msra.mxu3 %v4364_v17  ;;  %307 = vst [vmem:[#allocation1 + $0x1] ss:$9 sm:$0xff] %v196_v51  ;;  %v546_v1 = vsel %vm393_vm2, %v533_v49, %v534_v53  ;;  %v426_v4 = vshrl.u32 %v390_v57, 16  ;;  %v431_v5 = vshll.u32 %v398_v52, 16  ;;  %v557_v6 = vsel %vm391_vm1, %v4714_v37, %v535_v54  ;;  %v4336_v8 = vld [vmem:[%s5495_s1] sm:$0xff]  ;;  %vm4778_vm8 = vmor %vm4755_vm6, %vm424_vm7  ;;  %v4383_v13 = vld [vmem:[%s5495_s1 + $0x178] sm:$0xff] }
  0x1d   : > { %294 = vmatpush.bf16.msra.mxu0 %v4347_v14  ;;  %v434_v10 = vshrl.u32 %v405_v62, 16  ;;  %v439_v11 = vshll.u32 %v410_v58, 16  ;;  %v558_v12 = vsel %vm393_vm2, %v536_v59, %v537_v60  ;;  %v4352_v14 = vld [vmem:[%s5495_s1 + $0x80] sm:$0xff]  ;;  %v547_v15 = vsel %vm395_vm3, %v545_v0, %v546_v1  ;;  %v4374_v24 = vld [vmem:[%s5495_s1 + $0x130] sm:$0xff]  ;;  %v4399_v25 = vld [vmem:[%s5495_s1 + $0x1f8] sm:$0xff] }
  0x1e   : > { %362 = vmatpush.bf16.msra.mxu1 %v4339_v16  ;;  %v4391_v16 = vld [vmem:[%s5495_s1 + $0x1b8] sm:$0xff]  ;;  %v540_v17 = vsel %vm381_vm0, %v4696_v29, %v532_v43  ;;  %v543_v18 = vsel %vm385_vm10, %v533_v49, %v534_v53  ;;  %v559_v19 = vsel %vm395_vm3, %v557_v6, %v558_v12  ;;  %v4360_v20 = vld [vmem:[%s5495_s1 + $0xc0] sm:$0xff]  ;;  %v552_v22 = vsel %vm381_vm0, %v4714_v37, %v535_v54  ;;  %v4382_v28 = vld [vmem:[%s5495_s1 + $0x170] sm:$0xff] }
  0x1f   : > { %518 = vmatpush.bf16.msra.mxu2 %v4355_v21  ;;  %v433_v21 = vsel %vm4778_vm8, %v426_v4, %v431_v5  ;;  %v555_v23 = vsel %vm385_vm10, %v536_v59, %v537_v60  ;;  %v441_v26 = vsel %vm4778_vm8, %v434_v10, %v439_v11  ;;  %v549_v27 = vrot.slane %v547_v15, 1  ;;  %v4390_v32 = vld [vmem:[%s5495_s1 + $0x1b0] sm:$0xff]  ;;  %v4389_v41 = vld [vmem:[%s5495_s1 + $0x1a8] sm:$0xff]  ;;  %v4372_v42 = vld [vmem:[%s5495_s1 + $0x120] sm:$0xff] }
  0x20   : > { %654 = vmatpush.bf16.msra.mxu3 %v4363_v31  ;;  %v561_v31 = vrot.slane %v559_v19, 1  ;;  %v556_v33 = vsel %vm389_vm14, %v552_v22, %v555_v23  ;;  %v4398_v35 = vld [vmem:[%s5495_s1 + $0x1f0] sm:$0xff]  ;;  %v4397_v43 = vld [vmem:[%s5495_s1 + $0x1e8] sm:$0xff]  ;;  %v4380_v45 = vld [vmem:[%s5495_s1 + $0x160] sm:$0xff] }
  0x21   : > { %295 = vmatpush.bf16.msra.mxu0 %v4346_v30  ;;  %v544_v30 = vsel %vm389_vm14, %v540_v17, %v543_v18  ;;  %v567_v37 = vshll.u32 %v549_v27, 16  ;;  %v4388_v47 = vld [vmem:[%s5495_s1 + $0x1a0] sm:$0xff]  ;;  %v4379_v52 = vld [vmem:[%s5495_s1 + $0x158] sm:$0xff]  ;;  %v4370_v54 = vld [vmem:[%s5495_s1 + $0x110] sm:$0xff] }
  0x22   : > { %363 = vmatpush.bf16.msra.mxu1 %v4338_v34  ;;  %v4373_v34 = vld [vmem:[%s5495_s1 + $0x128] sm:$0xff]  ;;  %v562_v36 = vshrl.u32 %v544_v30, 16  ;;  %v575_v40 = vshll.u32 %v561_v31, 16  ;;  %v665_v49 = vld [vmem:[%s4671_s24 + $0x2] sm:$0x2]  ;;  %v4387_v53 = vld [vmem:[%s5495_s1 + $0x198] sm:$0xff] }
  0x23   : > { %519 = vmatpush.bf16.msra.mxu2 %v4354_v39  ;;  %v308_v29 = vld [vmem:[#allocation1] sm:$0xff]  ;;  %v570_v39 = vshrl.u32 %v556_v33, 16  ;;  %v4386_v58 = vld [vmem:[%s5495_s1 + $0x190] sm:$0xff]  ;;  %v4369_v60 = vld [vmem:[%s5495_s1 + $0x108] sm:$0xff] }
  0x24   : > { %655 = vmatpush.bf16.msra.mxu3 %v4362_v50  ;;  %460 = vst [vmem:[#allocation1] ss:$9 sm:$0xff] %v433_v21  ;;  %v569_v44 = vsel %vm4778_vm8, %v562_v36, %v567_v37  ;;  %v4371_v50 = vld [vmem:[%s5495_s1 + $0x118] sm:$0xff]  ;;  %v4396_v51 = vld [vmem:[%s5495_s1 + $0x1e0] sm:$0xff]  ;;  %v4377_v62 = vld [vmem:[%s5495_s1 + $0x148] sm:$0xff] }
  0x25   : > { %296 = vmatpush.bf16.msra.mxu0 %v4345_v38  ;;  %463 = vst [vmem:[#allocation1 + $0x1] ss:$9 sm:$0xff] %v441_v26  ;;  %v4381_v38 = vld [vmem:[%s5495_s1 + $0x168] sm:$0xff]  ;;  %v577_v46 = vsel %vm4778_vm8, %v570_v39, %v575_v40  ;;  %v664_v57 = vld [vmem:[%s4671_s24] sm:$0x2]  ;;  %v4415_v5 = vld [vmem:[%s5495_s1 + $0x278] sm:$0xff] }
  0x26   : > { %364 = vmatpush.bf16.msra.mxu1 %v4337_v55  ;;  %v4395_v55 = vld [vmem:[%s5495_s1 + $0x1d8] sm:$0xff]  ;;  %v4385_v63 = vld [vmem:[%s5495_s1 + $0x188] sm:$0xff]  ;;  %v4368_v0 = vld [vmem:[%s5495_s1 + $0x100] sm:$0xff] }
  0x27   : > { %520 = vmatpush.bf16.msra.mxu2 %v4353_v61  ;;  %v4394_v61 = vld [vmem:[%s5495_s1 + $0x1d0] sm:$0xff]  ;;  %v4393_v1 = vld [vmem:[%s5495_s1 + $0x1c8] sm:$0xff]  ;;  %v4384_v6 = vld [vmem:[%s5495_s1 + $0x180] sm:$0xff] }
  0x28   : > { %656 = vmatpush.bf16.msra.mxu3 %v4361_v3  ;;  %v4376_v3 = vld [vmem:[%s5495_s1 + $0x140] sm:$0xff]  ;;  %v4406_v11 = vld [vmem:[%s5495_s1 + $0x230] sm:$0xff]  ;;  %v4431_v12 = vld [vmem:[%s5495_s1 + $0x2f8] sm:$0xff] }
  0x29   : > { %297 = vmatpush.bf16.msra.mxu0 %v4344_v2  ;;  %v4407_v2 = vld [vmem:[%s5495_s1 + $0x238] sm:$0xff]  ;;  %v4392_v10 = vld [vmem:[%s5495_s1 + $0x1c0] sm:$0xff]  ;;  %v3417_v15 = vld [vmem:[%s4671_s24 + $0x10] sm:$0x3] }
  0x2a   : > { %365 = vmatpush.bf16.msra.mxu1 %v4336_v8  ;;  %v4405_v17 = vld [vmem:[%s5495_s1 + $0x228] sm:$0xff]  ;;  %v4430_v18 = vld [vmem:[%s5495_s1 + $0x2f0] sm:$0xff]  ;;  %v944_v21 = vrot.slane %v3417_v15, 1  ;;  %v945_v22 = vrot.slane %v3417_v15, 2  ;;  %v946_v23 = vrot.slane %v3417_v15, 3  ;;  %v4404_v30 = vld [vmem:[%s5495_s1 + $0x220] sm:$0xff] }
  0x2b   : > { %521 = vmatpush.bf16.msra.mxu2 %v4352_v14  ;;  %v4422_v14 = vld [vmem:[%s5495_s1 + $0x2b0] sm:$0xff]  ;;  %v4413_v19 = vld [vmem:[%s5495_s1 + $0x268] sm:$0xff]  ;;  %v4403_v39 = vld [vmem:[%s5495_s1 + $0x218] sm:$0xff] }
  0x2c   : > { %298 = vmatmul.bf16.vlgmr.msra.gmra.mxu0 %v240_v56  ;;  %657 = vmatpush.bf16.msra.mxu3 %v4360_v20  ;;  %v464_v48 = vld [vmem:[#allocation1] sm:$0xff]  ;;  %v4378_v56 = vld [vmem:[%s5495_s1 + $0x150] sm:$0xff]  ;;  %v4429_v31 = vld [vmem:[%s5495_s1 + $0x2e8] sm:$0xff]  ;;  %v957_v33 = vsel %vm391_vm1, %v3417_v15, %v944_v21 }
  0x2d   : > { %744 = vmatpush.bf16.msrb.mxu0 %v4375_v7  ;;  %366 = vmatmul.bf16.vlgmr.msra.gmra.mxu1 %v308_v29  ;;  %596 = vst [vmem:[#allocation1] ss:$9 sm:$0xff] %v569_v44  ;;  %v4423_v7 = vld [vmem:[%s5495_s1 + $0x2b8] sm:$0xff]  ;;  %v3317_v20 = vld [vmem:[%s4671_s24 + $0x10] sm:$0x1]  ;;  %v952_v44 = vsel %vm381_vm0, %v3417_v15, %v944_v21 }
  0x2e   : > { %835 = vmatpush.bf16.msrb.mxu1 %v4383_v13  ;;  %522 = vmatmul.bf16.vlgmr.msra.gmra.mxu2 %v464_v48  ;;  %599 = vst [vmem:[#allocation1 + $0x1] ss:$9 sm:$0xff] %v577_v46  ;;  %v4414_v13 = vld [vmem:[%s5495_s1 + $0x270] sm:$0xff]  ;;  %v3367_v48 = vld [vmem:[%s4671_s24 + $0x18] sm:$0x1] }
  0x2f   : > { %926 = vmatpush.bf16.msrb.mxu2 %v4391_v16  ;;  %671 = vst [vmem:[#allocation1 + $0x10] sm:$0xff] %v665_v49  ;;  %v3418_v16 = vld [vmem:[%s4671_s24 + $0x12] sm:$0x3] }
  0x30   : > { %1062 = vmatpush.bf16.msrb.mxu3 %v4399_v25  ;;  %v3318_v25 = vld [vmem:[%s4671_s24 + $0x12] sm:$0x1]  ;;  %v947_v26 = vrot.slane %v3418_v16, 1  ;;  %v948_v27 = vrot.slane %v3418_v16, 2 }
  0x31   : > { %745 = vmatpush.bf16.msrb.mxu0 %v4374_v24  ;;  %v4421_v24 = vld [vmem:[%s5495_s1 + $0x2a8] sm:$0xff] }
  0x32   : > { %836 = vmatpush.bf16.msrb.mxu1 %v4382_v28  ;;  %v949_v28 = vrot.slane %v3418_v16, 3  ;;  %v969_v36 = vsel %vm391_vm1, %v3418_v16, %v947_v26  ;;  %v964_v46 = vsel %vm381_vm0, %v3418_v16, %v947_v26 }
  0x33   : > { %927 = vmatpush.bf16.msrb.mxu2 %v4390_v32  ;;  %v4412_v32 = vld [vmem:[%s5495_s1 + $0x260] sm:$0xff] }
  0x34   : > { %1063 = vmatpush.bf16.msrb.mxu3 %v4398_v35  ;;  %v4420_v35 = vld [vmem:[%s5495_s1 + $0x2a0] sm:$0xff]  ;;  %v970_v37 = vsel %vm393_vm2, %v948_v27, %v949_v28  ;;  %v967_v49 = vsel %vm385_vm10, %v948_v27, %v949_v28  ;;  %v4439_v27 = vld [vmem:[%s5495_s1 + $0x338] sm:$0xff] }
  0x35   : > { %746 = vmatpush.bf16.msrb.mxu0 %v4373_v34  ;;  %v600_v59 = vld [vmem:[#allocation1] sm:$0xff]  ;;  %v958_v34 = vsel %vm393_vm2, %v945_v22, %v946_v23 }
  0x36   : > { %837 = vmatpush.bf16.msrb.mxu1 %v4381_v38  ;;  %667 = vst [vmem:[#allocation1] sm:$0xff] %v664_v57  ;;  %658 = vmatmul.bf16.vlgmr.msra.gmra.mxu3 %v600_v59  ;;  %v673_v4 = vld [vmem:[#allocation1 + $0x11] ss:$2 sm:$0xff]  ;;  %v959_v40 = vsel %vm395_vm3, %v957_v33, %v958_v34  ;;  %v4416_v33 = vld [vmem:[%s5495_s1 + $0x280] sm:$0xff] }
  0x37   : > { %928 = vmatpush.bf16.msrb.mxu2 %v4389_v41  ;;  %v3469_v38 = vld [vmem:[%s4671_s24 + $0x18] sm:$0x3]  ;;  %v4428_v41 = vld [vmem:[%s5495_s1 + $0x2e0] sm:$0xff]  ;;  %v4402_v59 = vld [vmem:[%s5495_s1 + $0x210] sm:$0xff] }
  0x38   : > { %1064 = vmatpush.bf16.msrb.mxu3 %v4397_v43  ;;  %v4411_v43 = vld [vmem:[%s5495_s1 + $0x258] sm:$0xff] }
  0x39   : > { %747 = vmatpush.bf16.msrb.mxu0 %v4372_v42  ;;  %v3470_v42 = vld [vmem:[%s4671_s24 + $0x1a] sm:$0x3] }
  0x3a   : > { %838 = vmatpush.bf16.msrb.mxu1 %v4380_v45  ;;  %v955_v45 = vsel %vm385_vm10, %v945_v22, %v946_v23  ;;  %v1084_v57 = vrot.slane %v3470_v42, 2  ;;  %v4417_v22 = vld [vmem:[%s5495_s1 + $0x288] sm:$0xff]  ;;  %v4400_v23 = vld [vmem:[%s5495_s1 + $0x200] sm:$0xff] }
  0x3b   : > { %929 = vmatpush.bf16.msrb.mxu2 %v4388_v47  ;;  %v971_v47 = vsel %vm395_vm3, %v969_v36, %v970_v37  ;;  %v4438_v36 = vld [vmem:[%s5495_s1 + $0x330] sm:$0xff] }
  0x3c   : > { %1065 = vmatpush.bf16.msrb.mxu3 %v4396_v51  ;;  %v1080_v51 = vrot.slane %v3469_v38, 1 }
  0x3d   : > { %748 = vmatpush.bf16.msrb.mxu0 %v4371_v50  ;;  %v669_v8 = vld [vmem:[#allocation1 + $0x1] ss:$2 sm:$0xff]  ;;  %v4419_v50 = vld [vmem:[%s5495_s1 + $0x298] sm:$0xff] }
  0x3e   : > { %839 = vmatpush.bf16.msrb.mxu1 %v4379_v52  ;;  %691 = vst [vmem:[#allocation1] ss:$9 sm:$0xff] %v669_v8  ;;  %v1081_v52 = vrot.slane %v3469_v38, 2  ;;  %v1088_v16 = vsel %vm381_vm0, %v3469_v38, %v1080_v51 }
  0x3f   : > { %930 = vmatpush.bf16.msrb.mxu2 %v4387_v53  ;;  %693 = vst [vmem:[#allocation1 + $0x1] ss:$9 sm:$0xff] %v673_v4  ;;  %v1082_v53 = vrot.slane %v3469_v38, 3 }
  0x40   : > { %1066 = vmatpush.bf16.msrb.mxu3 %v4395_v55  ;;  %v961_v55 = vrot.slane %v959_v40, 1 }
  0x41   : > { %749 = vmatpush.bf16.msrb.mxu0 %v4370_v54  ;;  %v3368_v54 = vld [vmem:[%s4671_s24 + $0x1a] sm:$0x1]  ;;  %v1094_v4 = vsel %vm393_vm2, %v1081_v52, %v1082_v53 }
  0x42   : > { %840 = vmatpush.bf16.msrb.mxu1 %v4378_v56  ;;  %v1083_v56 = vrot.slane %v3470_v42, 1 }
  0x43   : > { %931 = vmatpush.bf16.msrb.mxu2 %v4386_v58  ;;  %v1085_v58 = vrot.slane %v3470_v42, 3 }
  0x44   : > { %1067 = vmatpush.bf16.msrb.mxu3 %v4394_v61  ;;  %v956_v61 = vsel %vm389_vm14, %v952_v44, %v955_v45  ;;  %v3522_v44 = vld [vmem:[%s4671_s24 + $0x12] sm:$0x2]  ;;  %v4436_v45 = vld [vmem:[%s5495_s1 + $0x320] sm:$0xff] }
  0x45   : > { %750 = vmatpush.bf16.msrb.mxu0 %v4369_v60  ;;  %v1106_v8 = vsel %vm393_vm2, %v1084_v57, %v1085_v58  ;;  %v1103_v21 = vsel %vm385_vm10, %v1084_v57, %v1085_v58  ;;  %v4433_v57 = vld [vmem:[%s5495_s1 + $0x308] sm:$0xff]  ;;  %v4442_v58 = vld [vmem:[%s5495_s1 + $0x350] sm:$0xff] }
  0x46   : > { %841 = vmatpush.bf16.msrb.mxu1 %v4377_v62  ;;  %v694_v29 = vld [vmem:[#allocation1] sm:$0xff]  ;;  %v973_v62 = vrot.slane %v971_v47, 1  ;;  %v4445_v47 = vld [vmem:[%s5495_s1 + $0x368] sm:$0xff] }
  0x47   : > { %932 = vmatpush.bf16.msrb.mxu2 %v4385_v63  ;;  %781 = vst [vmem:[#allocation1] ss:$9 sm:$0xff] %v3317_v20  ;;  %v4427_v63 = vld [vmem:[%s5495_s1 + $0x2d8] sm:$0xff]  ;;  %v1100_v20 = vsel %vm381_vm0, %v3470_v42, %v1083_v56 }
  0x48   : > { %1068 = vmatpush.bf16.msrb.mxu3 %v4393_v1  ;;  %784 = vst [vmem:[#allocation1 + $0x1] ss:$9 sm:$0xff] %v3318_v25  ;;  %v968_v1 = vsel %vm389_vm14, %v964_v46, %v967_v49  ;;  %v4425_v46 = vld [vmem:[%s5495_s1 + $0x2c8] sm:$0xff]  ;;  %v3521_v49 = vld [vmem:[%s4671_s24 + $0x10] sm:$0x2] }
  0x49   : > { %751 = vmatpush.bf16.msrb.mxu0 %v4368_v0  ;;  %v4410_v0 = vld [vmem:[%s5495_s1 + $0x250] sm:$0xff] }
  0x4a   : > { %842 = vmatpush.bf16.msrb.mxu1 %v4376_v3  ;;  %v1093_v3 = vsel %vm391_vm1, %v3469_v38, %v1080_v51  ;;  %v4444_v51 = vld [vmem:[%s5495_s1 + $0x360] sm:$0xff] }
  0x4b   : > { %933 = vmatpush.bf16.msrb.mxu2 %v4384_v6  ;;  %v979_v6 = vshll.u32 %v961_v55, 16  ;;  %v1095_v15 = vsel %vm395_vm3, %v1093_v3, %v1094_v4  ;;  %v4455_v55 = vld [vmem:[%s5495_s1 + $0x3b8] sm:$0xff]  ;;  %v3571_v3 = vld [vmem:[%s4671_s24 + $0x2] sm:$0x1] }
  0x4c   : > { %1069 = vmatpush.bf16.msrb.mxu3 %v4392_v10  ;;  %752 = vmatmul.bf16.vlgmr.msrb.gmra.mxu0 %v694_v29  ;;  %v4401_v10 = vld [vmem:[%s5495_s1 + $0x208] sm:$0xff]  ;;  %v1097_v25 = vrot.slane %v1095_v15, 1  ;;  %v4462_v15 = vld [vmem:[%s5495_s1 + $0x3f0] sm:$0xff] }
  0x4d   : > { %1198 = vmatpush.bf16.msra.mxu0 %v4407_v2  ;;  %v4418_v2 = vld [vmem:[%s5495_s1 + $0x290] sm:$0xff] }
  0x4e   : > { %1292 = vmatpush.bf16.msra.mxu1 %v4415_v5  ;;  %v974_v5 = vshrl.u32 %v956_v61, 16  ;;  %v4432_v61 = vld [vmem:[%s5495_s1 + $0x300] sm:$0xff] }
  0x4f   : > { %1383 = vmatpush.bf16.msra.mxu2 %v4423_v7  ;;  %v785_v60 = vld [vmem:[#allocation1] sm:$0xff]  ;;  %v1105_v7 = vsel %vm391_vm1, %v3470_v42, %v1083_v56  ;;  %v4437_v42 = vld [vmem:[%s5495_s1 + $0x328] sm:$0xff] }
  0x50   : > { %1474 = vmatpush.bf16.msra.mxu3 %v4431_v12  ;;  %872 = vst [vmem:[#allocation1] ss:$9 sm:$0xff] %v3367_v48  ;;  %843 = vmatmul.bf16.vlgmr.msrb.gmra.mxu1 %v785_v60  ;;  %v987_v12 = vshll.u32 %v973_v62, 16  ;;  %v4424_v48 = vld [vmem:[%s5495_s1 + $0x2c0] sm:$0xff] }
  0x51   : > { %1199 = vmatpush.bf16.msra.mxu0 %v4406_v11  ;;  %875 = vst [vmem:[#allocation1 + $0x1] ss:$9 sm:$0xff] %v3368_v54  ;;  %v982_v11 = vshrl.u32 %v968_v1, 16  ;;  %v4443_v54 = vld [vmem:[%s5495_s1 + $0x358] sm:$0xff]  ;;  %v3671_v62 = vld [vmem:[%s4671_s24 + $0x2] sm:$0x3] }
  0x52   : > { %1293 = vmatpush.bf16.msra.mxu1 %v4414_v13  ;;  %v4426_v13 = vld [vmem:[%s5495_s1 + $0x2d0] sm:$0xff]  ;;  %v4453_v1 = vld [vmem:[%s5495_s1 + $0x3a8] sm:$0xff]  ;;  %v1492_v4 = vrot.slane %v3671_v62, 1 }
  0x53   : > { %1384 = vmatpush.bf16.msra.mxu2 %v4422_v14  ;;  %v4409_v14 = vld [vmem:[%s5495_s1 + $0x248] sm:$0xff] }
  0x54   : > { %1475 = vmatpush.bf16.msra.mxu3 %v4430_v18  ;;  %v1107_v18 = vsel %vm395_vm3, %v1105_v7, %v1106_v8  ;;  %v3572_v7 = vld [vmem:[%s4671_s24 + $0x4] sm:$0x1] }
  0x55   : > { %1200 = vmatpush.bf16.msra.mxu0 %v4405_v17  ;;  %v1091_v17 = vsel %vm385_vm10, %v1081_v52, %v1082_v53  ;;  %v1109_v29 = vrot.slane %v1107_v18, 1  ;;  %v4434_v53 = vld [vmem:[%s5495_s1 + $0x310] sm:$0xff] }
  0x56   : > { %1294 = vmatpush.bf16.msra.mxu1 %v4413_v19  ;;  %v981_v19 = vsel %vm4778_vm8, %v974_v5, %v979_v6  ;;  %v1092_v28 = vsel %vm389_vm14, %v1088_v16, %v1091_v17  ;;  %v1493_v5 = vrot.slane %v3671_v62, 2  ;;  %v1494_v6 = vrot.slane %v3671_v62, 3 }
  0x57   : > { %1385 = vmatpush.bf16.msra.mxu2 %v4421_v24  ;;  %v989_v24 = vsel %vm4778_vm8, %v982_v11, %v987_v12  ;;  %v1110_v34 = vshrl.u32 %v1092_v28, 16  ;;  %v1123_v38 = vshll.u32 %v1109_v29, 16  ;;  %v1505_v16 = vsel %vm391_vm1, %v3671_v62, %v1492_v4 }
  0x58   : > { %1476 = vmatpush.bf16.msra.mxu3 %v4429_v31  ;;  %v876_v26 = vld [vmem:[#allocation1] sm:$0xff]  ;;  %v1104_v31 = vsel %vm389_vm14, %v1100_v20, %v1103_v21  ;;  %v1506_v17 = vsel %vm393_vm2, %v1493_v5, %v1494_v6  ;;  %v3723_v20 = vld [vmem:[%s4671_s24 + $0xa] sm:$0x3]  ;;  %v3724_v21 = vld [vmem:[%s4671_s24 + $0xc] sm:$0x3] }
  0x59   : > { %1201 = vmatpush.bf16.msra.mxu0 %v4404_v30  ;;  %v4408_v30 = vld [vmem:[%s5495_s1 + $0x240] sm:$0xff]  ;;  %934 = vmatmul.bf16.vlgmr.msrb.gmra.mxu2 %v876_v26  ;;  %1008 = vst [vmem:[#allocation1] ss:$9 sm:$0xff] %v981_v19  ;;  %v1118_v37 = vshrl.u32 %v1104_v31, 16  ;;  %v1500_v26 = vsel %vm381_vm0, %v3671_v62, %v1492_v4 }
  0x5a   : > { %1295 = vmatpush.bf16.msra.mxu1 %v4412_v32  ;;  %v4447_v32 = vld [vmem:[%s5495_s1 + $0x378] sm:$0xff]  ;;  %1011 = vst [vmem:[#allocation1 + $0x1] ss:$9 sm:$0xff] %v989_v24  ;;  %v4461_v24 = vld [vmem:[%s5495_s1 + $0x3e8] sm:$0xff]  ;;  %v4468_v4 = vld [vmem:[%s5495_s1 + $0x420] sm:$0xff] }
  0x5b   : > { %1386 = vmatpush.bf16.msra.mxu2 %v4420_v35  ;;  %v1115_v35 = vshll.u32 %v1097_v25, 16  ;;  %v4471_v25 = vld [vmem:[%s5495_s1 + $0x438] sm:$0xff] }
  0x5c   : > { %1477 = vmatpush.bf16.msra.mxu3 %v4428_v41  ;;  %v1125_v41 = vsel %vm4778_vm8, %v1118_v37, %v1123_v38  ;;  %v1631_v37 = vrot.slane %v3724_v21, 1  ;;  %v1632_v38 = vrot.slane %v3724_v21, 2 }
  0x5d   : > { %1202 = vmatpush.bf16.msra.mxu0 %v4403_v39  ;;  %v4446_v39 = vld [vmem:[%s5495_s1 + $0x370] sm:$0xff]  ;;  %v1117_v40 = vsel %vm4778_vm8, %v1110_v34, %v1115_v35  ;;  %v1630_v34 = vrot.slane %v3723_v20, 3  ;;  %v3622_v35 = vld [vmem:[%s4671_s24 + $0xc] sm:$0x1] }
  0x5e   : > { %1296 = vmatpush.bf16.msra.mxu1 %v4411_v43 }
  0x5f   : > { %1387 = vmatpush.bf16.msra.mxu2 %v4419_v50  ;;  %v4435_v50 = vld [vmem:[%s5495_s1 + $0x318] sm:$0xff] }
  0x60   : > { %1478 = vmatpush.bf16.msra.mxu3 %v4427_v63  ;;  %v3672_v63 = vld [vmem:[%s4671_s24 + $0x4] sm:$0x3] }
  0x61   : > { %1203 = vmatpush.bf16.msra.mxu0 %v4402_v59  ;;  %v1012_v43 = vld [vmem:[#allocation1] sm:$0xff]  ;;  %v4454_v59 = vld [vmem:[%s5495_s1 + $0x3b0] sm:$0xff]  ;;  %v1495_v8 = vrot.slane %v3672_v63, 1  ;;  %v1497_v11 = vrot.slane %v3672_v63, 3 }
  0x62   : > { %1297 = vmatpush.bf16.msra.mxu1 %v4410_v0  ;;  %1070 = vmatmul.bf16.vlgmr.msrb.gmra.mxu3 %v1012_v43  ;;  %1144 = vst [vmem:[#allocation1] ss:$9 sm:$0xff] %v1117_v40  ;;  %v4441_v0 = vld [vmem:[%s5495_s1 + $0x348] sm:$0xff]  ;;  %v4450_v43 = vld [vmem:[%s5495_s1 + $0x390] sm:$0xff] }
  0x63   : > { %1388 = vmatpush.bf16.msra.mxu2 %v4418_v2  ;;  %1147 = vst [vmem:[#allocation1 + $0x1] ss:$9 sm:$0xff] %v1125_v41  ;;  %v4463_v2 = vld [vmem:[%s5495_s1 + $0x3f8] sm:$0xff]  ;;  %v1517_v18 = vsel %vm391_vm1, %v3672_v63, %v1495_v8  ;;  %v1512_v28 = vsel %vm381_vm0, %v3672_v63, %v1495_v8 }
  0x64   : > { %1479 = vmatpush.bf16.msra.mxu3 %v4426_v13  ;;  %1219 = vst [vmem:[#allocation1 + $0x10] sm:$0xff] %v3522_v44  ;;  %v4440_v13 = vld [vmem:[%s5495_s1 + $0x340] sm:$0xff] }
  0x65   : > { %1204 = vmatpush.bf16.msra.mxu0 %v4401_v10  ;;  %v1496_v10 = vrot.slane %v3672_v63, 2  ;;  %v4460_v44 = vld [vmem:[%s5495_s1 + $0x3e0] sm:$0xff] }
  0x66   : > { %1298 = vmatpush.bf16.msra.mxu1 %v4409_v14  ;;  %v4452_v14 = vld [vmem:[%s5495_s1 + $0x3a0] sm:$0xff] }
  0x67   : > { %1389 = vmatpush.bf16.msra.mxu2 %v4417_v22  ;;  %v1518_v19 = vsel %vm393_vm2, %v1496_v10, %v1497_v11  ;;  %v1507_v22 = vsel %vm395_vm3, %v1505_v16, %v1506_v17  ;;  %v1515_v31 = vsel %vm385_vm10, %v1496_v10, %v1497_v11  ;;  %v4448_v63 = vld [vmem:[%s5495_s1 + $0x380] sm:$0xff]  ;;  %v4467_v16 = vld [vmem:[%s5495_s1 + $0x418] sm:$0xff]  ;;  %v4477_v17 = vld [vmem:[%s5495_s1 + $0x468] sm:$0xff] }
  0x68   : > { %1480 = vmatpush.bf16.msra.mxu3 %v4425_v46  ;;  %v1519_v29 = vsel %vm395_vm3, %v1517_v18, %v1518_v19  ;;  %v4470_v46 = vld [vmem:[%s5495_s1 + $0x430] sm:$0xff] }
  0x69   : > { %1205 = vmatpush.bf16.msra.mxu0 %v4400_v23  ;;  %v4451_v23 = vld [vmem:[%s5495_s1 + $0x398] sm:$0xff] }
  0x6a   : > { %1299 = vmatpush.bf16.msra.mxu1 %v4408_v30  ;;  %v1148_v52 = vld [vmem:[#allocation1] sm:$0xff]  ;;  %v3621_v30 = vld [vmem:[%s4671_s24 + $0xa] sm:$0x1] }
  0x6b   : > { %1390 = vmatpush.bf16.msra.mxu2 %v4416_v33  ;;  %1215 = vst [vmem:[#allocation1] sm:$0xff] %v3521_v49  ;;  %v1221_v56 = vld [vmem:[#allocation1 + $0x11] ss:$2 sm:$0xff]  ;;  %v1629_v33 = vrot.slane %v3723_v20, 2 }
  0x6c   : > { %1206 = vmatmul.bf16.vlgmr.msra.gmra.mxu0 %v1148_v52  ;;  %1481 = vmatpush.bf16.msra.mxu3 %v4424_v48 }
  0x6d   : > { %1610 = vmatpush.bf16.msrb.mxu0 %v4439_v27  ;;  %v1503_v27 = vsel %vm385_vm10, %v1493_v5, %v1494_v6  ;;  %v1642_v48 = vsel %vm393_vm2, %v1629_v33, %v1630_v34 }
  0x6e   : > { %1746 = vmatpush.bf16.msrb.mxu1 %v4447_v32  ;;  %v1628_v32 = vrot.slane %v3723_v20, 1  ;;  %v1504_v41 = vsel %vm389_vm14, %v1500_v26, %v1503_v27  ;;  %v4486_v26 = vld [vmem:[%s5495_s1 + $0x4b0] sm:$0xff] }
  0x6f   : > { %1840 = vmatpush.bf16.msrb.mxu2 %v4455_v55  ;;  %v1522_v49 = vshrl.u32 %v1504_v41, 16  ;;  %v4449_v55 = vld [vmem:[%s5495_s1 + $0x388] sm:$0xff] }
  0x70   : > { %1931 = vmatpush.bf16.msrb.mxu3 %v4463_v2 }
  0x71   : > { %1611 = vmatpush.bf16.msrb.mxu0 %v4438_v36  ;;  %v1509_v36 = vrot.slane %v1507_v22, 1 }
  0x72   : > { %1747 = vmatpush.bf16.msrb.mxu1 %v4446_v39  ;;  %v1217_v60 = vld [vmem:[#allocation1 + $0x1] ss:$2 sm:$0xff]  ;;  %v1633_v39 = vrot.slane %v3724_v21, 3 }
  0x73   : > { %1239 = vst [vmem:[#allocation1] ss:$9 sm:$0xff] %v1217_v60  ;;  %1841 = vmatpush.bf16.msrb.mxu2 %v4454_v59  ;;  %v4479_v59 = vld [vmem:[%s5495_s1 + $0x478] sm:$0xff]  ;;  %v1636_v60 = vsel %vm381_vm0, %v3723_v20, %v1628_v32 }
  0x74   : > { %1241 = vst [vmem:[#allocation1 + $0x1] ss:$9 sm:$0xff] %v1221_v56  ;;  %1932 = vmatpush.bf16.msrb.mxu3 %v4462_v15  ;;  %v1654_v52 = vsel %vm393_vm2, %v1632_v38, %v1633_v39  ;;  %v4459_v56 = vld [vmem:[%s5495_s1 + $0x3d8] sm:$0xff]  ;;  %v1651_v2 = vsel %vm385_vm10, %v1632_v38, %v1633_v39  ;;  %v4457_v15 = vld [vmem:[%s5495_s1 + $0x3c8] sm:$0xff] }
  0x75   : > { %1612 = vmatpush.bf16.msrb.mxu0 %v4437_v42  ;;  %v1521_v42 = vrot.slane %v1519_v29, 1  ;;  %v4465_v29 = vld [vmem:[%s5495_s1 + $0x408] sm:$0xff]  ;;  %v4483_v38 = vld [vmem:[%s5495_s1 + $0x498] sm:$0xff] }
  0x76   : > { %1748 = vmatpush.bf16.msrb.mxu1 %v4445_v47  ;;  %v1641_v47 = vsel %vm391_vm1, %v3723_v20, %v1628_v32  ;;  %v4487_v20 = vld [vmem:[%s5495_s1 + $0x4b8] sm:$0xff]  ;;  %v4464_v32 = vld [vmem:[%s5495_s1 + $0x400] sm:$0xff] }
  0x77   : > { %1842 = vmatpush.bf16.msrb.mxu2 %v4453_v1  ;;  %v1648_v1 = vsel %vm381_vm0, %v3724_v21, %v1631_v37  ;;  %v4495_v39 = vld [vmem:[%s5495_s1 + $0x4f8] sm:$0xff] }
  0x78   : > { %1933 = vmatpush.bf16.msrb.mxu3 %v4461_v24  ;;  %v4476_v24 = vld [vmem:[%s5495_s1 + $0x460] sm:$0xff] }
  0x79   : > { %1613 = vmatpush.bf16.msrb.mxu0 %v4436_v45  ;;  %v1516_v45 = vsel %vm389_vm14, %v1512_v28, %v1515_v31  ;;  %v3776_v28 = vld [vmem:[%s4671_s24 + $0x4] sm:$0x2]  ;;  %v4485_v31 = vld [vmem:[%s5495_s1 + $0x4a8] sm:$0xff] }
  0x7a   : > { %1749 = vmatpush.bf16.msrb.mxu1 %v4444_v51  ;;  %v1653_v51 = vsel %vm391_vm1, %v3724_v21, %v1631_v37  ;;  %v4456_v21 = vld [vmem:[%s5495_s1 + $0x3c0] sm:$0xff]  ;;  %v4473_v37 = vld [vmem:[%s5495_s1 + $0x448] sm:$0xff] }
  0x7b   : > { %v1242_v12 = vld [vmem:[#allocation1] sm:$0xff]  ;;  %1843 = vmatpush.bf16.msrb.mxu2 %v4452_v14  ;;  %v1655_v62 = vsel %vm395_vm3, %v1653_v51, %v1654_v52 }
  0x7c   : > { %1329 = vst [vmem:[#allocation1] ss:$9 sm:$0xff] %v3571_v3  ;;  %1300 = vmatmul.bf16.vlgmr.msra.gmra.mxu1 %v1242_v12  ;;  %1934 = vmatpush.bf16.msrb.mxu3 %v4460_v44  ;;  %v4458_v3 = vld [vmem:[%s5495_s1 + $0x3d0] sm:$0xff]  ;;  %v1657_v11 = vrot.slane %v1655_v62, 1  ;;  %v1652_v12 = vsel %vm389_vm14, %v1648_v1, %v1651_v2  ;;  %v4492_v51 = vld [vmem:[%s5495_s1 + $0x4e0] sm:$0xff] }
  0x7d   : > { %1614 = vmatpush.bf16.msrb.mxu0 %v4435_v50  ;;  %1332 = vst [vmem:[#allocation1 + $0x1] ss:$9 sm:$0xff] %v3572_v7  ;;  %v1527_v50 = vshll.u32 %v1509_v36, 16  ;;  %v4478_v7 = vld [vmem:[%s5495_s1 + $0x470] sm:$0xff]  ;;  %v1666_v18 = vshrl.u32 %v1652_v12, 16 }
  0x7e   : > { %1750 = vmatpush.bf16.msrb.mxu1 %v4443_v54  ;;  %v1535_v54 = vshll.u32 %v1521_v42, 16  ;;  %v1671_v19 = vshll.u32 %v1657_v11, 16  ;;  %v4472_v42 = vld [vmem:[%s5495_s1 + $0x440] sm:$0xff]  ;;  %v3977_v2 = vld [vmem:[%s4671_s24 + $0x1a] sm:$0x3] }
  0x7f   : > { %1844 = vmatpush.bf16.msrb.mxu2 %v4451_v23  ;;  %v4466_v23 = vld [vmem:[%s5495_s1 + $0x410] sm:$0xff] }
  0x80   : > { %1935 = vmatpush.bf16.msrb.mxu3 %v4459_v56  ;;  %v4502_v56 = vld [vmem:[%s5495_s1 + $0x530] sm:$0xff] }
  0x81   : > { %1615 = vmatpush.bf16.msrb.mxu0 %v4434_v53  ;;  %v1530_v53 = vshrl.u32 %v1516_v45, 16  ;;  %v3925_v45 = vld [vmem:[%s4671_s24 + $0x12] sm:$0x3] }
  0x82   : > { %1751 = vmatpush.bf16.msrb.mxu1 %v4442_v58  ;;  %v1643_v58 = vsel %vm395_vm3, %v1641_v47, %v1642_v48  ;;  %v4493_v47 = vld [vmem:[%s5495_s1 + $0x4e8] sm:$0xff]  ;;  %v4503_v48 = vld [vmem:[%s5495_s1 + $0x538] sm:$0xff]  ;;  %v2040_v52 = vrot.slane %v3925_v45, 1 }
  0x83   : > { %1845 = vmatpush.bf16.msrb.mxu2 %v4450_v43  ;;  %v1537_v5 = vsel %vm4778_vm8, %v1530_v53, %v1535_v54  ;;  %v1645_v6 = vrot.slane %v1643_v58, 1  ;;  %v4482_v43 = vld [vmem:[%s5495_s1 + $0x490] sm:$0xff]  ;;  %v2041_v53 = vrot.slane %v3925_v45, 2  ;;  %v2042_v54 = vrot.slane %v3925_v45, 3 }
  0x84   : > { %v1333_v40 = vld [vmem:[#allocation1] sm:$0xff]  ;;  %1936 = vmatpush.bf16.msrb.mxu3 %v4458_v3  ;;  %v2053_v62 = vsel %vm391_vm1, %v3925_v45, %v2040_v52  ;;  %v3978_v3 = vld [vmem:[%s4671_s24 + $0x1c] sm:$0x3] }
  0x85   : > { %1616 = vmatpush.bf16.msrb.mxu0 %v4433_v57  ;;  %1391 = vmatmul.bf16.vlgmr.msra.gmra.mxu2 %v1333_v40  ;;  %1420 = vst [vmem:[#allocation1] ss:$9 sm:$0xff] %v3621_v30  ;;  %v4469_v57 = vld [vmem:[%s5495_s1 + $0x428] sm:$0xff]  ;;  %v1663_v14 = vshll.u32 %v1645_v6, 16  ;;  %v4475_v30 = vld [vmem:[%s5495_s1 + $0x458] sm:$0xff]  ;;  %v4494_v40 = vld [vmem:[%s5495_s1 + $0x4f0] sm:$0xff] }
  0x86   : > { %1752 = vmatpush.bf16.msrb.mxu1 %v4441_v0  ;;  %1423 = vst [vmem:[#allocation1 + $0x1] ss:$9 sm:$0xff] %v3622_v35  ;;  %v1529_v0 = vsel %vm4778_vm8, %v1522_v49, %v1527_v50  ;;  %v4484_v35 = vld [vmem:[%s5495_s1 + $0x4a0] sm:$0xff]  ;;  %v3926_v49 = vld [vmem:[%s4671_s24 + $0x14] sm:$0x3]  ;;  %v4501_v6 = vld [vmem:[%s5495_s1 + $0x528] sm:$0xff] }
  0x87   : > { %1846 = vmatpush.bf16.msrb.mxu2 %v4449_v55  ;;  %v3825_v50 = vld [vmem:[%s4671_s24 + $0x12] sm:$0x1]  ;;  %v4480_v55 = vld [vmem:[%s5495_s1 + $0x480] sm:$0xff]  ;;  %v2043_v58 = vrot.slane %v3926_v49, 1 }
  0x88   : > { %1937 = vmatpush.bf16.msrb.mxu3 %v4457_v15  ;;  %v2176_v15 = vrot.slane %v3977_v2, 1 }
  0x89   : > { %1617 = vmatpush.bf16.msrb.mxu0 %v4432_v61  ;;  %v1639_v61 = vsel %vm385_vm10, %v1629_v33, %v1630_v34  ;;  %v3775_v33 = vld [vmem:[%s4671_s24 + $0x2] sm:$0x2]  ;;  %v4474_v34 = vld [vmem:[%s5495_s1 + $0x450] sm:$0xff]  ;;  %v2060_v11 = vsel %vm381_vm0, %v3926_v49, %v2043_v58 }
  0x8a   : > { %1753 = vmatpush.bf16.msrb.mxu1 %v4440_v13  ;;  %v1640_v10 = vsel %vm389_vm14, %v1636_v60, %v1639_v61  ;;  %v2045_v60 = vrot.slane %v3926_v49, 3 }
  0x8b   : > { %1847 = vmatpush.bf16.msrb.mxu2 %v4448_v63  ;;  %v1658_v13 = vshrl.u32 %v1640_v10, 16  ;;  %v2054_v63 = vsel %vm393_vm2, %v2041_v53, %v2042_v54  ;;  %v2051_v10 = vsel %vm385_vm10, %v2041_v53, %v2042_v54  ;;  %v4518_v54 = vld [vmem:[%s5495_s1 + $0x5b0] sm:$0xff] }
  0x8c   : > { %1938 = vmatpush.bf16.msrb.mxu3 %v4456_v21  ;;  %v2180_v21 = vrot.slane %v3978_v3, 2 }
  0x8d   : > { %2022 = vmatpush.bf16.msra.mxu0 %v4471_v25  ;;  %v1424_v8 = vld [vmem:[#allocation1] sm:$0xff]  ;;  %v1665_v22 = vsel %vm4778_vm8, %v1658_v13, %v1663_v14  ;;  %v1673_v25 = vsel %vm4778_vm8, %v1666_v18, %v1671_v19  ;;  %v3875_v13 = vld [vmem:[%s4671_s24 + $0x1a] sm:$0x1]  ;;  %v3876_v18 = vld [vmem:[%s4671_s24 + $0x1c] sm:$0x1] }
  0x8e   : > { %2158 = vmatpush.bf16.msra.mxu1 %v4479_v59  ;;  %1482 = vmatmul.bf16.vlgmr.msra.gmra.mxu3 %v1424_v8  ;;  %1556 = vst [vmem:[#allocation1] ss:$9 sm:$0xff] %v1529_v0  ;;  %v2044_v59 = vrot.slane %v3926_v49, 2  ;;  %v2065_v0 = vsel %vm391_vm1, %v3926_v49, %v2043_v58  ;;  %v2048_v8 = vsel %vm381_vm0, %v3925_v45, %v2040_v52 }
  0x8f   : > { %1559 = vst [vmem:[#allocation1 + $0x1] ss:$9 sm:$0xff] %v1537_v5  ;;  %2294 = vmatpush.bf16.msra.mxu2 %v4487_v20  ;;  %v4491_v5 = vld [vmem:[%s5495_s1 + $0x4d8] sm:$0xff]  ;;  %v2179_v20 = vrot.slane %v3978_v3, 1 }
  0x90   : > { %2388 = vmatpush.bf16.msra.mxu3 %v4495_v39  ;;  %v2066_v1 = vsel %vm393_vm2, %v2044_v59, %v2045_v60  ;;  %v2063_v14 = vsel %vm385_vm10, %v2044_v59, %v2045_v60  ;;  %v4499_v39 = vld [vmem:[%s5495_s1 + $0x518] sm:$0xff] }
  0x91   : > { %2023 = vmatpush.bf16.msra.mxu0 %v4470_v46  ;;  %v4481_v46 = vld [vmem:[%s5495_s1 + $0x488] sm:$0xff]  ;;  %v2067_v12 = vsel %vm395_vm3, %v2065_v0, %v2066_v1 }
  0x92   : > { %2159 = vmatpush.bf16.msra.mxu1 %v4478_v7  ;;  %v4511_v7 = vld [vmem:[%s5495_s1 + $0x578] sm:$0xff] }
  0x93   : > { %2295 = vmatpush.bf16.msra.mxu2 %v4486_v26  ;;  %v4490_v26 = vld [vmem:[%s5495_s1 + $0x4d0] sm:$0xff] }
  0x94   : > { %2389 = vmatpush.bf16.msra.mxu3 %v4494_v40  ;;  %v4509_v40 = vld [vmem:[%s5495_s1 + $0x568] sm:$0xff] }
  0x95   : > { %2024 = vmatpush.bf16.msra.mxu0 %v4469_v57  ;;  %v3826_v57 = vld [vmem:[%s4671_s24 + $0x14] sm:$0x1] }
  0x96   : > { %2160 = vmatpush.bf16.msra.mxu1 %v4477_v17  ;;  %v1560_v27 = vld [vmem:[#allocation1] sm:$0xff]  ;;  %v2178_v17 = vrot.slane %v3977_v2, 3 }
  0x97   : > { %1618 = vmatmul.bf16.vlgmr.msrb.gmra.mxu0 %v1560_v27  ;;  %1692 = vst [vmem:[#allocation1] ss:$9 sm:$0xff] %v1665_v22  ;;  %2296 = vmatpush.bf16.msra.mxu2 %v4485_v31  ;;  %v2181_v22 = vrot.slane %v3978_v3, 3  ;;  %v4500_v27 = vld [vmem:[%s5495_s1 + $0x520] sm:$0xff] }
  0x98   : > { %1695 = vst [vmem:[#allocation1 + $0x1] ss:$9 sm:$0xff] %v1673_v25  ;;  %2390 = vmatpush.bf16.msra.mxu3 %v4493_v47  ;;  %v2069_v25 = vrot.slane %v2067_v12, 1  ;;  %v4030_v12 = vld [vmem:[%s4671_s24 + $0x14] sm:$0x2] }
  0x99   : > { %2025 = vmatpush.bf16.msra.mxu0 %v4468_v4  ;;  %1767 = vst [vmem:[#allocation1 + $0x10] sm:$0xff] %v3776_v28  ;;  %v2055_v4 = vsel %vm395_vm3, %v2053_v62, %v2054_v63  ;;  %v2064_v28 = vsel %vm389_vm14, %v2060_v11, %v2063_v14  ;;  %v2199_v49 = vsel %vm385_vm10, %v2180_v21, %v2181_v22  ;;  %v4507_v62 = vld [vmem:[%s5495_s1 + $0x558] sm:$0xff]  ;;  %v4517_v63 = vld [vmem:[%s5495_s1 + $0x5a8] sm:$0xff] }
  0x9a   : > { %2161 = vmatpush.bf16.msra.mxu1 %v4476_v24  ;;  %v2057_v19 = vrot.slane %v2055_v4, 1  ;;  %v2052_v24 = vsel %vm389_vm14, %v2048_v8, %v2051_v10  ;;  %v4496_v4 = vld [vmem:[%s5495_s1 + $0x500] sm:$0xff]  ;;  %v4526_v10 = vld [vmem:[%s5495_s1 + $0x5f0] sm:$0xff]  ;;  %v4515_v14 = vld [vmem:[%s5495_s1 + $0x598] sm:$0xff] }
  0x9b   : > { %2297 = vmatpush.bf16.msra.mxu2 %v4484_v35  ;;  %v2202_v35 = vsel %vm393_vm2, %v2180_v21, %v2181_v22  ;;  %v4029_v21 = vld [vmem:[%s4671_s24 + $0x12] sm:$0x2] }
  0x9c   : > { %2391 = vmatpush.bf16.msra.mxu3 %v4492_v51  ;;  %v4508_v51 = vld [vmem:[%s5495_s1 + $0x560] sm:$0xff] }
  0x9d   : > { %2026 = vmatpush.bf16.msra.mxu0 %v4467_v16  ;;  %v2177_v16 = vrot.slane %v3977_v2, 2 }
  0x9e   : > { %2162 = vmatpush.bf16.msra.mxu1 %v4475_v30  ;;  %v2189_v30 = vsel %vm391_vm1, %v3977_v2, %v2176_v15 }
  0x9f   : > { %v1696_v36 = vld [vmem:[#allocation1] sm:$0xff]  ;;  %2298 = vmatpush.bf16.msra.mxu2 %v4483_v38  ;;  %v2190_v31 = vsel %vm393_vm2, %v2177_v16, %v2178_v17  ;;  %v4489_v38 = vld [vmem:[%s5495_s1 + $0x4c8] sm:$0xff] }
  0xa0   : > { %1754 = vmatmul.bf16.vlgmr.msrb.gmra.mxu1 %v1696_v36  ;;  %1763 = vst [vmem:[#allocation1] sm:$0xff] %v3775_v33  ;;  %v1769_v41 = vld [vmem:[#allocation1 + $0x11] ss:$2 sm:$0xff]  ;;  %2392 = vmatpush.bf16.msra.mxu3 %v4491_v5  ;;  %v2075_v33 = vshll.u32 %v2057_v19, 16  ;;  %v2078_v36 = vshrl.u32 %v2064_v28, 16 }
  0xa1   : > { %2027 = vmatpush.bf16.msra.mxu0 %v4466_v23  ;;  %v4535_v28 = vld [vmem:[%s5495_s1 + $0x638] sm:$0xff] }
  0xa2   : > { %2163 = vmatpush.bf16.msra.mxu1 %v4474_v34  ;;  %v2201_v34 = vsel %vm391_vm1, %v3978_v3, %v2179_v20 }
  0xa3   : > { %2299 = vmatpush.bf16.msra.mxu2 %v4482_v43  ;;  %v2184_v43 = vsel %vm381_vm0, %v3977_v2, %v2176_v15  ;;  %v2203_v45 = vsel %vm395_vm3, %v2201_v34, %v2202_v35  ;;  %v4527_v2 = vld [vmem:[%s5495_s1 + $0x5f8] sm:$0xff]  ;;  %v4525_v15 = vld [vmem:[%s5495_s1 + $0x5e8] sm:$0xff]  ;;  %v4534_v34 = vld [vmem:[%s5495_s1 + $0x630] sm:$0xff] }
  0xa4   : > { %2393 = vmatpush.bf16.msra.mxu3 %v4490_v26  ;;  %v4513_v26 = vld [vmem:[%s5495_s1 + $0x588] sm:$0xff] }
  0xa5   : > { %2028 = vmatpush.bf16.msra.mxu0 %v4465_v29  ;;  %v4510_v29 = vld [vmem:[%s5495_s1 + $0x570] sm:$0xff] }
  0xa6   : > { %2164 = vmatpush.bf16.msra.mxu1 %v4473_v37  ;;  %v2083_v37 = vshll.u32 %v2069_v25, 16 }
  0xa7   : > { %v1765_v44 = vld [vmem:[#allocation1 + $0x1] ss:$2 sm:$0xff]  ;;  %2300 = vmatpush.bf16.msra.mxu2 %v4481_v46 }
  0xa8   : > { %1787 = vst [vmem:[#allocation1] ss:$9 sm:$0xff] %v1765_v44  ;;  %v2187_v44 = vsel %vm385_vm10, %v2177_v16, %v2178_v17  ;;  %2394 = vmatpush.bf16.msra.mxu3 %v4489_v38  ;;  %v4488_v46 = vld [vmem:[%s5495_s1 + $0x4c0] sm:$0xff]  ;;  %v2085_v52 = vsel %vm4778_vm8, %v2078_v36, %v2083_v37  ;;  %v4522_v37 = vld [vmem:[%s5495_s1 + $0x5d0] sm:$0xff] }
  0xa9   : > { %2029 = vmatpush.bf16.msra.mxu0 %v4464_v32  ;;  %1789 = vst [vmem:[#allocation1 + $0x1] ss:$9 sm:$0xff] %v1769_v41  ;;  %v2070_v32 = vshrl.u32 %v2052_v24, 16  ;;  %v2191_v41 = vsel %vm395_vm3, %v2189_v30, %v2190_v31  ;;  %v4524_v24 = vld [vmem:[%s5495_s1 + $0x5e0] sm:$0xff] }
  0xaa   : > { %2165 = vmatpush.bf16.msra.mxu1 %v4472_v42  ;;  %v4519_v42 = vld [vmem:[%s5495_s1 + $0x5b8] sm:$0xff]  ;;  %v2193_v53 = vrot.slane %v2191_v41, 1  ;;  %v367_v17 = vpop.f32.mrf.mxu1  ;;  %v4512_v36 = vld [vmem:[%s5495_s1 + $0x580] sm:$0xff]  ;;  %v4521_v41 = vld [vmem:[%s5495_s1 + $0x5c8] sm:$0xff] }
  0xab   : > { %2301 = vmatpush.bf16.msra.mxu2 %v4480_v55  ;;  %v2077_v47 = vsel %vm4778_vm8, %v2070_v32, %v2075_v33 }
  0xac   : > { %2395 = vmatpush.bf16.msra.mxu3 %v4488_v46  ;;  %v2211_v60 = vshll.u32 %v2193_v53, 16  ;;  %v4079_v53 = vld [vmem:[%s4671_s24 + $0x4] sm:$0x1] }
  0xad   : > { %2479 = vmatpush.bf16.msrb.mxu0 %v4503_v48  ;;  %v2196_v48 = vsel %vm381_vm0, %v3978_v3, %v2179_v20  ;;  %v299_v3 = vpop.f32.mrf.mxu0  ;;  %v4504_v20 = vld [vmem:[%s5495_s1 + $0x540] sm:$0xff] }
  0xae   : > { %2570 = vmatpush.bf16.msrb.mxu1 %v4511_v7  ;;  %v2200_v58 = vsel %vm389_vm14, %v2196_v48, %v2199_v49  ;;  %v4516_v7 = vld [vmem:[%s5495_s1 + $0x5a0] sm:$0xff]  ;;  %v368_v19 = vadd.f32 %v367_v17, %v299_v3  ;;  %v4531_v3 = vld [vmem:[%s5495_s1 + $0x618] sm:$0xff] }
  0xaf   : > { %v2214_v0 = vshrl.u32 %v2200_v58, 16 }
  0xb0   : > { %v1790_v61 = vld [vmem:[#allocation1] sm:$0xff] }
  0xb1   : > { %1848 = vmatmul.bf16.vlgmr.msrb.gmra.mxu2 %v1790_v61  ;;  %1877 = vst [vmem:[#allocation1] ss:$9 sm:$0xff] %v3825_v50  ;;  %2480 = vmatpush.bf16.msrb.mxu0 %v4502_v56  ;;  %v4498_v50 = vld [vmem:[%s5495_s1 + $0x510] sm:$0xff]  ;;  %v2188_v56 = vsel %vm389_vm14, %v2184_v43, %v2187_v44  ;;  %v4497_v61 = vld [vmem:[%s5495_s1 + $0x508] sm:$0xff] }
  0xb2   : > { %1880 = vst [vmem:[#allocation1 + $0x1] ss:$9 sm:$0xff] %v3826_v57  ;;  %2571 = vmatpush.bf16.msrb.mxu1 %v4510_v29  ;;  %2706 = vmatpush.bf16.msrb.mxu2 %v4519_v42  ;;  %v2205_v57 = vrot.slane %v2203_v45, 1  ;;  %v2206_v59 = vshrl.u32 %v2188_v56, 16  ;;  %v369_v29 = vpop.f32.mrf.mxu1  ;;  %v4533_v42 = vld [vmem:[%s5495_s1 + $0x628] sm:$0xff] }
  0xb3   : > { %v4180_v45 = vld [vmem:[%s4671_s24 + $0x6] sm:$0x3] }
  0xb4   : > { %v2219_v1 = vshll.u32 %v2205_v57, 16  ;;  %v2213_v5 = vsel %vm4778_vm8, %v2206_v59, %v2211_v60  ;;  %v2591_v56 = vrot.slane %v4180_v45, 1  ;;  %v2592_v57 = vrot.slane %v4180_v45, 2 }
  0xb5   : > { %2481 = vmatpush.bf16.msrb.mxu0 %v4501_v6  ;;  %v4506_v6 = vld [vmem:[%s5495_s1 + $0x550] sm:$0xff]  ;;  %v301_v16 = vpop.f32.mrf.mxu0  ;;  %v2593_v58 = vrot.slane %v4180_v45, 3 }
  0xb6   : > { %2572 = vmatpush.bf16.msrb.mxu1 %v4509_v40  ;;  %2707 = vmatpush.bf16.msrb.mxu2 %v4518_v54  ;;  %v2221_v8 = vsel %vm4778_vm8, %v2214_v0, %v2219_v1  ;;  %v4179_v40 = vld [vmem:[%s4671_s24 + $0x4] sm:$0x3] }
  0xb7   : > { %v2588_v48 = vrot.slane %v4179_v40, 1  ;;  %v2589_v49 = vrot.slane %v4179_v40, 2  ;;  %v4520_v54 = vld [vmem:[%s5495_s1 + $0x5c0] sm:$0xff]  ;;  %v2614_v0 = vsel %vm393_vm2, %v2592_v57, %v2593_v58 }
  0xb9   : > { %v1881_v23 = vld [vmem:[#allocation1] sm:$0xff]  ;;  %2482 = vmatpush.bf16.msrb.mxu0 %v4500_v27  ;;  %v4523_v27 = vld [vmem:[%s5495_s1 + $0x5d8] sm:$0xff]  ;;  %v659_v31 = vpop.f32.mrf.mxu3 }
  0xba   : > { %1939 = vmatmul.bf16.vlgmr.msrb.gmra.mxu3 %v1881_v23  ;;  %1968 = vst [vmem:[#allocation1] ss:$9 sm:$0xff] %v3875_v13  ;;  %2573 = vmatpush.bf16.msrb.mxu1 %v4508_v51  ;;  %v4505_v13 = vld [vmem:[%s5495_s1 + $0x548] sm:$0xff]  ;;  %v4514_v23 = vld [vmem:[%s5495_s1 + $0x590] sm:$0xff] }
  0xbb   : > { %1971 = vst [vmem:[#allocation1 + $0x1] ss:$9 sm:$0xff] %v3876_v18  ;;  %2708 = vmatpush.bf16.msrb.mxu2 %v4517_v63  ;;  %2842 = vmatpush.bf16.msrb.mxu3 %v4527_v2  ;;  %v523_v18 = vpop.f32.mrf.mxu2  ;;  %v2613_v63 = vsel %vm391_vm1, %v4180_v45, %v2591_v56  ;;  %v4231_v2 = vld [vmem:[%s4671_s24 + $0xc] sm:$0x3] }
  0xbc   : > { %v527_v22 = vadd.f32 %v523_v18, %v368_v19  ;;  %v2724_v18 = vrot.slane %v4231_v2, 1  ;;  %v2725_v19 = vrot.slane %v4231_v2, 2 }
  0xbd   : > { %2483 = vmatpush.bf16.msrb.mxu0 %v4499_v39 }
  0xbe   : > { %2574 = vmatpush.bf16.msrb.mxu1 %v4507_v62  ;;  %v663_v33 = vadd.f32 %v659_v31, %v527_v22  ;;  %v4130_v22 = vld [vmem:[%s4671_s24 + $0xe] sm:$0x1]  ;;  %v2737_v31 = vsel %vm391_vm1, %v4231_v2, %v2724_v18 }
  0xbf   : > { %2709 = vmatpush.bf16.msrb.mxu2 %v4516_v7  ;;  %2843 = vmatpush.bf16.msrb.mxu3 %v4526_v10 }
  0xc1   : > { %2484 = vmatpush.bf16.msrb.mxu0 %v4498_v50  ;;  %v661_v43 = vpop.f32.mrf.mxu3  ;;  %v2590_v50 = vrot.slane %v4179_v40, 3 }
  0xc2   : > { %v1972_v55 = vld [vmem:[#allocation1] sm:$0xff]  ;;  %2575 = vmatpush.bf16.msrb.mxu1 %v4506_v6  ;;  %v2596_v6 = vsel %vm381_vm0, %v4179_v40, %v2588_v48  ;;  %v2732_v43 = vsel %vm381_vm0, %v4231_v2, %v2724_v18 }
  0xc3   : > { %2030 = vmatmul.bf16.vlgmr.msra.gmra.mxu0 %v1972_v55  ;;  %2104 = vst [vmem:[#allocation1] ss:$9 sm:$0xff] %v2077_v47  ;;  %2710 = vmatpush.bf16.msrb.mxu2 %v4515_v14  ;;  %v525_v30 = vpop.f32.mrf.mxu2  ;;  %v4080_v55 = vld [vmem:[%s4671_s24 + $0x6] sm:$0x1]  ;;  %v2602_v62 = vsel %vm393_vm2, %v2589_v49, %v2590_v50  ;;  %v2599_v7 = vsel %vm385_vm10, %v2589_v49, %v2590_v50 }
  0xc4   : > { %2107 = vst [vmem:[#allocation1 + $0x1] ss:$9 sm:$0xff] %v2085_v52  ;;  %2844 = vmatpush.bf16.msrb.mxu3 %v4525_v15  ;;  %v4532_v52 = vld [vmem:[%s5495_s1 + $0x620] sm:$0xff]  ;;  %v2611_v14 = vsel %vm385_vm10, %v2592_v57, %v2593_v58  ;;  %v2615_v15 = vsel %vm395_vm3, %v2613_v63, %v2614_v0 }
  0xc5   : > { %2485 = vmatpush.bf16.msrb.mxu0 %v4497_v61  ;;  %v2601_v61 = vsel %vm391_vm1, %v4179_v40, %v2588_v48  ;;  %v2617_v29 = vrot.slane %v2615_v15, 1 }
  0xc6   : > { %2576 = vmatpush.bf16.msrb.mxu1 %v4505_v13  ;;  %v2603_v1 = vsel %vm395_vm3, %v2601_v61, %v2602_v62  ;;  %v2608_v13 = vsel %vm381_vm0, %v4180_v45, %v2591_v56 }
  0xc7   : > { %2711 = vmatpush.bf16.msrb.mxu2 %v4514_v23  ;;  %v2605_v17 = vrot.slane %v2603_v1, 1  ;;  %v2612_v30 = vsel %vm389_vm14, %v2608_v13, %v2611_v14  ;;  %v4284_v1 = vld [vmem:[%s4671_s24 + $0x6] sm:$0x2] }
  0xc8   : > { %2845 = vmatpush.bf16.msrb.mxu3 %v4524_v24 }
  0xc9   : > { %2486 = vmatpush.bf16.msrb.mxu0 %v4496_v4  ;;  %v753_v32 = vpop.f32.mrf.mxu0 }
  0xca   : > { %2577 = vmatpush.bf16.msrb.mxu1 %v4504_v20  ;;  %v757_v38 = vadd.f32 %v753_v32, %v663_v33  ;;  %v2726_v20 = vrot.slane %v4231_v2, 3  ;;  %v4529_v33 = vld [vmem:[%s5495_s1 + $0x608] sm:$0xff] }
  0xcb   : > { %v2108_v11 = vld [vmem:[#allocation1] sm:$0xff]  ;;  %2712 = vmatpush.bf16.msrb.mxu2 %v4513_v26 }
  0xcc   : > { %2166 = vmatmul.bf16.vlgmr.msra.gmra.mxu1 %v2108_v11  ;;  %2240 = vst [vmem:[#allocation1] ss:$9 sm:$0xff] %v2213_v5  ;;  %2846 = vmatpush.bf16.msrb.mxu3 %v4523_v27  ;;  %v2738_v32 = vsel %vm393_vm2, %v2725_v19, %v2726_v20 }
  0xcd   : > { %2243 = vst [vmem:[#allocation1 + $0x1] ss:$9 sm:$0xff] %v2221_v8  ;;  %2936 = vmatpush.bf16.msra.mxu0 %v4535_v28  ;;  %v844_v46 = vpop.f32.mrf.mxu1  ;;  %v4232_v8 = vld [vmem:[%s4671_s24 + $0xe] sm:$0x3]  ;;  %v2600_v28 = vsel %vm389_vm14, %v2596_v6, %v2599_v7 }
  0xce   : > { %2315 = vst [vmem:[#allocation1 + $0x10] sm:$0xff] %v4030_v12  ;;  %v848_v51 = vadd.f32 %v844_v46, %v757_v38  ;;  %v4129_v12 = vld [vmem:[%s4671_s24 + $0xc] sm:$0x1]  ;;  %v2727_v23 = vrot.slane %v4232_v8, 1  ;;  %v2728_v24 = vrot.slane %v4232_v8, 2  ;;  %v2626_v38 = vshrl.u32 %v2612_v30, 16 }
  0xcf   : > { %2713 = vmatpush.bf16.msrb.mxu2 %v4512_v36  ;;  %v4528_v46 = vld [vmem:[%s5495_s1 + $0x600] sm:$0xff] }
  0xd0   : > { %2847 = vmatpush.bf16.msrb.mxu3 %v4522_v37  ;;  %v2749_v36 = vsel %vm391_vm1, %v4232_v8, %v2727_v23  ;;  %v2744_v48 = vsel %vm381_vm0, %v4232_v8, %v2727_v23 }
  0xd1   : > { %2937 = vmatpush.bf16.msra.mxu0 %v4534_v34  ;;  %v755_v44 = vpop.f32.mrf.mxu0  ;;  %v2618_v34 = vshrl.u32 %v2600_v28, 16 }
  0xd2   : > { %v2735_v44 = vsel %vm385_vm10, %v2725_v19, %v2726_v20 }
  0xd4   : > { %v2244_v25 = vld [vmem:[#allocation1] sm:$0xff]  ;;  %2848 = vmatpush.bf16.msrb.mxu3 %v4521_v41 }
  0xd5   : > { %2302 = vmatmul.bf16.vlgmr.msra.gmra.mxu2 %v2244_v25  ;;  %2311 = vst [vmem:[#allocation1] sm:$0xff] %v4029_v21  ;;  %v2317_v35 = vld [vmem:[#allocation1 + $0x11] ss:$2 sm:$0xff]  ;;  %2938 = vmatpush.bf16.msra.mxu0 %v4533_v42  ;;  %v846_v4 = vpop.f32.mrf.mxu1  ;;  %v2729_v25 = vrot.slane %v4232_v8, 3  ;;  %v2739_v42 = vsel %vm395_vm3, %v2737_v31, %v2738_v32 }
  0xd6   : > { %v4530_v21 = vld [vmem:[%s5495_s1 + $0x610] sm:$0xff] }
  0xd7   : > { %v2750_v37 = vsel %vm393_vm2, %v2728_v24, %v2729_v25  ;;  %v2747_v49 = vsel %vm385_vm10, %v2728_v24, %v2729_v25 }
  0xd8   : > { %2849 = vmatpush.bf16.msrb.mxu3 %v4520_v54  ;;  %v2751_v45 = vsel %vm395_vm3, %v2749_v36, %v2750_v37 }
  0xd9   : > { %2939 = vmatpush.bf16.msra.mxu0 %v4532_v52  ;;  %v2753_v54 = vrot.slane %v2751_v45, 1 }
  0xdb   : > { %v2767_v61 = vshll.u32 %v2753_v54, 16 }
  0xdc   : > { %v2313_v39 = vld [vmem:[#allocation1 + $0x1] ss:$2 sm:$0xff]  ;;  %v935_v47 = vpop.f32.mrf.mxu2 }
  0xdd   : > { %2335 = vst [vmem:[#allocation1] ss:$9 sm:$0xff] %v2313_v39  ;;  %v939_v59 = vadd.f32 %v935_v47, %v848_v51  ;;  %2940 = vmatpush.bf16.msra.mxu0 %v4531_v3  ;;  %v2631_v39 = vshll.u32 %v2617_v29, 16  ;;  %v2741_v51 = vrot.slane %v2739_v42, 1  ;;  %v4283_v3 = vld [vmem:[%s4671_s24 + $0x4] sm:$0x2] }
  0xde   : > { %2337 = vst [vmem:[#allocation1 + $0x1] ss:$9 sm:$0xff] %v2317_v35  ;;  %v2623_v35 = vshll.u32 %v2605_v17, 16 }
  0xdf   : > { %v2633_v50 = vsel %vm4778_vm8, %v2626_v38, %v2631_v39  ;;  %v2759_v58 = vshll.u32 %v2741_v51, 16 }
  0xe0   : > { %v2625_v47 = vsel %vm4778_vm8, %v2618_v34, %v2623_v35 }
  0xe1   : > { %2941 = vmatpush.bf16.msra.mxu0 %v4530_v21 }
  0xe4   : > { %v937_v5 = vpop.f32.mrf.mxu2 }
  0xe5   : > { %v2338_v60 = vld [vmem:[#allocation1] sm:$0xff]  ;;  %v1071_v10 = vpop.f32.mrf.mxu3  ;;  %2942 = vmatpush.bf16.msra.mxu0 %v4529_v33 }
  0xe6   : > { %2396 = vmatmul.bf16.vlgmr.msra.gmra.mxu3 %v2338_v60  ;;  %2425 = vst [vmem:[#allocation1] ss:$9 sm:$0xff] %v4079_v53  ;;  %v1075_v16 = vadd.f32 %v1071_v10, %v939_v59  ;;  %v2736_v53 = vsel %vm389_vm14, %v2732_v43, %v2735_v44 }
  0xe7   : > { %2428 = vst [vmem:[#allocation1 + $0x1] ss:$9 sm:$0xff] %v4080_v55  ;;  %v2748_v55 = vsel %vm389_vm14, %v2744_v48, %v2747_v49  ;;  %v2754_v57 = vshrl.u32 %v2736_v53, 16 }
  0xe8   : > { %v2762_v60 = vshrl.u32 %v2748_v55, 16 }
  0xe9   : > { %v1207_v11 = vpop.f32.mrf.mxu0  ;;  %2943 = vmatpush.bf16.msra.mxu0 %v4528_v46  ;;  %v2761_v62 = vsel %vm4778_vm8, %v2754_v57, %v2759_v58 }
  0xea   : > { %v1211_v26 = vadd.f32 %v1207_v11, %v1075_v16  ;;  %v2769_v63 = vsel %vm4778_vm8, %v2762_v60, %v2767_v61 }
  0xed   : > { %v1073_v40 = vpop.f32.mrf.mxu3 }
  0xee   : > { %v2429_v27 = vld [vmem:[#allocation1] sm:$0xff] }
  0xef   : > { %2487 = vmatmul.bf16.vlgmr.msrb.gmra.mxu0 %v2429_v27  ;;  %2516 = vst [vmem:[#allocation1] ss:$9 sm:$0xff] %v4129_v12 }
  0xf0   : > { %2519 = vst [vmem:[#allocation1 + $0x1] ss:$9 sm:$0xff] %v4130_v22 }
  0xf1   : > { %v1209_v41 = vpop.f32.mrf.mxu0 }
  0xf7   : > { %v2520_v52 = vld [vmem:[#allocation1] sm:$0xff] }
  0xf8   : > { %2578 = vmatmul.bf16.vlgmr.msrb.gmra.mxu1 %v2520_v52  ;;  %2652 = vst [vmem:[#allocation1] ss:$9 sm:$0xff] %v2625_v47 }
  0xf9   : > { %2655 = vst [vmem:[#allocation1 + $0x1] ss:$9 sm:$0xff] %v2633_v50  ;;  %v1301_v56 = vpop.f32.mrf.mxu1  ;;  %v4560_v50 = vld [vmem:[%s5496_s2] ss:$0 sm:$0xff] }
  0xfa   : > { %v1305_v59 = vadd.f32 %v1301_v56, %v1211_v26 }
 0x100   : > { %v2656_v0 = vld [vmem:[#allocation1] sm:$0xff] }
 0x101   : > { %2714 = vmatmul.bf16.vlgmr.msrb.gmra.mxu2 %v2656_v0  ;;  %2788 = vst [vmem:[#allocation1] ss:$9 sm:$0xff] %v2761_v62  ;;  %v1303_v2 = vpop.f32.mrf.mxu1 }
 0x102   : > { %2791 = vst [vmem:[#allocation1 + $0x1] ss:$9 sm:$0xff] %v2769_v63 }
 0x103   : > { %2863 = vst [vmem:[#allocation1 + $0x10] sm:$0xff] %v4284_v1 }
 0x108   : > { %v1392_v4 = vpop.f32.mrf.mxu2 }
 0x109   : > { %v2792_v5 = vld [vmem:[#allocation1] sm:$0xff]  ;;  %v1396_v6 = vadd.f32 %v1392_v4, %v1305_v59 }
 0x10a   : > { %2850 = vmatmul.bf16.vlgmr.msrb.gmra.mxu3 %v2792_v5  ;;  %2859 = vst [vmem:[#allocation1] sm:$0xff] %v4283_v3  ;;  %v2865_v7 = vld [vmem:[#allocation1 + $0x11] ss:$2 sm:$0xff] }
 0x110   : > { %v1394_v8 = vpop.f32.mrf.mxu2 }
 0x111   : > { %v2861_v10 = vld [vmem:[#allocation1 + $0x1] ss:$2 sm:$0xff]  ;;  %v1483_v11 = vpop.f32.mrf.mxu3 }
 0x112   : > { %2883 = vst [vmem:[#allocation1] ss:$9 sm:$0xff] %v2861_v10  ;;  %v1487_v9 = vadd.f32 %v1483_v11, %v1396_v6 }
 0x113   : > { %2885 = vst [vmem:[#allocation1 + $0x1] ss:$9 sm:$0xff] %v2865_v7 }
 0x114   : > { %v1619_v12 = vpop.f32.mrf.mxu0 }
 0x115   : > { %v1623_v13 = vadd.f32 %v1619_v12, %v1487_v9 }
 0x119   : > { %v1485_v14 = vpop.f32.mrf.mxu3 }
 0x11a   : > { %v2886_v15 = vld [vmem:[#allocation1] sm:$0xff] }
 0x11b   : > { %2944 = vmatmul.bf16.vlgmr.msra.gmra.mxu0 %v2886_v15 }
 0x11c   : > { %v1621_v16 = vpop.f32.mrf.mxu0 }
 0x11d   : > { %v1755_v17 = vpop.f32.mrf.mxu1 }
 0x11e   : > { %v1759_v18 = vadd.f32 %v1755_v17, %v1623_v13 }
 0x125   : > { %v1757_v19 = vpop.f32.mrf.mxu1 }
 0x134   : > { %v1849_v20 = vpop.f32.mrf.mxu2 }
 0x135   : > { %v1853_v21 = vadd.f32 %v1849_v20, %v1759_v18 }
 0x13c   : > { %v1851_v22 = vpop.f32.mrf.mxu2 }
 0x13d   : > { %v1940_v23 = vpop.f32.mrf.mxu3 }
 0x13e   : > { %v1944_v24 = vadd.f32 %v1940_v23, %v1853_v21 }
 0x140   : > { %v2031_v25 = vpop.f32.mrf.mxu0 }
 0x141   : > { %v2035_v26 = vadd.f32 %v2031_v25, %v1944_v24 }
 0x145   : > { %v1942_v27 = vpop.f32.mrf.mxu3 }
 0x148   : > { %v2033_v28 = vpop.f32.mrf.mxu0 }
 0x149   : > { %v2167_v29 = vpop.f32.mrf.mxu1 }
 0x14a   : > { %v2171_v30 = vadd.f32 %v2167_v29, %v2035_v26 }
 0x151   : > { %v2169_v31 = vpop.f32.mrf.mxu1 }
 0x158   : > { %v2303_v32 = vpop.f32.mrf.mxu2 }
 0x159   : > { %v2307_v41 = vadd.f32 %v2303_v32, %v2171_v30 }
 0x160   : > { %v2305_v33 = vpop.f32.mrf.mxu2 }
 0x169   : > { %v2397_v34 = vpop.f32.mrf.mxu3 }
 0x16a   : > { %v2401_v43 = vadd.f32 %v2397_v34, %v2307_v41 }
 0x16c   : > { %v2488_v35 = vpop.f32.mrf.mxu0 }
 0x16d   : > { %v2492_v45 = vadd.f32 %v2488_v35, %v2401_v43 }
 0x171   : > { %v2399_v36 = vpop.f32.mrf.mxu3 }
 0x174   : > { %v2490_v37 = vpop.f32.mrf.mxu0 }
 0x175   : > { %v2579_v38 = vpop.f32.mrf.mxu1 }
 0x176   : > { %v2583_v46 = vadd.f32 %v2579_v38, %v2492_v45 }
 0x17d   : > { %v2581_v39 = vpop.f32.mrf.mxu1 }
 0x184   : > { %v2715_v40 = vpop.f32.mrf.mxu2 }
 0x185   : > { %v2719_v47 = vadd.f32 %v2715_v40, %v2583_v46 }
 0x18c   : > { %v2717_v42 = vpop.f32.mrf.mxu2 }
 0x18d   : > { %v2851_v44 = vpop.f32.mrf.mxu3 }
 0x18e   : > { %v2855_v49 = vadd.f32 %v2851_v44, %v2719_v47 }
 0x195   : > { %v2853_v48 = vpop.f32.mrf.mxu3 }
 0x198   : > { %v2945_v51 = vpop.f32.mrf.mxu0 }
 0x199   : > { %v2949_v52 = vadd.f32 %v2945_v51, %v2855_v49 }
 0x19b   : > { %v2954_v53 = vadd.f32 %v4560_v50, %v2949_v52 }
 0x19d   : > { %v2955_v54 = vmul.f32 0.2, %v2954_v53 }
 0x19f   : > { %v2956_v55 = vmax.f32 %v2954_v53, %v2955_v54 }
 0x1a0   : > { %v2947_v56 = vpop.f32.mrf.mxu0 }
 0x1a1   : > { %v2958_v57 = vrot.slane %v2956_v55, 2  ;;  %v2960_v58 = vpack.c.bf16 %v2956_v55, %v2956_v55 }
 0x1a3   : > { %v2961_v59 = vpack.c.bf16 %v2958_v57, %v2958_v57  ;;  %2962 = vst [vmem:[%s190_s27] sm:$0x1] %v2960_v58 }
 0x1a5   : > { %2963 = vst [vmem:[%s190_s27 + $0x1] sm:$0x1] %v2961_v59 }
 0x1a6 PF: > { %s13_s14 = sadd.s32 1, %s4583_s14   ;;  %s5504_s12 = smov %s4579_s13 }
 0x1a7   : > { %p10_p5 = scmp.ge.s32.totalorder %s13_s14, 4   ;;  %s5505_s13 = smov %s5507_s15 }
 0x1a9   :  { %12 = sbr.rel (!%p10_p5) target bundleno = 2 (0x2), region = 131 }

// kernel: patch_discriminator.6
= control target key start
LH: loop header
LB: loop body
LE: loop exit
PB: predicated region body
PF: predicated region fallthrough
CT: control target
= control target key end

     0   :  { %s5521_s12 = smov 0   ;;  %s5523_s13 = smov 0   ;;  %s6589_s0 = inlined_call_operand.vmem [shape: bf16[2,4,6,6,128], index: 0, kind: input, shape index: {}]   ;;  %s6590_s1 = inlined_call_operand.vmem [shape: bf16[25,128,128], index: 1, kind: input, shape index: {}]   ;;  %s6591_s2 = inlined_call_operand.vmem [shape: f32[1,128], index: 2, kind: input, shape index: {}]   ;;  %s6592_s3 = inlined_call_operand.vmem [shape: bf16[2,4,4,128], index: 3, kind: output, shape index: {}]  }
   0x1   :  { %s5525_s14 = smov 0  }
   0x2 LB: > { %s25_s15 = sadd.s32 1, %s5495_s13  ;;  %p3932_p0 = scmp.ge.s32.totalorder %s5499_s14, 1  ;;  %s5499_s14 = sphi %s5525_s14, %s13_s14   ;;  %s5495_s13 = sphi %s5523_s13, %s6602_s13   ;;  %s5491_s12 = sphi %s5521_s12, %s6601_s12  }
   0x3   : > { %p27_p1 = scmp.ge.s32.totalorder %s25_s15, 2  ;;  %p151_p2 = scmp.lt.s32.totalorder %s5499_s14, 3 }
   0x5   : > { %s6604_s15 = smov (%p27_p1, %s25_s15), 0  ;;  %p152_p3 = pnand %p3932_p0, %p151_p2 }
   0x6   : > { %p179_p4 = scmp.lt.s32.totalorder (!%p152_p3), %s5491_s12, 1 }
   0x7   : > { %155 = sbr.rel (%p152_p3) target bundleno = 444 (0x1bc), region = 32 }
   0xc   : > { %v5266_v0 = vld [vmem:[%s6590_s1 + $0x78] sm:$0xff]  ;;  %v5265_v3 = vld [vmem:[%s6590_s1 + $0x70] sm:$0xff]  ;;  %s6606_s12 = smov (!%p179_p4, %s5491_s12), 1  ;;  %v5264_v8 = vld [vmem:[%s6590_s1 + $0x68] sm:$0xff]  ;;  %vm403_vm0 = vcmask 1041408   ;;  %vm407_vm2 = vcmask 1043458  }
   0xd   : > { %v5274_v1 = vld [vmem:[%s6590_s1 + $0xb8] sm:$0xff]  ;;  %302 = vmatpush.bf16.msra.mxu0 %v5266_v0  ;;  %v5273_v4 = vld [vmem:[%s6590_s1 + $0xb0] sm:$0xff]  ;;  %v5272_v9 = vld [vmem:[%s6590_s1 + $0xa8] sm:$0xff]  ;;  %s5451_s17 = smul.u32 96, %s6606_s12  ;;  %vm429_vm1 = vsmask.f32 1280 }
   0xe   : > { %v5258_v2 = vld [vmem:[%s6590_s1 + $0x38] sm:$0xff]  ;;  %566 = vmatpush.bf16.msra.mxu2 %v5274_v1  ;;  %v5257_v6 = vld [vmem:[%s6590_s1 + $0x30] sm:$0xff]  ;;  %v5256_v10 = vld [vmem:[%s6590_s1 + $0x28] sm:$0xff]  ;;  %vm430_vm3 = vsmask.f32 3336  ;;  %vm804_vm9 = vcmask 1040384  }
   0xf   : > { %v5282_v5 = vld [vmem:[%s6590_s1 + $0xf8] sm:$0xff]  ;;  %377 = vmatpush.bf16.msra.mxu1 %v5258_v2  ;;  %v5281_v7 = vld [vmem:[%s6590_s1 + $0xf0] sm:$0xff]  ;;  %v5280_v11 = vld [vmem:[%s6590_s1 + $0xe8] sm:$0xff]  ;;  %s5593_s28 = scalar_lea.vmem %s6589_s0, %s5451_s17  ;;  %vm432_vm4 = vsmask.f32 5392  ;;  %vm805_vm10 = vcmask 1042434  }
  0x10   : > { %748 = vmatpush.bf16.msra.mxu3 %v5282_v5  ;;  %v5263_v12 = vld [vmem:[%s6590_s1 + $0x60] sm:$0xff]  ;;  %v5262_v16 = vld [vmem:[%s6590_s1 + $0x58] sm:$0xff]  ;;  %v5261_v24 = vld [vmem:[%s6590_s1 + $0x50] sm:$0xff]  ;;  %vm434_vm5 = vsmask.f32 7448  ;;  %vm807_vm11 = vcmask 1044484  }
  0x11   : > { %303 = vmatpush.bf16.msra.mxu0 %v5265_v3  ;;  %v5271_v13 = vld [vmem:[%s6590_s1 + $0xa0] sm:$0xff]  ;;  %v5270_v17 = vld [vmem:[%s6590_s1 + $0x98] sm:$0xff]  ;;  %v5269_v25 = vld [vmem:[%s6590_s1 + $0x90] sm:$0xff]  ;;  %vm809_vm13 = vcmask 1046534   ;;  %s5250_s23 = sshll.u32 %s6606_s12, 3 }
  0x12   : > { %567 = vmatpush.bf16.msra.mxu2 %v5273_v4  ;;  %v5255_v14 = vld [vmem:[%s6590_s1 + $0x20] sm:$0xff]  ;;  %v5254_v18 = vld [vmem:[%s6590_s1 + $0x18] sm:$0xff]  ;;  %v5253_v26 = vld [vmem:[%s6590_s1 + $0x10] sm:$0xff]  ;;  %s192_s26 = scalar_lea.vmem %s6592_s3, %s5250_s23 }
  0x13   : > { %378 = vmatpush.bf16.msra.mxu1 %v5257_v6  ;;  %v5279_v15 = vld [vmem:[%s6590_s1 + $0xe0] sm:$0xff]  ;;  %v5278_v19 = vld [vmem:[%s6590_s1 + $0xd8] sm:$0xff]  ;;  %v5277_v27 = vld [vmem:[%s6590_s1 + $0xd0] sm:$0xff] }
  0x14   : > { %749 = vmatpush.bf16.msra.mxu3 %v5281_v7  ;;  %v3936_v20 = vld [vmem:[%s5593_s28 + $0x18] sm:$0x3]  ;;  %v3937_v21 = vld [vmem:[%s5593_s28 + $0x1c] sm:$0x3]  ;;  %v3938_v22 = vld [vmem:[%s5593_s28 + $0x20] sm:$0x3] }
  0x15   : > { %304 = vmatpush.bf16.msra.mxu0 %v5264_v8  ;;  %v3939_v23 = vld [vmem:[%s5593_s28 + $0x24] sm:$0x3]  ;;  %242 = vst [vmem:[#allocation1] ss:$4 sm:$0xff] %v3936_v20  ;;  %v391_v28 = vld [vmem:[%s5593_s28] sm:$0x7]  ;;  %vm5657_vm6 = vmor %vm429_vm1, %vm430_vm3 }
  0x16   : > { %568 = vmatpush.bf16.msra.mxu2 %v5272_v9  ;;  %245 = vst [vmem:[#allocation1 + $0x1] ss:$4 sm:$0xff] %v3937_v21  ;;  %v392_v29 = vld [vmem:[%s5593_s28 + $0x4] sm:$0x7]  ;;  %v393_v30 = vld [vmem:[%s5593_s28 + $0x8] sm:$0x7]  ;;  %vm5679_vm7 = vmor %vm5657_vm6, %vm432_vm4 }
  0x17   : > { %379 = vmatpush.bf16.msra.mxu1 %v5256_v10  ;;  %248 = vst [vmem:[#allocation1 + $0x2] ss:$4 sm:$0xff] %v3938_v22  ;;  %v394_v31 = vld [vmem:[%s5593_s28 + $0xc] sm:$0x7]  ;;  %v399_v32 = vrot.slane %v391_v28, 2  ;;  %v400_v33 = vrot.slane %v392_v29, 2  ;;  %vm5695_vm8 = vmor %vm5679_vm7, %vm434_vm5 }
  0x18   : > { %750 = vmatpush.bf16.msra.mxu3 %v5280_v11  ;;  %251 = vst [vmem:[#allocation1 + $0x3] ss:$4 sm:$0xff] %v3939_v23  ;;  %v401_v34 = vrot.slane %v393_v30, 2  ;;  %v5260_v35 = vld [vmem:[%s6590_s1 + $0x48] sm:$0xff]  ;;  %v402_v37 = vrot.slane %v394_v31, 2  ;;  %v5259_v47 = vld [vmem:[%s6590_s1 + $0x40] sm:$0xff]  ;;  %vm806_vm12 = vmor %vm804_vm9, %vm805_vm10 }
  0x19   : > { %305 = vmatpush.bf16.msra.mxu0 %v5263_v12  ;;  %v5268_v36 = vld [vmem:[%s6590_s1 + $0x88] sm:$0xff]  ;;  %v406_v38 = vsel %vm403_vm0, %v391_v28, %v399_v32  ;;  %v408_v39 = vsel %vm407_vm2, %v391_v28, %v399_v32  ;;  %v197_v42 = vld [vmem:[%s5593_s28] sm:$0x3]  ;;  %v413_v44 = vsel %vm403_vm0, %v392_v29, %v400_v33  ;;  %v414_v45 = vsel %vm407_vm2, %v392_v29, %v400_v33  ;;  %v198_v49 = vld [vmem:[%s5593_s28 + $0x4] sm:$0x3] }
  0x1a   : > { %569 = vmatpush.bf16.msra.mxu2 %v5271_v13  ;;  %v5252_v40 = vld [vmem:[%s6590_s1 + $0x8] sm:$0xff]  ;;  %v410_v43 = vrot.slane %v408_v39, 2  ;;  %v420_v46 = vsel %vm407_vm2, %v393_v30, %v401_v34  ;;  %v5267_v48 = vld [vmem:[%s6590_s1 + $0x80] sm:$0xff]  ;;  %v416_v51 = vrot.slane %v414_v45, 2  ;;  %v419_v52 = vsel %vm403_vm0, %v393_v30, %v401_v34  ;;  %v5290_v56 = vld [vmem:[%s6590_s1 + $0x138] sm:$0xff] }
  0x1b   : > { %380 = vmatpush.bf16.msra.mxu1 %v5255_v14  ;;  %v5276_v41 = vld [vmem:[%s6590_s1 + $0xc8] sm:$0xff]  ;;  %v422_v53 = vrot.slane %v420_v46, 2  ;;  %v426_v54 = vsel %vm407_vm2, %v394_v31, %v402_v37  ;;  %v5251_v57 = vld [vmem:[%s6590_s1] sm:$0xff]  ;;  %v436_v60 = vshrl.u32 %v406_v38, 16  ;;  %v439_v61 = vshll.u32 %v406_v38, 16  ;;  %v5306_v63 = vld [vmem:[%s6590_s1 + $0x1b8] sm:$0xff] }
  0x1c   : > { %751 = vmatpush.bf16.msra.mxu3 %v5279_v15  ;;  %v199_v50 = vld [vmem:[%s5593_s28 + $0x8] sm:$0x3]  ;;  %v200_v58 = vld [vmem:[%s5593_s28 + $0xc] sm:$0x3]  ;;  %v428_v59 = vrot.slane %v426_v54, 2  ;;  %v445_v62 = vshll.u32 %v410_v43, 16  ;;  %v425_v2 = vsel %vm403_vm0, %v394_v31, %v402_v37  ;;  %vm808_vm14 = vmor %vm806_vm12, %vm807_vm11 }
  0x1d   : > { %306 = vmatpush.bf16.msra.mxu0 %v5262_v16  ;;  %v5298_v0 = vld [vmem:[%s6590_s1 + $0x178] sm:$0xff]  ;;  %v449_v3 = vshrl.u32 %v413_v44, 16  ;;  %v452_v4 = vshll.u32 %v413_v44, 16  ;;  %v458_v5 = vshll.u32 %v416_v51, 16  ;;  %v438_v8 = vrot.slane %v436_v60, 6  ;;  %v5289_v30 = vld [vmem:[%s6590_s1 + $0x130] sm:$0xff]  ;;  %vm5806_vm15 = vmor %vm808_vm14, %vm809_vm13 }
  0x1e   : > { %570 = vmatpush.bf16.msra.mxu2 %v5270_v17  ;;  %v4068_v6 = vld [vmem:[%s5593_s28 + $0x18] sm:$0x7]  ;;  %v441_v9 = vrot.slane %v439_v61, 7  ;;  %v447_v10 = vrot.slane %v445_v62, 7  ;;  %v462_v11 = vshrl.u32 %v419_v52, 16  ;;  %v465_v15 = vshll.u32 %v419_v52, 16 }
  0x1f   : > { %381 = vmatpush.bf16.msra.mxu1 %v5254_v18  ;;  %v252_v1 = vld.sshfl [vmem:[#allocation1] sm:$0xff pattern:$0x73625140]  ;;  %v451_v12 = vrot.slane %v449_v3, 6  ;;  %v454_v13 = vrot.slane %v452_v4, 7  ;;  %v460_v14 = vrot.slane %v458_v5, 7 }
  0x20   : > { %752 = vmatpush.bf16.msra.mxu3 %v5278_v19  ;;  %317 = vst [vmem:[#allocation1] ss:$4 sm:$0xff] %v197_v42  ;;  %v4069_v16 = vld [vmem:[%s5593_s28 + $0x1c] sm:$0x7]  ;;  %v4070_v17 = vld [vmem:[%s5593_s28 + $0x20] sm:$0x7]  ;;  %v442_v20 = vor.u32 %v441_v9, %v438_v8 }
  0x21   : > { %307 = vmatpush.bf16.msra.mxu0 %v5261_v24  ;;  %320 = vst [vmem:[#allocation1 + $0x1] ss:$4 sm:$0xff] %v198_v49  ;;  %v4071_v18 = vld [vmem:[%s5593_s28 + $0x24] sm:$0x7]  ;;  %v464_v21 = vrot.slane %v462_v11, 6  ;;  %v471_v22 = vshll.u32 %v422_v53, 16 }
  0x22   : > { %571 = vmatpush.bf16.msra.mxu2 %v5269_v25  ;;  %v5275_v19 = vld [vmem:[%s6590_s1 + $0xc0] sm:$0xff]  ;;  %323 = vst [vmem:[#allocation1 + $0x2] ss:$4 sm:$0xff] %v199_v50  ;;  %v475_v23 = vshrl.u32 %v425_v2, 16  ;;  %v5314_v24 = vld [vmem:[%s6590_s1 + $0x1f8] sm:$0xff]  ;;  %v478_v28 = vshll.u32 %v425_v2, 16 }
  0x23   : > { %382 = vmatpush.bf16.msra.mxu1 %v5253_v26  ;;  %326 = vst [vmem:[#allocation1 + $0x3] ss:$4 sm:$0xff] %v200_v58  ;;  %v455_v26 = vor.u32 %v454_v13, %v451_v12  ;;  %v484_v29 = vshll.u32 %v428_v59, 16  ;;  %v443_v31 = vrot.slane %v442_v20, 2  ;;  %v473_v32 = vrot.slane %v471_v22, 7  ;;  %v5313_v45 = vld [vmem:[%s6590_s1 + $0x1f0] sm:$0xff] }
  0x24   : > { %753 = vmatpush.bf16.msra.mxu3 %v5277_v27  ;;  %v467_v27 = vrot.slane %v465_v15, 7  ;;  %v477_v33 = vrot.slane %v475_v23, 6  ;;  %v590_v34 = vrot.slane %v4068_v6, 2  ;;  %v480_v39 = vrot.slane %v478_v28, 7  ;;  %v5288_v50 = vld [vmem:[%s6590_s1 + $0x128] sm:$0xff]  ;;  %v5287_v61 = vld [vmem:[%s6590_s1 + $0x120] sm:$0xff] }
  0x25   : > { %308 = vmatpush.bf16.msra.mxu0 %v5260_v35  ;;  %v5305_v35 = vld [vmem:[%s6590_s1 + $0x1b0] sm:$0xff]  ;;  %v456_v37 = vrot.slane %v455_v26, 2  ;;  %v591_v42 = vrot.slane %v4069_v16, 2  ;;  %v592_v43 = vrot.slane %v4070_v17, 2  ;;  %v593_v44 = vrot.slane %v4071_v18, 2  ;;  %v5304_v55 = vld [vmem:[%s6590_s1 + $0x1a8] sm:$0xff] }
  0x26   : > { %572 = vmatpush.bf16.msra.mxu2 %v5268_v36  ;;  %v5297_v36 = vld [vmem:[%s6590_s1 + $0x170] sm:$0xff]  ;;  %v468_v38 = vor.u32 %v467_v27, %v464_v21  ;;  %v596_v49 = vsel %vm403_vm0, %v4068_v6, %v590_v34  ;;  %v597_v51 = vsel %vm407_vm2, %v4068_v6, %v590_v34  ;;  %v5303_v3 = vld [vmem:[%s6590_s1 + $0x1a0] sm:$0xff]  ;;  %v5312_v6 = vld [vmem:[%s6590_s1 + $0x1e8] sm:$0xff] }
  0x27   : > { %383 = vmatpush.bf16.msra.mxu1 %v5252_v40  ;;  %v486_v40 = vrot.slane %v484_v29, 7  ;;  %v461_v46 = vsel %vm5695_vm8, %v456_v37, %v460_v14  ;;  %v602_v52 = vsel %vm403_vm0, %v4069_v16, %v591_v42  ;;  %v603_v53 = vsel %vm407_vm2, %v4069_v16, %v591_v42  ;;  %v5295_v4 = vld [vmem:[%s6590_s1 + $0x160] sm:$0xff]  ;;  %v5286_v21 = vld [vmem:[%s6590_s1 + $0x118] sm:$0xff] }
  0x28   : > { %754 = vmatpush.bf16.msra.mxu3 %v5276_v41  ;;  %v448_v41 = vsel %vm5695_vm8, %v443_v31, %v447_v10  ;;  %v608_v54 = vsel %vm403_vm0, %v4070_v17, %v592_v43  ;;  %v599_v59 = vrot.slane %v597_v51, 2  ;;  %v605_v60 = vrot.slane %v603_v53, 2  ;;  %v5311_v27 = vld [vmem:[%s6590_s1 + $0x1e0] sm:$0xff]  ;;  %v5302_v28 = vld [vmem:[%s6590_s1 + $0x198] sm:$0xff]  ;;  %v5301_v53 = vld [vmem:[%s6590_s1 + $0x190] sm:$0xff] }
  0x29   : > { %309 = vmatpush.bf16.msra.mxu0 %v5259_v47  ;;  %v469_v47 = vrot.slane %v468_v38, 2  ;;  %v618_v2 = vshrl.u32 %v596_v49, 16  ;;  %v621_v9 = vshll.u32 %v596_v49, 16  ;;  %v631_v12 = vshrl.u32 %v602_v52, 16  ;;  %v5294_v34 = vld [vmem:[%s6590_s1 + $0x158] sm:$0xff] }
  0x2a   : > { %573 = vmatpush.bf16.msra.mxu2 %v5267_v48  ;;  %v481_v48 = vor.u32 %v480_v39, %v477_v33  ;;  %v327_v62 = vld.sshfl [vmem:[#allocation1] sm:$0xff pattern:$0x73625140]  ;;  %v627_v11 = vshll.u32 %v599_v59, 16  ;;  %v634_v13 = vshll.u32 %v602_v52, 16  ;;  %v640_v15 = vshll.u32 %v605_v60, 16 }
  0x2b   : > { %384 = vmatpush.bf16.msra.mxu1 %v5251_v57  ;;  %v474_v57 = vsel %vm5695_vm8, %v469_v47, %v473_v32  ;;  %506 = vst [vmem:[#allocation1] ss:$4 sm:$0xff] %v448_v41  ;;  %v620_v10 = vrot.slane %v618_v2, 6  ;;  %v623_v14 = vrot.slane %v621_v9, 7  ;;  %v644_v16 = vshrl.u32 %v608_v54, 16  ;;  %v5285_v52 = vld [vmem:[%s6590_s1 + $0x110] sm:$0xff] }
  0x2c   : > { %755 = vmatpush.bf16.msra.mxu3 %v5275_v19  ;;  %310 = vmatmul.bf16.vlgmr.msra.gmra.mxu0 %v252_v1  ;;  %v482_v58 = vrot.slane %v481_v48, 2  ;;  %v615_v1 = vsel %vm407_vm2, %v4071_v18, %v593_v44  ;;  %509 = vst [vmem:[#allocation1 + $0x1] ss:$4 sm:$0xff] %v461_v46  ;;  %v636_v19 = vrot.slane %v634_v13, 7  ;;  %v629_v23 = vrot.slane %v627_v11, 7  ;;  %v5310_v46 = vld [vmem:[%s6590_s1 + $0x1d8] sm:$0xff] }
  0x2d   : > { %905 = vmatpush.bf16.msrb.mxu0 %v5290_v56  ;;  %v5296_v56 = vld [vmem:[%s6590_s1 + $0x168] sm:$0xff]  ;;  %v617_v8 = vrot.slane %v615_v1, 2  ;;  %512 = vst [vmem:[#allocation1 + $0x2] ss:$4 sm:$0xff] %v474_v57  ;;  %v624_v22 = vor.u32 %v623_v14, %v620_v10  ;;  %v764_v33 = vld [vmem:[%s5593_s28] sm:$0x6] }
  0x2e   : > { %1107 = vmatpush.bf16.msrb.mxu2 %v5306_v63  ;;  %v609_v63 = vsel %vm407_vm2, %v4070_v17, %v592_v43  ;;  %v487_v5 = vsel %vm5695_vm8, %v482_v58, %v486_v40  ;;  %385 = vmatmul.bf16.vlgmr.msra.gmra.mxu1 %v327_v62  ;;  %v647_v17 = vshll.u32 %v608_v54, 16  ;;  %v765_v39 = vld [vmem:[%s5593_s28 + $0x4] sm:$0x6]  ;;  %v766_v43 = vld [vmem:[%s5593_s28 + $0x8] sm:$0x6]  ;;  %v772_v48 = vrot.slane %v764_v33, 2 }
  0x2f   : > { %1006 = vmatpush.bf16.msrb.mxu1 %v5298_v0  ;;  %v614_v0 = vsel %vm403_vm0, %v4071_v18, %v593_v44  ;;  %v611_v7 = vrot.slane %v609_v63, 2  ;;  %515 = vst [vmem:[#allocation1 + $0x3] ss:$4 sm:$0xff] %v487_v5  ;;  %v633_v18 = vrot.slane %v631_v12, 6  ;;  %v666_v38 = vshll.u32 %v617_v8, 16  ;;  %v5293_v57 = vld [vmem:[%s6590_s1 + $0x150] sm:$0xff] }
  0x30   : > { %1289 = vmatpush.bf16.msrb.mxu3 %v5314_v24  ;;  %v646_v24 = vrot.slane %v644_v16, 6  ;;  %v649_v26 = vrot.slane %v647_v17, 7  ;;  %v657_v31 = vshrl.u32 %v614_v0, 16  ;;  %v660_v32 = vshll.u32 %v614_v0, 16  ;;  %v767_v47 = vld [vmem:[%s5593_s28 + $0xc] sm:$0x6] }
  0x31   : > { %906 = vmatpush.bf16.msrb.mxu0 %v5289_v30  ;;  %v653_v20 = vshll.u32 %v611_v7, 16  ;;  %v637_v29 = vor.u32 %v636_v19, %v633_v18  ;;  %v642_v30 = vrot.slane %v640_v15, 7  ;;  %v668_v51 = vrot.slane %v666_v38, 7  ;;  %v5284_v1 = vld [vmem:[%s6590_s1 + $0x108] sm:$0xff]  ;;  %v5283_v15 = vld [vmem:[%s6590_s1 + $0x100] sm:$0xff] }
  0x32   : > { %1108 = vmatpush.bf16.msrb.mxu2 %v5305_v35  ;;  %v625_v35 = vrot.slane %v624_v22, 2  ;;  %v659_v41 = vrot.slane %v657_v31, 6  ;;  %v662_v42 = vrot.slane %v660_v32, 7  ;;  %v773_v54 = vrot.slane %v765_v39, 2  ;;  %v5292_v5 = vld [vmem:[%s6590_s1 + $0x148] sm:$0xff]  ;;  %v5299_v18 = vld [vmem:[%s6590_s1 + $0x180] sm:$0xff] }
  0x33   : > { %1007 = vmatpush.bf16.msrb.mxu1 %v5297_v36  ;;  %v650_v36 = vor.u32 %v649_v26, %v646_v24  ;;  %v655_v37 = vrot.slane %v653_v20, 7  ;;  %v638_v40 = vrot.slane %v637_v29, 2  ;;  %v774_v58 = vrot.slane %v766_v43, 2  ;;  %v5291_v22 = vld [vmem:[%s6590_s1 + $0x140] sm:$0xff]  ;;  %v5330_v26 = vld [vmem:[%s6590_s1 + $0x278] sm:$0xff]  ;;  %v5321_v32 = vld [vmem:[%s6590_s1 + $0x230] sm:$0xff] }
  0x34   : > { %1290 = vmatpush.bf16.msrb.mxu3 %v5313_v45  ;;  %v630_v44 = vsel %vm5695_vm8, %v625_v35, %v629_v23  ;;  %v775_v60 = vrot.slane %v767_v47, 2  ;;  %v778_v62 = vsel %vm403_vm0, %v764_v33, %v772_v48  ;;  %v780_v63 = vsel %vm407_vm2, %v764_v33, %v772_v48  ;;  %v5338_v31 = vld [vmem:[%s6590_s1 + $0x2b8] sm:$0xff]  ;;  %v4280_v33 = vld [vmem:[%s5593_s28 + $0x30] sm:$0x7]  ;;  %v5307_v35 = vld [vmem:[%s6590_s1 + $0x1c0] sm:$0xff] }
  0x35   : > { %907 = vmatpush.bf16.msrb.mxu0 %v5288_v50  ;;  %v651_v45 = vrot.slane %v650_v36, 2  ;;  %v643_v49 = vsel %vm5695_vm8, %v638_v40, %v642_v30  ;;  %v663_v50 = vor.u32 %v662_v42, %v659_v41  ;;  %v785_v2 = vsel %vm403_vm0, %v765_v39, %v773_v54  ;;  %v5308_v30 = vld [vmem:[%s6590_s1 + $0x1c8] sm:$0xff]  ;;  %v5337_v36 = vld [vmem:[%s6590_s1 + $0x2b0] sm:$0xff]  ;;  %v4282_v40 = vld [vmem:[%s5593_s28 + $0x38] sm:$0x7] }
  0x36   : > { %1109 = vmatpush.bf16.msrb.mxu2 %v5304_v55  ;;  %v516_v55 = vld.sshfl [vmem:[#allocation1] sm:$0xff pattern:$0x73625140]  ;;  %v794_v7 = vsel %vm407_vm2, %v766_v43, %v774_v58  ;;  %v799_v8 = vsel %vm403_vm0, %v767_v47, %v775_v60  ;;  %v801_v9 = vsel %vm407_vm2, %v767_v47, %v775_v60  ;;  %v4120_v10 = vrot.slane %v778_v62, 9  ;;  %v5328_v41 = vld [vmem:[%s6590_s1 + $0x268] sm:$0xff] }
  0x37   : > { %1008 = vmatpush.bf16.msrb.mxu1 %v5296_v56  ;;  %v656_v56 = vsel %vm5695_vm8, %v651_v45, %v655_v37  ;;  %574 = vmatmul.bf16.vlgmr.msra.gmra.mxu2 %v516_v55  ;;  %v664_v59 = vrot.slane %v663_v50, 2  ;;  %688 = vst [vmem:[#allocation1] ss:$4 sm:$0xff] %v630_v44  ;;  %v4121_v11 = vrot.slane %v780_v63, 9  ;;  %v4122_v13 = vrot.slane %v785_v2, 9  ;;  %v5327_v63 = vld [vmem:[%s6590_s1 + $0x260] sm:$0xff] }
  0x38   : > { %1291 = vmatpush.bf16.msrb.mxu3 %v5312_v6  ;;  %691 = vst [vmem:[#allocation1 + $0x1] ss:$4 sm:$0xff] %v643_v49  ;;  %v792_v6 = vsel %vm403_vm0, %v766_v43, %v774_v58  ;;  %v4125_v17 = vrot.slane %v794_v7, 9  ;;  %v4126_v19 = vrot.slane %v799_v8, 9  ;;  %v4127_v20 = vrot.slane %v801_v9, 9  ;;  %v5336_v58 = vld [vmem:[%s6590_s1 + $0x2a8] sm:$0xff] }
  0x39   : > { %908 = vmatpush.bf16.msrb.mxu0 %v5287_v61  ;;  %v5309_v61 = vld [vmem:[%s6590_s1 + $0x1d0] sm:$0xff]  ;;  %v669_v0 = vsel %vm5695_vm8, %v664_v59, %v668_v51  ;;  %694 = vst [vmem:[#allocation1 + $0x2] ss:$4 sm:$0xff] %v656_v56  ;;  %v4124_v16 = vrot.slane %v792_v6, 9  ;;  %v814_v23 = vsel %vm5806_vm15, %v4120_v10, %v4121_v11  ;;  %v1131_v38 = vrot.slane %v4280_v33, 2  ;;  %v5346_v59 = vld [vmem:[%s6590_s1 + $0x2f8] sm:$0xff] }
  0x3a   : > { %1110 = vmatpush.bf16.msrb.mxu2 %v5303_v3  ;;  %v787_v3 = vsel %vm407_vm2, %v765_v39, %v773_v54  ;;  %697 = vst [vmem:[#allocation1 + $0x3] ss:$4 sm:$0xff] %v669_v0  ;;  %v826_v29 = vsel %vm5806_vm15, %v4126_v19, %v4127_v20  ;;  %v4281_v37 = vld [vmem:[%s5593_s28 + $0x34] sm:$0x7]  ;;  %v5320_v39 = vld [vmem:[%s6590_s1 + $0x228] sm:$0xff]  ;;  %v1133_v45 = vrot.slane %v4282_v40, 2 }
  0x3b   : > { %1009 = vmatpush.bf16.msrb.mxu1 %v5295_v4  ;;  %v5300_v4 = vld [vmem:[%s6590_s1 + $0x188] sm:$0xff]  ;;  %v4123_v14 = vrot.slane %v787_v3, 9  ;;  %v4283_v42 = vld [vmem:[%s5593_s28 + $0x3c] sm:$0x7]  ;;  %v1132_v43 = vrot.slane %v4281_v37, 2  ;;  %v1138_v50 = vsel %vm407_vm2, %v4280_v33, %v1131_v38  ;;  %v5319_v54 = vld [vmem:[%s6590_s1 + $0x220] sm:$0xff] }
  0x3c   : > { %1292 = vmatpush.bf16.msrb.mxu3 %v5311_v27  ;;  %v4176_v44 = vld [vmem:[%s5593_s28 + $0x30] sm:$0x3]  ;;  %v4177_v47 = vld [vmem:[%s5593_s28 + $0x34] sm:$0x3]  ;;  %v4178_v48 = vld [vmem:[%s5593_s28 + $0x38] sm:$0x3]  ;;  %v1149_v62 = vsel %vm403_vm0, %v4282_v40, %v1133_v45  ;;  %v1150_v0 = vsel %vm407_vm2, %v4282_v40, %v1133_v45 }
  0x3d   : > { %909 = vmatpush.bf16.msrb.mxu0 %v5286_v21  ;;  %v5322_v21 = vld [vmem:[%s6590_s1 + $0x238] sm:$0xff]  ;;  %v818_v24 = vsel %vm5806_vm15, %v4122_v13, %v4123_v14  ;;  %v1134_v49 = vrot.slane %v4283_v42, 2  ;;  %v1144_v51 = vsel %vm407_vm2, %v4281_v37, %v1132_v43  ;;  %v1143_v55 = vsel %vm403_vm0, %v4281_v37, %v1132_v43  ;;  %v5345_v7 = vld [vmem:[%s6590_s1 + $0x2f0] sm:$0xff]  ;;  %v4332_v14 = vld [vmem:[%s5593_s28 + $0x48] sm:$0x7] }
  0x3e   : > { %1111 = vmatpush.bf16.msrb.mxu2 %v5302_v28  ;;  %v822_v28 = vsel %vm5806_vm15, %v4124_v16, %v4125_v17  ;;  %v1140_v60 = vrot.slane %v1138_v50, 2  ;;  %v5318_v3 = vld [vmem:[%s6590_s1 + $0x218] sm:$0xff]  ;;  %v1175_v6 = vshll.u32 %v1143_v55, 16  ;;  %v1185_v11 = vshrl.u32 %v1149_v62, 16  ;;  %v5899_v19 = vld [vmem:[%s5593_s28 + $0x4c] sm:$0x7] }
  0x3f   : > { %1010 = vmatpush.bf16.msrb.mxu1 %v5294_v34  ;;  %v5329_v34 = vld [vmem:[%s6590_s1 + $0x270] sm:$0xff]  ;;  %v1156_v2 = vsel %vm407_vm2, %v4283_v42, %v1134_v49  ;;  %v5326_v8 = vld [vmem:[%s6590_s1 + $0x258] sm:$0xff]  ;;  %v1188_v13 = vshll.u32 %v1149_v62, 16  ;;  %v4228_v20 = vld [vmem:[%s5593_s28 + $0x48] sm:$0x3]  ;;  %v1314_v37 = vrot.slane %v5899_v19, 2 }
  0x40   : > { %1293 = vmatpush.bf16.msrb.mxu3 %v5310_v46  ;;  %v1137_v46 = vsel %vm403_vm0, %v4280_v33, %v1131_v38  ;;  %v1158_v16 = vrot.slane %v1156_v2, 2  ;;  %v4230_v38 = vld [vmem:[%s5593_s28 + $0x50] sm:$0x3]  ;;  %v5343_v50 = vld [vmem:[%s6590_s1 + $0x2e0] sm:$0xff] }
  0x41   : > { %910 = vmatpush.bf16.msrb.mxu0 %v5285_v52  ;;  %v698_v27 = vld.sshfl [vmem:[#allocation1] sm:$0xff pattern:$0x73625140]  ;;  %v1159_v56 = vshrl.u32 %v1137_v46, 16  ;;  %v5333_v45 = vld [vmem:[%s6590_s1 + $0x290] sm:$0xff] }
  0x42   : > { %1112 = vmatpush.bf16.msrb.mxu2 %v5301_v53  ;;  %756 = vmatmul.bf16.vlgmr.msra.gmra.mxu3 %v698_v27  ;;  %845 = vst [vmem:[#allocation1] ss:$4 sm:$0xff] %v814_v23  ;;  %v4179_v53 = vld [vmem:[%s5593_s28 + $0x3c] sm:$0x3]  ;;  %v5317_v23 = vld [vmem:[%s6590_s1 + $0x210] sm:$0xff]  ;;  %v5315_v62 = vld [vmem:[%s6590_s1 + $0x200] sm:$0xff] }
  0x43   : > { %1011 = vmatpush.bf16.msrb.mxu1 %v5293_v57  ;;  %848 = vst [vmem:[#allocation1 + $0x1] ss:$4 sm:$0xff] %v818_v24  ;;  %v1162_v57 = vshll.u32 %v1137_v46, 16  ;;  %v1161_v9 = vrot.slane %v1159_v56, 6  ;;  %v5334_v24 = vld [vmem:[%s6590_s1 + $0x298] sm:$0xff]  ;;  %v1325_v56 = vsel %vm403_vm0, %v5899_v19, %v1314_v37 }
  0x44   : > { %1294 = vmatpush.bf16.msrb.mxu3 %v5309_v61  ;;  %851 = vst [vmem:[#allocation1 + $0x2] ss:$4 sm:$0xff] %v822_v28  ;;  %v1146_v61 = vrot.slane %v1144_v51, 2  ;;  %v1177_v28 = vrot.slane %v1175_v6, 7  ;;  %v5354_v6 = vld [vmem:[%s6590_s1 + $0x338] sm:$0xff] }
  0x45   : > { %911 = vmatpush.bf16.msrb.mxu0 %v5284_v1  ;;  %854 = vst [vmem:[#allocation1 + $0x3] ss:$4 sm:$0xff] %v826_v29  ;;  %v1155_v1 = vsel %vm403_vm0, %v4283_v42, %v1134_v49  ;;  %v1164_v10 = vrot.slane %v1162_v57, 7  ;;  %v5344_v29 = vld [vmem:[%s6590_s1 + $0x2e8] sm:$0xff]  ;;  %v5938_v49 = vshll.u32 %v1158_v16, 16 }
  0x46   : > { %1113 = vmatpush.bf16.msrb.mxu2 %v5300_v4  ;;  %v5335_v4 = vld [vmem:[%s6590_s1 + $0x2a0] sm:$0xff]  ;;  %v1198_v17 = vshrl.u32 %v1155_v1, 16 }
  0x47   : > { %1012 = vmatpush.bf16.msrb.mxu1 %v5292_v5  ;;  %v1172_v5 = vshrl.u32 %v1143_v55, 16  ;;  %v1165_v33 = vor.u32 %v1164_v10, %v1161_v9  ;;  %v5324_v55 = vld [vmem:[%s6590_s1 + $0x248] sm:$0xff]  ;;  %v5323_v10 = vld [vmem:[%s6590_s1 + $0x240] sm:$0xff] }
  0x48   : > { %1295 = vmatpush.bf16.msrb.mxu3 %v5308_v30  ;;  %v5919_v30 = vld [vmem:[%s5593_s28 + $0x54] sm:$0x7]  ;;  %v1200_v40 = vrot.slane %v1198_v17, 6 }
  0x49   : > { %912 = vmatpush.bf16.msrb.mxu0 %v5283_v15  ;;  %v1152_v15 = vrot.slane %v1150_v0, 2  ;;  %v1174_v27 = vrot.slane %v1172_v5, 6  ;;  %v1316_v46 = vrot.slane %v5919_v30, 2  ;;  %v1166_v57 = vrot.slane %v1165_v33, 2  ;;  %v5342_v5 = vld [vmem:[%s6590_s1 + $0x2d8] sm:$0xff] }
  0x4a   : > { %1114 = vmatpush.bf16.msrb.mxu2 %v5299_v18  ;;  %v1201_v18 = vshll.u32 %v1155_v1, 16 }
  0x4b   : > { %1013 = vmatpush.bf16.msrb.mxu1 %v5291_v22  ;;  %v5904_v22 = vshll.u32 %v1146_v61, 16  ;;  %v1337_v0 = vsel %vm403_vm0, %v5919_v30, %v1316_v46 }
  0x4c   : > { %1296 = vmatpush.bf16.msrb.mxu3 %v5307_v35  ;;  %v855_v52 = vld.sshfl [vmem:[#allocation1] sm:$0xff pattern:$0x73625140]  ;;  %v1190_v35 = vrot.slane %v1188_v13, 7  ;;  %v1380_v17 = vshrl.u32 %v1337_v0, 16 }
  0x4d   : > { %1471 = vmatpush.bf16.msra.mxu0 %v5322_v21  ;;  %946 = vst [vmem:[#allocation1] ss:$4 sm:$0xff] %v4176_v44  ;;  %v5902_v21 = vshll.u32 %v1140_v60, 16  ;;  %v5316_v44 = vld [vmem:[%s6590_s1 + $0x208] sm:$0xff] }
  0x4e   : > { %1722 = vmatpush.bf16.msra.mxu2 %v5338_v31  ;;  %913 = vmatmul.bf16.vlgmr.msrb.gmra.mxu0 %v855_v52  ;;  %949 = vst [vmem:[#allocation1 + $0x1] ss:$4 sm:$0xff] %v4177_v47  ;;  %v1313_v31 = vrot.slane %v4332_v14, 2  ;;  %v4231_v47 = vld [vmem:[%s5593_s28 + $0x54] sm:$0x3] }
  0x4f   : > { %1621 = vmatpush.bf16.msra.mxu1 %v5330_v26  ;;  %952 = vst [vmem:[#allocation1 + $0x2] ss:$4 sm:$0xff] %v4178_v48  ;;  %v5913_v26 = vld [vmem:[%s5593_s28 + $0x50] sm:$0x7]  ;;  %v1178_v48 = vor.u32 %v1177_v28, %v1174_v27  ;;  %v1170_v52 = vrot.slane %v5902_v21, 7 }
  0x50   : > { %955 = vst [vmem:[#allocation1 + $0x3] ss:$4 sm:$0xff] %v4179_v53  ;;  %1823 = vmatpush.bf16.msra.mxu3 %v5346_v59  ;;  %v1315_v42 = vrot.slane %v5913_v26, 2  ;;  %v1319_v51 = vsel %vm403_vm0, %v4332_v14, %v1313_v31  ;;  %v1183_v53 = vrot.slane %v5904_v22, 7  ;;  %v1320_v59 = vsel %vm407_vm2, %v4332_v14, %v1313_v31  ;;  %v5341_v31 = vld [vmem:[%s6590_s1 + $0x2d0] sm:$0xff] }
  0x51   : > { %1472 = vmatpush.bf16.msra.mxu0 %v5321_v32  ;;  %v4229_v32 = vld [vmem:[%s5593_s28 + $0x4c] sm:$0x3]  ;;  %v1341_v1 = vshrl.u32 %v1319_v51, 16  ;;  %v1344_v2 = vshll.u32 %v1319_v51, 16  ;;  %v1338_v22 = vsel %vm407_vm2, %v5919_v30, %v1316_v46 }
  0x52   : > { %1723 = vmatpush.bf16.msra.mxu2 %v5337_v36  ;;  %v5325_v36 = vld [vmem:[%s6590_s1 + $0x250] sm:$0xff]  ;;  %v1331_v60 = vsel %vm403_vm0, %v5913_v26, %v1315_v42  ;;  %v1332_v16 = vsel %vm407_vm2, %v5913_v26, %v1315_v42 }
  0x53   : > { %1622 = vmatpush.bf16.msra.mxu1 %v5329_v34  ;;  %v1187_v34 = vrot.slane %v1185_v11, 6  ;;  %v1326_v11 = vsel %vm407_vm2, %v5899_v19, %v1314_v37  ;;  %v1367_v13 = vshrl.u32 %v1331_v60, 16  ;;  %v1370_v14 = vshll.u32 %v1331_v60, 16  ;;  %v4386_v60 = vld [vmem:[%s5593_s28 + $0x38] sm:$0x6] }
  0x54   : > { %1824 = vmatpush.bf16.msra.mxu3 %v5345_v7  ;;  %v1354_v7 = vshrl.u32 %v1325_v56, 16  ;;  %v1346_v19 = vrot.slane %v1344_v2, 7  ;;  %v1328_v26 = vrot.slane %v1326_v11, 2  ;;  %v1340_v37 = vrot.slane %v1338_v22, 2  ;;  %v5361_v2 = vld [vmem:[%s6590_s1 + $0x370] sm:$0xff]  ;;  %v5351_v22 = vld [vmem:[%s6590_s1 + $0x320] sm:$0xff] }
  0x55   : > { %1473 = vmatpush.bf16.msra.mxu0 %v5320_v39  ;;  %v5927_v39 = vshll.u32 %v1152_v15, 16  ;;  %v1322_v15 = vrot.slane %v1320_v59, 2  ;;  %v1369_v33 = vrot.slane %v1367_v13, 6 }
  0x56   : > { %1724 = vmatpush.bf16.msra.mxu2 %v5336_v58  ;;  %v1356_v27 = vrot.slane %v1354_v7, 6 }
  0x57   : > { %1623 = vmatpush.bf16.msra.mxu1 %v5328_v41  ;;  %v1203_v41 = vrot.slane %v1201_v18, 7  ;;  %v956_v43 = vld.sshfl [vmem:[#allocation1] sm:$0xff pattern:$0x73625140]  ;;  %v1196_v58 = vrot.slane %v5927_v39, 7  ;;  %v1383_v18 = vshll.u32 %v1337_v0, 16 }
  0x58   : > { %1047 = vst [vmem:[#allocation1] ss:$4 sm:$0xff] %v4228_v20  ;;  %1014 = vmatmul.bf16.vlgmr.msrb.gmra.mxu1 %v956_v43  ;;  %1825 = vmatpush.bf16.msra.mxu3 %v5344_v29  ;;  %v5362_v20 = vld [vmem:[%s6590_s1 + $0x378] sm:$0xff]  ;;  %v5331_v29 = vld [vmem:[%s6590_s1 + $0x280] sm:$0xff]  ;;  %v1350_v42 = vshll.u32 %v1322_v15, 16 }
  0x59   : > { %1474 = vmatpush.bf16.msra.mxu0 %v5319_v54  ;;  %1050 = vst [vmem:[#allocation1 + $0x1] ss:$4 sm:$0xff] %v4229_v32  ;;  %v1191_v54 = vor.u32 %v1190_v35, %v1187_v34  ;;  %v1204_v61 = vor.u32 %v1203_v41, %v1200_v40  ;;  %v1334_v32 = vrot.slane %v1332_v16, 2  ;;  %v1372_v34 = vrot.slane %v1370_v14, 7  ;;  %v5360_v14 = vld [vmem:[%s6590_s1 + $0x368] sm:$0xff] }
  0x5a   : > { %1725 = vmatpush.bf16.msra.mxu2 %v5335_v4  ;;  %1053 = vst [vmem:[#allocation1 + $0x2] ss:$4 sm:$0xff] %v4230_v38  ;;  %v1209_v4 = vrot.slane %v5938_v49, 7  ;;  %v1382_v38 = vrot.slane %v1380_v17, 6  ;;  %v1385_v39 = vrot.slane %v1383_v18, 7  ;;  %v1389_v49 = vshll.u32 %v1340_v37, 16 }
  0x5b   : > { %1624 = vmatpush.bf16.msra.mxu1 %v5327_v63  ;;  %1056 = vst [vmem:[#allocation1 + $0x3] ss:$4 sm:$0xff] %v4231_v47  ;;  %v5332_v63 = vld [vmem:[%s6590_s1 + $0x288] sm:$0xff]  ;;  %v1192_v9 = vrot.slane %v1191_v54, 2  ;;  %v1205_v21 = vrot.slane %v1204_v61, 2  ;;  %v1373_v46 = vor.u32 %v1372_v34, %v1369_v33  ;;  %v1376_v47 = vshll.u32 %v1334_v32, 16 }
  0x5c   : > { %1826 = vmatpush.bf16.msra.mxu3 %v5343_v50  ;;  %v1352_v51 = vrot.slane %v1350_v42, 7  ;;  %v4384_v54 = vld [vmem:[%s5593_s28 + $0x30] sm:$0x6]  ;;  %v1391_v59 = vrot.slane %v1389_v49, 7  ;;  %v5339_v17 = vld [vmem:[%s6590_s1 + $0x2c0] sm:$0xff]  ;;  %v5358_v42 = vld [vmem:[%s6590_s1 + $0x358] sm:$0xff] }
  0x5d   : > { %1475 = vmatpush.bf16.msra.mxu0 %v5318_v3  ;;  %v1179_v3 = vrot.slane %v1178_v48, 2  ;;  %v1210_v40 = vsel %vm5695_vm8, %v1205_v21, %v1209_v4  ;;  %v1386_v48 = vor.u32 %v1385_v39, %v1382_v38  ;;  %v5369_v18 = vld [vmem:[%s6590_s1 + $0x3b0] sm:$0xff]  ;;  %v5368_v39 = vld [vmem:[%s6590_s1 + $0x3a8] sm:$0xff] }
  0x5e   : > { %1726 = vmatpush.bf16.msra.mxu2 %v5334_v24  ;;  %v1171_v24 = vsel %vm5695_vm8, %v1166_v57, %v1170_v52  ;;  %v4385_v57 = vld [vmem:[%s5593_s28 + $0x34] sm:$0x6] }
  0x5f   : > { %1625 = vmatpush.bf16.msra.mxu1 %v5326_v8  ;;  %v1357_v8 = vshll.u32 %v1325_v56, 16  ;;  %v1184_v30 = vsel %vm5695_vm8, %v1179_v3, %v1183_v53  ;;  %v1378_v56 = vrot.slane %v1376_v47, 7  ;;  %v5349_v47 = vld [vmem:[%s6590_s1 + $0x310] sm:$0xff] }
  0x60   : > { %1827 = vmatpush.bf16.msra.mxu3 %v5342_v5  ;;  %v1497_v5 = vrot.slane %v4386_v60, 2 }
  0x61   : > { %1476 = vmatpush.bf16.msra.mxu0 %v5317_v23  ;;  %v1343_v23 = vrot.slane %v1341_v1, 6  ;;  %v1359_v28 = vrot.slane %v1357_v8, 7  ;;  %v1496_v1 = vrot.slane %v4385_v57, 2  ;;  %v5340_v8 = vld [vmem:[%s6590_s1 + $0x2c8] sm:$0xff] }
  0x62   : > { %1727 = vmatpush.bf16.msra.mxu2 %v5333_v45  ;;  %v1057_v35 = vld.sshfl [vmem:[#allocation1] sm:$0xff pattern:$0x73625140]  ;;  %v5353_v45 = vld [vmem:[%s6590_s1 + $0x330] sm:$0xff]  ;;  %v1517_v21 = vsel %vm407_vm2, %v4386_v60, %v1497_v5 }
  0x63   : > { %1626 = vmatpush.bf16.msra.mxu1 %v5325_v36  ;;  %v1197_v36 = vsel %vm5695_vm8, %v1192_v9, %v1196_v58  ;;  %1115 = vmatmul.bf16.vlgmr.msrb.gmra.mxu2 %v1057_v35  ;;  %1229 = vst [vmem:[#allocation1] ss:$4 sm:$0xff] %v1171_v24  ;;  %v1347_v41 = vor.u32 %v1346_v19, %v1343_v23  ;;  %v1387_v58 = vrot.slane %v1386_v48, 2  ;;  %v5370_v9 = vld [vmem:[%s6590_s1 + $0x3b8] sm:$0xff]  ;;  %v5359_v35 = vld [vmem:[%s6590_s1 + $0x360] sm:$0xff]  ;;  %v5357_v48 = vld [vmem:[%s6590_s1 + $0x350] sm:$0xff] }
  0x64   : > { %1232 = vst [vmem:[#allocation1 + $0x1] ss:$4 sm:$0xff] %v1184_v30  ;;  %v1360_v43 = vor.u32 %v1359_v28, %v1356_v27  ;;  %1828 = vmatpush.bf16.msra.mxu3 %v5341_v31  ;;  %v1508_v15 = vsel %vm403_vm0, %v4385_v57, %v1496_v1  ;;  %v1510_v16 = vsel %vm407_vm2, %v4385_v57, %v1496_v1  ;;  %v4393_v31 = vrot.slane %v1517_v21, 9  ;;  %v4445_v57 = vld [vmem:[%s5593_s28 + $0x8] sm:$0x3] }
  0x65   : > { %1477 = vmatpush.bf16.msra.mxu0 %v5316_v44  ;;  %v1363_v44 = vshll.u32 %v1328_v26, 16  ;;  %1235 = vst [vmem:[#allocation1 + $0x2] ss:$4 sm:$0xff] %v1197_v36  ;;  %v1348_v50 = vrot.slane %v1347_v41, 2  ;;  %v4390_v27 = vrot.slane %v1508_v15, 9  ;;  %v4391_v28 = vrot.slane %v1510_v16, 9 }
  0x66   : > { %1728 = vmatpush.bf16.msra.mxu2 %v5332_v63  ;;  %1238 = vst [vmem:[#allocation1 + $0x3] ss:$4 sm:$0xff] %v1210_v40  ;;  %v1361_v52 = vrot.slane %v1360_v43, 2  ;;  %v1495_v63 = vrot.slane %v4384_v54, 2  ;;  %v5378_v40 = vld [vmem:[%s6590_s1 + $0x3f8] sm:$0xff] }
  0x67   : > { %1627 = vmatpush.bf16.msra.mxu1 %v5324_v55  ;;  %v1365_v53 = vrot.slane %v1363_v44, 7  ;;  %v1374_v55 = vrot.slane %v1373_v46, 2  ;;  %v1353_v61 = vsel %vm5695_vm8, %v1348_v50, %v1352_v51  ;;  %v1534_v34 = vsel %vm5806_vm15, %v4390_v27, %v4391_v28  ;;  %v5350_v41 = vld [vmem:[%s6590_s1 + $0x318] sm:$0xff]  ;;  %v4548_v43 = vld [vmem:[%s5593_s28 + $0x4] sm:$0x7] }
  0x68   : > { %v1501_v11 = vsel %vm403_vm0, %v4384_v54, %v1495_v63  ;;  %v1503_v13 = vsel %vm407_vm2, %v4384_v54, %v1495_v63  ;;  %1829 = vmatpush.bf16.msra.mxu3 %v5340_v8  ;;  %v5367_v44 = vld [vmem:[%s6590_s1 + $0x3a0] sm:$0xff]  ;;  %v4549_v46 = vld [vmem:[%s5593_s28 + $0x8] sm:$0x7]  ;;  %v1847_v49 = vrot.slane %v4548_v43, 2  ;;  %v4550_v50 = vld [vmem:[%s5593_s28 + $0xc] sm:$0x7] }
  0x69   : > { %1478 = vmatpush.bf16.msra.mxu0 %v5315_v62  ;;  %v4387_v62 = vld [vmem:[%s5593_s28 + $0x3c] sm:$0x6]  ;;  %v1366_v0 = vsel %vm5695_vm8, %v1361_v52, %v1365_v53  ;;  %v1379_v4 = vsel %vm5695_vm8, %v1374_v55, %v1378_v56  ;;  %v4388_v24 = vrot.slane %v1501_v11, 9  ;;  %v4389_v26 = vrot.slane %v1503_v13, 9  ;;  %v5376_v53 = vld [vmem:[%s6590_s1 + $0x3e8] sm:$0xff] }
  0x6a   : > { %1729 = vmatpush.bf16.msra.mxu2 %v5331_v29  ;;  %v1498_v7 = vrot.slane %v4387_v62, 2  ;;  %v1848_v51 = vrot.slane %v4549_v46, 2  ;;  %v5366_v52 = vld [vmem:[%s6590_s1 + $0x398] sm:$0xff]  ;;  %v4551_v54 = vld [vmem:[%s5593_s28 + $0x10] sm:$0x7]  ;;  %v5348_v55 = vld [vmem:[%s6590_s1 + $0x308] sm:$0xff] }
  0x6b   : > { %1628 = vmatpush.bf16.msra.mxu1 %v5323_v10  ;;  %v5352_v10 = vld [vmem:[%s6590_s1 + $0x328] sm:$0xff]  ;;  %v1530_v33 = vsel %vm5806_vm15, %v4388_v24, %v4389_v26  ;;  %v4444_v56 = vld [vmem:[%s5593_s28 + $0x4] sm:$0x3]  ;;  %v1850_v63 = vrot.slane %v4551_v54, 2  ;;  %v5394_v16 = vld [vmem:[%s6590_s1 + $0x478] sm:$0xff] }
  0x6c   : > { %v1522_v23 = vsel %vm403_vm0, %v4387_v62, %v1498_v7  ;;  %v1524_v19 = vsel %vm407_vm2, %v4387_v62, %v1498_v7  ;;  %1830 = vmatpush.bf16.msra.mxu3 %v5339_v17  ;;  %v4447_v62 = vld [vmem:[%s5593_s28 + $0x10] sm:$0x3]  ;;  %v4600_v28 = vld [vmem:[%s5593_s28 + $0x1c] sm:$0x7] }
  0x6d   : > { %2005 = vmatpush.bf16.msrb.mxu0 %v5354_v6  ;;  %v1239_v3 = vld.sshfl [vmem:[#allocation1] sm:$0xff pattern:$0x73625140]  ;;  %v1392_v6 = vsel %vm5695_vm8, %v1387_v58, %v1391_v59  ;;  %v4394_v30 = vrot.slane %v1522_v23, 9  ;;  %v4395_v32 = vrot.slane %v1524_v19, 9  ;;  %v5356_v58 = vld [vmem:[%s6590_s1 + $0x348] sm:$0xff]  ;;  %v1871_v15 = vsel %vm403_vm0, %v4551_v54, %v1850_v63 }
  0x6e   : > { %1297 = vmatmul.bf16.vlgmr.msrb.gmra.mxu3 %v1239_v3  ;;  %1411 = vst [vmem:[#allocation1] ss:$4 sm:$0xff] %v1353_v61  ;;  %2337 = vmatpush.bf16.msrb.mxu2 %v5370_v9  ;;  %v1849_v59 = vrot.slane %v4550_v50, 2  ;;  %v4446_v61 = vld [vmem:[%s5593_s28 + $0xc] sm:$0x3]  ;;  %v5375_v3 = vld [vmem:[%s6590_s1 + $0x3e0] sm:$0xff]  ;;  %v1872_v21 = vsel %vm407_vm2, %v4551_v54, %v1850_v63 }
  0x6f   : > { %2187 = vmatpush.bf16.msrb.mxu1 %v5362_v20  ;;  %1414 = vst [vmem:[#allocation1 + $0x1] ss:$4 sm:$0xff] %v1366_v0  ;;  %v1515_v20 = vsel %vm403_vm0, %v4386_v60, %v1497_v5  ;;  %v1542_v38 = vsel %vm5806_vm15, %v4394_v30, %v4395_v32  ;;  %v1853_v60 = vsel %vm403_vm0, %v4548_v43, %v1847_v49  ;;  %v5386_v9 = vld [vmem:[%s6590_s1 + $0x438] sm:$0xff]  ;;  %v1914_v30 = vshrl.u32 %v1871_v15, 16  ;;  %v5363_v63 = vld [vmem:[%s6590_s1 + $0x380] sm:$0xff] }
  0x70   : > { %1417 = vst [vmem:[#allocation1 + $0x2] ss:$4 sm:$0xff] %v1379_v4  ;;  %v4392_v29 = vrot.slane %v1515_v20, 9  ;;  %2438 = vmatpush.bf16.msrb.mxu3 %v5378_v40  ;;  %v1859_v0 = vsel %vm403_vm0, %v4549_v46, %v1848_v51  ;;  %v5347_v4 = vld [vmem:[%s6590_s1 + $0x300] sm:$0xff]  ;;  %v1854_v5 = vsel %vm407_vm2, %v4548_v43, %v1847_v49  ;;  %v1875_v7 = vshrl.u32 %v1853_v60, 16  ;;  %v5374_v23 = vld [vmem:[%s6590_s1 + $0x3d8] sm:$0xff] }
  0x71   : > { %2006 = vmatpush.bf16.msrb.mxu0 %v5353_v45  ;;  %1420 = vst [vmem:[#allocation1 + $0x3] ss:$4 sm:$0xff] %v1392_v6  ;;  %v5377_v45 = vld [vmem:[%s6590_s1 + $0x3f0] sm:$0xff]  ;;  %v1860_v6 = vsel %vm407_vm2, %v4549_v46, %v1848_v51  ;;  %v1878_v8 = vshll.u32 %v1853_v60, 16  ;;  %v1865_v11 = vsel %vm403_vm0, %v4550_v50, %v1849_v59  ;;  %v1888_v13 = vshrl.u32 %v1859_v0, 16 }
  0x72   : > { %2338 = vmatpush.bf16.msrb.mxu2 %v5369_v18  ;;  %v1538_v37 = vsel %vm5806_vm15, %v4392_v29, %v4393_v31  ;;  %v1856_v17 = vrot.slane %v1854_v5, 2  ;;  %v1862_v18 = vrot.slane %v1860_v6, 2  ;;  %v1866_v20 = vsel %vm407_vm2, %v4550_v50, %v1849_v59  ;;  %v4603_v40 = vld [vmem:[%s5593_s28 + $0x28] sm:$0x7]  ;;  %v5393_v5 = vld [vmem:[%s6590_s1 + $0x470] sm:$0xff] }
  0x73   : > { %2188 = vmatpush.bf16.msrb.mxu1 %v5361_v2  ;;  %v5365_v2 = vld [vmem:[%s6590_s1 + $0x390] sm:$0xff]  ;;  %v1877_v19 = vrot.slane %v1875_v7, 6  ;;  %v1880_v24 = vrot.slane %v1878_v8, 7  ;;  %v1901_v26 = vshrl.u32 %v1865_v11, 16  ;;  %v1904_v27 = vshll.u32 %v1865_v11, 16 }
  0x74   : > { %2439 = vmatpush.bf16.msrb.mxu3 %v5377_v45  ;;  %v1890_v29 = vrot.slane %v1888_v13, 6  ;;  %v1917_v32 = vshll.u32 %v1871_v15, 16  ;;  %v1916_v49 = vrot.slane %v1914_v30, 6  ;;  %v2032_v54 = vrot.slane %v4603_v40, 2 }
  0x75   : > { %2007 = vmatpush.bf16.msrb.mxu0 %v5352_v10  ;;  %v5355_v10 = vld [vmem:[%s6590_s1 + $0x340] sm:$0xff]  ;;  %v1881_v43 = vor.u32 %v1880_v24, %v1877_v19  ;;  %v1906_v45 = vrot.slane %v1904_v27, 7 }
  0x76   : > { %2339 = vmatpush.bf16.msrb.mxu2 %v5368_v39  ;;  %v6136_v39 = vshll.u32 %v1862_v18, 16  ;;  %v1919_v50 = vrot.slane %v1917_v32, 7  ;;  %v2053_v7 = vsel %vm403_vm0, %v4603_v40, %v2032_v54 }
  0x77   : > { %2189 = vmatpush.bf16.msrb.mxu1 %v5360_v14  ;;  %v1891_v14 = vshll.u32 %v1859_v0, 16  ;;  %v1882_v59 = vrot.slane %v1881_v43, 2  ;;  %v5373_v0 = vld [vmem:[%s6590_s1 + $0x3d0] sm:$0xff]  ;;  %v2099_v19 = vshll.u32 %v2053_v7, 16 }
  0x78   : > { %v1421_v36 = vld.sshfl [vmem:[#allocation1] sm:$0xff pattern:$0x73625140]  ;;  %2440 = vmatpush.bf16.msrb.mxu3 %v5376_v53 }
  0x79   : > { %2008 = vmatpush.bf16.msrb.mxu0 %v5351_v22  ;;  %1561 = vst [vmem:[#allocation1] ss:$4 sm:$0xff] %v1530_v33  ;;  %v5364_v22 = vld [vmem:[%s6590_s1 + $0x388] sm:$0xff]  ;;  %v1893_v31 = vrot.slane %v1891_v14, 7  ;;  %v4601_v33 = vld [vmem:[%s5593_s28 + $0x20] sm:$0x7] }
  0x7a   : > { %1479 = vmatmul.bf16.vlgmr.msra.gmra.mxu0 %v1421_v36  ;;  %1564 = vst [vmem:[#allocation1 + $0x1] ss:$4 sm:$0xff] %v1534_v34  ;;  %2340 = vmatpush.bf16.msrb.mxu2 %v5367_v44  ;;  %v4496_v34 = vld [vmem:[%s5593_s28 + $0x1c] sm:$0x3]  ;;  %v4602_v36 = vld [vmem:[%s5593_s28 + $0x24] sm:$0x7] }
  0x7b   : > { %2190 = vmatpush.bf16.msrb.mxu1 %v5359_v35  ;;  %1567 = vst [vmem:[#allocation1 + $0x2] ss:$4 sm:$0xff] %v1538_v37  ;;  %v1868_v35 = vrot.slane %v1866_v20, 2  ;;  %v1874_v37 = vrot.slane %v1872_v21, 2  ;;  %v1903_v44 = vrot.slane %v1901_v26, 6  ;;  %v2030_v46 = vrot.slane %v4601_v33, 2 }
  0x7c   : > { %1570 = vst [vmem:[#allocation1 + $0x3] ss:$4 sm:$0xff] %v1542_v38  ;;  %2441 = vmatpush.bf16.msrb.mxu3 %v5375_v3  ;;  %v6134_v38 = vshll.u32 %v1856_v17, 16  ;;  %v2031_v51 = vrot.slane %v4602_v36, 2  ;;  %v1920_v3 = vor.u32 %v1919_v50, %v1916_v49  ;;  %v2054_v26 = vsel %vm407_vm2, %v4603_v40, %v2032_v54  ;;  %v5383_v50 = vld [vmem:[%s6590_s1 + $0x420] sm:$0xff] }
  0x7d   : > { %2009 = vmatpush.bf16.msrb.mxu0 %v5350_v41  ;;  %v2029_v41 = vrot.slane %v4600_v28, 2  ;;  %v1910_v53 = vshll.u32 %v1868_v35, 16  ;;  %v1907_v60 = vor.u32 %v1906_v45, %v1903_v44  ;;  %v2042_v17 = vsel %vm407_vm2, %v4601_v33, %v2030_v46  ;;  %v5372_v45 = vld [vmem:[%s6590_s1 + $0x3c8] sm:$0xff]  ;;  %v5391_v54 = vld [vmem:[%s6590_s1 + $0x460] sm:$0xff] }
  0x7e   : > { %2341 = vmatpush.bf16.msrb.mxu2 %v5366_v52  ;;  %v1921_v21 = vrot.slane %v1920_v3, 2 }
  0x7f   : > { %2191 = vmatpush.bf16.msrb.mxu1 %v5358_v42  ;;  %v4497_v42 = vld [vmem:[%s5593_s28 + $0x20] sm:$0x3]  ;;  %v1912_v6 = vrot.slane %v1910_v53, 7  ;;  %v2036_v13 = vsel %vm407_vm2, %v4600_v28, %v2029_v41 }
  0x80   : > { %2442 = vmatpush.bf16.msrb.mxu3 %v5374_v23  ;;  %v2096_v23 = vshrl.u32 %v2053_v7, 16  ;;  %v2038_v24 = vrot.slane %v2036_v13, 2  ;;  %v5371_v53 = vld [vmem:[%s6590_s1 + $0x3c0] sm:$0xff]  ;;  %v4655_v7 = vld [vmem:[%s5593_s28 + $0x10] sm:$0x6] }
  0x81   : > { %2010 = vmatpush.bf16.msrb.mxu0 %v5349_v47  ;;  %v4498_v47 = vld [vmem:[%s5593_s28 + $0x24] sm:$0x3] }
  0x82   : > { %2342 = vmatpush.bf16.msrb.mxu2 %v5365_v2  ;;  %v1899_v2 = vrot.slane %v6136_v39, 7  ;;  %v2056_v39 = vrot.slane %v2054_v26, 2  ;;  %v2098_v40 = vrot.slane %v2096_v23, 6  ;;  %v2066_v44 = vshll.u32 %v2038_v24, 16  ;;  %v5381_v23 = vld [vmem:[%s6590_s1 + $0x410] sm:$0xff] }
  0x83   : > { %2192 = vmatpush.bf16.msrb.mxu1 %v5357_v48  ;;  %v1571_v1 = vld.sshfl [vmem:[#allocation1] sm:$0xff pattern:$0x73625140]  ;;  %v1894_v48 = vor.u32 %v1893_v31, %v1890_v29  ;;  %v2044_v31 = vrot.slane %v2042_v17, 2  ;;  %v5390_v17 = vld [vmem:[%s6590_s1 + $0x458] sm:$0xff]  ;;  %v5389_v26 = vld [vmem:[%s6590_s1 + $0x450] sm:$0xff] }
  0x84   : > { %1629 = vmatmul.bf16.vlgmr.msra.gmra.mxu1 %v1571_v1  ;;  %1662 = vst [vmem:[#allocation1] ss:$4 sm:$0xff] %v4444_v56  ;;  %v1886_v56 = vrot.slane %v6134_v38, 7  ;;  %2443 = vmatpush.bf16.msrb.mxu3 %v5373_v0 }
  0x85   : > { %2011 = vmatpush.bf16.msrb.mxu0 %v5348_v55  ;;  %1665 = vst [vmem:[#allocation1 + $0x1] ss:$4 sm:$0xff] %v4445_v57  ;;  %v4499_v55 = vld [vmem:[%s5593_s28 + $0x28] sm:$0x3]  ;;  %v1923_v57 = vshll.u32 %v1874_v37, 16  ;;  %v1895_v1 = vrot.slane %v1894_v48, 2 }
  0x86   : > { %1668 = vst [vmem:[#allocation1 + $0x2] ss:$4 sm:$0xff] %v4446_v61  ;;  %2343 = vmatpush.bf16.msrb.mxu2 %v5364_v22  ;;  %v2041_v61 = vsel %vm403_vm0, %v4601_v33, %v2030_v46  ;;  %v2048_v22 = vsel %vm407_vm2, %v4602_v36, %v2031_v51  ;;  %v5392_v46 = vld [vmem:[%s6590_s1 + $0x468] sm:$0xff]  ;;  %v2079_v49 = vshll.u32 %v2044_v31, 16  ;;  %v5409_v31 = vld [vmem:[%s6590_s1 + $0x4f0] sm:$0xff] }
  0x87   : > { %2193 = vmatpush.bf16.msrb.mxu1 %v5356_v58  ;;  %1671 = vst [vmem:[#allocation1 + $0x3] ss:$4 sm:$0xff] %v4447_v62  ;;  %v2035_v58 = vsel %vm403_vm0, %v4600_v28, %v2029_v41  ;;  %v5385_v62 = vld [vmem:[%s6590_s1 + $0x430] sm:$0xff]  ;;  %v1925_v11 = vrot.slane %v1923_v57, 7  ;;  %v2070_v14 = vshrl.u32 %v2041_v61, 16  ;;  %v2073_v15 = vshll.u32 %v2041_v61, 16 }
  0x88   : > { %v2057_v8 = vshrl.u32 %v2035_v58, 16  ;;  %v1887_v28 = vsel %vm5695_vm8, %v1882_v59, %v1886_v56  ;;  %v1900_v33 = vsel %vm5695_vm8, %v1895_v1, %v1899_v2  ;;  %v2101_v41 = vrot.slane %v2099_v19, 7  ;;  %2444 = vmatpush.bf16.msrb.mxu3 %v5372_v45  ;;  %v5401_v57 = vld [vmem:[%s6590_s1 + $0x4b0] sm:$0xff]  ;;  %v4653_v2 = vld [vmem:[%s5593_s28 + $0x8] sm:$0x6] }
  0x89   : > { %2012 = vmatpush.bf16.msrb.mxu0 %v5347_v4  ;;  %v2047_v4 = vsel %vm403_vm0, %v4602_v36, %v2031_v51  ;;  %v2072_v30 = vrot.slane %v2070_v14, 6  ;;  %v2075_v32 = vrot.slane %v2073_v15, 7  ;;  %v2105_v56 = vshll.u32 %v2056_v39, 16 }
  0x8a   : > { %2344 = vmatpush.bf16.msrb.mxu2 %v5363_v63  ;;  %v2083_v18 = vshrl.u32 %v2047_v4, 16  ;;  %v2086_v20 = vshll.u32 %v2047_v4, 16  ;;  %v2059_v27 = vrot.slane %v2057_v8, 6  ;;  %v4652_v63 = vld [vmem:[%s5593_s28 + $0x4] sm:$0x6] }
  0x8b   : > { %2194 = vmatpush.bf16.msrb.mxu1 %v5355_v10  ;;  %v5384_v10 = vld [vmem:[%s6590_s1 + $0x428] sm:$0xff]  ;;  %v2076_v48 = vor.u32 %v2075_v32, %v2072_v30  ;;  %v2107_v4 = vrot.slane %v2105_v56, 7  ;;  %v2211_v8 = vrot.slane %v4652_v63, 2 }
  0x8c   : > { %v2085_v35 = vrot.slane %v2083_v18, 6  ;;  %v2088_v36 = vrot.slane %v2086_v20, 7  ;;  %2445 = vmatpush.bf16.msrb.mxu3 %v5371_v53  ;;  %v5400_v18 = vld [vmem:[%s6590_s1 + $0x4a8] sm:$0xff]  ;;  %v5410_v20 = vld [vmem:[%s6590_s1 + $0x4f8] sm:$0xff] }
  0x8d   : > { %2539 = vmatpush.bf16.msra.mxu0 %v5386_v9  ;;  %v2060_v9 = vshll.u32 %v2035_v58, 16  ;;  %v5382_v58 = vld [vmem:[%s6590_s1 + $0x418] sm:$0xff]  ;;  %v2077_v61 = vrot.slane %v2076_v48, 2  ;;  %v5380_v30 = vld [vmem:[%s6590_s1 + $0x408] sm:$0xff] }
  0x8e   : > { %v1672_v52 = vld.sshfl [vmem:[#allocation1] sm:$0xff pattern:$0x73625140]  ;;  %v2089_v51 = vor.u32 %v2088_v36, %v2085_v35  ;;  %v5418_v48 = vld [vmem:[%s6590_s1 + $0x538] sm:$0xff] }
  0x8f   : > { %2721 = vmatpush.bf16.msra.mxu1 %v5394_v16  ;;  %1730 = vmatmul.bf16.vlgmr.msra.gmra.mxu2 %v1672_v52  ;;  %1763 = vst [vmem:[#allocation1] ss:$4 sm:$0xff] %v4496_v34  ;;  %v1908_v16 = vrot.slane %v1907_v60, 2  ;;  %v2062_v29 = vrot.slane %v2060_v9, 7  ;;  %v2050_v34 = vrot.slane %v2048_v22, 2  ;;  %v2068_v60 = vrot.slane %v2066_v44, 7 }
  0x90   : > { %1766 = vst [vmem:[#allocation1 + $0x1] ss:$4 sm:$0xff] %v4497_v42  ;;  %v1926_v42 = vsel %vm5695_vm8, %v1921_v21, %v1925_v11  ;;  %v2090_v0 = vrot.slane %v2089_v51, 2  ;;  %v2217_v21 = vsel %vm403_vm0, %v4652_v63, %v2211_v8  ;;  %v2219_v22 = vsel %vm407_vm2, %v4652_v63, %v2211_v8  ;;  %v5408_v44 = vld [vmem:[%s6590_s1 + $0x4e8] sm:$0xff]  ;;  %v5387_v51 = vld [vmem:[%s6590_s1 + $0x440] sm:$0xff] }
  0x91   : > { %1769 = vst [vmem:[#allocation1 + $0x2] ss:$4 sm:$0xff] %v4498_v47  ;;  %2540 = vmatpush.bf16.msra.mxu0 %v5385_v62  ;;  %v1913_v38 = vsel %vm5695_vm8, %v1908_v16, %v1912_v6  ;;  %v2063_v43 = vor.u32 %v2062_v29, %v2059_v27  ;;  %v5402_v47 = vld [vmem:[%s6590_s1 + $0x4b8] sm:$0xff]  ;;  %v2092_v52 = vshll.u32 %v2050_v34, 16  ;;  %v2081_v62 = vrot.slane %v2079_v49, 7  ;;  %v5399_v27 = vld [vmem:[%s6590_s1 + $0x4a0] sm:$0xff] }
  0x92   : > { %1772 = vst [vmem:[#allocation1 + $0x3] ss:$4 sm:$0xff] %v4499_v55  ;;  %v2102_v55 = vor.u32 %v2101_v41, %v2098_v40  ;;  %2903 = vmatpush.bf16.msra.mxu2 %v5402_v47  ;;  %v2214_v16 = vrot.slane %v4655_v7, 2  ;;  %v4656_v34 = vrot.slane %v2217_v21, 9  ;;  %v4657_v35 = vrot.slane %v2219_v22, 9  ;;  %v5388_v40 = vld [vmem:[%s6590_s1 + $0x448] sm:$0xff] }
  0x93   : > { %2722 = vmatpush.bf16.msra.mxu1 %v5393_v5  ;;  %v2064_v59 = vrot.slane %v2063_v43, 2  ;;  %v2094_v1 = vrot.slane %v2092_v52, 7  ;;  %v4654_v5 = vld [vmem:[%s5593_s28 + $0xc] sm:$0x6]  ;;  %v2082_v9 = vsel %vm5695_vm8, %v2077_v61, %v2081_v62  ;;  %v5398_v41 = vld [vmem:[%s6590_s1 + $0x498] sm:$0xff]  ;;  %v5397_v52 = vld [vmem:[%s6590_s1 + $0x490] sm:$0xff] }
  0x94   : > { %v2103_v3 = vrot.slane %v2102_v55, 2  ;;  %v2213_v14 = vrot.slane %v4654_v5, 2  ;;  %v2238_v32 = vsel %vm403_vm0, %v4655_v7, %v2214_v16  ;;  %v2246_v45 = vsel %vm5806_vm15, %v4656_v34, %v4657_v35  ;;  %v4816_v55 = vld [vmem:[%s5593_s28 + $0x34] sm:$0x7]  ;;  %v4713_v63 = vld [vmem:[%s5593_s28 + $0x38] sm:$0x3] }
  0x95   : > { %2541 = vmatpush.bf16.msra.mxu0 %v5384_v10  ;;  %v2069_v6 = vsel %vm5695_vm8, %v2064_v59, %v2068_v60  ;;  %v2212_v10 = vrot.slane %v4653_v2, 2  ;;  %v2095_v13 = vsel %vm5695_vm8, %v2090_v0, %v2094_v1  ;;  %v2563_v56 = vrot.slane %v4816_v55, 2  ;;  %v4819_v59 = vld [vmem:[%s5593_s28 + $0x40] sm:$0x7]  ;;  %v4712_v62 = vld [vmem:[%s5593_s28 + $0x34] sm:$0x3] }
  0x96   : > { %2904 = vmatpush.bf16.msra.mxu2 %v5401_v57  ;;  %v2108_v15 = vsel %vm5695_vm8, %v2103_v3, %v2107_v4  ;;  %v2231_v29 = vsel %vm403_vm0, %v4654_v5, %v2213_v14  ;;  %v4817_v57 = vld [vmem:[%s5593_s28 + $0x38] sm:$0x7]  ;;  %v4714_v1 = vld [vmem:[%s5593_s28 + $0x3c] sm:$0x3]  ;;  %v5417_v3 = vld [vmem:[%s6590_s1 + $0x530] sm:$0xff] }
  0x97   : > { %2723 = vmatpush.bf16.msra.mxu1 %v5392_v46  ;;  %v2224_v19 = vsel %vm403_vm0, %v4653_v2, %v2212_v10  ;;  %v2226_v24 = vsel %vm407_vm2, %v4653_v2, %v2212_v10  ;;  %v5379_v46 = vld [vmem:[%s6590_s1 + $0x400] sm:$0xff]  ;;  %v2564_v60 = vrot.slane %v4817_v57, 2  ;;  %v2569_v61 = vsel %vm403_vm0, %v4816_v55, %v2563_v56  ;;  %v5396_v10 = vld [vmem:[%s6590_s1 + $0x488] sm:$0xff]  ;;  %v5405_v21 = vld [vmem:[%s6590_s1 + $0x4d0] sm:$0xff] }
  0x98   : > { %v4658_v36 = vrot.slane %v2224_v19, 9  ;;  %v4715_v2 = vld [vmem:[%s5593_s28 + $0x40] sm:$0x3]  ;;  %v6317_v34 = vld [vmem:[%s5593_s28 + $0x50] sm:$0x7] }
  0x99   : > { %v1773_v37 = vld.sshfl [vmem:[#allocation1] sm:$0xff pattern:$0x73625140]  ;;  %2542 = vmatpush.bf16.msra.mxu0 %v5383_v50  ;;  %v2575_v8 = vsel %vm403_vm0, %v4817_v57, %v2564_v60  ;;  %v4764_v35 = vld [vmem:[%s5593_s28 + $0x4c] sm:$0x3] }
  0x9a   : > { %1831 = vmatmul.bf16.vlgmr.msra.gmra.mxu3 %v1773_v37  ;;  %1945 = vst [vmem:[#allocation1] ss:$4 sm:$0xff] %v1887_v28  ;;  %2905 = vmatpush.bf16.msra.mxu2 %v5400_v18  ;;  %v2233_v28 = vsel %vm407_vm2, %v4654_v5, %v2213_v14  ;;  %v4659_v37 = vrot.slane %v2226_v24, 9  ;;  %v2566_v5 = vrot.slane %v4819_v59, 2  ;;  %v2604_v19 = vshrl.u32 %v2575_v8, 16 }
  0x9b   : > { %1948 = vst [vmem:[#allocation1 + $0x1] ss:$4 sm:$0xff] %v1900_v33  ;;  %2724 = vmatpush.bf16.msra.mxu1 %v5391_v54  ;;  %3053 = vmatpush.bf16.msra.mxu3 %v5410_v20  ;;  %v2240_v33 = vsel %vm407_vm2, %v4655_v7, %v2214_v16  ;;  %v4661_v39 = vrot.slane %v2233_v28, 9  ;;  %v5407_v54 = vld [vmem:[%s6590_s1 + $0x4e0] sm:$0xff]  ;;  %v2591_v7 = vshrl.u32 %v2569_v61, 16  ;;  %v2607_v24 = vshll.u32 %v2575_v8, 16 }
  0x9c   : > { %1951 = vst [vmem:[#allocation1 + $0x2] ss:$4 sm:$0xff] %v1913_v38  ;;  %v4660_v38 = vrot.slane %v2231_v29, 9  ;;  %v4663_v43 = vrot.slane %v2240_v33, 9  ;;  %v2250_v47 = vsel %vm5806_vm15, %v4658_v36, %v4659_v37  ;;  %v5395_v20 = vld [vmem:[%s6590_s1 + $0x480] sm:$0xff]  ;;  %v2587_v22 = vsel %vm403_vm0, %v4819_v59, %v2566_v5 }
  0x9d   : > { %1954 = vst [vmem:[#allocation1 + $0x3] ss:$4 sm:$0xff] %v1926_v42  ;;  %2543 = vmatpush.bf16.msra.mxu0 %v5382_v58  ;;  %v4662_v42 = vrot.slane %v2238_v32, 9  ;;  %v4818_v58 = vld [vmem:[%s5593_s28 + $0x3c] sm:$0x7]  ;;  %v2630_v37 = vshrl.u32 %v2587_v22, 16 }
  0x9e   : > { %2906 = vmatpush.bf16.msra.mxu2 %v5399_v27  ;;  %v2254_v50 = vsel %vm5806_vm15, %v4660_v38, %v4661_v39  ;;  %v2565_v0 = vrot.slane %v4818_v58, 2  ;;  %v2588_v27 = vsel %vm407_vm2, %v4819_v59, %v2566_v5  ;;  %v2633_v38 = vshll.u32 %v2587_v22, 16  ;;  %v6323_v39 = vld [vmem:[%s5593_s28 + $0x54] sm:$0x7] }
  0x9f   : > { %2725 = vmatpush.bf16.msra.mxu1 %v5390_v17  ;;  %3054 = vmatpush.bf16.msra.mxu3 %v5409_v31  ;;  %v2258_v53 = vsel %vm5806_vm15, %v4662_v42, %v4663_v43  ;;  %v2576_v17 = vsel %vm407_vm2, %v4817_v57, %v2564_v60  ;;  %v2606_v42 = vrot.slane %v2604_v19, 6  ;;  %v2609_v43 = vrot.slane %v2607_v24, 7 }
  0xa0   : > { %v2581_v14 = vsel %vm403_vm0, %v4818_v58, %v2565_v0  ;;  %v2582_v18 = vsel %vm407_vm2, %v4818_v58, %v2565_v0  ;;  %v2578_v32 = vrot.slane %v2576_v17, 2  ;;  %v2632_v57 = vrot.slane %v2630_v37, 6  ;;  %v5424_v0 = vld [vmem:[%s6590_s1 + $0x568] sm:$0xff] }
  0xa1   : > { %2544 = vmatpush.bf16.msra.mxu0 %v5381_v23  ;;  %v2593_v23 = vrot.slane %v2591_v7, 6  ;;  %v2617_v28 = vshrl.u32 %v2581_v14, 16  ;;  %v2620_v31 = vshll.u32 %v2581_v14, 16  ;;  %v2584_v33 = vrot.slane %v2582_v18, 2  ;;  %v5433_v18 = vld [vmem:[%s6590_s1 + $0x5b0] sm:$0xff] }
  0xa2   : > { %2907 = vmatpush.bf16.msra.mxu2 %v5398_v41  ;;  %v2590_v41 = vrot.slane %v2588_v27, 2  ;;  %v2635_v58 = vrot.slane %v2633_v38, 7  ;;  %v2610_v60 = vor.u32 %v2609_v43, %v2606_v42 }
  0xa3   : > { %2726 = vmatpush.bf16.msra.mxu1 %v5389_v26  ;;  %3055 = vmatpush.bf16.msra.mxu3 %v5408_v44  ;;  %v5425_v26 = vld [vmem:[%s6590_s1 + $0x570] sm:$0xff]  ;;  %v6327_v44 = vld [vmem:[%s5593_s28 + $0x58] sm:$0x7] }
  0xa4   : > { %v1955_v11 = vld.sshfl [vmem:[#allocation1] sm:$0xff pattern:$0x73625140]  ;;  %v2748_v59 = vrot.slane %v6327_v44, 2  ;;  %v2636_v14 = vor.u32 %v2635_v58, %v2632_v57  ;;  %v5412_v58 = vld [vmem:[%s6590_s1 + $0x508] sm:$0xff] }
  0xa5   : > { %2013 = vmatmul.bf16.vlgmr.msrb.gmra.mxu0 %v1955_v11  ;;  %2127 = vst [vmem:[#allocation1] ss:$4 sm:$0xff] %v2069_v6  ;;  %v2570_v6 = vsel %vm407_vm2, %v4816_v55, %v2563_v56  ;;  %v5406_v11 = vld [vmem:[%s6590_s1 + $0x4d8] sm:$0xff]  ;;  %v5415_v55 = vld [vmem:[%s6590_s1 + $0x520] sm:$0xff] }
  0xa6   : > { %2130 = vst [vmem:[#allocation1 + $0x1] ss:$4 sm:$0xff] %v2082_v9  ;;  %2545 = vmatpush.bf16.msra.mxu0 %v5380_v30  ;;  %2908 = vmatpush.bf16.msra.mxu2 %v5397_v52  ;;  %v2594_v9 = vshll.u32 %v2569_v61, 16  ;;  %v2572_v16 = vrot.slane %v2570_v6, 2  ;;  %v4868_v30 = vld [vmem:[%s5593_s28 + $0x4c] sm:$0x7] }
  0xa7   : > { %2133 = vst [vmem:[#allocation1 + $0x2] ss:$4 sm:$0xff] %v2095_v13  ;;  %2727 = vmatpush.bf16.msra.mxu1 %v5388_v40  ;;  %3056 = vmatpush.bf16.msra.mxu3 %v5407_v54  ;;  %v5426_v13 = vld [vmem:[%s6590_s1 + $0x578] sm:$0xff]  ;;  %v4765_v40 = vld [vmem:[%s5593_s28 + $0x50] sm:$0x3]  ;;  %v6332_v52 = vshll.u32 %v2578_v32, 16 }
  0xa8   : > { %2136 = vst [vmem:[#allocation1 + $0x3] ss:$4 sm:$0xff] %v2108_v15  ;;  %v5416_v15 = vld [vmem:[%s6590_s1 + $0x528] sm:$0xff]  ;;  %v2596_v29 = vrot.slane %v2594_v9, 7  ;;  %v6320_v36 = vshll.u32 %v2572_v16, 16  ;;  %v2747_v54 = vrot.slane %v6323_v39, 2 }
  0xa9   : > { %v6341_v61 = vshll.u32 %v2590_v41, 16  ;;  %v5414_v6 = vld [vmem:[%s6590_s1 + $0x518] sm:$0xff]  ;;  %v2615_v7 = vrot.slane %v6332_v52, 7  ;;  %v2637_v32 = vrot.slane %v2636_v14, 2 }
  0xaa   : > { %2546 = vmatpush.bf16.msra.mxu0 %v5379_v46  ;;  %2909 = vmatpush.bf16.msra.mxu2 %v5396_v10  ;;  %v4766_v46 = vld [vmem:[%s5593_s28 + $0x54] sm:$0x3]  ;;  %v2763_v10 = vsel %vm403_vm0, %v6323_v39, %v2747_v54 }
  0xab   : > { %2728 = vmatpush.bf16.msra.mxu1 %v5387_v51  ;;  %3057 = vmatpush.bf16.msra.mxu3 %v5406_v11  ;;  %v4767_v51 = vld [vmem:[%s5593_s28 + $0x58] sm:$0x3]  ;;  %v5403_v11 = vld [vmem:[%s6590_s1 + $0x4c0] sm:$0xff]  ;;  %v2802_v27 = vshll.u32 %v2763_v10, 16 }
  0xad   : > { %v2804_v43 = vrot.slane %v2802_v27, 7 }
  0xae   : > { %3154 = vmatpush.bf16.msrb.mxu0 %v5418_v48  ;;  %2910 = vmatpush.bf16.msra.mxu2 %v5395_v20  ;;  %v2619_v48 = vrot.slane %v2617_v28, 6  ;;  %v2611_v20 = vrot.slane %v2610_v60, 2  ;;  %v2764_v28 = vsel %vm407_vm2, %v6323_v39, %v2747_v54  ;;  %v5432_v54 = vld [vmem:[%s6590_s1 + $0x5a8] sm:$0xff] }
  0xaf   : > { %v2137_v49 = vld.sshfl [vmem:[#allocation1] sm:$0xff pattern:$0x73625140]  ;;  %3058 = vmatpush.bf16.msra.mxu3 %v5405_v21  ;;  %v2641_v21 = vrot.slane %v6341_v61, 7  ;;  %v2766_v41 = vrot.slane %v2764_v28, 2  ;;  %v5421_v61 = vld [vmem:[%s6590_s1 + $0x550] sm:$0xff] }
  0xb0   : > { %2195 = vmatmul.bf16.vlgmr.msrb.gmra.mxu1 %v2137_v49  ;;  %2277 = vst [vmem:[#allocation1] ss:$4 sm:$0xff] %v2246_v45  ;;  %v2745_v45 = vrot.slane %v4868_v30, 2  ;;  %v2622_v49 = vrot.slane %v2620_v31, 7  ;;  %v2616_v39 = vsel %vm5695_vm8, %v2611_v20, %v2615_v7  ;;  %v5411_v7 = vld [vmem:[%s6590_s1 + $0x500] sm:$0xff] }
  0xb1   : > { %2280 = vst [vmem:[#allocation1 + $0x1] ss:$4 sm:$0xff] %v2250_v47  ;;  %3255 = vmatpush.bf16.msrb.mxu1 %v5426_v13  ;;  %v2597_v47 = vor.u32 %v2596_v29, %v2593_v23  ;;  %v5423_v13 = vld [vmem:[%s6590_s1 + $0x560] sm:$0xff]  ;;  %v2808_v60 = vshll.u32 %v2766_v41, 16 }
  0xb2   : > { %2283 = vst [vmem:[#allocation1 + $0x2] ss:$4 sm:$0xff] %v2254_v50  ;;  %3155 = vmatpush.bf16.msrb.mxu0 %v5417_v3  ;;  %v2746_v50 = vrot.slane %v6317_v34, 2  ;;  %v2602_v3 = vrot.slane %v6320_v36, 7  ;;  %v2752_v9 = vsel %vm407_vm2, %v4868_v30, %v2745_v45  ;;  %v4923_v20 = vld [vmem:[%s5593_s28 + $0x40] sm:$0x6] }
  0xb3   : > { %2286 = vst [vmem:[#allocation1 + $0x3] ss:$4 sm:$0xff] %v2258_v53  ;;  %v6334_v53 = vshll.u32 %v2584_v33, 16  ;;  %v2754_v29 = vrot.slane %v2752_v9, 2  ;;  %v2770_v33 = vsel %vm407_vm2, %v6327_v44, %v2748_v59  ;;  %v2810_v9 = vrot.slane %v2808_v60, 7  ;;  %v5437_v60 = vld [vmem:[%s6590_s1 + $0x5d0] sm:$0xff] }
  0xb4   : > { %v2757_v5 = vsel %vm403_vm0, %v6317_v34, %v2746_v50  ;;  %v2758_v24 = vsel %vm407_vm2, %v6317_v34, %v2746_v50  ;;  %v2642_v50 = vsel %vm5695_vm8, %v2637_v32, %v2641_v21  ;;  %v2930_v28 = vrot.slane %v4923_v20, 2  ;;  %v5419_v32 = vld [vmem:[%s6590_s1 + $0x540] sm:$0xff] }
  0xb5   : > { %3256 = vmatpush.bf16.msrb.mxu1 %v5425_v26  ;;  %v2628_v8 = vrot.slane %v6334_v53, 7  ;;  %v2786_v22 = vshrl.u32 %v2757_v5, 16  ;;  %v2789_v23 = vshll.u32 %v2757_v5, 16  ;;  %v2799_v26 = vshrl.u32 %v2763_v10, 16  ;;  %v5422_v53 = vld [vmem:[%s6590_s1 + $0x558] sm:$0xff] }
  0xb6   : > { %3156 = vmatpush.bf16.msrb.mxu0 %v5416_v15  ;;  %v2769_v15 = vsel %vm403_vm0, %v6327_v44, %v2748_v59  ;;  %v2760_v37 = vrot.slane %v2758_v24, 2  ;;  %v2782_v52 = vshll.u32 %v2754_v29, 16  ;;  %v4921_v10 = vld [vmem:[%s5593_s28 + $0x38] sm:$0x6]  ;;  %v2956_v41 = vsel %vm407_vm2, %v4923_v20, %v2930_v28 }
  0xb7   : > { %v2812_v31 = vshrl.u32 %v2769_v15, 16  ;;  %v2788_v38 = vrot.slane %v2786_v22, 6  ;;  %v2801_v42 = vrot.slane %v2799_v26, 6  ;;  %v5450_v22 = vld [vmem:[%s6590_s1 + $0x638] sm:$0xff] }
  0xb8   : > { %v2795_v57 = vshll.u32 %v2760_v37, 16  ;;  %v5449_v37 = vld [vmem:[%s6590_s1 + $0x630] sm:$0xff] }
  0xb9   : > { %3257 = vmatpush.bf16.msrb.mxu1 %v5424_v0  ;;  %v2805_v59 = vor.u32 %v2804_v43, %v2801_v42 }
  0xba   : > { %v2287_v4 = vld.sshfl [vmem:[#allocation1] sm:$0xff pattern:$0x73625140]  ;;  %3157 = vmatpush.bf16.msrb.mxu0 %v5415_v55  ;;  %v5442_v55 = vld [vmem:[%s6590_s1 + $0x5f8] sm:$0xff]  ;;  %v2797_v5 = vrot.slane %v2795_v57, 7  ;;  %v5448_v57 = vld [vmem:[%s6590_s1 + $0x628] sm:$0xff] }
  0xbb   : > { %2345 = vmatmul.bf16.vlgmr.msrb.gmra.mxu2 %v2287_v4  ;;  %2378 = vst [vmem:[#allocation1] ss:$4 sm:$0xff] %v4712_v62  ;;  %v2751_v62 = vsel %vm403_vm0, %v4868_v30, %v2745_v45  ;;  %v2623_v4 = vor.u32 %v2622_v49, %v2619_v48  ;;  %v2815_v30 = vshll.u32 %v2769_v15, 16  ;;  %v5413_v45 = vld [vmem:[%s6590_s1 + $0x510] sm:$0xff]  ;;  %v2814_v48 = vrot.slane %v2812_v31, 6 }
  0xbc   : > { %2381 = vst [vmem:[#allocation1 + $0x1] ss:$4 sm:$0xff] %v4713_v63  ;;  %v5404_v63 = vld [vmem:[%s6590_s1 + $0x4c8] sm:$0xff]  ;;  %v2773_v16 = vshrl.u32 %v2751_v62, 16  ;;  %v2776_v17 = vshll.u32 %v2751_v62, 16  ;;  %v5431_v62 = vld [vmem:[%s6590_s1 + $0x5a0] sm:$0xff] }
  0xbd   : > { %2384 = vst [vmem:[#allocation1 + $0x2] ss:$4 sm:$0xff] %v4714_v1  ;;  %v5434_v1 = vld [vmem:[%s6590_s1 + $0x5b8] sm:$0xff]  ;;  %3059 = vmatpush.bf16.msra.mxu3 %v5404_v63  ;;  %v2624_v19 = vrot.slane %v2623_v4, 2  ;;  %3258 = vmatpush.bf16.msrb.mxu1 %v5423_v13  ;;  %v2817_v49 = vrot.slane %v2815_v30, 7 }
  0xbe   : > { %2387 = vst [vmem:[#allocation1 + $0x3] ss:$4 sm:$0xff] %v4715_v2  ;;  %v2598_v2 = vrot.slane %v2597_v47, 2  ;;  %3437 = vmatpush.bf16.msrb.mxu2 %v5434_v1  ;;  %3158 = vmatpush.bf16.msrb.mxu0 %v5414_v6  ;;  %v2778_v36 = vrot.slane %v2776_v17, 7  ;;  %v2772_v47 = vrot.slane %v2770_v33, 2  ;;  %v5441_v1 = vld [vmem:[%s6590_s1 + $0x5f0] sm:$0xff] }
  0xbf   : > { %v2818_v63 = vor.u32 %v2817_v49, %v2814_v48  ;;  %v4920_v6 = vld [vmem:[%s5593_s28 + $0x34] sm:$0x6]  ;;  %v5430_v13 = vld [vmem:[%s6590_s1 + $0x598] sm:$0xff]  ;;  %v5440_v17 = vld [vmem:[%s6590_s1 + $0x5e8] sm:$0xff]  ;;  %v4931_v49 = vrot.slane %v2956_v41, 9 }
  0xc0   : > { %v2603_v34 = vsel %vm5695_vm8, %v2598_v2, %v2602_v3  ;;  %v2821_v0 = vshll.u32 %v2772_v47, 16  ;;  %v2784_v3 = vrot.slane %v2782_v52, 7  ;;  %v2927_v21 = vrot.slane %v4920_v6, 2  ;;  %v5429_v33 = vld [vmem:[%s6590_s1 + $0x590] sm:$0xff]  ;;  %v5138_v41 = vld [vmem:[%s5593_s28 + $0x28] sm:$0x7] }
  0xc1   : > { %3060 = vmatpush.bf16.msra.mxu3 %v5403_v11  ;;  %3259 = vmatpush.bf16.msrb.mxu1 %v5422_v53  ;;  %v5420_v11 = vld [vmem:[%s6590_s1 + $0x548] sm:$0xff]  ;;  %v2819_v14 = vrot.slane %v2818_v63, 2  ;;  %v5086_v63 = vld [vmem:[%s5593_s28 + $0x10] sm:$0x7] }
  0xc2   : > { %3438 = vmatpush.bf16.msrb.mxu2 %v5433_v18  ;;  %3159 = vmatpush.bf16.msrb.mxu0 %v5413_v45  ;;  %v2823_v15 = vrot.slane %v2821_v0, 7  ;;  %v2933_v31 = vsel %vm403_vm0, %v4920_v6, %v2927_v21  ;;  %v2935_v30 = vsel %vm407_vm2, %v4920_v6, %v2927_v21  ;;  %v4981_v6 = vld [vmem:[%s5593_s28 + $0xc] sm:$0x3] }
  0xc3   : > { %v4924_v42 = vrot.slane %v2933_v31, 9  ;;  %v4925_v43 = vrot.slane %v2935_v30, 9 }
  0xc4   : > { %v2824_v29 = vsel %vm5695_vm8, %v2819_v14, %v2823_v15 }
  0xc5   : > { %v2388_v56 = vld.sshfl [vmem:[#allocation1] sm:$0xff pattern:$0x73625140]  ;;  %3260 = vmatpush.bf16.msrb.mxu1 %v5421_v61 }
  0xc6   : > { %2446 = vmatmul.bf16.vlgmr.msrb.gmra.mxu3 %v2388_v56  ;;  %2479 = vst [vmem:[#allocation1] ss:$4 sm:$0xff] %v4764_v35  ;;  %v2775_v35 = vrot.slane %v2773_v16, 6  ;;  %3439 = vmatpush.bf16.msrb.mxu2 %v5432_v54  ;;  %v4922_v16 = vld [vmem:[%s5593_s28 + $0x3c] sm:$0x6]  ;;  %v5447_v61 = vld [vmem:[%s6590_s1 + $0x620] sm:$0xff] }
  0xc7   : > { %2482 = vst [vmem:[#allocation1 + $0x1] ss:$4 sm:$0xff] %v4765_v40  ;;  %v2791_v40 = vrot.slane %v2789_v23, 7  ;;  %3619 = vmatpush.bf16.msrb.mxu3 %v5442_v55  ;;  %3160 = vmatpush.bf16.msrb.mxu0 %v5412_v58  ;;  %v2929_v27 = vrot.slane %v4922_v16, 2  ;;  %v5428_v55 = vld [vmem:[%s6590_s1 + $0x588] sm:$0xff] }
  0xc8   : > { %2485 = vst [vmem:[#allocation1 + $0x2] ss:$4 sm:$0xff] %v4766_v46  ;;  %v2629_v46 = vsel %vm5695_vm8, %v2624_v19, %v2628_v8  ;;  %v2806_v8 = vrot.slane %v2805_v59, 2  ;;  %v2928_v19 = vrot.slane %v4921_v10, 2  ;;  %v5084_v58 = vld [vmem:[%s5593_s28 + $0x8] sm:$0x7] }
  0xc9   : > { %2488 = vst [vmem:[#allocation1 + $0x3] ss:$4 sm:$0xff] %v4767_v51  ;;  %v2779_v51 = vor.u32 %v2778_v36, %v2775_v35  ;;  %v2792_v56 = vor.u32 %v2791_v40, %v2788_v38  ;;  %3261 = vmatpush.bf16.msrb.mxu1 %v5420_v11  ;;  %v5439_v35 = vld [vmem:[%s6590_s1 + $0x5e0] sm:$0xff]  ;;  %v2947_v38 = vsel %vm403_vm0, %v4922_v16, %v2929_v27  ;;  %v3279_v0 = vrot.slane %v5084_v58, 2 }
  0xca   : > { %3440 = vmatpush.bf16.msrb.mxu2 %v5431_v62  ;;  %v2811_v26 = vsel %vm5695_vm8, %v2806_v8, %v2810_v9  ;;  %v2940_v36 = vsel %vm403_vm0, %v4921_v10, %v2928_v19  ;;  %v2949_v40 = vsel %vm407_vm2, %v4922_v16, %v2929_v27  ;;  %v5427_v59 = vld [vmem:[%s6590_s1 + $0x580] sm:$0xff]  ;;  %v5085_v62 = vld [vmem:[%s5593_s28 + $0xc] sm:$0x7]  ;;  %v4983_v9 = vld [vmem:[%s5593_s28 + $0x14] sm:$0x3] }
  0xcb   : > { %v2780_v2 = vrot.slane %v2779_v51, 2  ;;  %v2793_v4 = vrot.slane %v2792_v56, 2  ;;  %3620 = vmatpush.bf16.msrb.mxu3 %v5441_v1  ;;  %3161 = vmatpush.bf16.msrb.mxu0 %v5411_v7  ;;  %v4926_v45 = vrot.slane %v2940_v36, 9  ;;  %v4929_v47 = vrot.slane %v2949_v40, 9  ;;  %v5438_v56 = vld [vmem:[%s6590_s1 + $0x5d8] sm:$0xff]  ;;  %v5436_v16 = vld [vmem:[%s6590_s1 + $0x5c8] sm:$0xff] }
  0xcc   : > { %v3280_v1 = vrot.slane %v5085_v62, 2  ;;  %v4982_v7 = vld [vmem:[%s5593_s28 + $0x10] sm:$0x3] }
  0xcd   : > { %v2785_v18 = vsel %vm5695_vm8, %v2780_v2, %v2784_v3  ;;  %v2798_v23 = vsel %vm5695_vm8, %v2793_v4, %v2797_v5  ;;  %3262 = vmatpush.bf16.msrb.mxu1 %v5419_v32  ;;  %v5087_v2 = vld [vmem:[%s5593_s28 + $0x14] sm:$0x7]  ;;  %v3281_v3 = vrot.slane %v5086_v63, 2  ;;  %v4980_v4 = vld [vmem:[%s5593_s28 + $0x8] sm:$0x3]  ;;  %v3285_v5 = vsel %vm403_vm0, %v5084_v58, %v3279_v0 }
  0xce   : > { %3441 = vmatpush.bf16.msrb.mxu2 %v5430_v13  ;;  %v3291_v11 = vsel %vm403_vm0, %v5085_v62, %v3280_v1  ;;  %v3307_v14 = vshrl.u32 %v3285_v5, 16  ;;  %v3310_v15 = vshll.u32 %v3285_v5, 16  ;;  %v5136_v32 = vld [vmem:[%s5593_s28 + $0x20] sm:$0x7] }
  0xcf   : > { %3621 = vmatpush.bf16.msrb.mxu3 %v5440_v17  ;;  %v3297_v13 = vsel %vm403_vm0, %v5086_v63, %v3281_v3  ;;  %v5446_v17 = vld [vmem:[%s6590_s1 + $0x618] sm:$0xff]  ;;  %v3298_v21 = vsel %vm407_vm2, %v5086_v63, %v3281_v3 }
  0xd0   : > { %v2489_v44 = vld.sshfl [vmem:[#allocation1] sm:$0xff pattern:$0x73625140]  ;;  %v3333_v27 = vshrl.u32 %v3297_v13, 16  ;;  %v3309_v31 = vrot.slane %v3307_v14, 6  ;;  %v3312_v30 = vrot.slane %v3310_v15, 7 }
  0xd1   : > { %2547 = vmatmul.bf16.vlgmr.msra.gmra.mxu0 %v2489_v44  ;;  %2661 = vst [vmem:[#allocation1] ss:$4 sm:$0xff] %v2603_v34  ;;  %v2942_v34 = vsel %vm407_vm2, %v4921_v10, %v2928_v19  ;;  %v3282_v10 = vrot.slane %v5087_v2, 2  ;;  %v5445_v19 = vld [vmem:[%s6590_s1 + $0x610] sm:$0xff] }
  0xd2   : > { %2664 = vst [vmem:[#allocation1 + $0x1] ss:$4 sm:$0xff] %v2616_v39  ;;  %3769 = vmatpush.bf16.msra.mxu0 %v5450_v22  ;;  %3442 = vmatpush.bf16.msrb.mxu2 %v5429_v33  ;;  %v2954_v39 = vsel %vm403_vm0, %v4923_v20, %v2930_v28  ;;  %v4927_v44 = vrot.slane %v2942_v34, 9  ;;  %v3292_v20 = vsel %vm407_vm2, %v5085_v62, %v3280_v1  ;;  %v3320_v22 = vshrl.u32 %v3291_v11, 16  ;;  %v5137_v34 = vld [vmem:[%s5593_s28 + $0x24] sm:$0x7] }
  0xd3   : > { %2667 = vst [vmem:[#allocation1 + $0x2] ss:$4 sm:$0xff] %v2629_v46  ;;  %3622 = vmatpush.bf16.msrb.mxu3 %v5439_v35  ;;  %v4928_v46 = vrot.slane %v2947_v38, 9  ;;  %v4930_v48 = vrot.slane %v2954_v39, 9  ;;  %v3294_v33 = vrot.slane %v3292_v20, 2  ;;  %v3300_v35 = vrot.slane %v3298_v21, 2 }
  0xd4   : > { %2670 = vst [vmem:[#allocation1 + $0x3] ss:$4 sm:$0xff] %v2642_v50  ;;  %v2962_v50 = vsel %vm5806_vm15, %v4924_v42, %v4925_v43  ;;  %v2966_v51 = vsel %vm5806_vm15, %v4926_v45, %v4927_v44  ;;  %v3304_v36 = vsel %vm407_vm2, %v5087_v2, %v3282_v10  ;;  %v3322_v38 = vrot.slane %v3320_v22, 6  ;;  %v5139_v44 = vld [vmem:[%s5593_s28 + $0x2c] sm:$0x7] }
  0xd5   : > { %v2970_v53 = vsel %vm5806_vm15, %v4928_v46, %v4929_v47  ;;  %v2974_v54 = vsel %vm5806_vm15, %v4930_v48, %v4931_v49  ;;  %v3335_v43 = vrot.slane %v3333_v27, 6  ;;  %v3461_v46 = vrot.slane %v5136_v32, 2  ;;  %v5033_v47 = vld [vmem:[%s5593_s28 + $0x24] sm:$0x3] }
  0xd6   : > { %3770 = vmatpush.bf16.msra.mxu0 %v5449_v37  ;;  %3443 = vmatpush.bf16.msrb.mxu2 %v5428_v55  ;;  %v5032_v37 = vld [vmem:[%s5593_s28 + $0x20] sm:$0x3]  ;;  %v3306_v48 = vrot.slane %v3304_v36, 2  ;;  %v3313_v49 = vor.u32 %v3312_v30, %v3309_v31  ;;  %v3463_v55 = vrot.slane %v5138_v41, 2 }
  0xd7   : > { %3623 = vmatpush.bf16.msrb.mxu3 %v5438_v56  ;;  %v3467_v63 = vsel %vm403_vm0, %v5136_v32, %v3461_v46 }
  0xd8   : > { %v3314_v1 = vrot.slane %v3313_v49, 2  ;;  %v3355_v3 = vshll.u32 %v3306_v48, 16  ;;  %v3492_v14 = vshll.u32 %v3467_v63, 16 }
  0xda   : > { %3771 = vmatpush.bf16.msra.mxu0 %v5448_v57  ;;  %3444 = vmatpush.bf16.msrb.mxu2 %v5427_v59  ;;  %v3464_v59 = vrot.slane %v5139_v44, 2  ;;  %v3357_v20 = vrot.slane %v3355_v3, 7  ;;  %v3494_v30 = vrot.slane %v3492_v14, 7 }
  0xdb   : > { %v2671_v24 = vld.sshfl [vmem:[#allocation1] sm:$0xff pattern:$0x73625140]  ;;  %3624 = vmatpush.bf16.msrb.mxu3 %v5437_v60  ;;  %v5035_v60 = vld [vmem:[%s5593_s28 + $0x2c] sm:$0x3] }
  0xdc   : > { %2729 = vmatmul.bf16.vlgmr.msra.gmra.mxu1 %v2671_v24  ;;  %2843 = vst [vmem:[#allocation1] ss:$4 sm:$0xff] %v2785_v18  ;;  %v3286_v18 = vsel %vm407_vm2, %v5084_v58, %v3279_v0  ;;  %v3303_v24 = vsel %vm403_vm0, %v5087_v2, %v3282_v10  ;;  %v5444_v0 = vld [vmem:[%s6590_s1 + $0x608] sm:$0xff] }
  0xdd   : > { %2846 = vst [vmem:[#allocation1 + $0x1] ss:$4 sm:$0xff] %v2798_v23  ;;  %v5435_v23 = vld [vmem:[%s6590_s1 + $0x5c0] sm:$0xff]  ;;  %v3288_v28 = vrot.slane %v3286_v18, 2  ;;  %v3346_v40 = vshrl.u32 %v3303_v24, 16  ;;  %v3349_v39 = vshll.u32 %v3303_v24, 16  ;;  %v3480_v24 = vsel %vm407_vm2, %v5138_v41, %v3463_v55 }
  0xde   : > { %2849 = vst [vmem:[#allocation1 + $0x2] ss:$4 sm:$0xff] %v2811_v26  ;;  %3772 = vmatpush.bf16.msra.mxu0 %v5447_v61  ;;  %v3323_v26 = vshll.u32 %v3291_v11, 16  ;;  %v3485_v11 = vsel %vm403_vm0, %v5139_v44, %v3464_v59 }
  0xdf   : > { %2852 = vst [vmem:[#allocation1 + $0x3] ss:$4 sm:$0xff] %v2824_v29  ;;  %3625 = vmatpush.bf16.msrb.mxu3 %v5436_v16  ;;  %v3336_v29 = vshll.u32 %v3297_v13, 16  ;;  %v3348_v57 = vrot.slane %v3346_v40, 6  ;;  %v3351_v58 = vrot.slane %v3349_v39, 7  ;;  %v3489_v13 = vshrl.u32 %v3467_v63, 16 }
  0xe0   : > { %v3325_v42 = vrot.slane %v3323_v26, 7  ;;  %v3528_v26 = vshrl.u32 %v3485_v11, 16  ;;  %v3531_v27 = vshll.u32 %v3485_v11, 16 }
  0xe1   : > { %v3338_v45 = vrot.slane %v3336_v29, 7  ;;  %v3352_v10 = vor.u32 %v3351_v58, %v3348_v57  ;;  %v3491_v31 = vrot.slane %v3489_v13, 6  ;;  %v5188_v58 = vld [vmem:[%s5593_s28 + $0x8] sm:$0x6] }
  0xe2   : > { %3773 = vmatpush.bf16.msra.mxu0 %v5446_v17  ;;  %v3326_v61 = vor.u32 %v3325_v42, %v3322_v38  ;;  %v3643_v3 = vrot.slane %v5188_v58, 2 }
  0xe3   : > { %3626 = vmatpush.bf16.msrb.mxu3 %v5435_v23  ;;  %v3339_v62 = vor.u32 %v3338_v45, %v3335_v43  ;;  %v3353_v29 = vrot.slane %v3352_v10, 2  ;;  %v3530_v43 = vrot.slane %v3528_v26, 6  ;;  %v3533_v45 = vrot.slane %v3531_v27, 7 }
  0xe4   : > { %v3327_v15 = vrot.slane %v3326_v61, 2  ;;  %v5189_v61 = vld [vmem:[%s5593_s28 + $0xc] sm:$0x6]  ;;  %v3649_v11 = vsel %vm403_vm0, %v5188_v58, %v3643_v3  ;;  %v3651_v13 = vsel %vm407_vm2, %v5188_v58, %v3643_v3 }
  0xe5   : > { %v3340_v16 = vrot.slane %v3339_v62, 2 }
  0xe6   : > { %v2853_v52 = vld.sshfl [vmem:[#allocation1] sm:$0xff pattern:$0x73625140]  ;;  %3774 = vmatpush.bf16.msra.mxu0 %v5445_v19 }
  0xe7   : > { %2911 = vmatmul.bf16.vlgmr.msra.gmra.mxu2 %v2853_v52  ;;  %2993 = vst [vmem:[#allocation1] ss:$4 sm:$0xff] %v2962_v50  ;;  %v3316_v50 = vshll.u32 %v3288_v28, 16  ;;  %v5034_v52 = vld [vmem:[%s5593_s28 + $0x28] sm:$0x3]  ;;  %v3486_v28 = vsel %vm407_vm2, %v5139_v44, %v3464_v59  ;;  %v3358_v44 = vsel %vm5695_vm8, %v3353_v29, %v3357_v20  ;;  %v5192_v20 = vrot.slane %v3649_v11, 9 }
  0xe8   : > { %2996 = vst [vmem:[#allocation1 + $0x1] ss:$4 sm:$0xff] %v2966_v51  ;;  %v3462_v51 = vrot.slane %v5137_v34, 2  ;;  %v3488_v42 = vrot.slane %v3486_v28, 2 }
  0xe9   : > { %2999 = vst [vmem:[#allocation1 + $0x2] ss:$4 sm:$0xff] %v2970_v53  ;;  %v3329_v53 = vshll.u32 %v3294_v33, 16  ;;  %v3318_v2 = vrot.slane %v3316_v50, 7 }
  0xea   : > { %3002 = vst [vmem:[#allocation1 + $0x3] ss:$4 sm:$0xff] %v2974_v54  ;;  %v3342_v54 = vshll.u32 %v3300_v35, 16  ;;  %3775 = vmatpush.bf16.msra.mxu0 %v5444_v0  ;;  %v3474_v21 = vsel %vm407_vm2, %v5137_v34, %v3462_v51  ;;  %v5190_v0 = vld [vmem:[%s5593_s28 + $0x10] sm:$0x6] }
  0xeb   : > { %v3331_v5 = vrot.slane %v3329_v53, 7  ;;  %v3476_v33 = vrot.slane %v3474_v21, 2  ;;  %v3537_v53 = vshll.u32 %v3488_v42, 16  ;;  %v5193_v21 = vrot.slane %v3651_v13, 9 }
  0xed   : > { %v3511_v49 = vshll.u32 %v3476_v33, 16  ;;  %v3539_v63 = vrot.slane %v3537_v53, 7  ;;  %v3678_v29 = vsel %vm5806_vm15, %v5192_v20, %v5193_v21 }
  0xef   : > { %v3513_v57 = vrot.slane %v3511_v49, 7 }
  0xf1   : > { %v3003_v8 = vld.sshfl [vmem:[#allocation1] sm:$0xff pattern:$0x73625140] }
  0xf2   : > { %3061 = vmatmul.bf16.vlgmr.msra.gmra.mxu3 %v3003_v8  ;;  %3094 = vst [vmem:[#allocation1] ss:$4 sm:$0xff] %v4980_v4  ;;  %v3473_v4 = vsel %vm403_vm0, %v5137_v34, %v3462_v51  ;;  %v3479_v8 = vsel %vm403_vm0, %v5138_v41, %v3463_v55  ;;  %v3332_v34 = vsel %vm5695_vm8, %v3327_v15, %v3331_v5  ;;  %v3644_v5 = vrot.slane %v5189_v61, 2 }
  0xf3   : > { %3097 = vst [vmem:[#allocation1 + $0x1] ss:$4 sm:$0xff] %v4981_v6  ;;  %v3344_v6 = vrot.slane %v3342_v54, 7  ;;  %v3502_v17 = vshrl.u32 %v3473_v4, 16  ;;  %v3505_v18 = vshll.u32 %v3473_v4, 16  ;;  %v3515_v22 = vshrl.u32 %v3479_v8, 16 }
  0xf4   : > { %3100 = vst [vmem:[#allocation1 + $0x2] ss:$4 sm:$0xff] %v4982_v7  ;;  %v3468_v7 = vsel %vm407_vm2, %v5136_v32, %v3461_v46  ;;  %v3518_v23 = vshll.u32 %v3479_v8, 16  ;;  %v3319_v32 = vsel %vm5695_vm8, %v3314_v1, %v3318_v2  ;;  %v3495_v46 = vor.u32 %v3494_v30, %v3491_v31  ;;  %v5191_v2 = vld [vmem:[%s5593_s28 + $0x14] sm:$0x6] }
  0xf5   : > { %3103 = vst [vmem:[#allocation1 + $0x3] ss:$4 sm:$0xff] %v4983_v9  ;;  %v5443_v9 = vld [vmem:[%s6590_s1 + $0x600] sm:$0xff]  ;;  %v3470_v19 = vrot.slane %v3468_v7, 2  ;;  %v3504_v35 = vrot.slane %v3502_v17, 6  ;;  %v3507_v36 = vrot.slane %v3505_v18, 7  ;;  %v3345_v41 = vsel %vm5695_vm8, %v3340_v16, %v3344_v6 }
  0xf6   : > { %3776 = vmatpush.bf16.msra.mxu0 %v5443_v9  ;;  %v3517_v38 = vrot.slane %v3515_v22, 6  ;;  %v3520_v40 = vrot.slane %v3518_v23, 7  ;;  %v3496_v54 = vrot.slane %v3495_v46, 2  ;;  %v3645_v8 = vrot.slane %v5190_v0, 2 }
  0xf7   : > { %v3508_v48 = vor.u32 %v3507_v36, %v3504_v35  ;;  %v3646_v10 = vrot.slane %v5191_v2, 2  ;;  %v3656_v14 = vsel %vm403_vm0, %v5189_v61, %v3644_v5  ;;  %v3658_v15 = vsel %vm407_vm2, %v5189_v61, %v3644_v5  ;;  %v311_v35 = vpop.f32.mrf.mxu0  ;;  %v386_v36 = vpop.f32.mrf.mxu1 }
  0xf8   : > { %v3521_v50 = vor.u32 %v3520_v40, %v3517_v38  ;;  %v3663_v16 = vsel %vm403_vm0, %v5190_v0, %v3645_v8  ;;  %v3665_v17 = vsel %vm407_vm2, %v5190_v0, %v3645_v8  ;;  %v5194_v22 = vrot.slane %v3656_v14, 9  ;;  %v757_v38 = vpop.f32.mrf.mxu3 }
  0xf9   : > { %v3670_v25 = vsel %vm403_vm0, %v5191_v2, %v3646_v10  ;;  %v3672_v18 = vsel %vm407_vm2, %v5191_v2, %v3646_v10  ;;  %v5195_v23 = vrot.slane %v3658_v15, 9 }
  0xfa   : > { %v3522_v59 = vrot.slane %v3521_v50, 2  ;;  %v5198_v26 = vrot.slane %v3670_v25, 9  ;;  %v5199_v27 = vrot.slane %v3672_v18, 9 }
  0xfb   : > { %v3682_v28 = vsel %vm5806_vm15, %v5194_v22, %v5195_v23 }
  0xfc   : > { %v3104_v56 = vld.sshfl [vmem:[#allocation1] sm:$0xff pattern:$0x73625140] }
  0xfd   : > { %3162 = vmatmul.bf16.vlgmr.msrb.gmra.mxu0 %v3104_v56  ;;  %3195 = vst [vmem:[#allocation1] ss:$4 sm:$0xff] %v5032_v37  ;;  %v3482_v37 = vrot.slane %v3480_v24, 2  ;;  %v3509_v56 = vrot.slane %v3508_v48, 2  ;;  %v5197_v24 = vrot.slane %v3665_v17, 9 }
  0xfe   : > { %3198 = vst [vmem:[#allocation1 + $0x1] ss:$4 sm:$0xff] %v5033_v47  ;;  %v3498_v47 = vshll.u32 %v3470_v19, 16  ;;  %v5196_v19 = vrot.slane %v3663_v16, 9 }
  0xff   : > { %3201 = vst [vmem:[#allocation1 + $0x2] ss:$4 sm:$0xff] %v5034_v52  ;;  %v3524_v51 = vshll.u32 %v3482_v37, 16  ;;  %v3534_v52 = vor.u32 %v3533_v45, %v3530_v43  ;;  %v3514_v4 = vsel %vm5695_vm8, %v3509_v56, %v3513_v57  ;;  %v313_v37 = vpop.f32.mrf.mxu0  ;;  %v388_v40 = vpop.f32.mrf.mxu1 }
 0x100   : > { %3204 = vst [vmem:[#allocation1 + $0x3] ss:$4 sm:$0xff] %v5035_v60  ;;  %v3500_v55 = vrot.slane %v3498_v47, 7  ;;  %v3686_v30 = vsel %vm5806_vm15, %v5196_v19, %v5197_v24  ;;  %v759_v42 = vpop.f32.mrf.mxu3 }
 0x101   : > { %v3526_v60 = vrot.slane %v3524_v51, 7  ;;  %v3535_v62 = vrot.slane %v3534_v52, 2  ;;  %v387_v52 = vadd.f32 %v386_v36, %v311_v35 }
 0x102   : > { %v3501_v1 = vsel %vm5695_vm8, %v3496_v54, %v3500_v55 }
 0x103   : > { %v3527_v7 = vsel %vm5695_vm8, %v3522_v59, %v3526_v60  ;;  %v3540_v9 = vsel %vm5695_vm8, %v3535_v62, %v3539_v63  ;;  %v389_v60 = vadd.f32 %v388_v40, %v313_v37 }
 0x107   : > { %v3205_v39 = vld.sshfl [vmem:[#allocation1] sm:$0xff pattern:$0x73625140]  ;;  %v1015_v43 = vpop.f32.mrf.mxu1 }
 0x108   : > { %3263 = vmatmul.bf16.vlgmr.msrb.gmra.mxu1 %v3205_v39  ;;  %3377 = vst [vmem:[#allocation1] ss:$4 sm:$0xff] %v3319_v32  ;;  %v3690_v32 = vsel %vm5806_vm15, %v5198_v26, %v5199_v27  ;;  %v1298_v12 = vpop.f32.mrf.mxu3 }
 0x109   : > { %3380 = vst [vmem:[#allocation1 + $0x1] ss:$4 sm:$0xff] %v3332_v34  ;;  %v575_v34 = vpop.f32.mrf.mxu2 }
 0x10a   : > { %3383 = vst [vmem:[#allocation1 + $0x2] ss:$4 sm:$0xff] %v3345_v41  ;;  %v914_v41 = vpop.f32.mrf.mxu0  ;;  %v580_v54 = vadd.f32 %v575_v34, %v387_v52 }
 0x10b   : > { %3386 = vst [vmem:[#allocation1 + $0x3] ss:$4 sm:$0xff] %v3358_v44 }
 0x10c   : > { %v762_v57 = vadd.f32 %v757_v38, %v580_v54 }
 0x10e   : > { %v919_v61 = vadd.f32 %v914_v41, %v762_v57 }
 0x10f   : > { %v1017_v46 = vpop.f32.mrf.mxu1 }
 0x110   : > { %v1300_v49 = vpop.f32.mrf.mxu3 }
 0x111   : > { %v577_v39 = vpop.f32.mrf.mxu2 }
 0x112   : > { %v3387_v6 = vld.sshfl [vmem:[#allocation1] sm:$0xff pattern:$0x73625140]  ;;  %v916_v44 = vpop.f32.mrf.mxu0  ;;  %v581_v0 = vadd.f32 %v577_v39, %v389_v60 }
 0x113   : > { %3445 = vmatmul.bf16.vlgmr.msrb.gmra.mxu2 %v3387_v6  ;;  %3559 = vst [vmem:[#allocation1] ss:$4 sm:$0xff] %v3501_v1  ;;  %v1020_v1 = vadd.f32 %v1015_v43, %v919_v61 }
 0x114   : > { %3562 = vst [vmem:[#allocation1 + $0x1] ss:$4 sm:$0xff] %v3514_v4  ;;  %v763_v4 = vadd.f32 %v759_v42, %v581_v0 }
 0x115   : > { %3565 = vst [vmem:[#allocation1 + $0x2] ss:$4 sm:$0xff] %v3527_v7 }
 0x116   : > { %3568 = vst [vmem:[#allocation1 + $0x3] ss:$4 sm:$0xff] %v3540_v9  ;;  %v920_v6 = vadd.f32 %v916_v44, %v763_v4 }
 0x117   : > { %v1630_v50 = vpop.f32.mrf.mxu1 }
 0x118   : > { %v1021_v11 = vadd.f32 %v1017_v46, %v920_v6 }
 0x119   : > { %v1116_v45 = vpop.f32.mrf.mxu2 }
 0x11a   : > { %v1480_v48 = vpop.f32.mrf.mxu0  ;;  %v1121_v5 = vadd.f32 %v1116_v45, %v1020_v1 }
 0x11c   : > { %v1303_v7 = vadd.f32 %v1298_v12, %v1121_v5 }
 0x11d   : > { %v3569_v31 = vld.sshfl [vmem:[#allocation1] sm:$0xff pattern:$0x73625140]  ;;  %v1832_v55 = vpop.f32.mrf.mxu3 }
 0x11e   : > { %3627 = vmatmul.bf16.vlgmr.msrb.gmra.mxu3 %v3569_v31  ;;  %3709 = vst [vmem:[#allocation1] ss:$4 sm:$0xff] %v3678_v29  ;;  %v1485_v9 = vadd.f32 %v1480_v48, %v1303_v7 }
 0x11f   : > { %3712 = vst [vmem:[#allocation1 + $0x1] ss:$4 sm:$0xff] %v3682_v28  ;;  %v1632_v56 = vpop.f32.mrf.mxu1 }
 0x120   : > { %3715 = vst [vmem:[#allocation1 + $0x2] ss:$4 sm:$0xff] %v3686_v30  ;;  %v1635_v16 = vadd.f32 %v1630_v50, %v1485_v9 }
 0x121   : > { %3718 = vst [vmem:[#allocation1 + $0x3] ss:$4 sm:$0xff] %v3690_v32  ;;  %v1118_v47 = vpop.f32.mrf.mxu2 }
 0x122   : > { %v1482_v53 = vpop.f32.mrf.mxu0  ;;  %v1122_v15 = vadd.f32 %v1118_v47, %v1021_v11 }
 0x124   : > { %v1304_v17 = vadd.f32 %v1300_v49, %v1122_v15 }
 0x125   : > { %v1834_v62 = vpop.f32.mrf.mxu3 }
 0x126   : > { %v1486_v18 = vadd.f32 %v1482_v53, %v1304_v17 }
 0x128   : > { %v3719_v33 = vld.sshfl [vmem:[#allocation1] sm:$0xff pattern:$0x73625140]  ;;  %v1636_v24 = vadd.f32 %v1632_v56, %v1486_v18 }
 0x129   : > { %3777 = vmatmul.bf16.vlgmr.msra.gmra.mxu0 %v3719_v33  ;;  %v1731_v51 = vpop.f32.mrf.mxu2 }
 0x12a   : > { %v2014_v59 = vpop.f32.mrf.mxu0  ;;  %v1736_v25 = vadd.f32 %v1731_v51, %v1635_v16 }
 0x12c   : > { %v1837_v20 = vadd.f32 %v1832_v55, %v1736_v25 }
 0x12d   : > { %v2196_v63 = vpop.f32.mrf.mxu1 }
 0x12e   : > { %v2019_v23 = vadd.f32 %v2014_v59, %v1837_v20 }
 0x130   : > { %v2201_v29 = vadd.f32 %v2196_v63, %v2019_v23 }
 0x131   : > { %v1733_v58 = vpop.f32.mrf.mxu2 }
 0x132   : > { %v2016_v3 = vpop.f32.mrf.mxu0  ;;  %v1737_v27 = vadd.f32 %v1733_v58, %v1636_v24  ;;  %v5476_v58 = vld [vmem:[%s6591_s2] ss:$0 sm:$0xff] }
 0x134   : > { %v1838_v28 = vadd.f32 %v1834_v62, %v1737_v27 }
 0x135   : > { %v2198_v10 = vpop.f32.mrf.mxu1 }
 0x136   : > { %v2020_v32 = vadd.f32 %v2016_v3, %v1838_v28 }
 0x138   : > { %v2202_v38 = vadd.f32 %v2198_v10, %v2020_v32 }
 0x13e   : > { %v2346_v2 = vpop.f32.mrf.mxu2 }
 0x13f   : > { %v2351_v31 = vadd.f32 %v2346_v2, %v2201_v29 }
 0x146   : > { %v2348_v13 = vpop.f32.mrf.mxu2 }
 0x147   : > { %v2352_v40 = vadd.f32 %v2348_v13, %v2202_v38 }
 0x149   : > { %v2447_v8 = vpop.f32.mrf.mxu3 }
 0x14a   : > { %v2452_v33 = vadd.f32 %v2447_v8, %v2351_v31 }
 0x14e   : > { %v2548_v14 = vpop.f32.mrf.mxu0 }
 0x14f   : > { %v2553_v36 = vadd.f32 %v2548_v14, %v2452_v33 }
 0x151   : > { %v2449_v21 = vpop.f32.mrf.mxu3 }
 0x152   : > { %v2453_v41 = vadd.f32 %v2449_v21, %v2352_v40 }
 0x156   : > { %v2550_v26 = vpop.f32.mrf.mxu0 }
 0x157   : > { %v2554_v44 = vadd.f32 %v2550_v26, %v2453_v41 }
 0x159   : > { %v2730_v22 = vpop.f32.mrf.mxu1 }
 0x15a   : > { %v2735_v39 = vadd.f32 %v2730_v22, %v2553_v36 }
 0x161   : > { %v2732_v35 = vpop.f32.mrf.mxu1 }
 0x162   : > { %v2736_v49 = vadd.f32 %v2732_v35, %v2554_v44 }
 0x16a   : > { %v2912_v19 = vpop.f32.mrf.mxu2 }
 0x16b   : > { %v2917_v42 = vadd.f32 %v2912_v19, %v2735_v39 }
 0x172   : > { %v2914_v34 = vpop.f32.mrf.mxu2 }
 0x173   : > { %v2918_v51 = vadd.f32 %v2914_v34, %v2736_v49 }
 0x175   : > { %v3062_v30 = vpop.f32.mrf.mxu3 }
 0x176   : > { %v3067_v12 = vadd.f32 %v3062_v30, %v2917_v42 }
 0x17a   : > { %v3163_v37 = vpop.f32.mrf.mxu0 }
 0x17b   : > { %v3168_v47 = vadd.f32 %v3163_v37, %v3067_v12 }
 0x17d   : > { %v3064_v43 = vpop.f32.mrf.mxu3 }
 0x17e   : > { %v3068_v54 = vadd.f32 %v3064_v43, %v2918_v51 }
 0x182   : > { %v3165_v48 = vpop.f32.mrf.mxu0 }
 0x183   : > { %v3169_v57 = vadd.f32 %v3165_v48, %v3068_v54 }
 0x185   : > { %v3264_v45 = vpop.f32.mrf.mxu1 }
 0x186   : > { %v3269_v50 = vadd.f32 %v3264_v45, %v3168_v47 }
 0x18d   : > { %v3266_v56 = vpop.f32.mrf.mxu1 }
 0x18e   : > { %v3270_v61 = vadd.f32 %v3266_v56, %v3169_v57 }
 0x196   : > { %v3446_v46 = vpop.f32.mrf.mxu2 }
 0x197   : > { %v3451_v52 = vadd.f32 %v3446_v46, %v3269_v50 }
 0x19e   : > { %v3448_v59 = vpop.f32.mrf.mxu2 }
 0x19f   : > { %v3452_v63 = vadd.f32 %v3448_v59, %v3270_v61 }
 0x1a1   : > { %v3628_v53 = vpop.f32.mrf.mxu3 }
 0x1a2   : > { %v3633_v55 = vadd.f32 %v3628_v53, %v3451_v52 }
 0x1a6   : > { %v3778_v60 = vpop.f32.mrf.mxu0 }
 0x1a7   : > { %v3783_v62 = vadd.f32 %v3778_v60, %v3633_v55 }
 0x1a9   : > { %v3789_v0 = vadd.f32 %v5476_v58, %v3783_v62  ;;  %v3630_v1 = vpop.f32.mrf.mxu3 }
 0x1aa   : > { %v3634_v3 = vadd.f32 %v3630_v1, %v3452_v63 }
 0x1ab   : > { %v3791_v2 = vmul.f32 0.2, %v3789_v0 }
 0x1ad   : > { %v3793_v4 = vmax.f32 %v3789_v0, %v3791_v2 }
 0x1ae   : > { %v3780_v5 = vpop.f32.mrf.mxu0 }
 0x1af   : > { %v3797_v6 = vrot.slane %v3793_v4, 4  ;;  %v3801_v7 = vpack.c.bf16 %v3793_v4, %v3793_v4  ;;  %v3784_v8 = vadd.f32 %v3780_v5, %v3634_v3 }
 0x1b1   : > { %v3802_v9 = vpack.c.bf16 %v3797_v6, %v3797_v6  ;;  %3805 = vst [vmem:[%s192_s26] sm:$0x3] %v3801_v7  ;;  %v3790_v10 = vadd.f32 %v5476_v58, %v3784_v8 }
 0x1b3   : > { %3806 = vst [vmem:[%s192_s26 + $0x2] sm:$0x3] %v3802_v9  ;;  %v3792_v11 = vmul.f32 0.2, %v3790_v10 }
 0x1b5   : > { %v3794_v13 = vmax.f32 %v3790_v10, %v3792_v11 }
 0x1b7   : > { %v3798_v14 = vrot.slane %v3794_v13, 4  ;;  %v3803_v15 = vpack.c.bf16 %v3794_v13, %v3794_v13 }
 0x1b9   : > { %v3804_v16 = vpack.c.bf16 %v3798_v14, %v3798_v14  ;;  %3807 = vst [vmem:[%s192_s26 + $0x4] sm:$0x3] %v3803_v15 }
 0x1bb   : > { %3808 = vst [vmem:[%s192_s26 + $0x6] sm:$0x3] %v3804_v16 }
 0x1bc PF: > { %s13_s14 = sadd.s32 1, %s5499_s14   ;;  %s6601_s12 = smov %s5495_s13 }
 0x1bd   : > { %p10_p5 = scmp.ge.s32.totalorder %s13_s14, 4   ;;  %s6602_s13 = smov %s6604_s15 }
 0x1bf   :  { %12 = sbr.rel (!%p10_p5) target bundleno = 2 (0x2), region = 171 }

// kernel: patch_discriminator.8
= control target key start
LH: loop header
LB: loop body
LE: loop exit
PB: predicated region body
PF: predicated region fallthrough
CT: control target
= control target key end

     0   :  { %s3882_s12 = smov 0   ;;  %s3884_s13 = smov 0   ;;  %s4587_s0 = inlined_call_operand.vmem [shape: bf16[2,4,3,3,128], index: 0, kind: input, shape index: {}]   ;;  %s4588_s1 = inlined_call_operand.vmem [shape: bf16[25,128,128], index: 1, kind: input, shape index: {}]   ;;  %s4589_s2 = inlined_call_operand.vmem [shape: f32[1,128], index: 2, kind: input, shape index: {}]   ;;  %s4590_s3 = inlined_call_operand.vmem [shape: bf16[2,1,1,128], index: 3, kind: output, shape index: {}]  }
   0x1   :  { %s3886_s14 = smov 0  }
   0x2 LB: > { %s25_s15 = sadd.s32 1, %s3856_s13  ;;  %p2407_p0 = scmp.ge.s32.totalorder %s3860_s14, 1  ;;  %s3860_s14 = sphi %s3886_s14, %s13_s14   ;;  %s3856_s13 = sphi %s3884_s13, %s4592_s13   ;;  %s3852_s12 = sphi %s3882_s12, %s4591_s12  }
   0x3   : > { %p27_p1 = scmp.ge.s32.totalorder %s25_s15, 2  ;;  %p151_p2 = scmp.lt.s32.totalorder %s3860_s14, 3 }
   0x5   : > { %s4594_s15 = smov (%p27_p1, %s25_s15), 0  ;;  %p152_p3 = pnand %p2407_p0, %p151_p2 }
   0x6   : > { %p176_p4 = scmp.lt.s32.totalorder (!%p152_p3), %s3852_s12, 1 }
   0x7   : > { %155 = sbr.rel (%p152_p3) target bundleno = 374 (0x176), region = 32 }
   0xc   : > { %v3628_v0 = vld [vmem:[%s4588_s1 + $0x78] sm:$0xff]  ;;  %v3627_v4 = vld [vmem:[%s4588_s1 + $0x70] sm:$0xff]  ;;  %s4596_s12 = smov (!%p176_p4, %s3852_s12), 1  ;;  %v3626_v8 = vld [vmem:[%s4588_s1 + $0x68] sm:$0xff]  ;;  %vm2303_vm0 = vcmask 1040384  }
   0xd   : > { %v3636_v1 = vld [vmem:[%s4588_s1 + $0xb8] sm:$0xff]  ;;  %275 = vmatpush.bf16.msra.mxu0 %v3628_v0  ;;  %v3635_v5 = vld [vmem:[%s4588_s1 + $0xb0] sm:$0xff]  ;;  %v3634_v9 = vld [vmem:[%s4588_s1 + $0xa8] sm:$0xff]  ;;  %s3813_s17 = smul.u32 24, %s4596_s12  ;;  %s186_s25 = scalar_lea.vmem %s4590_s3, %s4596_s12  ;;  %vm2304_vm1 = vsmask.f32 256 }
   0xe   : > { %v3620_v2 = vld [vmem:[%s4588_s1 + $0x38] sm:$0xff]  ;;  %420 = vmatpush.bf16.msra.mxu2 %v3636_v1  ;;  %v3619_v6 = vld [vmem:[%s4588_s1 + $0x30] sm:$0xff]  ;;  %v3618_v10 = vld [vmem:[%s4588_s1 + $0x28] sm:$0xff] }
   0xf   : > { %v3644_v3 = vld [vmem:[%s4588_s1 + $0xf8] sm:$0xff]  ;;  %336 = vmatpush.bf16.msra.mxu1 %v3620_v2  ;;  %v3643_v7 = vld [vmem:[%s4588_s1 + $0xf0] sm:$0xff]  ;;  %v3642_v11 = vld [vmem:[%s4588_s1 + $0xe8] sm:$0xff]  ;;  %s3954_s28 = scalar_lea.vmem %s4587_s0, %s3813_s17 }
  0x10   : > { %506 = vmatpush.bf16.msra.mxu3 %v3644_v3  ;;  %v3625_v12 = vld [vmem:[%s4588_s1 + $0x60] sm:$0xff]  ;;  %v3624_v16 = vld [vmem:[%s4588_s1 + $0x58] sm:$0xff]  ;;  %v3623_v21 = vld [vmem:[%s4588_s1 + $0x50] sm:$0xff] }
  0x11   : > { %276 = vmatpush.bf16.msra.mxu0 %v3627_v4  ;;  %v3633_v13 = vld [vmem:[%s4588_s1 + $0xa0] sm:$0xff]  ;;  %v3632_v17 = vld [vmem:[%s4588_s1 + $0x98] sm:$0xff]  ;;  %v3631_v22 = vld [vmem:[%s4588_s1 + $0x90] sm:$0xff] }
  0x12   : > { %421 = vmatpush.bf16.msra.mxu2 %v3635_v5  ;;  %v3617_v14 = vld [vmem:[%s4588_s1 + $0x20] sm:$0xff]  ;;  %v3616_v18 = vld [vmem:[%s4588_s1 + $0x18] sm:$0xff]  ;;  %v3615_v23 = vld [vmem:[%s4588_s1 + $0x10] sm:$0xff] }
  0x13   : > { %337 = vmatpush.bf16.msra.mxu1 %v3619_v6  ;;  %v3641_v15 = vld [vmem:[%s4588_s1 + $0xe0] sm:$0xff]  ;;  %v3640_v19 = vld [vmem:[%s4588_s1 + $0xd8] sm:$0xff]  ;;  %v3639_v24 = vld [vmem:[%s4588_s1 + $0xd0] sm:$0xff] }
  0x14   : > { %507 = vmatpush.bf16.msra.mxu3 %v3643_v7  ;;  %v189_v20 = vld [vmem:[%s3954_s28] sm:$0x1]  ;;  %v3622_v25 = vld [vmem:[%s4588_s1 + $0x48] sm:$0xff]  ;;  %v2538_v27 = vld [vmem:[%s3954_s28 + $0x6] sm:$0x1] }
  0x15   : > { %277 = vmatpush.bf16.msra.mxu0 %v3626_v8  ;;  %367 = vst [vmem:[#allocation1] ss:$4 sm:$0xff] %v189_v20  ;;  %v3630_v26 = vld [vmem:[%s4588_s1 + $0x88] sm:$0xff]  ;;  %v3621_v31 = vld [vmem:[%s4588_s1 + $0x40] sm:$0xff]  ;;  %v3652_v33 = vld [vmem:[%s4588_s1 + $0x138] sm:$0xff] }
  0x16   : > { %422 = vmatpush.bf16.msra.mxu2 %v3634_v9  ;;  %v3614_v28 = vld [vmem:[%s4588_s1 + $0x8] sm:$0xff]  ;;  %v3629_v32 = vld [vmem:[%s4588_s1 + $0x80] sm:$0xff]  ;;  %v3668_v34 = vld [vmem:[%s4588_s1 + $0x1b8] sm:$0xff] }
  0x17   : > { %338 = vmatpush.bf16.msra.mxu1 %v3618_v10  ;;  %v3638_v29 = vld [vmem:[%s4588_s1 + $0xc8] sm:$0xff]  ;;  %v3613_v35 = vld [vmem:[%s4588_s1] sm:$0xff]  ;;  %v3660_v37 = vld [vmem:[%s4588_s1 + $0x178] sm:$0xff] }
  0x18   : > { %508 = vmatpush.bf16.msra.mxu3 %v3642_v11  ;;  %v3637_v36 = vld [vmem:[%s4588_s1 + $0xc0] sm:$0xff]  ;;  %v3676_v38 = vld [vmem:[%s4588_s1 + $0x1f8] sm:$0xff]  ;;  %v3651_v41 = vld [vmem:[%s4588_s1 + $0x130] sm:$0xff] }
  0x19   : > { %278 = vmatpush.bf16.msra.mxu0 %v3625_v12  ;;  %v520_v40 = vld [vmem:[%s3954_s28] sm:$0x2]  ;;  %v3667_v42 = vld [vmem:[%s4588_s1 + $0x1b0] sm:$0xff]  ;;  %v2409_v43 = vld [vmem:[%s3954_s28 + $0x6] sm:$0x1] }
  0x1a   : > { %423 = vmatpush.bf16.msra.mxu2 %v3633_v13  ;;  %v3659_v45 = vld [vmem:[%s4588_s1 + $0x170] sm:$0xff]  ;;  %v3650_v48 = vld [vmem:[%s4588_s1 + $0x128] sm:$0xff]  ;;  %v3649_v53 = vld [vmem:[%s4588_s1 + $0x120] sm:$0xff] }
  0x1b   : > { %339 = vmatpush.bf16.msra.mxu1 %v3617_v14  ;;  %v3675_v46 = vld [vmem:[%s4588_s1 + $0x1f0] sm:$0xff]  ;;  %v3666_v49 = vld [vmem:[%s4588_s1 + $0x1a8] sm:$0xff]  ;;  %v3665_v54 = vld [vmem:[%s4588_s1 + $0x1a0] sm:$0xff] }
  0x1c   : > { %509 = vmatpush.bf16.msra.mxu3 %v3641_v15  ;;  %v368_v30 = vld.sshfl [vmem:[#allocation1] sm:$0xff pattern:$0x73625140]  ;;  %v3658_v50 = vld [vmem:[%s4588_s1 + $0x168] sm:$0xff]  ;;  %v3648_v58 = vld [vmem:[%s4588_s1 + $0x118] sm:$0xff] }
  0x1d   : > { %279 = vmatpush.bf16.msra.mxu0 %v3624_v16  ;;  %453 = vst [vmem:[#allocation1] ss:$4 sm:$0xff] %v2538_v27  ;;  %v369_v39 = vshrl.u32 %v368_v30, 16  ;;  %v3674_v51 = vld [vmem:[%s4588_s1 + $0x1e8] sm:$0xff]  ;;  %v3657_v56 = vld [vmem:[%s4588_s1 + $0x160] sm:$0xff]  ;;  %v3664_v59 = vld [vmem:[%s4588_s1 + $0x198] sm:$0xff] }
  0x1e   : > { %424 = vmatpush.bf16.msra.mxu2 %v3632_v17  ;;  %v4045_v52 = vld [vmem:[%s3954_s28 + $0xc] sm:$0x1]  ;;  %v3673_v57 = vld [vmem:[%s4588_s1 + $0x1e0] sm:$0xff]  ;;  %v3656_v60 = vld [vmem:[%s4588_s1 + $0x158] sm:$0xff] }
  0x1f   : > { %340 = vmatpush.bf16.msra.mxu1 %v3616_v18  ;;  %v3672_v61 = vld [vmem:[%s4588_s1 + $0x1d8] sm:$0xff]  ;;  %v2781_v62 = vld [vmem:[%s3954_s28 + $0x12] sm:$0x1]  ;;  %v3646_v4 = vld [vmem:[%s4588_s1 + $0x108] sm:$0xff] }
  0x20   : > { %510 = vmatpush.bf16.msra.mxu3 %v3640_v19  ;;  %v3647_v63 = vld [vmem:[%s4588_s1 + $0x110] sm:$0xff]  ;;  %v3662_v5 = vld [vmem:[%s4588_s1 + $0x188] sm:$0xff]  ;;  %v3645_v9 = vld [vmem:[%s4588_s1 + $0x100] sm:$0xff] }
  0x21   : > { %280 = vmatpush.bf16.msra.mxu0 %v3623_v21  ;;  %v3663_v0 = vld [vmem:[%s4588_s1 + $0x190] sm:$0xff]  ;;  %v3654_v6 = vld [vmem:[%s4588_s1 + $0x148] sm:$0xff]  ;;  %v3661_v10 = vld [vmem:[%s4588_s1 + $0x180] sm:$0xff] }
  0x22   : > { %425 = vmatpush.bf16.msra.mxu2 %v3631_v22  ;;  %v3655_v2 = vld [vmem:[%s4588_s1 + $0x150] sm:$0xff]  ;;  %v3670_v7 = vld [vmem:[%s4588_s1 + $0x1c8] sm:$0xff]  ;;  %v3684_v11 = vld [vmem:[%s4588_s1 + $0x238] sm:$0xff] }
  0x23   : > { %341 = vmatpush.bf16.msra.mxu1 %v3615_v23  ;;  %v3671_v3 = vld [vmem:[%s4588_s1 + $0x1d0] sm:$0xff]  ;;  %v2830_v8 = vld [vmem:[%s3954_s28 + $0xc] sm:$0x2]  ;;  %v3700_v12 = vld [vmem:[%s4588_s1 + $0x2b8] sm:$0xff] }
  0x24   : > { %511 = vmatpush.bf16.msra.mxu3 %v3639_v24  ;;  %v454_v44 = vld.sshfl [vmem:[#allocation1] sm:$0xff pattern:$0x73625140]  ;;  %v3692_v16 = vld [vmem:[%s4588_s1 + $0x278] sm:$0xff]  ;;  %v2684_v19 = vld [vmem:[%s3954_s28 + $0x12] sm:$0x1] }
  0x25   : > { %281 = vmatpush.bf16.msra.mxu0 %v3622_v25  ;;  %v455_v47 = vshrl.u32 %v454_v44, 16  ;;  %539 = vst [vmem:[#allocation1] ss:$4 sm:$0xff] %v520_v40  ;;  %v3653_v14 = vld [vmem:[%s4588_s1 + $0x140] sm:$0xff]  ;;  %v3708_v17 = vld [vmem:[%s4588_s1 + $0x2f8] sm:$0xff]  ;;  %v3699_v21 = vld [vmem:[%s4588_s1 + $0x2b0] sm:$0xff] }
  0x26   : > { %426 = vmatpush.bf16.msra.mxu2 %v3630_v26  ;;  %v3669_v15 = vld [vmem:[%s4588_s1 + $0x1c0] sm:$0xff]  ;;  %v3691_v23 = vld [vmem:[%s4588_s1 + $0x270] sm:$0xff]  ;;  %v3682_v25 = vld [vmem:[%s4588_s1 + $0x228] sm:$0xff] }
  0x27   : > { %342 = vmatpush.bf16.msra.mxu1 %v3614_v28  ;;  %v3707_v24 = vld [vmem:[%s4588_s1 + $0x2f0] sm:$0xff]  ;;  %v3698_v26 = vld [vmem:[%s4588_s1 + $0x2a8] sm:$0xff]  ;;  %v4149_v28 = vld [vmem:[%s3954_s28 + $0x2] sm:$0x1] }
  0x28   : > { %512 = vmatpush.bf16.msra.mxu3 %v3638_v29  ;;  %v3690_v29 = vld [vmem:[%s4588_s1 + $0x268] sm:$0xff]  ;;  %v3704_v40 = vld [vmem:[%s4588_s1 + $0x2d8] sm:$0xff]  ;;  %v3703_v44 = vld [vmem:[%s4588_s1 + $0x2d0] sm:$0xff] }
  0x29   : > { %282 = vmatpush.bf16.msra.mxu0 %v3621_v31  ;;  %v3706_v30 = vld [vmem:[%s4588_s1 + $0x2e8] sm:$0xff]  ;;  %v3681_v31 = vld [vmem:[%s4588_s1 + $0x220] sm:$0xff]  ;;  %vm2305_vm2 = vmand %vm2303_vm0, %vm2304_vm1 }
  0x2a   : > { %427 = vmatpush.bf16.msra.mxu2 %v3629_v32  ;;  %v3697_v32 = vld [vmem:[%s4588_s1 + $0x2a0] sm:$0xff] }
  0x2b   : > { %343 = vmatpush.bf16.msra.mxu1 %v3613_v35  ;;  %v3025_v35 = vld [vmem:[%s3954_s28 + $0x8] sm:$0x1] }
  0x2c   : > { %513 = vmatpush.bf16.msra.mxu3 %v3637_v36  ;;  %283 = vmatmul.bf16.vlgmr.msra.gmra.mxu0 %v2409_v43  ;;  %v4053_v55 = vld.sshfl [vmem:[#allocation1] sm:$0xff pattern:$0x73625140]  ;;  %v3680_v36 = vld [vmem:[%s4588_s1 + $0x218] sm:$0xff]  ;;  %v3687_v43 = vld [vmem:[%s4588_s1 + $0x250] sm:$0xff] }
  0x2d   : > { %592 = vmatpush.bf16.msrb.mxu0 %v3652_v33  ;;  %428 = vmatmul.bf16.vlgmr.msra.gmra.mxu2 %v369_v39  ;;  %790 = vst [vmem:[#allocation1] ss:$4 sm:$0xff] %v4045_v52  ;;  %v542_v18 = vrot.slane %v4053_v55, 1  ;;  %v3689_v33 = vld [vmem:[%s4588_s1 + $0x260] sm:$0xff]  ;;  %v3688_v39 = vld [vmem:[%s4588_s1 + $0x258] sm:$0xff] }
  0x2e   : > { %758 = vmatpush.bf16.msrb.mxu2 %v3668_v34  ;;  %344 = vmatmul.bf16.vlgmr.msra.gmra.mxu1 %v189_v20  ;;  %v3683_v20 = vld [vmem:[%s4588_s1 + $0x230] sm:$0xff]  ;;  %v3705_v34 = vld [vmem:[%s4588_s1 + $0x2e0] sm:$0xff] }
  0x2f   : > { %675 = vmatpush.bf16.msrb.mxu1 %v3660_v37  ;;  %514 = vmatmul.bf16.vlgmr.msra.gmra.mxu3 %v455_v47  ;;  %v3696_v37 = vld [vmem:[%s4588_s1 + $0x298] sm:$0xff]  ;;  %v3694_v47 = vld [vmem:[%s4588_s1 + $0x288] sm:$0xff]  ;;  %v3685_v55 = vld [vmem:[%s4588_s1 + $0x240] sm:$0xff] }
  0x30   : > { %843 = vmatpush.bf16.msrb.mxu3 %v3676_v38 }
  0x31   : > { %593 = vmatpush.bf16.msrb.mxu0 %v3651_v41  ;;  %v3679_v41 = vld [vmem:[%s4588_s1 + $0x210] sm:$0xff] }
  0x32   : > { %759 = vmatpush.bf16.msrb.mxu2 %v3667_v42  ;;  %v3695_v42 = vld [vmem:[%s4588_s1 + $0x290] sm:$0xff] }
  0x33   : > { %676 = vmatpush.bf16.msrb.mxu1 %v3659_v45  ;;  %v3074_v45 = vld [vmem:[%s3954_s28 + $0x2] sm:$0x2] }
  0x34   : > { %844 = vmatpush.bf16.msrb.mxu3 %v3675_v46  ;;  %v791_v1 = vld.sshfl [vmem:[#allocation1] sm:$0xff pattern:$0x73625140]  ;;  %v3678_v46 = vld [vmem:[%s4588_s1 + $0x208] sm:$0xff] }
  0x35   : > { %594 = vmatpush.bf16.msrb.mxu0 %v3650_v48  ;;  %876 = vst [vmem:[#allocation1] ss:$4 sm:$0xff] %v2781_v62  ;;  %v792_v22 = vshrl.u32 %v791_v1, 16  ;;  %v3715_v62 = vld [vmem:[%s4588_s1 + $0x330] sm:$0xff]  ;;  %v4250_v1 = vld [vmem:[%s3954_s28 + $0xe] sm:$0x1] }
  0x36   : > { %760 = vmatpush.bf16.msrb.mxu2 %v3666_v49  ;;  %v3686_v49 = vld [vmem:[%s4588_s1 + $0x248] sm:$0xff] }
  0x37   : > { %677 = vmatpush.bf16.msrb.mxu1 %v3658_v50  ;;  %v3702_v50 = vld [vmem:[%s4588_s1 + $0x2c8] sm:$0xff] }
  0x38   : > { %845 = vmatpush.bf16.msrb.mxu3 %v3674_v51  ;;  %v3677_v51 = vld [vmem:[%s4588_s1 + $0x200] sm:$0xff] }
  0x39   : > { %595 = vmatpush.bf16.msrb.mxu0 %v3649_v53  ;;  %v3716_v53 = vld [vmem:[%s4588_s1 + $0x338] sm:$0xff] }
  0x3a   : > { %761 = vmatpush.bf16.msrb.mxu2 %v3665_v54  ;;  %v3732_v54 = vld [vmem:[%s4588_s1 + $0x3b8] sm:$0xff] }
  0x3b   : > { %678 = vmatpush.bf16.msrb.mxu1 %v3657_v56  ;;  %v3701_v56 = vld [vmem:[%s4588_s1 + $0x2c0] sm:$0xff] }
  0x3c   : > { %846 = vmatpush.bf16.msrb.mxu3 %v3673_v57  ;;  %v4112_v13 = vld.sshfl [vmem:[#allocation1] sm:$0xff pattern:$0x73625140] }
  0x3d   : > { %596 = vmatpush.bf16.msrb.mxu0 %v3648_v58  ;;  %962 = vst [vmem:[#allocation1] ss:$4 sm:$0xff] %v2830_v8  ;;  %v878_v57 = vshrl.u32 %v4112_v13, 16  ;;  %v3724_v58 = vld [vmem:[%s4588_s1 + $0x378] sm:$0xff]  ;;  %v3713_v8 = vld [vmem:[%s4588_s1 + $0x320] sm:$0xff] }
  0x3e   : > { %762 = vmatpush.bf16.msrb.mxu2 %v3664_v59  ;;  %v3740_v59 = vld [vmem:[%s4588_s1 + $0x3f8] sm:$0xff] }
  0x3f   : > { %679 = vmatpush.bf16.msrb.mxu1 %v3656_v60  ;;  %v3712_v13 = vld [vmem:[%s4588_s1 + $0x318] sm:$0xff] }
  0x40   : > { %847 = vmatpush.bf16.msrb.mxu3 %v3672_v61  ;;  %v2928_v61 = vld [vmem:[%s3954_s28 + $0x8] sm:$0x1] }
  0x41   : > { %597 = vmatpush.bf16.msrb.mxu0 %v3647_v63  ;;  %v3731_v63 = vld [vmem:[%s4588_s1 + $0x3b0] sm:$0xff] }
  0x42   : > { %763 = vmatpush.bf16.msrb.mxu2 %v3663_v0 }
  0x43   : > { %680 = vmatpush.bf16.msrb.mxu1 %v3655_v2  ;;  %v3723_v2 = vld [vmem:[%s4588_s1 + $0x370] sm:$0xff] }
  0x44   : > { %848 = vmatpush.bf16.msrb.mxu3 %v3671_v3  ;;  %v4146_v27 = vld.sshfl [vmem:[#allocation1] sm:$0xff pattern:$0x73625140]  ;;  %v3739_v3 = vld [vmem:[%s4588_s1 + $0x3f0] sm:$0xff] }
  0x45   : > { %598 = vmatpush.bf16.msrb.mxu0 %v3646_v4  ;;  %1213 = vst [vmem:[#allocation1] ss:$4 sm:$0xff] %v4149_v28  ;;  %v965_v60 = vrot.slane %v4146_v27, 1  ;;  %v3714_v4 = vld [vmem:[%s4588_s1 + $0x328] sm:$0xff] }
  0x46   : > { %764 = vmatpush.bf16.msrb.mxu2 %v3662_v5  ;;  %v3730_v5 = vld [vmem:[%s4588_s1 + $0x3a8] sm:$0xff] }
  0x47   : > { %681 = vmatpush.bf16.msrb.mxu1 %v3654_v6  ;;  %v3722_v6 = vld [vmem:[%s4588_s1 + $0x368] sm:$0xff] }
  0x48   : > { %849 = vmatpush.bf16.msrb.mxu3 %v3670_v7  ;;  %v3738_v7 = vld [vmem:[%s4588_s1 + $0x3e8] sm:$0xff] }
  0x49   : > { %599 = vmatpush.bf16.msrb.mxu0 %v3645_v9  ;;  %v3729_v9 = vld [vmem:[%s4588_s1 + $0x3a0] sm:$0xff]  ;;  %v3734_v27 = vld [vmem:[%s4588_s1 + $0x3c8] sm:$0xff] }
  0x4a   : > { %765 = vmatpush.bf16.msrb.mxu2 %v3661_v10  ;;  %v3721_v10 = vld [vmem:[%s4588_s1 + $0x360] sm:$0xff] }
  0x4b   : > { %682 = vmatpush.bf16.msrb.mxu1 %v3653_v14  ;;  %v3728_v14 = vld [vmem:[%s4588_s1 + $0x398] sm:$0xff] }
  0x4c   : > { %850 = vmatpush.bf16.msrb.mxu3 %v3669_v15  ;;  %600 = vmatmul.bf16.vlgmr.msrb.gmra.mxu0 %v542_v18  ;;  %v4178_v38 = vld.sshfl [vmem:[#allocation1] sm:$0xff pattern:$0x73625140]  ;;  %v3269_v15 = vld [vmem:[%s3954_s28 + $0x14] sm:$0x1] }
  0x4d   : > { %929 = vmatpush.bf16.msra.mxu0 %v3684_v11  ;;  %766 = vmatmul.bf16.vlgmr.msrb.gmra.mxu2 %v2684_v19  ;;  %1299 = vst [vmem:[#allocation1] ss:$4 sm:$0xff] %v3025_v35  ;;  %v3737_v11 = vld [vmem:[%s4588_s1 + $0x3e0] sm:$0xff]  ;;  %v3711_v18 = vld [vmem:[%s4588_s1 + $0x310] sm:$0xff] }
  0x4e   : > { %1098 = vmatpush.bf16.msra.mxu2 %v3700_v12  ;;  %683 = vmatmul.bf16.vlgmr.msrb.gmra.mxu1 %v4045_v52  ;;  %v3693_v52 = vld [vmem:[%s4588_s1 + $0x280] sm:$0xff]  ;;  %v3727_v19 = vld [vmem:[%s4588_s1 + $0x390] sm:$0xff] }
  0x4f   : > { %1015 = vmatpush.bf16.msra.mxu1 %v3692_v16  ;;  %851 = vmatmul.bf16.vlgmr.msrb.gmra.mxu3 %v792_v22  ;;  %v3720_v16 = vld [vmem:[%s4588_s1 + $0x358] sm:$0xff]  ;;  %v3710_v22 = vld [vmem:[%s4588_s1 + $0x308] sm:$0xff] }
  0x50   : > { %1181 = vmatpush.bf16.msra.mxu3 %v3708_v17  ;;  %v3736_v17 = vld [vmem:[%s4588_s1 + $0x3d8] sm:$0xff] }
  0x51   : > { %930 = vmatpush.bf16.msra.mxu0 %v3683_v20  ;;  %v3719_v20 = vld [vmem:[%s4588_s1 + $0x350] sm:$0xff] }
  0x52   : > { %1099 = vmatpush.bf16.msra.mxu2 %v3699_v21  ;;  %v3735_v21 = vld [vmem:[%s4588_s1 + $0x3d0] sm:$0xff] }
  0x53   : > { %1016 = vmatpush.bf16.msra.mxu1 %v3691_v23  ;;  %v3726_v23 = vld [vmem:[%s4588_s1 + $0x388] sm:$0xff] }
  0x54   : > { %1182 = vmatpush.bf16.msra.mxu3 %v3707_v24  ;;  %v4205_v48 = vld.sshfl [vmem:[#allocation1] sm:$0xff pattern:$0x73625140] }
  0x55   : > { %931 = vmatpush.bf16.msra.mxu0 %v3682_v25  ;;  %1385 = vst [vmem:[#allocation1] ss:$4 sm:$0xff] %v3074_v45  ;;  %v3318_v25 = vld [vmem:[%s3954_s28 + $0xe] sm:$0x2] }
  0x56   : > { %1100 = vmatpush.bf16.msra.mxu2 %v3698_v26  ;;  %v3718_v26 = vld [vmem:[%s4588_s1 + $0x348] sm:$0xff] }
  0x57   : > { %1017 = vmatpush.bf16.msra.mxu1 %v3690_v29  ;;  %v3725_v29 = vld [vmem:[%s4588_s1 + $0x380] sm:$0xff]  ;;  %v3754_v45 = vld [vmem:[%s4588_s1 + $0x468] sm:$0xff] }
  0x58   : > { %1183 = vmatpush.bf16.msra.mxu3 %v3706_v30  ;;  %v3748_v30 = vld [vmem:[%s4588_s1 + $0x438] sm:$0xff] }
  0x59   : > { %932 = vmatpush.bf16.msra.mxu0 %v3681_v31  ;;  %v3764_v31 = vld [vmem:[%s4588_s1 + $0x4b8] sm:$0xff] }
  0x5a   : > { %1101 = vmatpush.bf16.msra.mxu2 %v3697_v32  ;;  %v3717_v32 = vld [vmem:[%s4588_s1 + $0x340] sm:$0xff] }
  0x5b   : > { %1018 = vmatpush.bf16.msra.mxu1 %v3689_v33  ;;  %v3733_v33 = vld [vmem:[%s4588_s1 + $0x3c0] sm:$0xff] }
  0x5c   : > { %1184 = vmatpush.bf16.msra.mxu3 %v3705_v34  ;;  %v4247_v0 = vld.sshfl [vmem:[#allocation1] sm:$0xff pattern:$0x73625140]  ;;  %v1215_v34 = vshrl.u32 %v4178_v38, 16  ;;  %v3747_v38 = vld [vmem:[%s4588_s1 + $0x430] sm:$0xff] }
  0x5d   : > { %933 = vmatpush.bf16.msra.mxu0 %v3680_v36  ;;  %1636 = vst [vmem:[#allocation1] ss:$4 sm:$0xff] %v4250_v1  ;;  %v1388_v35 = vrot.slane %v4247_v0, 1  ;;  %v3756_v36 = vld [vmem:[%s4588_s1 + $0x478] sm:$0xff]  ;;  %v3513_v0 = vld [vmem:[%s3954_s28 + $0xa] sm:$0x1] }
  0x5e   : > { %1102 = vmatpush.bf16.msra.mxu2 %v3696_v37  ;;  %v3772_v37 = vld [vmem:[%s4588_s1 + $0x4f8] sm:$0xff] }
  0x5f   : > { %1019 = vmatpush.bf16.msra.mxu1 %v3688_v39  ;;  %v1301_v39 = vshrl.u32 %v4205_v48, 16  ;;  %v3761_v48 = vld [vmem:[%s4588_s1 + $0x4a0] sm:$0xff] }
  0x60   : > { %1185 = vmatpush.bf16.msra.mxu3 %v3704_v40  ;;  %v3763_v40 = vld [vmem:[%s4588_s1 + $0x4b0] sm:$0xff] }
  0x61   : > { %934 = vmatpush.bf16.msra.mxu0 %v3679_v41  ;;  %v3755_v41 = vld [vmem:[%s4588_s1 + $0x470] sm:$0xff] }
  0x62   : > { %1103 = vmatpush.bf16.msra.mxu2 %v3695_v42  ;;  %v3771_v42 = vld [vmem:[%s4588_s1 + $0x4f0] sm:$0xff] }
  0x63   : > { %1020 = vmatpush.bf16.msra.mxu1 %v3687_v43  ;;  %v3746_v43 = vld [vmem:[%s4588_s1 + $0x428] sm:$0xff] }
  0x64   : > { %1186 = vmatpush.bf16.msra.mxu3 %v3703_v44  ;;  %v4283_v12 = vld.sshfl [vmem:[#allocation1] sm:$0xff pattern:$0x73625140]  ;;  %v3762_v44 = vld [vmem:[%s4588_s1 + $0x4a8] sm:$0xff] }
  0x65   : > { %935 = vmatpush.bf16.msra.mxu0 %v3678_v46  ;;  %1722 = vst [vmem:[#allocation1] ss:$4 sm:$0xff] %v3269_v15  ;;  %v3770_v46 = vld [vmem:[%s4588_s1 + $0x4e8] sm:$0xff] }
  0x66   : > { %1104 = vmatpush.bf16.msra.mxu2 %v3694_v47  ;;  %v3745_v47 = vld [vmem:[%s4588_s1 + $0x420] sm:$0xff] }
  0x67   : > { %1021 = vmatpush.bf16.msra.mxu1 %v3686_v49  ;;  %v3753_v49 = vld [vmem:[%s4588_s1 + $0x460] sm:$0xff] }
  0x68   : > { %1187 = vmatpush.bf16.msra.mxu3 %v3702_v50  ;;  %v3769_v50 = vld [vmem:[%s4588_s1 + $0x4e0] sm:$0xff] }
  0x69   : > { %936 = vmatpush.bf16.msra.mxu0 %v3677_v51  ;;  %v3744_v51 = vld [vmem:[%s4588_s1 + $0x418] sm:$0xff] }
  0x6a   : > { %1105 = vmatpush.bf16.msra.mxu2 %v3693_v52  ;;  %v3760_v52 = vld [vmem:[%s4588_s1 + $0x498] sm:$0xff] }
  0x6b   : > { %1022 = vmatpush.bf16.msra.mxu1 %v3685_v55  ;;  %v3752_v55 = vld [vmem:[%s4588_s1 + $0x458] sm:$0xff] }
  0x6c   : > { %1188 = vmatpush.bf16.msra.mxu3 %v3701_v56  ;;  %937 = vmatmul.bf16.vlgmr.msra.gmra.mxu0 %v878_v57  ;;  %v4316_v24 = vld.sshfl [vmem:[#allocation1] sm:$0xff pattern:$0x73625140]  ;;  %v3768_v56 = vld [vmem:[%s4588_s1 + $0x4d8] sm:$0xff]  ;;  %v3743_v57 = vld [vmem:[%s4588_s1 + $0x410] sm:$0xff] }
  0x6d   : > { %1266 = vmatpush.bf16.msrb.mxu0 %v3716_v53  ;;  %1106 = vmatmul.bf16.vlgmr.msra.gmra.mxu2 %v4149_v28  ;;  %1808 = vst [vmem:[#allocation1] ss:$4 sm:$0xff] %v3318_v25  ;;  %v3709_v28 = vld [vmem:[%s4588_s1 + $0x300] sm:$0xff] }
  0x6e   : > { %1438 = vmatpush.bf16.msrb.mxu2 %v3732_v54  ;;  %1023 = vmatmul.bf16.vlgmr.msra.gmra.mxu1 %v965_v60  ;;  %v4396_v54 = vld [vmem:[%s3954_s28 + $0x4] sm:$0x1]  ;;  %v3767_v60 = vld [vmem:[%s4588_s1 + $0x4d0] sm:$0xff] }
  0x6f   : > { %1352 = vmatpush.bf16.msrb.mxu1 %v3724_v58  ;;  %1189 = vmatmul.bf16.vlgmr.msra.gmra.mxu3 %v2928_v61  ;;  %v3759_v58 = vld [vmem:[%s4588_s1 + $0x490] sm:$0xff]  ;;  %v3742_v61 = vld [vmem:[%s4588_s1 + $0x408] sm:$0xff] }
  0x70   : > { %1521 = vmatpush.bf16.msrb.mxu3 %v3740_v59  ;;  %v3751_v59 = vld [vmem:[%s4588_s1 + $0x450] sm:$0xff] }
  0x71   : > { %1267 = vmatpush.bf16.msrb.mxu0 %v3715_v62  ;;  %v3758_v62 = vld [vmem:[%s4588_s1 + $0x488] sm:$0xff] }
  0x72   : > { %1439 = vmatpush.bf16.msrb.mxu2 %v3731_v63 }
  0x73   : > { %1353 = vmatpush.bf16.msrb.mxu1 %v3723_v2  ;;  %v3766_v2 = vld [vmem:[%s4588_s1 + $0x4c8] sm:$0xff] }
  0x74   : > { %1522 = vmatpush.bf16.msrb.mxu3 %v3739_v3  ;;  %v1809_v53 = vld.sshfl [vmem:[#allocation1] sm:$0xff pattern:$0x73625140] }
  0x75   : > { %1268 = vmatpush.bf16.msrb.mxu0 %v3714_v4  ;;  %2059 = vst [vmem:[#allocation1] ss:$4 sm:$0xff] %v4396_v54  ;;  %v3741_v3 = vld [vmem:[%s4588_s1 + $0x400] sm:$0xff]  ;;  %v1811_v15 = vrot.slane %v1809_v53, 1  ;;  %v3812_v53 = vld [vmem:[%s4588_s1 + $0x638] sm:$0xff] }
  0x76   : > { %1440 = vmatpush.bf16.msrb.mxu2 %v3730_v5  ;;  %v3757_v4 = vld [vmem:[%s4588_s1 + $0x480] sm:$0xff]  ;;  %v3780_v5 = vld [vmem:[%s4588_s1 + $0x538] sm:$0xff] }
  0x77   : > { %1354 = vmatpush.bf16.msrb.mxu1 %v3722_v6  ;;  %v3796_v6 = vld [vmem:[%s4588_s1 + $0x5b8] sm:$0xff] }
  0x78   : > { %1523 = vmatpush.bf16.msrb.mxu3 %v3738_v7  ;;  %v3749_v7 = vld [vmem:[%s4588_s1 + $0x440] sm:$0xff] }
  0x79   : > { %1269 = vmatpush.bf16.msrb.mxu0 %v3713_v8  ;;  %v3765_v8 = vld [vmem:[%s4588_s1 + $0x4c0] sm:$0xff] }
  0x7a   : > { %1441 = vmatpush.bf16.msrb.mxu2 %v3729_v9  ;;  %v1724_v9 = vshrl.u32 %v4316_v24, 16  ;;  %v3793_v24 = vld [vmem:[%s4588_s1 + $0x5a0] sm:$0xff] }
  0x7b   : > { %1355 = vmatpush.bf16.msrb.mxu1 %v3721_v10  ;;  %v3172_v10 = vld [vmem:[%s3954_s28 + $0x14] sm:$0x1] }
  0x7c   : > { %1524 = vmatpush.bf16.msrb.mxu3 %v3737_v11  ;;  %v4423_v63 = vld.sshfl [vmem:[#allocation1] sm:$0xff pattern:$0x73625140]  ;;  %v3788_v11 = vld [vmem:[%s4588_s1 + $0x578] sm:$0xff] }
  0x7d   : > { %1270 = vmatpush.bf16.msrb.mxu0 %v3712_v13  ;;  %2145 = vst [vmem:[#allocation1] ss:$4 sm:$0xff] %v3513_v0  ;;  %v3804_v13 = vld [vmem:[%s4588_s1 + $0x5f8] sm:$0xff] }
  0x7e   : > { %1442 = vmatpush.bf16.msrb.mxu2 %v3728_v14  ;;  %v1638_v14 = vshrl.u32 %v4283_v12, 16  ;;  %v3803_v12 = vld [vmem:[%s4588_s1 + $0x5f0] sm:$0xff] }
  0x7f   : > { %1356 = vmatpush.bf16.msrb.mxu1 %v3720_v16  ;;  %v3779_v16 = vld [vmem:[%s4588_s1 + $0x530] sm:$0xff] }
  0x80   : > { %1525 = vmatpush.bf16.msrb.mxu3 %v3736_v17  ;;  %v3795_v17 = vld [vmem:[%s4588_s1 + $0x5b0] sm:$0xff] }
  0x81   : > { %1271 = vmatpush.bf16.msrb.mxu0 %v3711_v18  ;;  %v3787_v18 = vld [vmem:[%s4588_s1 + $0x570] sm:$0xff] }
  0x82   : > { %1443 = vmatpush.bf16.msrb.mxu2 %v3727_v19  ;;  %v3778_v19 = vld [vmem:[%s4588_s1 + $0x528] sm:$0xff] }
  0x83   : > { %1357 = vmatpush.bf16.msrb.mxu1 %v3719_v20  ;;  %v3794_v20 = vld [vmem:[%s4588_s1 + $0x5a8] sm:$0xff] }
  0x84   : > { %1526 = vmatpush.bf16.msrb.mxu3 %v3735_v21  ;;  %v3786_v21 = vld [vmem:[%s4588_s1 + $0x568] sm:$0xff] }
  0x85   : > { %1272 = vmatpush.bf16.msrb.mxu0 %v3710_v22  ;;  %v3802_v22 = vld [vmem:[%s4588_s1 + $0x5e8] sm:$0xff] }
  0x86   : > { %1444 = vmatpush.bf16.msrb.mxu2 %v3726_v23  ;;  %v3777_v23 = vld [vmem:[%s4588_s1 + $0x520] sm:$0xff] }
  0x87   : > { %1358 = vmatpush.bf16.msrb.mxu1 %v3718_v26  ;;  %v3785_v26 = vld [vmem:[%s4588_s1 + $0x560] sm:$0xff] }
  0x88   : > { %1527 = vmatpush.bf16.msrb.mxu3 %v3734_v27  ;;  %v3801_v27 = vld [vmem:[%s4588_s1 + $0x5e0] sm:$0xff] }
  0x89   : > { %1273 = vmatpush.bf16.msrb.mxu0 %v3709_v28 }
  0x8a   : > { %1445 = vmatpush.bf16.msrb.mxu2 %v3725_v29  ;;  %v3776_v29 = vld [vmem:[%s4588_s1 + $0x518] sm:$0xff] }
  0x8b   : > { %1359 = vmatpush.bf16.msrb.mxu1 %v3717_v32  ;;  %v3784_v32 = vld [vmem:[%s4588_s1 + $0x558] sm:$0xff] }
  0x8c   : > { %1528 = vmatpush.bf16.msrb.mxu3 %v3733_v33  ;;  %1274 = vmatmul.bf16.vlgmr.msrb.gmra.mxu0 %v1215_v34  ;;  %v3800_v33 = vld [vmem:[%s4588_s1 + $0x5d8] sm:$0xff] }
  0x8d   : > { %1604 = vmatpush.bf16.msra.mxu0 %v3748_v30  ;;  %1446 = vmatmul.bf16.vlgmr.msrb.gmra.mxu2 %v1388_v35  ;;  %v3792_v30 = vld [vmem:[%s4588_s1 + $0x598] sm:$0xff]  ;;  %v3775_v35 = vld [vmem:[%s4588_s1 + $0x510] sm:$0xff] }
  0x8e   : > { %1775 = vmatpush.bf16.msra.mxu2 %v3764_v31  ;;  %1360 = vmatmul.bf16.vlgmr.msrb.gmra.mxu1 %v1301_v39  ;;  %v3783_v39 = vld [vmem:[%s4588_s1 + $0x550] sm:$0xff] }
  0x8f   : > { %1689 = vmatpush.bf16.msra.mxu1 %v3756_v36  ;;  %1529 = vmatmul.bf16.vlgmr.msrb.gmra.mxu3 %v4250_v1  ;;  %v3750_v1 = vld [vmem:[%s4588_s1 + $0x448] sm:$0xff]  ;;  %v3791_v36 = vld [vmem:[%s4588_s1 + $0x590] sm:$0xff] }
  0x90   : > { %1861 = vmatpush.bf16.msra.mxu3 %v3772_v37 }
  0x91   : > { %1605 = vmatpush.bf16.msra.mxu0 %v3747_v38 }
  0x92   : > { %1776 = vmatpush.bf16.msra.mxu2 %v3763_v40 }
  0x93   : > { %1690 = vmatpush.bf16.msra.mxu1 %v3755_v41  ;;  %v3799_v41 = vld [vmem:[%s4588_s1 + $0x5d0] sm:$0xff] }
  0x94   : > { %1862 = vmatpush.bf16.msra.mxu3 %v3771_v42  ;;  %v2146_v42 = vld.sshfl [vmem:[#allocation1] sm:$0xff pattern:$0x73625140] }
  0x95   : > { %1606 = vmatpush.bf16.msra.mxu0 %v3746_v43 }
  0x96   : > { %1777 = vmatpush.bf16.msra.mxu2 %v3762_v44  ;;  %v3562_v44 = vld [vmem:[%s3954_s28 + $0x4] sm:$0x2] }
  0x97   : > { %1691 = vmatpush.bf16.msra.mxu1 %v3754_v45  ;;  %2231 = vst [vmem:[#allocation1] ss:$4 sm:$0xff] %v3562_v44 }
  0x98   : > { %1863 = vmatpush.bf16.msra.mxu3 %v3770_v46  ;;  %v3774_v46 = vld [vmem:[%s4588_s1 + $0x508] sm:$0xff] }
  0x99   : > { %1607 = vmatpush.bf16.msra.mxu0 %v3745_v47  ;;  %v3790_v47 = vld [vmem:[%s4588_s1 + $0x588] sm:$0xff] }
  0x9a   : > { %1778 = vmatpush.bf16.msra.mxu2 %v3761_v48  ;;  %v3782_v48 = vld [vmem:[%s4588_s1 + $0x548] sm:$0xff] }
  0x9b   : > { %1692 = vmatpush.bf16.msra.mxu1 %v3753_v49  ;;  %v3798_v49 = vld [vmem:[%s4588_s1 + $0x5c8] sm:$0xff] }
  0x9c   : > { %1864 = vmatpush.bf16.msra.mxu3 %v3769_v50 }
  0x9d   : > { %1608 = vmatpush.bf16.msra.mxu0 %v3744_v51  ;;  %v3773_v51 = vld [vmem:[%s4588_s1 + $0x500] sm:$0xff] }
  0x9e   : > { %1779 = vmatpush.bf16.msra.mxu2 %v3760_v52  ;;  %v3789_v52 = vld [vmem:[%s4588_s1 + $0x580] sm:$0xff] }
  0x9f   : > { %1693 = vmatpush.bf16.msra.mxu1 %v3752_v55 }
  0xa0   : > { %1865 = vmatpush.bf16.msra.mxu3 %v3768_v56  ;;  %v3781_v56 = vld [vmem:[%s4588_s1 + $0x540] sm:$0xff] }
  0xa1   : > { %1609 = vmatpush.bf16.msra.mxu0 %v3743_v57  ;;  %v3797_v57 = vld [vmem:[%s4588_s1 + $0x5c0] sm:$0xff] }
  0xa2   : > { %1780 = vmatpush.bf16.msra.mxu2 %v3759_v58  ;;  %v2061_v58 = vshrl.u32 %v4423_v63, 16  ;;  %v3809_v63 = vld [vmem:[%s4588_s1 + $0x620] sm:$0xff] }
  0xa3   : > { %1694 = vmatpush.bf16.msra.mxu1 %v3751_v59  ;;  %v2147_v59 = vshrl.u32 %v2146_v42, 16 }
  0xa4   : > { %1866 = vmatpush.bf16.msra.mxu3 %v3767_v60  ;;  %v3416_v60 = vld [vmem:[%s3954_s28 + $0xa] sm:$0x1] }
  0xa5   : > { %1610 = vmatpush.bf16.msra.mxu0 %v3742_v61  ;;  %v3811_v61 = vld [vmem:[%s4588_s1 + $0x630] sm:$0xff] }
  0xa6   : > { %1781 = vmatpush.bf16.msra.mxu2 %v3758_v62  ;;  %v3810_v62 = vld [vmem:[%s4588_s1 + $0x628] sm:$0xff] }
  0xa7   : > { %1695 = vmatpush.bf16.msra.mxu1 %v3750_v1 }
  0xa8   : > { %1867 = vmatpush.bf16.msra.mxu3 %v3766_v2 }
  0xa9   : > { %1611 = vmatpush.bf16.msra.mxu0 %v3741_v3  ;;  %v284_v25 = vpop.f32.mrf.mxu0 }
  0xaa   : > { %1782 = vmatpush.bf16.msra.mxu2 %v3757_v4 }
  0xab   : > { %1696 = vmatpush.bf16.msra.mxu1 %v3749_v7  ;;  %v345_v28 = vpop.f32.mrf.mxu1 }
  0xac   : > { %1868 = vmatpush.bf16.msra.mxu3 %v3765_v8  ;;  %1612 = vmatmul.bf16.vlgmr.msra.gmra.mxu0 %v3172_v10  ;;  %v346_v31 = vadd.f32 %v345_v28, %v284_v25 }
  0xad   : > { %1944 = vmatpush.bf16.msrb.mxu0 %v3780_v5  ;;  %1783 = vmatmul.bf16.vlgmr.msra.gmra.mxu2 %v1724_v9 }
  0xae   : > { %2112 = vmatpush.bf16.msrb.mxu2 %v3796_v6  ;;  %1697 = vmatmul.bf16.vlgmr.msra.gmra.mxu1 %v1638_v14  ;;  %v3807_v6 = vld [vmem:[%s4588_s1 + $0x610] sm:$0xff]  ;;  %v3805_v14 = vld [vmem:[%s4588_s1 + $0x600] sm:$0xff] }
  0xaf   : > { %2027 = vmatpush.bf16.msrb.mxu1 %v3788_v11  ;;  %1869 = vmatmul.bf16.vlgmr.msra.gmra.mxu3 %v1811_v15  ;;  %v3806_v11 = vld [vmem:[%s4588_s1 + $0x608] sm:$0xff]  ;;  %v2232_v15 = vld.sshfl [vmem:[#allocation1] sm:$0xff pattern:$0x73625140] }
  0xb0   : > { %2198 = vmatpush.bf16.msrb.mxu3 %v3804_v13  ;;  %v429_v34 = vpop.f32.mrf.mxu2 }
  0xb1   : > { %1945 = vmatpush.bf16.msrb.mxu0 %v3779_v16  ;;  %v433_v37 = vadd.f32 %v429_v34, %v346_v31  ;;  %v286_v40 = vpop.f32.mrf.mxu0 }
  0xb2   : > { %2113 = vmatpush.bf16.msrb.mxu2 %v3795_v17  ;;  %v515_v38 = vpop.f32.mrf.mxu3  ;;  %v2234_v17 = vrot.slane %v2232_v15, 1 }
  0xb3   : > { %2028 = vmatpush.bf16.msrb.mxu1 %v3787_v18  ;;  %v519_v43 = vadd.f32 %v515_v38, %v433_v37  ;;  %v347_v45 = vpop.f32.mrf.mxu1 }
  0xb4   : > { %2199 = vmatpush.bf16.msrb.mxu3 %v3803_v12 }
  0xb5   : > { %1946 = vmatpush.bf16.msrb.mxu0 %v3778_v19 }
  0xb6   : > { %2114 = vmatpush.bf16.msrb.mxu2 %v3794_v20 }
  0xb7   : > { %2029 = vmatpush.bf16.msrb.mxu1 %v3786_v21 }
  0xb8   : > { %2200 = vmatpush.bf16.msrb.mxu3 %v3802_v22  ;;  %v431_v50 = vpop.f32.mrf.mxu2 }
  0xb9   : > { %1947 = vmatpush.bf16.msrb.mxu0 %v3777_v23 }
  0xba   : > { %2115 = vmatpush.bf16.msrb.mxu2 %v3793_v24  ;;  %v517_v55 = vpop.f32.mrf.mxu3 }
  0xbb   : > { %2030 = vmatpush.bf16.msrb.mxu1 %v3785_v26 }
  0xbc   : > { %2201 = vmatpush.bf16.msrb.mxu3 %v3801_v27 }
  0xbd   : > { %1948 = vmatpush.bf16.msrb.mxu0 %v3776_v29 }
  0xbe   : > { %2116 = vmatpush.bf16.msrb.mxu2 %v3792_v30 }
  0xbf   : > { %2031 = vmatpush.bf16.msrb.mxu1 %v3784_v32 }
  0xc0   : > { %2202 = vmatpush.bf16.msrb.mxu3 %v3800_v33 }
  0xc1   : > { %1949 = vmatpush.bf16.msrb.mxu0 %v3775_v35 }
  0xc2   : > { %2117 = vmatpush.bf16.msrb.mxu2 %v3791_v36 }
  0xc3   : > { %2032 = vmatpush.bf16.msrb.mxu1 %v3783_v39 }
  0xc4   : > { %2203 = vmatpush.bf16.msrb.mxu3 %v3799_v41 }
  0xc5   : > { %1950 = vmatpush.bf16.msrb.mxu0 %v3774_v46 }
  0xc6   : > { %2118 = vmatpush.bf16.msrb.mxu2 %v3790_v47 }
  0xc7   : > { %2033 = vmatpush.bf16.msrb.mxu1 %v3782_v48 }
  0xc8   : > { %2204 = vmatpush.bf16.msrb.mxu3 %v3798_v49 }
  0xc9   : > { %1951 = vmatpush.bf16.msrb.mxu0 %v3773_v51  ;;  %v601_v0 = vpop.f32.mrf.mxu0 }
  0xca   : > { %2119 = vmatpush.bf16.msrb.mxu2 %v3789_v52  ;;  %v605_v1 = vadd.f32 %v601_v0, %v519_v43 }
  0xcb   : > { %2034 = vmatpush.bf16.msrb.mxu1 %v3781_v56  ;;  %v684_v2 = vpop.f32.mrf.mxu1 }
  0xcc   : > { %2205 = vmatpush.bf16.msrb.mxu3 %v3797_v57  ;;  %1952 = vmatmul.bf16.vlgmr.msrb.gmra.mxu0 %v4396_v54  ;;  %v688_v3 = vadd.f32 %v684_v2, %v605_v1  ;;  %v3808_v54 = vld [vmem:[%s4588_s1 + $0x618] sm:$0xff] }
  0xcd   : > { %2284 = vmatpush.bf16.msra.mxu0 %v3812_v53  ;;  %2120 = vmatmul.bf16.vlgmr.msrb.gmra.mxu2 %v2061_v58 }
  0xce   : > { %2035 = vmatmul.bf16.vlgmr.msrb.gmra.mxu1 %v3416_v60 }
  0xcf   : > { %2206 = vmatmul.bf16.vlgmr.msrb.gmra.mxu3 %v2147_v59 }
  0xd0   : > { %v767_v4 = vpop.f32.mrf.mxu2 }
  0xd1   : > { %2285 = vmatpush.bf16.msra.mxu0 %v3811_v61  ;;  %v771_v5 = vadd.f32 %v767_v4, %v688_v3  ;;  %v603_v8 = vpop.f32.mrf.mxu0  ;;  %v2298_v3 = vld [vmem:[%s4589_s2] sm:$0x1] }
  0xd2   : > { %v852_v7 = vpop.f32.mrf.mxu3 }
  0xd3   : > { %v856_v9 = vadd.f32 %v852_v7, %v771_v5  ;;  %v686_v10 = vpop.f32.mrf.mxu1  ;;  %v2306_v7 = vld [vmem:[%s186_s25] sm:$0x1] }
  0xd5   : > { %2286 = vmatpush.bf16.msra.mxu0 %v3810_v62 }
  0xd8   : > { %v769_v13 = vpop.f32.mrf.mxu2 }
  0xd9   : > { %2287 = vmatpush.bf16.msra.mxu0 %v3809_v63 }
  0xda   : > { %v854_v16 = vpop.f32.mrf.mxu3 }
  0xdd   : > { %2288 = vmatpush.bf16.msra.mxu0 %v3808_v54 }
  0xe1   : > { %2289 = vmatpush.bf16.msra.mxu0 %v3807_v6 }
  0xe5   : > { %2290 = vmatpush.bf16.msra.mxu0 %v3806_v11 }
  0xe9   : > { %2291 = vmatpush.bf16.msra.mxu0 %v3805_v14  ;;  %v938_v18 = vpop.f32.mrf.mxu0 }
  0xea   : > { %v942_v12 = vadd.f32 %v938_v18, %v856_v9 }
  0xeb   : > { %v1024_v19 = vpop.f32.mrf.mxu1 }
  0xec   : > { %2292 = vmatmul.bf16.vlgmr.msra.gmra.mxu0 %v2234_v17  ;;  %v1028_v20 = vadd.f32 %v1024_v19, %v942_v12 }
  0xf0   : > { %v1107_v21 = vpop.f32.mrf.mxu2 }
  0xf1   : > { %v1111_v22 = vadd.f32 %v1107_v21, %v1028_v20  ;;  %v940_v24 = vpop.f32.mrf.mxu0 }
  0xf2   : > { %v1190_v23 = vpop.f32.mrf.mxu3 }
  0xf3   : > { %v1194_v25 = vadd.f32 %v1190_v23, %v1111_v22  ;;  %v1026_v26 = vpop.f32.mrf.mxu1 }
  0xf8   : > { %v1109_v27 = vpop.f32.mrf.mxu2 }
  0xfa   : > { %v1192_v28 = vpop.f32.mrf.mxu3 }
 0x109   : > { %v1275_v29 = vpop.f32.mrf.mxu0 }
 0x10a   : > { %v1279_v30 = vadd.f32 %v1275_v29, %v1194_v25 }
 0x10b   : > { %v1361_v31 = vpop.f32.mrf.mxu1 }
 0x10c   : > { %v1365_v32 = vadd.f32 %v1361_v31, %v1279_v30 }
 0x110   : > { %v1447_v33 = vpop.f32.mrf.mxu2 }
 0x111   : > { %v1451_v34 = vadd.f32 %v1447_v33, %v1365_v32  ;;  %v1277_v36 = vpop.f32.mrf.mxu0 }
 0x112   : > { %v1530_v35 = vpop.f32.mrf.mxu3 }
 0x113   : > { %v1534_v37 = vadd.f32 %v1530_v35, %v1451_v34  ;;  %v1363_v39 = vpop.f32.mrf.mxu1 }
 0x118   : > { %v1449_v38 = vpop.f32.mrf.mxu2 }
 0x11a   : > { %v1532_v40 = vpop.f32.mrf.mxu3 }
 0x129   : > { %v1613_v41 = vpop.f32.mrf.mxu0 }
 0x12a   : > { %v1617_v52 = vadd.f32 %v1613_v41, %v1534_v37 }
 0x12b   : > { %v1698_v42 = vpop.f32.mrf.mxu1 }
 0x12c   : > { %v1702_v57 = vadd.f32 %v1698_v42, %v1617_v52 }
 0x130   : > { %v1784_v43 = vpop.f32.mrf.mxu2 }
 0x131   : > { %v1615_v45 = vpop.f32.mrf.mxu0  ;;  %v1788_v58 = vadd.f32 %v1784_v43, %v1702_v57 }
 0x132   : > { %v1870_v44 = vpop.f32.mrf.mxu3 }
 0x133   : > { %v1700_v46 = vpop.f32.mrf.mxu1  ;;  %v1874_v61 = vadd.f32 %v1870_v44, %v1788_v58 }
 0x138   : > { %v1786_v47 = vpop.f32.mrf.mxu2 }
 0x13a   : > { %v1872_v48 = vpop.f32.mrf.mxu3 }
 0x149   : > { %v1953_v49 = vpop.f32.mrf.mxu0 }
 0x14a   : > { %v1957_v62 = vadd.f32 %v1953_v49, %v1874_v61 }
 0x14b   : > { %v2036_v50 = vpop.f32.mrf.mxu1 }
 0x14c   : > { %v2040_v63 = vadd.f32 %v2036_v50, %v1957_v62 }
 0x150   : > { %v2121_v51 = vpop.f32.mrf.mxu2 }
 0x151   : > { %v1955_v55 = vpop.f32.mrf.mxu0  ;;  %v2125_v0 = vadd.f32 %v2121_v51, %v2040_v63 }
 0x152   : > { %v2207_v53 = vpop.f32.mrf.mxu3 }
 0x153   : > { %v2038_v56 = vpop.f32.mrf.mxu1  ;;  %v2211_v1 = vadd.f32 %v2207_v53, %v2125_v0 }
 0x158   : > { %v2123_v59 = vpop.f32.mrf.mxu2 }
 0x15a   : > { %v2209_v60 = vpop.f32.mrf.mxu3 }
 0x169   : > { %v2293_v2 = vpop.f32.mrf.mxu0 }
 0x16a   : > { %v2297_v54 = vadd.f32 %v2293_v2, %v2211_v1 }
 0x16c   : > { %v2299_v4 = vadd.f32 %v2298_v3, %v2297_v54 }
 0x16e   : > { %v2300_v5 = vmul.f32 0.2, %v2299_v4 }
 0x170   : > { %v2301_v6 = vmax.f32 %v2299_v4, %v2300_v5 }
 0x171   : > { %v2295_v8 = vpop.f32.mrf.mxu0 }
 0x172   : > { %v2302_v9 = vpack.c.bf16 %v2301_v6, %v2301_v6 }
 0x174   : > { %v2307_v10 = vsel %vm2305_vm2, %v2302_v9, %v2306_v7 }
 0x175   : > { %2308 = vst [vmem:[%s186_s25] sm:$0x1] %v2307_v10 }
 0x176 PF: > { %s13_s14 = sadd.s32 1, %s3860_s14   ;;  %s4591_s12 = smov %s3856_s13 }
 0x177   : > { %p10_p5 = scmp.ge.s32.totalorder %s13_s14, 4   ;;  %s4592_s13 = smov %s4594_s15 }
 0x179   :  { %12 = sbr.rel (!%p10_p5) target bundleno = 2 (0x2), region = 96 }

</bundles_post_ra>
